<compile_context>
chip_gen: v6e
topology: v6e:2x2x1
jax: 0.10.0
libtpu: 0.0.40
codegen_flags: <defaults>
</compile_context>

<pallas_src>
import functools

import numpy as np

import jax
import jax.numpy as jnp
from jax.experimental import pallas as pl
from jax.experimental.pallas import tpu as pltpu

_VMEM = functools.partial(pl.BlockSpec, memory_space=pltpu.MemorySpace.VMEM)
# Everything here is tiny; set an explicit (generation-safe) VMEM budget anyway.
_CPARAMS = pltpu.CompilerParams(vmem_limit_bytes=32 * 1024 * 1024)

_N_STAGE_REFS = 11   # w1,s1,b1,w2,s2,b2,w3,s3,b3,sd,avg per Bottleneck


# ------------------------------ Pallas kernel -------------------------------

def _bottleneck_compute(x, w1, s1, b1, w2, s2, b2, w3, s3, b3, sd_ref, avg):
    """One stride-2 ShuffleNet Bottleneck (operands already in VMEM/vregs)."""
    # conv1: grouped 1x1 conv as ONE block-diagonal matmul; the channel shuffle
    # is already folded into the weight / BN columns.  BN + ReLU fused.
    z = jnp.dot(x, w1, preferred_element_type=jnp.float32)
    z = jnp.maximum(z * s1 + b1, 0.0)
    # conv2: depthwise 3x3 stride-2 pad-1.  sd_ref[t] @ z gathers tap t of every
    # output pixel (zero padding included); scale by the per-channel tap weight.
    acc = jnp.dot(sd_ref[0], z, preferred_element_type=jnp.float32) * w2[0:1, :]
    for t in range(1, 9):
        acc = acc + (jnp.dot(sd_ref[t], z, preferred_element_type=jnp.float32)
                     * w2[t:t + 1, :])
    y = jnp.maximum(acc * s2 + b2, 0.0)
    # conv3: grouped 1x1 block-diagonal matmul + BN.  The block's final ReLU is
    # fused here (relu(cat(a, b)) == cat(relu(a), relu(b))).
    conv_out = jnp.dot(y, w3, preferred_element_type=jnp.float32)
    conv_out = jnp.maximum(conv_out * s3 + b3, 0.0)
    # shortcut: AvgPool2d(3, stride=2, padding=1), count_include_pad=True, as a
    # single pooling matmul (sum of the 9 selection matrices / 9), ReLU fused.
    short = jnp.maximum(jnp.dot(avg, x, preferred_element_type=jnp.float32), 0.0)
    return conv_out, short


def _shufflenet_kernel(*refs):
    """Entire ShuffleNet forward: stem + 3 bottlenecks + GAP + FC, one launch."""
    *in_refs, o_ref, x2_scr, x3_scr, x4_scr = refs
    scratch = (x2_scr, x3_scr, x4_scr)
    it = iter(in_refs)
    nxt = lambda: next(it)

    # ---- stem: conv1 (im2col matmul) + folded BN + ReLU + 3x3/s2 maxpool ----
    pcol, sw, ss, sb, sp = nxt(), nxt(), nxt(), nxt(), nxt()
    y = jnp.dot(pcol[...], sw[...], preferred_element_type=jnp.float32)
    y = jnp.maximum(y * ss[...] + sb[...], 0.0)          # (N*Hc*Wc, 24)
    # maxpool via 9 tap-selection matmuls; y >= 0 (post-ReLU) so the zero rows
    # produced for padded taps cannot win the max (equivalent to -inf padding).
    m = jnp.dot(sp[0], y, preferred_element_type=jnp.float32)
    for t in range(1, 9):
        m = jnp.maximum(m, jnp.dot(sp[t], y, preferred_element_type=jnp.float32))
    x = m                                                # (N*Hm*Wm, 24)

    # ---- three stride-2 Bottlenecks, intermediates kept in VMEM scratch ----
    for si in range(3):
        w1, s1, b1, w2, s2, b2, w3, s3, b3, sd, avg = (
            nxt() for _ in range(_N_STAGE_REFS))
        conv_out, short = _bottleneck_compute(
            x, w1[...], s1[...], b1[...], w2[...], s2[...], b2[...],
            w3[...], s3[...], b3[...], sd, avg[...])
        cc = conv_out.shape[1]
        buf = scratch[si]
        # torch.cat([conv3, shortcut], 1): adjacent column ranges of one slab.
        buf[:, :cc] = conv_out
        buf[:, cc:] = short
        x = buf[...]

    # ---- AdaptiveAvgPool2d(1) + flatten + Linear ----
    gap, fcw, fcb = nxt(), nxt(), nxt()
    feat = jnp.dot(gap[...], x, preferred_element_type=jnp.float32)
    o_ref[...] = (jnp.dot(feat, fcw[...], preferred_element_type=jnp.float32)
                  + fcb[...])


# ------------------------------- host glue ----------------------------------

def _im2col_3x3_s2(x_nhwc):
    """3x3 / stride-2 / pad-1 im2col of the raw network input (tiny, one-time).

    Column order is (kh, kw, cin) with cin innermost, matching the conv1 weight
    conversion in prepare_params.
    """
    n, h, w, c = x_nhwc.shape
    xp = jnp.pad(x_nhwc, ((0, 0), (1, 1), (1, 1), (0, 0)))
    ho, wo = (h - 1) // 2 + 1, (w - 1) // 2 + 1
    taps = [xp[:, di:di + 2 * ho:2, dj:dj + 2 * wo:2, :]
            for di in range(3) for dj in range(3)]
    p = jnp.stack(taps, axis=3)                       # (n, ho, wo, 9, c)
    return p.reshape(n * ho * wo, 9 * c)


def shufflenet_forward(x_nchw, params):
    x = jnp.transpose(x_nchw, (0, 2, 3, 1)).astype(jnp.float32)   # NCHW -> NHWC
    pcol = _im2col_3x3_s2(x)

    stem = params['stem']
    head = params['head']
    args = [pcol, stem['w'], stem['s'], stem['b'], stem['sp']]
    for name in ('stage2', 'stage3', 'stage4'):
        sp_ = params[name]
        args += [sp_['w1'], sp_['s1'], sp_['b1'],
                 sp_['w2'], sp_['s2'], sp_['b2'],
                 sp_['w3'], sp_['s3'], sp_['b3'],
                 sp_['sd'], sp_['avg']]
    args += [head['gap'], head['fcw'], head['fcb']]

    n = head['gap'].shape[0]
    n_cls = head['fcw'].shape[1]
    scratch_shapes = [pltpu.VMEM(shape, jnp.float32)
                      for shape in params['scratch_shapes']]

    return pl.pallas_call(
        _shufflenet_kernel,
        out_shape=jax.ShapeDtypeStruct((n, n_cls), jnp.float32),
        in_specs=[_VMEM()] * len(args),
        out_specs=_VMEM(),
        scratch_shapes=scratch_shapes,
        compiler_params=_CPARAMS,
    )(*args)


# --------------------------- parameter preparation ---------------------------

def _pool_select(n, h, w, k=3, stride=2, pad=1):
    """0/1 selection matrices: sel[t] @ x_flat gathers tap t of a k x k window
    (with zero padding) for every output pixel; x_flat rows are (n, h, w)
    row-major.  Returns (sel, ho, wo)."""
    ho = (h + 2 * pad - k) // stride + 1
    wo = (w + 2 * pad - k) // stride + 1
    sel = np.zeros((k * k, n * ho * wo, n * h * w), np.float32)
    for di in range(k):
        for dj in range(k):
            t = di * k + dj
            for b in range(n):
                for i in range(ho):
                    ii = stride * i + di - pad
                    if not 0 <= ii < h:
                        continue
                    for j in range(wo):
                        jj = stride * j + dj - pad
                        if 0 <= jj < w:
                            sel[t, (b * ho + i) * wo + j, (b * h + ii) * w + jj] = 1.0
    return sel, ho, wo


def _gap_matrix(n, ho, wo):
    g = np.zeros((n, n * ho * wo), np.float32)
    for b in range(n):
        g[b, b * ho * wo:(b + 1) * ho * wo] = 1.0 / (ho * wo)
    return g


def _block_diag_1x1(w, groups):
    """(cout, cin/groups) grouped 1x1 conv weight -> (cin, cout) block-diagonal."""
    cout, cin_g = w.shape
    cout_g = cout // groups
    bd = np.zeros((cin_g * groups, cout), np.float32)
    for g in range(groups):
        bd[g * cin_g:(g + 1) * cin_g, g * cout_g:(g + 1) * cout_g] = \
            w[g * cout_g:(g + 1) * cout_g, :].T
    return bd


def _shuffle_perm(channels, groups):
    """out-channel k of shuffle(x, groups) == in-channel (k % g)*(C//g) + k//g."""
    cg = channels // groups
    return np.array([(k % groups) * cg + k // groups for k in range(channels)])


def _fold_bn(bn, eps=1e-5):
    scale = np.asarray(bn['gamma']) / np.sqrt(np.asarray(bn['var']) + eps)
    bias = np.asarray(bn['beta']) - np.asarray(bn['mean']) * scale
    return scale.astype(np.float32), bias.astype(np.float32)


def init_raw_params(key, groups, channel_num, class_num=10):
    """Random parameters in PyTorch layouts: Conv2d (cout, cin/g, kh, kw),
    eval-mode BatchNorm (gamma, beta, running mean/var), Linear (out, in)."""
    keys = iter(jax.random.split(key, 64))

    def nrm(shape, scale=0.1):
        return scale * jax.random.normal(next(keys), shape, jnp.float32)

    def bn(c):
        return {'gamma': 1.0 + 0.05 * jax.random.normal(next(keys), (c,), jnp.float32),
                'beta': 0.05 * jax.random.normal(next(keys), (c,), jnp.float32),
                'mean': jnp.zeros((c,), jnp.float32),
                'var': jnp.ones((c,), jnp.float32)}

    raw = {'conv1_w': nrm((24, 3, 3, 3)), 'conv1_bn': bn(24)}

    def bneck(in_ch, out_ch):
        mid = out_ch // 4
        g1 = 1 if in_ch == 24 else groups
        return {'g1': g1,
                'w1': nrm((mid, in_ch // g1)), 'bn1': bn(mid),      # 1x1 grouped
                'w2': nrm((mid, 1, 3, 3)), 'bn2': bn(mid),          # depthwise 3x3
                'w3': nrm((out_ch, mid // groups)), 'bn3': bn(out_ch)}  # 1x1 grouped

    raw['stage2'] = bneck(24, channel_num[0] - 24)
    raw['stage3'] = bneck(channel_num[0], channel_num[1] - channel_num[0])
    raw['stage4'] = bneck(channel_num[1], channel_num[2] - channel_num[1])
    raw['fc_w'] = nrm((class_num, channel_num[2]))
    raw['fc_b'] = nrm((class_num,))
    return raw


def prepare_params(raw, groups, input_shape):
    """Fold BN, build block-diagonal grouped-conv weights, fold the channel
    shuffle into conv1, and precompute tap-selection / pooling / GAP matrices
    for the given input geometry."""
    n, _, h, w = input_shape
    conv_sz = lambda s: (s + 2 - 3) // 2 + 1
    hp, wp = conv_sz(h), conv_sz(w)          # after conv1 (stride 2)
    hm, wm = conv_sz(hp), conv_sz(wp)        # after maxpool (stride 2)

    params = {}

    # stem: conv1 weight (cout, cin, kh, kw) -> im2col layout (kh*kw*cin, cout)
    # with column order (kh, kw, cin) matching _im2col_3x3_s2.
    w_im = np.asarray(raw['conv1_w']).transpose(2, 3, 1, 0).reshape(27, -1)
    s, b = _fold_bn(raw['conv1_bn'])
    sp, _, _ = _pool_select(n, hp, wp)
    params['stem'] = {'w': jnp.asarray(w_im),
                      's': jnp.asarray(s[None, :]), 'b': jnp.asarray(b[None, :]),
                      'sp': jnp.asarray(sp)}

    hh, ww = hm, wm
    scratch_shapes = []
    for name in ('stage2', 'stage3', 'stage4'):
        rp = raw[name]
        g1 = rp['g1']
        w1 = _block_diag_1x1(np.asarray(rp['w1']), g1)           # (cin, mid)
        s1, b1 = _fold_bn(rp['bn1'])
        mid = w1.shape[1]
        perm = _shuffle_perm(mid, g1)                            # fold shuffle
        w1, s1, b1 = w1[:, perm], s1[perm], b1[perm]
        w2 = np.asarray(rp['w2']).reshape(mid, 9).T              # (9, mid) taps
        s2, b2 = _fold_bn(rp['bn2'])
        w3 = _block_diag_1x1(np.asarray(rp['w3']), groups)       # (mid, cout)
        s3, b3 = _fold_bn(rp['bn3'])
        sd, ho, wo = _pool_select(n, hh, ww)
        avg = sd.sum(axis=0) / 9.0     # AvgPool2d(3,2,1), count_include_pad=True
        cin = w1.shape[0]
        cout_conv = w3.shape[1]
        scratch_shapes.append((sd.shape[1], cout_conv + cin))    # stage out slab
        params[name] = {
            'w1': jnp.asarray(w1), 's1': jnp.asarray(s1[None, :]), 'b1': jnp.asarray(b1[None, :]),
            'w2': jnp.asarray(w2), 's2': jnp.asarray(s2[None, :]), 'b2': jnp.asarray(b2[None, :]),
            'w3': jnp.asarray(w3), 's3': jnp.asarray(s3[None, :]), 'b3': jnp.asarray(b3[None, :]),
            'sd': jnp.asarray(sd), 'avg': jnp.asarray(avg)}
        hh, ww = ho, wo

    # head: GAP averaging matrix; FC weight already matches the torch.cat
    # channel order of the stage4 output slab (conv3 | shortcut).
    fc_w = np.asarray(raw['fc_w']).T                             # (in_feat, class)
    params['head'] = {'gap': jnp.asarray(_gap_matrix(n, hh, ww)),
                      'fcw': jnp.asarray(fc_w),
                      'fcb': jnp.asarray(np.asarray(raw['fc_b'])[None, :])}
    params['scratch_shapes'] = tuple(scratch_shapes)
    return params


# ---------------------------------- main -------------------------------------

if __name__ == "__main__":
    groups = 3
    channel_num = [48, 96, 192]          # small ShuffleNet(g=3)-style widths
    class_num = 10

    key = jax.random.PRNGKey(0)
    pkey, xkey = jax.random.split(key)
    x = jax.random.normal(xkey, (2, 3, 32, 32), jnp.float32)   # PyTorch NCHW input

    raw = init_raw_params(pkey, groups, channel_num, class_num)
    params = prepare_params(raw, groups, x.shape)

    fwd = jax.jit(lambda inp: shufflenet_forward(inp, params))
    out = fwd(x)
    jax.block_until_ready(out)

    assert out.shape == (2, class_num), out.shape
    assert bool(jnp.all(jnp.isfinite(out)))
    print("KERNEL_OK")
</pallas_src>

<mosaic_0001>
module attributes {stable_mosaic.version = 11 : i64} {
  func.func @_shufflenet_kernel(%arg0: memref<512x27xf32, #tpu.memory_space<vmem>>, %arg1: memref<27x24xf32, #tpu.memory_space<vmem>>, %arg2: memref<1x24xf32, #tpu.memory_space<vmem>>, %arg3: memref<1x24xf32, #tpu.memory_space<vmem>>, %arg4: memref<9x128x512xf32, #tpu.memory_space<vmem>>, %arg5: memref<24x6xf32, #tpu.memory_space<vmem>>, %arg6: memref<1x6xf32, #tpu.memory_space<vmem>>, %arg7: memref<1x6xf32, #tpu.memory_space<vmem>>, %arg8: memref<9x6xf32, #tpu.memory_space<vmem>>, %arg9: memref<1x6xf32, #tpu.memory_space<vmem>>, %arg10: memref<1x6xf32, #tpu.memory_space<vmem>>, %arg11: memref<6x24xf32, #tpu.memory_space<vmem>>, %arg12: memref<1x24xf32, #tpu.memory_space<vmem>>, %arg13: memref<1x24xf32, #tpu.memory_space<vmem>>, %arg14: memref<9x32x128xf32, #tpu.memory_space<vmem>>, %arg15: memref<32x128xf32, #tpu.memory_space<vmem>>, %arg16: memref<48x12xf32, #tpu.memory_space<vmem>>, %arg17: memref<1x12xf32, #tpu.memory_space<vmem>>, %arg18: memref<1x12xf32, #tpu.memory_space<vmem>>, %arg19: memref<9x12xf32, #tpu.memory_space<vmem>>, %arg20: memref<1x12xf32, #tpu.memory_space<vmem>>, %arg21: memref<1x12xf32, #tpu.memory_space<vmem>>, %arg22: memref<12x48xf32, #tpu.memory_space<vmem>>, %arg23: memref<1x48xf32, #tpu.memory_space<vmem>>, %arg24: memref<1x48xf32, #tpu.memory_space<vmem>>, %arg25: memref<9x8x32xf32, #tpu.memory_space<vmem>>, %arg26: memref<8x32xf32, #tpu.memory_space<vmem>>, %arg27: memref<96x24xf32, #tpu.memory_space<vmem>>, %arg28: memref<1x24xf32, #tpu.memory_space<vmem>>, %arg29: memref<1x24xf32, #tpu.memory_space<vmem>>, %arg30: memref<9x24xf32, #tpu.memory_space<vmem>>, %arg31: memref<1x24xf32, #tpu.memory_space<vmem>>, %arg32: memref<1x24xf32, #tpu.memory_space<vmem>>, %arg33: memref<24x96xf32, #tpu.memory_space<vmem>>, %arg34: memref<1x96xf32, #tpu.memory_space<vmem>>, %arg35: memref<1x96xf32, #tpu.memory_space<vmem>>, %arg36: memref<9x2x8xf32, #tpu.memory_space<vmem>>, %arg37: memref<2x8xf32, #tpu.memory_space<vmem>>, %arg38: memref<2x2xf32, #tpu.memory_space<vmem>>, %arg39: memref<192x10xf32, #tpu.memory_space<vmem>>, %arg40: memref<1x10xf32, #tpu.memory_space<vmem>>, %arg41: memref<2x10xf32, #tpu.memory_space<vmem>>, %arg42: memref<32x48xf32, #tpu.memory_space<vmem>>, %arg43: memref<8x96xf32, #tpu.memory_space<vmem>>, %arg44: memref<2x192xf32, #tpu.memory_space<vmem>>) attributes {dimension_semantics = [], scalar_prefetch = 0 : i64, scratch_operands = 3 : i64, tpu.core_type = #tpu.core_type<tc>} {
    %c0 = arith.constant 0 : index
    %c0_0 = arith.constant 0 : index
    %0 = vector.load %arg0[%c0, %c0_0] : memref<512x27xf32, #tpu.memory_space<vmem>>, vector<512x27xf32>
    %c0_1 = arith.constant 0 : index
    %c0_2 = arith.constant 0 : index
    %1 = vector.load %arg1[%c0_1, %c0_2] : memref<27x24xf32, #tpu.memory_space<vmem>>, vector<27x24xf32>
    %cst = arith.constant dense<0.000000e+00> : vector<512x24xf32>
    %2 = tpu.matmul %0, %1, %cst {dimension_numbers = #tpu.dot_dimension_numbers<[1], [0], [0], [1], [0, 0, 1, 1], [], []>} : vector<512x27xf32>, vector<27x24xf32>, vector<512x24xf32> -> vector<512x24xf32>
    %c0_3 = arith.constant 0 : index
    %c0_4 = arith.constant 0 : index
    %3 = vector.load %arg2[%c0_3, %c0_4] : memref<1x24xf32, #tpu.memory_space<vmem>>, vector<1x24xf32>
    %4 = vector.broadcast %3 : vector<1x24xf32> to vector<512x24xf32>
    %5 = arith.mulf %2, %4 : vector<512x24xf32>
    %c0_5 = arith.constant 0 : index
    %c0_6 = arith.constant 0 : index
    %6 = vector.load %arg3[%c0_5, %c0_6] : memref<1x24xf32, #tpu.memory_space<vmem>>, vector<1x24xf32>
    %7 = vector.broadcast %6 : vector<1x24xf32> to vector<512x24xf32>
    %8 = arith.addf %5, %7 : vector<512x24xf32>
    %cst_7 = arith.constant 0.000000e+00 : f32
    %9 = vector.broadcast %cst_7 : f32 to vector<512x24xf32>
    %10 = arith.maximumf %8, %9 : vector<512x24xf32>
    %c0_8 = arith.constant 0 : index
    %c0_9 = arith.constant 0 : index
    %c0_10 = arith.constant 0 : index
    %11 = vector.load %arg4[%c0_8, %c0_9, %c0_10] : memref<9x128x512xf32, #tpu.memory_space<vmem>>, vector<1x128x512xf32>
    %12 = vector.shape_cast %11 : vector<1x128x512xf32> to vector<128x512xf32>
    %cst_11 = arith.constant dense<0.000000e+00> : vector<128x24xf32>
    %13 = tpu.matmul %12, %10, %cst_11 {dimension_numbers = #tpu.dot_dimension_numbers<[1], [0], [0], [1], [0, 0, 1, 1], [], []>} : vector<128x512xf32>, vector<512x24xf32>, vector<128x24xf32> -> vector<128x24xf32>
    %c1 = arith.constant 1 : index
    %c0_12 = arith.constant 0 : index
    %c0_13 = arith.constant 0 : index
    %14 = vector.load %arg4[%c1, %c0_12, %c0_13] : memref<9x128x512xf32, #tpu.memory_space<vmem>>, vector<1x128x512xf32>
    %15 = vector.shape_cast %14 : vector<1x128x512xf32> to vector<128x512xf32>
    %cst_14 = arith.constant dense<0.000000e+00> : vector<128x24xf32>
    %16 = tpu.matmul %15, %10, %cst_14 {dimension_numbers = #tpu.dot_dimension_numbers<[1], [0], [0], [1], [0, 0, 1, 1], [], []>} : vector<128x512xf32>, vector<512x24xf32>, vector<128x24xf32> -> vector<128x24xf32>
    %17 = arith.maximumf %13, %16 : vector<128x24xf32>
    %c2 = arith.constant 2 : index
    %c0_15 = arith.constant 0 : index
    %c0_16 = arith.constant 0 : index
    %18 = vector.load %arg4[%c2, %c0_15, %c0_16] : memref<9x128x512xf32, #tpu.memory_space<vmem>>, vector<1x128x512xf32>
    %19 = vector.shape_cast %18 : vector<1x128x512xf32> to vector<128x512xf32>
    %cst_17 = arith.constant dense<0.000000e+00> : vector<128x24xf32>
    %20 = tpu.matmul %19, %10, %cst_17 {dimension_numbers = #tpu.dot_dimension_numbers<[1], [0], [0], [1], [0, 0, 1, 1], [], []>} : vector<128x512xf32>, vector<512x24xf32>, vector<128x24xf32> -> vector<128x24xf32>
    %21 = arith.maximumf %17, %20 : vector<128x24xf32>
    %c3 = arith.constant 3 : index
    %c0_18 = arith.constant 0 : index
    %c0_19 = arith.constant 0 : index
    %22 = vector.load %arg4[%c3, %c0_18, %c0_19] : memref<9x128x512xf32, #tpu.memory_space<vmem>>, vector<1x128x512xf32>
    %23 = vector.shape_cast %22 : vector<1x128x512xf32> to vector<128x512xf32>
    %cst_20 = arith.constant dense<0.000000e+00> : vector<128x24xf32>
    %24 = tpu.matmul %23, %10, %cst_20 {dimension_numbers = #tpu.dot_dimension_numbers<[1], [0], [0], [1], [0, 0, 1, 1], [], []>} : vector<128x512xf32>, vector<512x24xf32>, vector<128x24xf32> -> vector<128x24xf32>
    %25 = arith.maximumf %21, %24 : vector<128x24xf32>
    %c4 = arith.constant 4 : index
    %c0_21 = arith.constant 0 : index
    %c0_22 = arith.constant 0 : index
    %26 = vector.load %arg4[%c4, %c0_21, %c0_22] : memref<9x128x512xf32, #tpu.memory_space<vmem>>, vector<1x128x512xf32>
    %27 = vector.shape_cast %26 : vector<1x128x512xf32> to vector<128x512xf32>
    %cst_23 = arith.constant dense<0.000000e+00> : vector<128x24xf32>
    %28 = tpu.matmul %27, %10, %cst_23 {dimension_numbers = #tpu.dot_dimension_numbers<[1], [0], [0], [1], [0, 0, 1, 1], [], []>} : vector<128x512xf32>, vector<512x24xf32>, vector<128x24xf32> -> vector<128x24xf32>
    %29 = arith.maximumf %25, %28 : vector<128x24xf32>
    %c5 = arith.constant 5 : index
    %c0_24 = arith.constant 0 : index
    %c0_25 = arith.constant 0 : index
    %30 = vector.load %arg4[%c5, %c0_24, %c0_25] : memref<9x128x512xf32, #tpu.memory_space<vmem>>, vector<1x128x512xf32>
    %31 = vector.shape_cast %30 : vector<1x128x512xf32> to vector<128x512xf32>
    %cst_26 = arith.constant dense<0.000000e+00> : vector<128x24xf32>
    %32 = tpu.matmul %31, %10, %cst_26 {dimension_numbers = #tpu.dot_dimension_numbers<[1], [0], [0], [1], [0, 0, 1, 1], [], []>} : vector<128x512xf32>, vector<512x24xf32>, vector<128x24xf32> -> vector<128x24xf32>
    %33 = arith.maximumf %29, %32 : vector<128x24xf32>
    %c6 = arith.constant 6 : index
    %c0_27 = arith.constant 0 : index
    %c0_28 = arith.constant 0 : index
    %34 = vector.load %arg4[%c6, %c0_27, %c0_28] : memref<9x128x512xf32, #tpu.memory_space<vmem>>, vector<1x128x512xf32>
    %35 = vector.shape_cast %34 : vector<1x128x512xf32> to vector<128x512xf32>
    %cst_29 = arith.constant dense<0.000000e+00> : vector<128x24xf32>
    %36 = tpu.matmul %35, %10, %cst_29 {dimension_numbers = #tpu.dot_dimension_numbers<[1], [0], [0], [1], [0, 0, 1, 1], [], []>} : vector<128x512xf32>, vector<512x24xf32>, vector<128x24xf32> -> vector<128x24xf32>
    %37 = arith.maximumf %33, %36 : vector<128x24xf32>
    %c7 = arith.constant 7 : index
    %c0_30 = arith.constant 0 : index
    %c0_31 = arith.constant 0 : index
    %38 = vector.load %arg4[%c7, %c0_30, %c0_31] : memref<9x128x512xf32, #tpu.memory_space<vmem>>, vector<1x128x512xf32>
    %39 = vector.shape_cast %38 : vector<1x128x512xf32> to vector<128x512xf32>
    %cst_32 = arith.constant dense<0.000000e+00> : vector<128x24xf32>
    %40 = tpu.matmul %39, %10, %cst_32 {dimension_numbers = #tpu.dot_dimension_numbers<[1], [0], [0], [1], [0, 0, 1, 1], [], []>} : vector<128x512xf32>, vector<512x24xf32>, vector<128x24xf32> -> vector<128x24xf32>
    %41 = arith.maximumf %37, %40 : vector<128x24xf32>
    %c8 = arith.constant 8 : index
    %c0_33 = arith.constant 0 : index
    %c0_34 = arith.constant 0 : index
    %42 = vector.load %arg4[%c8, %c0_33, %c0_34] : memref<9x128x512xf32, #tpu.memory_space<vmem>>, vector<1x128x512xf32>
    %43 = vector.shape_cast %42 : vector<1x128x512xf32> to vector<128x512xf32>
    %cst_35 = arith.constant dense<0.000000e+00> : vector<128x24xf32>
    %44 = tpu.matmul %43, %10, %cst_35 {dimension_numbers = #tpu.dot_dimension_numbers<[1], [0], [0], [1], [0, 0, 1, 1], [], []>} : vector<128x512xf32>, vector<512x24xf32>, vector<128x24xf32> -> vector<128x24xf32>
    %45 = arith.maximumf %41, %44 : vector<128x24xf32>
    %c0_36 = arith.constant 0 : index
    %c0_37 = arith.constant 0 : index
    %46 = vector.load %arg5[%c0_36, %c0_37] : memref<24x6xf32, #tpu.memory_space<vmem>>, vector<24x6xf32>
    %c0_38 = arith.constant 0 : index
    %c0_39 = arith.constant 0 : index
    %47 = vector.load %arg6[%c0_38, %c0_39] : memref<1x6xf32, #tpu.memory_space<vmem>>, vector<1x6xf32>
    %c0_40 = arith.constant 0 : index
    %c0_41 = arith.constant 0 : index
    %48 = vector.load %arg7[%c0_40, %c0_41] : memref<1x6xf32, #tpu.memory_space<vmem>>, vector<1x6xf32>
    %c0_42 = arith.constant 0 : index
    %c0_43 = arith.constant 0 : index
    %49 = vector.load %arg8[%c0_42, %c0_43] : memref<9x6xf32, #tpu.memory_space<vmem>>, vector<9x6xf32>
    %c0_44 = arith.constant 0 : index
    %c0_45 = arith.constant 0 : index
    %50 = vector.load %arg9[%c0_44, %c0_45] : memref<1x6xf32, #tpu.memory_space<vmem>>, vector<1x6xf32>
    %c0_46 = arith.constant 0 : index
    %c0_47 = arith.constant 0 : index
    %51 = vector.load %arg10[%c0_46, %c0_47] : memref<1x6xf32, #tpu.memory_space<vmem>>, vector<1x6xf32>
    %c0_48 = arith.constant 0 : index
    %c0_49 = arith.constant 0 : index
    %52 = vector.load %arg11[%c0_48, %c0_49] : memref<6x24xf32, #tpu.memory_space<vmem>>, vector<6x24xf32>
    %c0_50 = arith.constant 0 : index
    %c0_51 = arith.constant 0 : index
    %53 = vector.load %arg12[%c0_50, %c0_51] : memref<1x24xf32, #tpu.memory_space<vmem>>, vector<1x24xf32>
    %c0_52 = arith.constant 0 : index
    %c0_53 = arith.constant 0 : index
    %54 = vector.load %arg13[%c0_52, %c0_53] : memref<1x24xf32, #tpu.memory_space<vmem>>, vector<1x24xf32>
    %c0_54 = arith.constant 0 : index
    %c0_55 = arith.constant 0 : index
    %55 = vector.load %arg15[%c0_54, %c0_55] : memref<32x128xf32, #tpu.memory_space<vmem>>, vector<32x128xf32>
    %cst_56 = arith.constant dense<0.000000e+00> : vector<128x6xf32>
    %56 = tpu.matmul %45, %46, %cst_56 {dimension_numbers = #tpu.dot_dimension_numbers<[1], [0], [0], [1], [0, 0, 1, 1], [], []>} : vector<128x24xf32>, vector<24x6xf32>, vector<128x6xf32> -> vector<128x6xf32>
    %57 = vector.broadcast %47 : vector<1x6xf32> to vector<128x6xf32>
    %58 = arith.mulf %56, %57 : vector<128x6xf32>
    %59 = vector.broadcast %48 : vector<1x6xf32> to vector<128x6xf32>
    %60 = arith.addf %58, %59 : vector<128x6xf32>
    %cst_57 = arith.constant 0.000000e+00 : f32
    %61 = vector.broadcast %cst_57 : f32 to vector<128x6xf32>
    %62 = arith.maximumf %60, %61 : vector<128x6xf32>
    %c0_58 = arith.constant 0 : index
    %c0_59 = arith.constant 0 : index
    %c0_60 = arith.constant 0 : index
    %63 = vector.load %arg14[%c0_58, %c0_59, %c0_60] : memref<9x32x128xf32, #tpu.memory_space<vmem>>, vector<1x32x128xf32>
    %64 = vector.shape_cast %63 : vector<1x32x128xf32> to vector<32x128xf32>
    %cst_61 = arith.constant dense<0.000000e+00> : vector<32x6xf32>
    %65 = tpu.matmul %64, %62, %cst_61 {dimension_numbers = #tpu.dot_dimension_numbers<[1], [0], [0], [1], [0, 0, 1, 1], [], []>} : vector<32x128xf32>, vector<128x6xf32>, vector<32x6xf32> -> vector<32x6xf32>
    %66 = vector.extract_strided_slice %49 {offsets = [0, 0], sizes = [1, 6], strides = [1, 1]} : vector<9x6xf32> to vector<1x6xf32>
    %67 = vector.broadcast %66 : vector<1x6xf32> to vector<32x6xf32>
    %68 = arith.mulf %65, %67 : vector<32x6xf32>
    %c1_62 = arith.constant 1 : index
    %c0_63 = arith.constant 0 : index
    %c0_64 = arith.constant 0 : index
    %69 = vector.load %arg14[%c1_62, %c0_63, %c0_64] : memref<9x32x128xf32, #tpu.memory_space<vmem>>, vector<1x32x128xf32>
    %70 = vector.shape_cast %69 : vector<1x32x128xf32> to vector<32x128xf32>
    %cst_65 = arith.constant dense<0.000000e+00> : vector<32x6xf32>
    %71 = tpu.matmul %70, %62, %cst_65 {dimension_numbers = #tpu.dot_dimension_numbers<[1], [0], [0], [1], [0, 0, 1, 1], [], []>} : vector<32x128xf32>, vector<128x6xf32>, vector<32x6xf32> -> vector<32x6xf32>
    %72 = vector.extract_strided_slice %49 {offsets = [1, 0], sizes = [1, 6], strides = [1, 1]} : vector<9x6xf32> to vector<1x6xf32>
    %73 = vector.broadcast %72 : vector<1x6xf32> to vector<32x6xf32>
    %74 = arith.mulf %71, %73 : vector<32x6xf32>
    %75 = arith.addf %68, %74 : vector<32x6xf32>
    %c2_66 = arith.constant 2 : index
    %c0_67 = arith.constant 0 : index
    %c0_68 = arith.constant 0 : index
    %76 = vector.load %arg14[%c2_66, %c0_67, %c0_68] : memref<9x32x128xf32, #tpu.memory_space<vmem>>, vector<1x32x128xf32>
    %77 = vector.shape_cast %76 : vector<1x32x128xf32> to vector<32x128xf32>
    %cst_69 = arith.constant dense<0.000000e+00> : vector<32x6xf32>
    %78 = tpu.matmul %77, %62, %cst_69 {dimension_numbers = #tpu.dot_dimension_numbers<[1], [0], [0], [1], [0, 0, 1, 1], [], []>} : vector<32x128xf32>, vector<128x6xf32>, vector<32x6xf32> -> vector<32x6xf32>
    %79 = vector.extract_strided_slice %49 {offsets = [2, 0], sizes = [1, 6], strides = [1, 1]} : vector<9x6xf32> to vector<1x6xf32>
    %80 = vector.broadcast %79 : vector<1x6xf32> to vector<32x6xf32>
    %81 = arith.mulf %78, %80 : vector<32x6xf32>
    %82 = arith.addf %75, %81 : vector<32x6xf32>
    %c3_70 = arith.constant 3 : index
    %c0_71 = arith.constant 0 : index
    %c0_72 = arith.constant 0 : index
    %83 = vector.load %arg14[%c3_70, %c0_71, %c0_72] : memref<9x32x128xf32, #tpu.memory_space<vmem>>, vector<1x32x128xf32>
    %84 = vector.shape_cast %83 : vector<1x32x128xf32> to vector<32x128xf32>
    %cst_73 = arith.constant dense<0.000000e+00> : vector<32x6xf32>
    %85 = tpu.matmul %84, %62, %cst_73 {dimension_numbers = #tpu.dot_dimension_numbers<[1], [0], [0], [1], [0, 0, 1, 1], [], []>} : vector<32x128xf32>, vector<128x6xf32>, vector<32x6xf32> -> vector<32x6xf32>
    %86 = vector.extract_strided_slice %49 {offsets = [3, 0], sizes = [1, 6], strides = [1, 1]} : vector<9x6xf32> to vector<1x6xf32>
    %87 = vector.broadcast %86 : vector<1x6xf32> to vector<32x6xf32>
    %88 = arith.mulf %85, %87 : vector<32x6xf32>
    %89 = arith.addf %82, %88 : vector<32x6xf32>
    %c4_74 = arith.constant 4 : index
    %c0_75 = arith.constant 0 : index
    %c0_76 = arith.constant 0 : index
    %90 = vector.load %arg14[%c4_74, %c0_75, %c0_76] : memref<9x32x128xf32, #tpu.memory_space<vmem>>, vector<1x32x128xf32>
    %91 = vector.shape_cast %90 : vector<1x32x128xf32> to vector<32x128xf32>
    %cst_77 = arith.constant dense<0.000000e+00> : vector<32x6xf32>
    %92 = tpu.matmul %91, %62, %cst_77 {dimension_numbers = #tpu.dot_dimension_numbers<[1], [0], [0], [1], [0, 0, 1, 1], [], []>} : vector<32x128xf32>, vector<128x6xf32>, vector<32x6xf32> -> vector<32x6xf32>
    %93 = vector.extract_strided_slice %49 {offsets = [4, 0], sizes = [1, 6], strides = [1, 1]} : vector<9x6xf32> to vector<1x6xf32>
    %94 = vector.broadcast %93 : vector<1x6xf32> to vector<32x6xf32>
    %95 = arith.mulf %92, %94 : vector<32x6xf32>
    %96 = arith.addf %89, %95 : vector<32x6xf32>
    %c5_78 = arith.constant 5 : index
    %c0_79 = arith.constant 0 : index
    %c0_80 = arith.constant 0 : index
    %97 = vector.load %arg14[%c5_78, %c0_79, %c0_80] : memref<9x32x128xf32, #tpu.memory_space<vmem>>, vector<1x32x128xf32>
    %98 = vector.shape_cast %97 : vector<1x32x128xf32> to vector<32x128xf32>
    %cst_81 = arith.constant dense<0.000000e+00> : vector<32x6xf32>
    %99 = tpu.matmul %98, %62, %cst_81 {dimension_numbers = #tpu.dot_dimension_numbers<[1], [0], [0], [1], [0, 0, 1, 1], [], []>} : vector<32x128xf32>, vector<128x6xf32>, vector<32x6xf32> -> vector<32x6xf32>
    %100 = vector.extract_strided_slice %49 {offsets = [5, 0], sizes = [1, 6], strides = [1, 1]} : vector<9x6xf32> to vector<1x6xf32>
    %101 = vector.broadcast %100 : vector<1x6xf32> to vector<32x6xf32>
    %102 = arith.mulf %99, %101 : vector<32x6xf32>
    %103 = arith.addf %96, %102 : vector<32x6xf32>
    %c6_82 = arith.constant 6 : index
    %c0_83 = arith.constant 0 : index
    %c0_84 = arith.constant 0 : index
    %104 = vector.load %arg14[%c6_82, %c0_83, %c0_84] : memref<9x32x128xf32, #tpu.memory_space<vmem>>, vector<1x32x128xf32>
    %105 = vector.shape_cast %104 : vector<1x32x128xf32> to vector<32x128xf32>
    %cst_85 = arith.constant dense<0.000000e+00> : vector<32x6xf32>
    %106 = tpu.matmul %105, %62, %cst_85 {dimension_numbers = #tpu.dot_dimension_numbers<[1], [0], [0], [1], [0, 0, 1, 1], [], []>} : vector<32x128xf32>, vector<128x6xf32>, vector<32x6xf32> -> vector<32x6xf32>
    %107 = vector.extract_strided_slice %49 {offsets = [6, 0], sizes = [1, 6], strides = [1, 1]} : vector<9x6xf32> to vector<1x6xf32>
    %108 = vector.broadcast %107 : vector<1x6xf32> to vector<32x6xf32>
    %109 = arith.mulf %106, %108 : vector<32x6xf32>
    %110 = arith.addf %103, %109 : vector<32x6xf32>
    %c7_86 = arith.constant 7 : index
    %c0_87 = arith.constant 0 : index
    %c0_88 = arith.constant 0 : index
    %111 = vector.load %arg14[%c7_86, %c0_87, %c0_88] : memref<9x32x128xf32, #tpu.memory_space<vmem>>, vector<1x32x128xf32>
    %112 = vector.shape_cast %111 : vector<1x32x128xf32> to vector<32x128xf32>
    %cst_89 = arith.constant dense<0.000000e+00> : vector<32x6xf32>
    %113 = tpu.matmul %112, %62, %cst_89 {dimension_numbers = #tpu.dot_dimension_numbers<[1], [0], [0], [1], [0, 0, 1, 1], [], []>} : vector<32x128xf32>, vector<128x6xf32>, vector<32x6xf32> -> vector<32x6xf32>
    %114 = vector.extract_strided_slice %49 {offsets = [7, 0], sizes = [1, 6], strides = [1, 1]} : vector<9x6xf32> to vector<1x6xf32>
    %115 = vector.broadcast %114 : vector<1x6xf32> to vector<32x6xf32>
    %116 = arith.mulf %113, %115 : vector<32x6xf32>
    %117 = arith.addf %110, %116 : vector<32x6xf32>
    %c8_90 = arith.constant 8 : index
    %c0_91 = arith.constant 0 : index
    %c0_92 = arith.constant 0 : index
    %118 = vector.load %arg14[%c8_90, %c0_91, %c0_92] : memref<9x32x128xf32, #tpu.memory_space<vmem>>, vector<1x32x128xf32>
    %119 = vector.shape_cast %118 : vector<1x32x128xf32> to vector<32x128xf32>
    %cst_93 = arith.constant dense<0.000000e+00> : vector<32x6xf32>
    %120 = tpu.matmul %119, %62, %cst_93 {dimension_numbers = #tpu.dot_dimension_numbers<[1], [0], [0], [1], [0, 0, 1, 1], [], []>} : vector<32x128xf32>, vector<128x6xf32>, vector<32x6xf32> -> vector<32x6xf32>
    %121 = vector.extract_strided_slice %49 {offsets = [8, 0], sizes = [1, 6], strides = [1, 1]} : vector<9x6xf32> to vector<1x6xf32>
    %122 = vector.broadcast %121 : vector<1x6xf32> to vector<32x6xf32>
    %123 = arith.mulf %120, %122 : vector<32x6xf32>
    %124 = arith.addf %117, %123 : vector<32x6xf32>
    %125 = vector.broadcast %50 : vector<1x6xf32> to vector<32x6xf32>
    %126 = arith.mulf %124, %125 : vector<32x6xf32>
    %127 = vector.broadcast %51 : vector<1x6xf32> to vector<32x6xf32>
    %128 = arith.addf %126, %127 : vector<32x6xf32>
    %cst_94 = arith.constant 0.000000e+00 : f32
    %129 = vector.broadcast %cst_94 : f32 to vector<32x6xf32>
    %130 = arith.maximumf %128, %129 : vector<32x6xf32>
    %cst_95 = arith.constant dense<0.000000e+00> : vector<32x24xf32>
    %131 = tpu.matmul %130, %52, %cst_95 {dimension_numbers = #tpu.dot_dimension_numbers<[1], [0], [0], [1], [0, 0, 1, 1], [], []>} : vector<32x6xf32>, vector<6x24xf32>, vector<32x24xf32> -> vector<32x24xf32>
    %132 = vector.broadcast %53 : vector<1x24xf32> to vector<32x24xf32>
    %133 = arith.mulf %131, %132 : vector<32x24xf32>
    %134 = vector.broadcast %54 : vector<1x24xf32> to vector<32x24xf32>
    %135 = arith.addf %133, %134 : vector<32x24xf32>
    %cst_96 = arith.constant 0.000000e+00 : f32
    %136 = vector.broadcast %cst_96 : f32 to vector<32x24xf32>
    %137 = arith.maximumf %135, %136 : vector<32x24xf32>
    %cst_97 = arith.constant dense<0.000000e+00> : vector<32x24xf32>
    %138 = tpu.matmul %55, %45, %cst_97 {dimension_numbers = #tpu.dot_dimension_numbers<[1], [0], [0], [1], [0, 0, 1, 1], [], []>} : vector<32x128xf32>, vector<128x24xf32>, vector<32x24xf32> -> vector<32x24xf32>
    %cst_98 = arith.constant 0.000000e+00 : f32
    %139 = vector.broadcast %cst_98 : f32 to vector<32x24xf32>
    %140 = arith.maximumf %138, %139 : vector<32x24xf32>
    %c0_99 = arith.constant 0 : index
    %c0_100 = arith.constant 0 : index
    %141 = vector.load %arg42[%c0_99, %c0_100] : memref<32x48xf32, #tpu.memory_space<vmem>>, vector<32x24xf32>
    tpu.vector_store %arg42[%c0_99, %c0_100], %137 {strides = array<i32>} : memref<32x48xf32, #tpu.memory_space<vmem>>, vector<32x24xf32>,
    %c0_101 = arith.constant 0 : index
    %c24 = arith.constant 24 : index
    %142 = vector.load %arg42[%c0_101, %c24] : memref<32x48xf32, #tpu.memory_space<vmem>>, vector<32x24xf32>
    tpu.vector_store %arg42[%c0_101, %c24], %140 {strides = array<i32>} : memref<32x48xf32, #tpu.memory_space<vmem>>, vector<32x24xf32>,
    %c0_102 = arith.constant 0 : index
    %c0_103 = arith.constant 0 : index
    %143 = vector.load %arg42[%c0_102, %c0_103] : memref<32x48xf32, #tpu.memory_space<vmem>>, vector<32x48xf32>
    %c0_104 = arith.constant 0 : index
    %c0_105 = arith.constant 0 : index
    %144 = vector.load %arg16[%c0_104, %c0_105] : memref<48x12xf32, #tpu.memory_space<vmem>>, vector<48x12xf32>
    %c0_106 = arith.constant 0 : index
    %c0_107 = arith.constant 0 : index
    %145 = vector.load %arg17[%c0_106, %c0_107] : memref<1x12xf32, #tpu.memory_space<vmem>>, vector<1x12xf32>
    %c0_108 = arith.constant 0 : index
    %c0_109 = arith.constant 0 : index
    %146 = vector.load %arg18[%c0_108, %c0_109] : memref<1x12xf32, #tpu.memory_space<vmem>>, vector<1x12xf32>
    %c0_110 = arith.constant 0 : index
    %c0_111 = arith.constant 0 : index
    %147 = vector.load %arg19[%c0_110, %c0_111] : memref<9x12xf32, #tpu.memory_space<vmem>>, vector<9x12xf32>
    %c0_112 = arith.constant 0 : index
    %c0_113 = arith.constant 0 : index
    %148 = vector.load %arg20[%c0_112, %c0_113] : memref<1x12xf32, #tpu.memory_space<vmem>>, vector<1x12xf32>
    %c0_114 = arith.constant 0 : index
    %c0_115 = arith.constant 0 : index
    %149 = vector.load %arg21[%c0_114, %c0_115] : memref<1x12xf32, #tpu.memory_space<vmem>>, vector<1x12xf32>
    %c0_116 = arith.constant 0 : index
    %c0_117 = arith.constant 0 : index
    %150 = vector.load %arg22[%c0_116, %c0_117] : memref<12x48xf32, #tpu.memory_space<vmem>>, vector<12x48xf32>
    %c0_118 = arith.constant 0 : index
    %c0_119 = arith.constant 0 : index
    %151 = vector.load %arg23[%c0_118, %c0_119] : memref<1x48xf32, #tpu.memory_space<vmem>>, vector<1x48xf32>
    %c0_120 = arith.constant 0 : index
    %c0_121 = arith.constant 0 : index
    %152 = vector.load %arg24[%c0_120, %c0_121] : memref<1x48xf32, #tpu.memory_space<vmem>>, vector<1x48xf32>
    %c0_122 = arith.constant 0 : index
    %c0_123 = arith.constant 0 : index
    %153 = vector.load %arg26[%c0_122, %c0_123] : memref<8x32xf32, #tpu.memory_space<vmem>>, vector<8x32xf32>
    %cst_124 = arith.constant dense<0.000000e+00> : vector<32x12xf32>
    %154 = tpu.matmul %143, %144, %cst_124 {dimension_numbers = #tpu.dot_dimension_numbers<[1], [0], [0], [1], [0, 0, 1, 1], [], []>} : vector<32x48xf32>, vector<48x12xf32>, vector<32x12xf32> -> vector<32x12xf32>
    %155 = vector.broadcast %145 : vector<1x12xf32> to vector<32x12xf32>
    %156 = arith.mulf %154, %155 : vector<32x12xf32>
    %157 = vector.broadcast %146 : vector<1x12xf32> to vector<32x12xf32>
    %158 = arith.addf %156, %157 : vector<32x12xf32>
    %cst_125 = arith.constant 0.000000e+00 : f32
    %159 = vector.broadcast %cst_125 : f32 to vector<32x12xf32>
    %160 = arith.maximumf %158, %159 : vector<32x12xf32>
    %c0_126 = arith.constant 0 : index
    %c0_127 = arith.constant 0 : index
    %c0_128 = arith.constant 0 : index
    %161 = vector.load %arg25[%c0_126, %c0_127, %c0_128] : memref<9x8x32xf32, #tpu.memory_space<vmem>>, vector<1x8x32xf32>
    %162 = vector.shape_cast %161 : vector<1x8x32xf32> to vector<8x32xf32>
    %cst_129 = arith.constant dense<0.000000e+00> : vector<8x12xf32>
    %163 = tpu.matmul %162, %160, %cst_129 {dimension_numbers = #tpu.dot_dimension_numbers<[1], [0], [0], [1], [0, 0, 1, 1], [], []>} : vector<8x32xf32>, vector<32x12xf32>, vector<8x12xf32> -> vector<8x12xf32>
    %164 = vector.extract_strided_slice %147 {offsets = [0, 0], sizes = [1, 12], strides = [1, 1]} : vector<9x12xf32> to vector<1x12xf32>
    %165 = vector.broadcast %164 : vector<1x12xf32> to vector<8x12xf32>
    %166 = arith.mulf %163, %165 : vector<8x12xf32>
    %c1_130 = arith.constant 1 : index
    %c0_131 = arith.constant 0 : index
    %c0_132 = arith.constant 0 : index
    %167 = vector.load %arg25[%c1_130, %c0_131, %c0_132] : memref<9x8x32xf32, #tpu.memory_space<vmem>>, vector<1x8x32xf32>
    %168 = vector.shape_cast %167 : vector<1x8x32xf32> to vector<8x32xf32>
    %cst_133 = arith.constant dense<0.000000e+00> : vector<8x12xf32>
    %169 = tpu.matmul %168, %160, %cst_133 {dimension_numbers = #tpu.dot_dimension_numbers<[1], [0], [0], [1], [0, 0, 1, 1], [], []>} : vector<8x32xf32>, vector<32x12xf32>, vector<8x12xf32> -> vector<8x12xf32>
    %170 = vector.extract_strided_slice %147 {offsets = [1, 0], sizes = [1, 12], strides = [1, 1]} : vector<9x12xf32> to vector<1x12xf32>
    %171 = vector.broadcast %170 : vector<1x12xf32> to vector<8x12xf32>
    %172 = arith.mulf %169, %171 : vector<8x12xf32>
    %173 = arith.addf %166, %172 : vector<8x12xf32>
    %c2_134 = arith.constant 2 : index
    %c0_135 = arith.constant 0 : index
    %c0_136 = arith.constant 0 : index
    %174 = vector.load %arg25[%c2_134, %c0_135, %c0_136] : memref<9x8x32xf32, #tpu.memory_space<vmem>>, vector<1x8x32xf32>
    %175 = vector.shape_cast %174 : vector<1x8x32xf32> to vector<8x32xf32>
    %cst_137 = arith.constant dense<0.000000e+00> : vector<8x12xf32>
    %176 = tpu.matmul %175, %160, %cst_137 {dimension_numbers = #tpu.dot_dimension_numbers<[1], [0], [0], [1], [0, 0, 1, 1], [], []>} : vector<8x32xf32>, vector<32x12xf32>, vector<8x12xf32> -> vector<8x12xf32>
    %177 = vector.extract_strided_slice %147 {offsets = [2, 0], sizes = [1, 12], strides = [1, 1]} : vector<9x12xf32> to vector<1x12xf32>
    %178 = vector.broadcast %177 : vector<1x12xf32> to vector<8x12xf32>
    %179 = arith.mulf %176, %178 : vector<8x12xf32>
    %180 = arith.addf %173, %179 : vector<8x12xf32>
    %c3_138 = arith.constant 3 : index
    %c0_139 = arith.constant 0 : index
    %c0_140 = arith.constant 0 : index
    %181 = vector.load %arg25[%c3_138, %c0_139, %c0_140] : memref<9x8x32xf32, #tpu.memory_space<vmem>>, vector<1x8x32xf32>
    %182 = vector.shape_cast %181 : vector<1x8x32xf32> to vector<8x32xf32>
    %cst_141 = arith.constant dense<0.000000e+00> : vector<8x12xf32>
    %183 = tpu.matmul %182, %160, %cst_141 {dimension_numbers = #tpu.dot_dimension_numbers<[1], [0], [0], [1], [0, 0, 1, 1], [], []>} : vector<8x32xf32>, vector<32x12xf32>, vector<8x12xf32> -> vector<8x12xf32>
    %184 = vector.extract_strided_slice %147 {offsets = [3, 0], sizes = [1, 12], strides = [1, 1]} : vector<9x12xf32> to vector<1x12xf32>
    %185 = vector.broadcast %184 : vector<1x12xf32> to vector<8x12xf32>
    %186 = arith.mulf %183, %185 : vector<8x12xf32>
    %187 = arith.addf %180, %186 : vector<8x12xf32>
    %c4_142 = arith.constant 4 : index
    %c0_143 = arith.constant 0 : index
    %c0_144 = arith.constant 0 : index
    %188 = vector.load %arg25[%c4_142, %c0_143, %c0_144] : memref<9x8x32xf32, #tpu.memory_space<vmem>>, vector<1x8x32xf32>
    %189 = vector.shape_cast %188 : vector<1x8x32xf32> to vector<8x32xf32>
    %cst_145 = arith.constant dense<0.000000e+00> : vector<8x12xf32>
    %190 = tpu.matmul %189, %160, %cst_145 {dimension_numbers = #tpu.dot_dimension_numbers<[1], [0], [0], [1], [0, 0, 1, 1], [], []>} : vector<8x32xf32>, vector<32x12xf32>, vector<8x12xf32> -> vector<8x12xf32>
    %191 = vector.extract_strided_slice %147 {offsets = [4, 0], sizes = [1, 12], strides = [1, 1]} : vector<9x12xf32> to vector<1x12xf32>
    %192 = vector.broadcast %191 : vector<1x12xf32> to vector<8x12xf32>
    %193 = arith.mulf %190, %192 : vector<8x12xf32>
    %194 = arith.addf %187, %193 : vector<8x12xf32>
    %c5_146 = arith.constant 5 : index
    %c0_147 = arith.constant 0 : index
    %c0_148 = arith.constant 0 : index
    %195 = vector.load %arg25[%c5_146, %c0_147, %c0_148] : memref<9x8x32xf32, #tpu.memory_space<vmem>>, vector<1x8x32xf32>
    %196 = vector.shape_cast %195 : vector<1x8x32xf32> to vector<8x32xf32>
    %cst_149 = arith.constant dense<0.000000e+00> : vector<8x12xf32>
    %197 = tpu.matmul %196, %160, %cst_149 {dimension_numbers = #tpu.dot_dimension_numbers<[1], [0], [0], [1], [0, 0, 1, 1], [], []>} : vector<8x32xf32>, vector<32x12xf32>, vector<8x12xf32> -> vector<8x12xf32>
    %198 = vector.extract_strided_slice %147 {offsets = [5, 0], sizes = [1, 12], strides = [1, 1]} : vector<9x12xf32> to vector<1x12xf32>
    %199 = vector.broadcast %198 : vector<1x12xf32> to vector<8x12xf32>
    %200 = arith.mulf %197, %199 : vector<8x12xf32>
    %201 = arith.addf %194, %200 : vector<8x12xf32>
    %c6_150 = arith.constant 6 : index
    %c0_151 = arith.constant 0 : index
    %c0_152 = arith.constant 0 : index
    %202 = vector.load %arg25[%c6_150, %c0_151, %c0_152] : memref<9x8x32xf32, #tpu.memory_space<vmem>>, vector<1x8x32xf32>
    %203 = vector.shape_cast %202 : vector<1x8x32xf32> to vector<8x32xf32>
    %cst_153 = arith.constant dense<0.000000e+00> : vector<8x12xf32>
    %204 = tpu.matmul %203, %160, %cst_153 {dimension_numbers = #tpu.dot_dimension_numbers<[1], [0], [0], [1], [0, 0, 1, 1], [], []>} : vector<8x32xf32>, vector<32x12xf32>, vector<8x12xf32> -> vector<8x12xf32>
    %205 = vector.extract_strided_slice %147 {offsets = [6, 0], sizes = [1, 12], strides = [1, 1]} : vector<9x12xf32> to vector<1x12xf32>
    %206 = vector.broadcast %205 : vector<1x12xf32> to vector<8x12xf32>
    %207 = arith.mulf %204, %206 : vector<8x12xf32>
    %208 = arith.addf %201, %207 : vector<8x12xf32>
    %c7_154 = arith.constant 7 : index
    %c0_155 = arith.constant 0 : index
    %c0_156 = arith.constant 0 : index
    %209 = vector.load %arg25[%c7_154, %c0_155, %c0_156] : memref<9x8x32xf32, #tpu.memory_space<vmem>>, vector<1x8x32xf32>
    %210 = vector.shape_cast %209 : vector<1x8x32xf32> to vector<8x32xf32>
    %cst_157 = arith.constant dense<0.000000e+00> : vector<8x12xf32>
    %211 = tpu.matmul %210, %160, %cst_157 {dimension_numbers = #tpu.dot_dimension_numbers<[1], [0], [0], [1], [0, 0, 1, 1], [], []>} : vector<8x32xf32>, vector<32x12xf32>, vector<8x12xf32> -> vector<8x12xf32>
    %212 = vector.extract_strided_slice %147 {offsets = [7, 0], sizes = [1, 12], strides = [1, 1]} : vector<9x12xf32> to vector<1x12xf32>
    %213 = vector.broadcast %212 : vector<1x12xf32> to vector<8x12xf32>
    %214 = arith.mulf %211, %213 : vector<8x12xf32>
    %215 = arith.addf %208, %214 : vector<8x12xf32>
    %c8_158 = arith.constant 8 : index
    %c0_159 = arith.constant 0 : index
    %c0_160 = arith.constant 0 : index
    %216 = vector.load %arg25[%c8_158, %c0_159, %c0_160] : memref<9x8x32xf32, #tpu.memory_space<vmem>>, vector<1x8x32xf32>
    %217 = vector.shape_cast %216 : vector<1x8x32xf32> to vector<8x32xf32>
    %cst_161 = arith.constant dense<0.000000e+00> : vector<8x12xf32>
    %218 = tpu.matmul %217, %160, %cst_161 {dimension_numbers = #tpu.dot_dimension_numbers<[1], [0], [0], [1], [0, 0, 1, 1], [], []>} : vector<8x32xf32>, vector<32x12xf32>, vector<8x12xf32> -> vector<8x12xf32>
    %219 = vector.extract_strided_slice %147 {offsets = [8, 0], sizes = [1, 12], strides = [1, 1]} : vector<9x12xf32> to vector<1x12xf32>
    %220 = vector.broadcast %219 : vector<1x12xf32> to vector<8x12xf32>
    %221 = arith.mulf %218, %220 : vector<8x12xf32>
    %222 = arith.addf %215, %221 : vector<8x12xf32>
    %223 = vector.broadcast %148 : vector<1x12xf32> to vector<8x12xf32>
    %224 = arith.mulf %222, %223 : vector<8x12xf32>
    %225 = vector.broadcast %149 : vector<1x12xf32> to vector<8x12xf32>
    %226 = arith.addf %224, %225 : vector<8x12xf32>
    %cst_162 = arith.constant 0.000000e+00 : f32
    %227 = vector.broadcast %cst_162 : f32 to vector<8x12xf32>
    %228 = arith.maximumf %226, %227 : vector<8x12xf32>
    %cst_163 = arith.constant dense<0.000000e+00> : vector<8x48xf32>
    %229 = tpu.matmul %228, %150, %cst_163 {dimension_numbers = #tpu.dot_dimension_numbers<[1], [0], [0], [1], [0, 0, 1, 1], [], []>} : vector<8x12xf32>, vector<12x48xf32>, vector<8x48xf32> -> vector<8x48xf32>
    %230 = vector.broadcast %151 : vector<1x48xf32> to vector<8x48xf32>
    %231 = arith.mulf %229, %230 : vector<8x48xf32>
    %232 = vector.broadcast %152 : vector<1x48xf32> to vector<8x48xf32>
    %233 = arith.addf %231, %232 : vector<8x48xf32>
    %cst_164 = arith.constant 0.000000e+00 : f32
    %234 = vector.broadcast %cst_164 : f32 to vector<8x48xf32>
    %235 = arith.maximumf %233, %234 : vector<8x48xf32>
    %cst_165 = arith.constant dense<0.000000e+00> : vector<8x48xf32>
    %236 = tpu.matmul %153, %143, %cst_165 {dimension_numbers = #tpu.dot_dimension_numbers<[1], [0], [0], [1], [0, 0, 1, 1], [], []>} : vector<8x32xf32>, vector<32x48xf32>, vector<8x48xf32> -> vector<8x48xf32>
    %cst_166 = arith.constant 0.000000e+00 : f32
    %237 = vector.broadcast %cst_166 : f32 to vector<8x48xf32>
    %238 = arith.maximumf %236, %237 : vector<8x48xf32>
    %c0_167 = arith.constant 0 : index
    %c0_168 = arith.constant 0 : index
    %239 = vector.load %arg43[%c0_167, %c0_168] : memref<8x96xf32, #tpu.memory_space<vmem>>, vector<8x48xf32>
    tpu.vector_store %arg43[%c0_167, %c0_168], %235 {strides = array<i32>} : memref<8x96xf32, #tpu.memory_space<vmem>>, vector<8x48xf32>,
    %c0_169 = arith.constant 0 : index
    %c48 = arith.constant 48 : index
    %240 = vector.load %arg43[%c0_169, %c48] : memref<8x96xf32, #tpu.memory_space<vmem>>, vector<8x48xf32>
    tpu.vector_store %arg43[%c0_169, %c48], %238 {strides = array<i32>} : memref<8x96xf32, #tpu.memory_space<vmem>>, vector<8x48xf32>,
    %c0_170 = arith.constant 0 : index
    %c0_171 = arith.constant 0 : index
    %241 = vector.load %arg43[%c0_170, %c0_171] : memref<8x96xf32, #tpu.memory_space<vmem>>, vector<8x96xf32>
    %c0_172 = arith.constant 0 : index
    %c0_173 = arith.constant 0 : index
    %242 = vector.load %arg27[%c0_172, %c0_173] : memref<96x24xf32, #tpu.memory_space<vmem>>, vector<96x24xf32>
    %c0_174 = arith.constant 0 : index
    %c0_175 = arith.constant 0 : index
    %243 = vector.load %arg28[%c0_174, %c0_175] : memref<1x24xf32, #tpu.memory_space<vmem>>, vector<1x24xf32>
    %c0_176 = arith.constant 0 : index
    %c0_177 = arith.constant 0 : index
    %244 = vector.load %arg29[%c0_176, %c0_177] : memref<1x24xf32, #tpu.memory_space<vmem>>, vector<1x24xf32>
    %c0_178 = arith.constant 0 : index
    %c0_179 = arith.constant 0 : index
    %245 = vector.load %arg30[%c0_178, %c0_179] : memref<9x24xf32, #tpu.memory_space<vmem>>, vector<9x24xf32>
    %c0_180 = arith.constant 0 : index
    %c0_181 = arith.constant 0 : index
    %246 = vector.load %arg31[%c0_180, %c0_181] : memref<1x24xf32, #tpu.memory_space<vmem>>, vector<1x24xf32>
    %c0_182 = arith.constant 0 : index
    %c0_183 = arith.constant 0 : index
    %247 = vector.load %arg32[%c0_182, %c0_183] : memref<1x24xf32, #tpu.memory_space<vmem>>, vector<1x24xf32>
    %c0_184 = arith.constant 0 : index
    %c0_185 = arith.constant 0 : index
    %248 = vector.load %arg33[%c0_184, %c0_185] : memref<24x96xf32, #tpu.memory_space<vmem>>, vector<24x96xf32>
    %c0_186 = arith.constant 0 : index
    %c0_187 = arith.constant 0 : index
    %249 = vector.load %arg34[%c0_186, %c0_187] : memref<1x96xf32, #tpu.memory_space<vmem>>, vector<1x96xf32>
    %c0_188 = arith.constant 0 : index
    %c0_189 = arith.constant 0 : index
    %250 = vector.load %arg35[%c0_188, %c0_189] : memref<1x96xf32, #tpu.memory_space<vmem>>, vector<1x96xf32>
    %c0_190 = arith.constant 0 : index
    %c0_191 = arith.constant 0 : index
    %251 = vector.load %arg37[%c0_190, %c0_191] : memref<2x8xf32, #tpu.memory_space<vmem>>, vector<2x8xf32>
    %cst_192 = arith.constant dense<0.000000e+00> : vector<8x24xf32>
    %252 = tpu.matmul %241, %242, %cst_192 {dimension_numbers = #tpu.dot_dimension_numbers<[1], [0], [0], [1], [0, 0, 1, 1], [], []>} : vector<8x96xf32>, vector<96x24xf32>, vector<8x24xf32> -> vector<8x24xf32>
    %253 = vector.broadcast %243 : vector<1x24xf32> to vector<8x24xf32>
    %254 = arith.mulf %252, %253 : vector<8x24xf32>
    %255 = vector.broadcast %244 : vector<1x24xf32> to vector<8x24xf32>
    %256 = arith.addf %254, %255 : vector<8x24xf32>
    %cst_193 = arith.constant 0.000000e+00 : f32
    %257 = vector.broadcast %cst_193 : f32 to vector<8x24xf32>
    %258 = arith.maximumf %256, %257 : vector<8x24xf32>
    %c0_194 = arith.constant 0 : index
    %c0_195 = arith.constant 0 : index
    %c0_196 = arith.constant 0 : index
    %259 = vector.load %arg36[%c0_194, %c0_195, %c0_196] : memref<9x2x8xf32, #tpu.memory_space<vmem>>, vector<1x2x8xf32>
    %260 = vector.shape_cast %259 : vector<1x2x8xf32> to vector<2x8xf32>
    %cst_197 = arith.constant dense<0.000000e+00> : vector<2x24xf32>
    %261 = tpu.matmul %260, %258, %cst_197 {dimension_numbers = #tpu.dot_dimension_numbers<[1], [0], [0], [1], [0, 0, 1, 1], [], []>} : vector<2x8xf32>, vector<8x24xf32>, vector<2x24xf32> -> vector<2x24xf32>
    %262 = vector.extract_strided_slice %245 {offsets = [0, 0], sizes = [1, 24], strides = [1, 1]} : vector<9x24xf32> to vector<1x24xf32>
    %263 = vector.broadcast %262 : vector<1x24xf32> to vector<2x24xf32>
    %264 = arith.mulf %261, %263 : vector<2x24xf32>
    %c1_198 = arith.constant 1 : index
    %c0_199 = arith.constant 0 : index
    %c0_200 = arith.constant 0 : index
    %265 = vector.load %arg36[%c1_198, %c0_199, %c0_200] : memref<9x2x8xf32, #tpu.memory_space<vmem>>, vector<1x2x8xf32>
    %266 = vector.shape_cast %265 : vector<1x2x8xf32> to vector<2x8xf32>
    %cst_201 = arith.constant dense<0.000000e+00> : vector<2x24xf32>
    %267 = tpu.matmul %266, %258, %cst_201 {dimension_numbers = #tpu.dot_dimension_numbers<[1], [0], [0], [1], [0, 0, 1, 1], [], []>} : vector<2x8xf32>, vector<8x24xf32>, vector<2x24xf32> -> vector<2x24xf32>
    %268 = vector.extract_strided_slice %245 {offsets = [1, 0], sizes = [1, 24], strides = [1, 1]} : vector<9x24xf32> to vector<1x24xf32>
    %269 = vector.broadcast %268 : vector<1x24xf32> to vector<2x24xf32>
    %270 = arith.mulf %267, %269 : vector<2x24xf32>
    %271 = arith.addf %264, %270 : vector<2x24xf32>
    %c2_202 = arith.constant 2 : index
    %c0_203 = arith.constant 0 : index
    %c0_204 = arith.constant 0 : index
    %272 = vector.load %arg36[%c2_202, %c0_203, %c0_204] : memref<9x2x8xf32, #tpu.memory_space<vmem>>, vector<1x2x8xf32>
    %273 = vector.shape_cast %272 : vector<1x2x8xf32> to vector<2x8xf32>
    %cst_205 = arith.constant dense<0.000000e+00> : vector<2x24xf32>
    %274 = tpu.matmul %273, %258, %cst_205 {dimension_numbers = #tpu.dot_dimension_numbers<[1], [0], [0], [1], [0, 0, 1, 1], [], []>} : vector<2x8xf32>, vector<8x24xf32>, vector<2x24xf32> -> vector<2x24xf32>
    %275 = vector.extract_strided_slice %245 {offsets = [2, 0], sizes = [1, 24], strides = [1, 1]} : vector<9x24xf32> to vector<1x24xf32>
    %276 = vector.broadcast %275 : vector<1x24xf32> to vector<2x24xf32>
    %277 = arith.mulf %274, %276 : vector<2x24xf32>
    %278 = arith.addf %271, %277 : vector<2x24xf32>
    %c3_206 = arith.constant 3 : index
    %c0_207 = arith.constant 0 : index
    %c0_208 = arith.constant 0 : index
    %279 = vector.load %arg36[%c3_206, %c0_207, %c0_208] : memref<9x2x8xf32, #tpu.memory_space<vmem>>, vector<1x2x8xf32>
    %280 = vector.shape_cast %279 : vector<1x2x8xf32> to vector<2x8xf32>
    %cst_209 = arith.constant dense<0.000000e+00> : vector<2x24xf32>
    %281 = tpu.matmul %280, %258, %cst_209 {dimension_numbers = #tpu.dot_dimension_numbers<[1], [0], [0], [1], [0, 0, 1, 1], [], []>} : vector<2x8xf32>, vector<8x24xf32>, vector<2x24xf32> -> vector<2x24xf32>
    %282 = vector.extract_strided_slice %245 {offsets = [3, 0], sizes = [1, 24], strides = [1, 1]} : vector<9x24xf32> to vector<1x24xf32>
    %283 = vector.broadcast %282 : vector<1x24xf32> to vector<2x24xf32>
    %284 = arith.mulf %281, %283 : vector<2x24xf32>
    %285 = arith.addf %278, %284 : vector<2x24xf32>
    %c4_210 = arith.constant 4 : index
    %c0_211 = arith.constant 0 : index
    %c0_212 = arith.constant 0 : index
    %286 = vector.load %arg36[%c4_210, %c0_211, %c0_212] : memref<9x2x8xf32, #tpu.memory_space<vmem>>, vector<1x2x8xf32>
    %287 = vector.shape_cast %286 : vector<1x2x8xf32> to vector<2x8xf32>
    %cst_213 = arith.constant dense<0.000000e+00> : vector<2x24xf32>
    %288 = tpu.matmul %287, %258, %cst_213 {dimension_numbers = #tpu.dot_dimension_numbers<[1], [0], [0], [1], [0, 0, 1, 1], [], []>} : vector<2x8xf32>, vector<8x24xf32>, vector<2x24xf32> -> vector<2x24xf32>
    %289 = vector.extract_strided_slice %245 {offsets = [4, 0], sizes = [1, 24], strides = [1, 1]} : vector<9x24xf32> to vector<1x24xf32>
    %290 = vector.broadcast %289 : vector<1x24xf32> to vector<2x24xf32>
    %291 = arith.mulf %288, %290 : vector<2x24xf32>
    %292 = arith.addf %285, %291 : vector<2x24xf32>
    %c5_214 = arith.constant 5 : index
    %c0_215 = arith.constant 0 : index
    %c0_216 = arith.constant 0 : index
    %293 = vector.load %arg36[%c5_214, %c0_215, %c0_216] : memref<9x2x8xf32, #tpu.memory_space<vmem>>, vector<1x2x8xf32>
    %294 = vector.shape_cast %293 : vector<1x2x8xf32> to vector<2x8xf32>
    %cst_217 = arith.constant dense<0.000000e+00> : vector<2x24xf32>
    %295 = tpu.matmul %294, %258, %cst_217 {dimension_numbers = #tpu.dot_dimension_numbers<[1], [0], [0], [1], [0, 0, 1, 1], [], []>} : vector<2x8xf32>, vector<8x24xf32>, vector<2x24xf32> -> vector<2x24xf32>
    %296 = vector.extract_strided_slice %245 {offsets = [5, 0], sizes = [1, 24], strides = [1, 1]} : vector<9x24xf32> to vector<1x24xf32>
    %297 = vector.broadcast %296 : vector<1x24xf32> to vector<2x24xf32>
    %298 = arith.mulf %295, %297 : vector<2x24xf32>
    %299 = arith.addf %292, %298 : vector<2x24xf32>
    %c6_218 = arith.constant 6 : index
    %c0_219 = arith.constant 0 : index
    %c0_220 = arith.constant 0 : index
    %300 = vector.load %arg36[%c6_218, %c0_219, %c0_220] : memref<9x2x8xf32, #tpu.memory_space<vmem>>, vector<1x2x8xf32>
    %301 = vector.shape_cast %300 : vector<1x2x8xf32> to vector<2x8xf32>
    %cst_221 = arith.constant dense<0.000000e+00> : vector<2x24xf32>
    %302 = tpu.matmul %301, %258, %cst_221 {dimension_numbers = #tpu.dot_dimension_numbers<[1], [0], [0], [1], [0, 0, 1, 1], [], []>} : vector<2x8xf32>, vector<8x24xf32>, vector<2x24xf32> -> vector<2x24xf32>
    %303 = vector.extract_strided_slice %245 {offsets = [6, 0], sizes = [1, 24], strides = [1, 1]} : vector<9x24xf32> to vector<1x24xf32>
    %304 = vector.broadcast %303 : vector<1x24xf32> to vector<2x24xf32>
    %305 = arith.mulf %302, %304 : vector<2x24xf32>
    %306 = arith.addf %299, %305 : vector<2x24xf32>
    %c7_222 = arith.constant 7 : index
    %c0_223 = arith.constant 0 : index
    %c0_224 = arith.constant 0 : index
    %307 = vector.load %arg36[%c7_222, %c0_223, %c0_224] : memref<9x2x8xf32, #tpu.memory_space<vmem>>, vector<1x2x8xf32>
    %308 = vector.shape_cast %307 : vector<1x2x8xf32> to vector<2x8xf32>
    %cst_225 = arith.constant dense<0.000000e+00> : vector<2x24xf32>
    %309 = tpu.matmul %308, %258, %cst_225 {dimension_numbers = #tpu.dot_dimension_numbers<[1], [0], [0], [1], [0, 0, 1, 1], [], []>} : vector<2x8xf32>, vector<8x24xf32>, vector<2x24xf32> -> vector<2x24xf32>
    %310 = vector.extract_strided_slice %245 {offsets = [7, 0], sizes = [1, 24], strides = [1, 1]} : vector<9x24xf32> to vector<1x24xf32>
    %311 = vector.broadcast %310 : vector<1x24xf32> to vector<2x24xf32>
    %312 = arith.mulf %309, %311 : vector<2x24xf32>
    %313 = arith.addf %306, %312 : vector<2x24xf32>
    %c8_226 = arith.constant 8 : index
    %c0_227 = arith.constant 0 : index
    %c0_228 = arith.constant 0 : index
    %314 = vector.load %arg36[%c8_226, %c0_227, %c0_228] : memref<9x2x8xf32, #tpu.memory_space<vmem>>, vector<1x2x8xf32>
    %315 = vector.shape_cast %314 : vector<1x2x8xf32> to vector<2x8xf32>
    %cst_229 = arith.constant dense<0.000000e+00> : vector<2x24xf32>
    %316 = tpu.matmul %315, %258, %cst_229 {dimension_numbers = #tpu.dot_dimension_numbers<[1], [0], [0], [1], [0, 0, 1, 1], [], []>} : vector<2x8xf32>, vector<8x24xf32>, vector<2x24xf32> -> vector<2x24xf32>
    %317 = vector.extract_strided_slice %245 {offsets = [8, 0], sizes = [1, 24], strides = [1, 1]} : vector<9x24xf32> to vector<1x24xf32>
    %318 = vector.broadcast %317 : vector<1x24xf32> to vector<2x24xf32>
    %319 = arith.mulf %316, %318 : vector<2x24xf32>
    %320 = arith.addf %313, %319 : vector<2x24xf32>
    %321 = vector.broadcast %246 : vector<1x24xf32> to vector<2x24xf32>
    %322 = arith.mulf %320, %321 : vector<2x24xf32>
    %323 = vector.broadcast %247 : vector<1x24xf32> to vector<2x24xf32>
    %324 = arith.addf %322, %323 : vector<2x24xf32>
    %cst_230 = arith.constant 0.000000e+00 : f32
    %325 = vector.broadcast %cst_230 : f32 to vector<2x24xf32>
    %326 = arith.maximumf %324, %325 : vector<2x24xf32>
    %cst_231 = arith.constant dense<0.000000e+00> : vector<2x96xf32>
    %327 = tpu.matmul %326, %248, %cst_231 {dimension_numbers = #tpu.dot_dimension_numbers<[1], [0], [0], [1], [0, 0, 1, 1], [], []>} : vector<2x24xf32>, vector<24x96xf32>, vector<2x96xf32> -> vector<2x96xf32>
    %328 = vector.broadcast %249 : vector<1x96xf32> to vector<2x96xf32>
    %329 = arith.mulf %327, %328 : vector<2x96xf32>
    %330 = vector.broadcast %250 : vector<1x96xf32> to vector<2x96xf32>
    %331 = arith.addf %329, %330 : vector<2x96xf32>
    %cst_232 = arith.constant 0.000000e+00 : f32
    %332 = vector.broadcast %cst_232 : f32 to vector<2x96xf32>
    %333 = arith.maximumf %331, %332 : vector<2x96xf32>
    %cst_233 = arith.constant dense<0.000000e+00> : vector<2x96xf32>
    %334 = tpu.matmul %251, %241, %cst_233 {dimension_numbers = #tpu.dot_dimension_numbers<[1], [0], [0], [1], [0, 0, 1, 1], [], []>} : vector<2x8xf32>, vector<8x96xf32>, vector<2x96xf32> -> vector<2x96xf32>
    %cst_234 = arith.constant 0.000000e+00 : f32
    %335 = vector.broadcast %cst_234 : f32 to vector<2x96xf32>
    %336 = arith.maximumf %334, %335 : vector<2x96xf32>
    %c0_235 = arith.constant 0 : index
    %c0_236 = arith.constant 0 : index
    %337 = vector.load %arg44[%c0_235, %c0_236] : memref<2x192xf32, #tpu.memory_space<vmem>>, vector<2x96xf32>
    tpu.vector_store %arg44[%c0_235, %c0_236], %333 {strides = array<i32>} : memref<2x192xf32, #tpu.memory_space<vmem>>, vector<2x96xf32>,
    %c0_237 = arith.constant 0 : index
    %c96 = arith.constant 96 : index
    %338 = vector.load %arg44[%c0_237, %c96] : memref<2x192xf32, #tpu.memory_space<vmem>>, vector<2x96xf32>
    tpu.vector_store %arg44[%c0_237, %c96], %336 {strides = array<i32>} : memref<2x192xf32, #tpu.memory_space<vmem>>, vector<2x96xf32>,
    %c0_238 = arith.constant 0 : index
    %c0_239 = arith.constant 0 : index
    %339 = vector.load %arg44[%c0_238, %c0_239] : memref<2x192xf32, #tpu.memory_space<vmem>>, vector<2x192xf32>
    %c0_240 = arith.constant 0 : index
    %c0_241 = arith.constant 0 : index
    %340 = vector.load %arg38[%c0_240, %c0_241] : memref<2x2xf32, #tpu.memory_space<vmem>>, vector<2x2xf32>
    %cst_242 = arith.constant dense<0.000000e+00> : vector<2x192xf32>
    %341 = tpu.matmul %340, %339, %cst_242 {dimension_numbers = #tpu.dot_dimension_numbers<[1], [0], [0], [1], [0, 0, 1, 1], [], []>} : vector<2x2xf32>, vector<2x192xf32>, vector<2x192xf32> -> vector<2x192xf32>
    %c0_243 = arith.constant 0 : index
    %c0_244 = arith.constant 0 : index
    %342 = vector.load %arg39[%c0_243, %c0_244] : memref<192x10xf32, #tpu.memory_space<vmem>>, vector<192x10xf32>
    %cst_245 = arith.constant dense<0.000000e+00> : vector<2x10xf32>
    %343 = tpu.matmul %341, %342, %cst_245 {dimension_numbers = #tpu.dot_dimension_numbers<[1], [0], [0], [1], [0, 0, 1, 1], [], []>} : vector<2x192xf32>, vector<192x10xf32>, vector<2x10xf32> -> vector<2x10xf32>
    %c0_246 = arith.constant 0 : index
    %c0_247 = arith.constant 0 : index
    %344 = vector.load %arg40[%c0_246, %c0_247] : memref<1x10xf32, #tpu.memory_space<vmem>>, vector<1x10xf32>
    %345 = vector.broadcast %344 : vector<1x10xf32> to vector<2x10xf32>
    %346 = arith.addf %343, %345 : vector<2x10xf32>
    %c0_248 = arith.constant 0 : index
    %c0_249 = arith.constant 0 : index
    %347 = vector.load %arg41[%c0_248, %c0_249] : memref<2x10xf32, #tpu.memory_space<vmem>>, vector<2x10xf32>
    tpu.vector_store %arg41[%c0_248, %c0_249], %346 {strides = array<i32>} : memref<2x10xf32, #tpu.memory_space<vmem>>, vector<2x10xf32>,
    return
  }
}

</mosaic_0001>

<bundles_post_ra>
// kernel: _lambda_.1
= control target key start
LH: loop header
LB: loop body
LE: loop exit
PB: predicated region body
PF: predicated region fallthrough
CT: control target
= control target key end

     0   :  { %s11503_s6 = smov 1   ;;  %s11504_s10 = smov 2   ;;  %s15646_s0 = inlined_call_operand.smem [shape: u32[42], index: -1, kind: input, shape index: {}] }
   0x1   :  { %s11559_s5 = sld [smem:[%s15646_s0]]   ;;  %s11505_s14 = smov 3  }
   0x2   :  { %s11564_s9 = sld [smem:[%s15646_s0 + %s11503_s6]]   ;;  %s11506_s18 = smov 4  }
   0x3   :  { %s11569_s13 = sld [smem:[%s15646_s0 + %s11504_s10]]   ;;  %s11507_s22 = smov 5  }
   0x4   :  { %s11574_s17 = sld [smem:[%s15646_s0 + %s11505_s14]]   ;;  %s11508_s26 = smov 6  }
   0x5   :  { %s11579_s21 = sld [smem:[%s15646_s0 + %s11506_s18]]   ;;  %s11509_s30 = smov 7  }
   0x6   :  { %s11584_s25 = sld [smem:[%s15646_s0 + %s11507_s22]]   ;;  %s11510_s4 = smov 8  }
   0x7   :  { %s11589_s29 = sld [smem:[%s15646_s0 + %s11508_s26]]   ;;  %s11511_s10 = smov 9  }
   0x8   :  { %s11594_s3 = sld [smem:[%s15646_s0 + %s11509_s30]]   ;;  %s11512_s15 = smov 10  }
   0x9   :  { %s11599_s8 = sld [smem:[%s15646_s0 + %s11510_s4]]   ;;  %s11513_s20 = smov 11  }
   0xa   :  { %s11604_s14 = sld [smem:[%s15646_s0 + %s11511_s10]]   ;;  %s11514_s26 = smov 12  }
   0xb   :  { %s11609_s19 = sld [smem:[%s15646_s0 + %s11512_s15]]   ;;  %s11515_s1 = smov 13  }
   0xc   :  { %s11614_s24 = sld [smem:[%s15646_s0 + %s11513_s20]]   ;;  %s11516_s7 = smov 14  }
   0xd   :  { %s11619_s30 = sld [smem:[%s15646_s0 + %s11514_s26]]   ;;  %s11517_s15 = smov 15  }
   0xe   :  { %s11624_s6 = sld [smem:[%s15646_s0 + %s11515_s1]]   ;;  %s11518_s22 = smov 16  }
   0xf   :  { %s11629_s12 = sld [smem:[%s15646_s0 + %s11516_s7]]   ;;  %s11519_s28 = smov 17  }
  0x10   :  { %s11634_s20 = sld [smem:[%s15646_s0 + %s11517_s15]]   ;;  %s11520_s7 = smov 18  }
  0x11   :  { %s11639_s27 = sld [smem:[%s15646_s0 + %s11518_s22]]   ;;  %s11521_s15 = smov 19  }
  0x12   :  { %s11644_s4 = sld [smem:[%s15646_s0 + %s11519_s28]]   ;;  %s11522_s22 = smov 20  }
  0x13   :  { %15791 = sst [smem:[#allocation8_spill]] %s11619_s30  ;;  %s11523_s28 = smov 21  }
  0x14   :  { %15792 = sst [smem:[#allocation9_spill]] %s11624_s6 }
  0x15   :  { %s11649_s6 = sld [smem:[%s15646_s0 + %s11520_s7]]   ;;  %s11524_s7 = smov 22  }
  0x16   :  { %s11654_s30 = sld [smem:[%s15646_s0 + %s11521_s15]]   ;;  %s11525_s15 = smov 23  }
  0x17   :  { %15793 = sst [smem:[#allocation10_spill]] %s11639_s27 }
  0x18   :  { %15794 = sst [smem:[#allocation11_spill]] %s11644_s4 }
  0x19   :  { %s11659_s27 = sld [smem:[%s15646_s0 + %s11522_s22]]   ;;  %s11526_s22 = smov 24  }
  0x1a   :  { %s11664_s4 = sld [smem:[%s15646_s0 + %s11523_s28]]   ;;  %s11527_s28 = smov 25  }
  0x1b   :  { %15795 = sst [smem:[#allocation12_spill]] %s11649_s6 }
  0x1c   :  { %15796 = sst [smem:[#allocation13_spill]] %s11654_s30 }
  0x1d   :  { %s11669_s6 = sld [smem:[%s15646_s0 + %s11524_s7]]   ;;  %s11528_s7 = smov 26  }
  0x1e   :  { %s11674_s30 = sld [smem:[%s15646_s0 + %s11525_s15]]   ;;  %s11529_s15 = smov 27  }
  0x1f   :  { %15797 = sst [smem:[#allocation14_spill]] %s11659_s27 }
  0x20   :  { %15798 = sst [smem:[#allocation15_spill]] %s11664_s4 }
  0x21   :  { %s11679_s27 = sld [smem:[%s15646_s0 + %s11526_s22]]   ;;  %s11530_s22 = smov 28  }
  0x22   :  { %s11684_s4 = sld [smem:[%s15646_s0 + %s11527_s28]]   ;;  %s11531_s28 = smov 29  }
  0x23   :  { %15799 = sst [smem:[#allocation16_spill]] %s11669_s6 }
  0x24   :  { %15800 = sst [smem:[#allocation17_spill]] %s11674_s30 }
  0x25   :  { %s11689_s6 = sld [smem:[%s15646_s0 + %s11528_s7]]   ;;  %s11532_s7 = smov 30  }
  0x26   :  { %s11694_s30 = sld [smem:[%s15646_s0 + %s11529_s15]]   ;;  %s11533_s15 = smov 31  }
  0x27   :  { %15801 = sst [smem:[#allocation18_spill]] %s11679_s27 }
  0x28   :  { %15802 = sst [smem:[#allocation19_spill]] %s11684_s4 }
  0x29   :  { %s11699_s27 = sld [smem:[%s15646_s0 + %s11530_s22]]   ;;  %s11534_s22 = smov 32  }
  0x2a   :  { %s11704_s4 = sld [smem:[%s15646_s0 + %s11531_s28]]   ;;  %s11535_s28 = smov 33  }
  0x2b   :  { %15803 = sst [smem:[#allocation20_spill]] %s11689_s6 }
  0x2c   :  { %15804 = sst [smem:[#allocation21_spill]] %s11694_s30 }
  0x2d   :  { %s11709_s6 = sld [smem:[%s15646_s0 + %s11532_s7]]   ;;  %s11536_s7 = smov 34  }
  0x2e   :  { %s11714_s30 = sld [smem:[%s15646_s0 + %s11533_s15]]   ;;  %s11537_s15 = smov 35  }
  0x2f   :  { %15805 = sst [smem:[#allocation22_spill]] %s11699_s27 }
  0x30   :  { %15806 = sst [smem:[#allocation23_spill]] %s11704_s4 }
  0x31   :  { %s11719_s27 = sld [smem:[%s15646_s0 + %s11534_s22]]   ;;  %s11538_s22 = smov 36  }
  0x32   :  { %s11724_s4 = sld [smem:[%s15646_s0 + %s11535_s28]]   ;;  %s11539_s28 = smov 37  }
  0x33   :  { %15807 = sst [smem:[#allocation24_spill]] %s11709_s6 }
  0x34   :  { %15808 = sst [smem:[#allocation25_spill]] %s11714_s30 }
  0x35   :  { %s11729_s6 = sld [smem:[%s15646_s0 + %s11536_s7]]   ;;  %s11540_s7 = smov 38  }
  0x36   :  { %s11734_s30 = sld [smem:[%s15646_s0 + %s11537_s15]]   ;;  %s11541_s15 = smov 39  }
  0x37   :  { %15809 = sst [smem:[#allocation26_spill]] %s11719_s27 }
  0x38   :  { %15810 = sst [smem:[#allocation27_spill]] %s11724_s4 }
  0x39   :  { %s11739_s27 = sld [smem:[%s15646_s0 + %s11538_s22]]   ;;  %s11542_s22 = smov 40  }
  0x3a   :  { %s11744_s4 = sld [smem:[%s15646_s0 + %s11539_s28]]   ;;  %s11543_s28 = smov 41  }
  0x3b   :  { %15811 = sst [smem:[#allocation28_spill]] %s11729_s6 }
  0x3c   :  { %15812 = sst [smem:[#allocation29_spill]] %s11734_s30 }
  0x3d   :  { %s11749_s6 = sld [smem:[%s15646_s0 + %s11540_s7]]  }
  0x3e   :  { %s11754_s30 = sld [smem:[%s15646_s0 + %s11541_s15]]  }
  0x3f   :  { %15813 = sst [smem:[#allocation30_spill]] %s11739_s27 }
  0x40   :  { %15814 = sst [smem:[#allocation31_spill]] %s11744_s4 }
  0x41   :  { %s11759_s27 = sld [smem:[%s15646_s0 + %s11542_s22]]  }
  0x42   :  { %s11764_s4 = sld [smem:[%s15646_s0 + %s11543_s28]]  }
  0x43   :  { %v238_v0 = vld [vmem:[%s11564_s9 + $0x18] sm:$0x7]  ;;  %vm432_vm0 = vcmask 1042432   ;;  %v237_v1 = vld [vmem:[%s11564_s9 + $0x10] sm:$0xff]  ;;  %vm239_vm1 = vcmask 220160   ;;  %v171_v2 = vld [vmem:[%s11559_s5] sm:$0xff] }
  0x44   :  { %10682 = vmatprep.subr.msk.mxu0 %vm432_vm0, %v238_v0  ;;  %11425 = vmatprep.subr.msk.mxu1 %vm432_vm0, %v238_v0  ;;  %v236_v3 = vld [vmem:[%s11564_s9 + $0x8] sm:$0xff]  ;;  %v235_v4 = vld [vmem:[%s11564_s9] sm:$0xff]  ;;  %v173_v6 = vld [vmem:[%s11559_s5 + $0x10] sm:$0xff] }
  0x45   :  { %10683 = vmatpush3.msk.msra.mxu0 %vm432_vm0, %v238_v0  ;;  %10690 = vmatprep.mubr.msk.f32.mxu0 %vm239_vm1, %v171_v2  ;;  %v172_v5 = vld [vmem:[%s11559_s5 + $0x8] sm:$0xff]  ;;  %v174_v7 = vld [vmem:[%s11559_s5 + $0x18] sm:$0xff]  ;;  %v175_v8 = vld [vmem:[%s11559_s5 + $0x20] sm:$0xff] }
  0x46   :  { %10684 = vmatprep.subr.mxu0 %v237_v1  ;;  %11429 = vmatpush3.msk.msra.mxu1 %vm432_vm0, %v238_v0  ;;  %v219_v9 = vld [vmem:[%s11559_s5 + $0x180] sm:$0xff]  ;;  %v220_v10 = vld [vmem:[%s11559_s5 + $0x188] sm:$0xff]  ;;  %v221_v11 = vld [vmem:[%s11559_s5 + $0x190] sm:$0xff] }
  0x47   :  { %10685 = vmatpush3.msra.mxu0 %v237_v1  ;;  %11426 = vmatprep.subr.mxu1 %v237_v1  ;;  %v176_v12 = vld [vmem:[%s11559_s5 + $0x28] sm:$0xff]  ;;  %v177_v13 = vld [vmem:[%s11559_s5 + $0x30] sm:$0xff]  ;;  %v222_v14 = vld [vmem:[%s11559_s5 + $0x198] sm:$0xff] }
  0x48   :  { %10686 = vmatprep.subr.mxu0 %v236_v3  ;;  %11430 = vmatpush3.msra.mxu1 %v237_v1  ;;  %v223_v15 = vld [vmem:[%s11559_s5 + $0x1a0] sm:$0xff]  ;;  %v178_v16 = vld [vmem:[%s11559_s5 + $0x38] sm:$0xff]  ;;  %v224_v18 = vld [vmem:[%s11559_s5 + $0x1a8] sm:$0xff] }
  0x49   :  { %10687 = vmatpush3.msra.mxu0 %v236_v3  ;;  %11427 = vmatprep.subr.mxu1 %v236_v3  ;;  %v179_v17 = vld [vmem:[%s11559_s5 + $0x40] sm:$0xff]  ;;  %v225_v19 = vld [vmem:[%s11559_s5 + $0x1b0] sm:$0xff]  ;;  %v180_v20 = vld [vmem:[%s11559_s5 + $0x48] sm:$0xff] }
  0x4a   :  { %10688 = vmatprep.subr.mxu0 %v235_v4  ;;  %11431 = vmatpush3.msra.mxu1 %v236_v3 }
  0x4b   :  { %10689 = vmatpush3.msra.mxu0 %v235_v4  ;;  %11428 = vmatprep.subr.mxu1 %v235_v4 }
  0x4c   :  { %10691 = vmatmul.mubr.msk.f32.vlgmr.msra.gmra.mxu0 %vm239_vm1, %v172_v5  ;;  %11432 = vmatpush3.msra.mxu1 %v235_v4 }
  0x4d   :  { %10693 = vmatprep.mubr.msk.f32.mxu0 %vm239_vm1, %v173_v6  ;;  %10762 = vmatprep.mubr.msk.f32.mxu1 %vm239_vm1, %v219_v9 }
  0x4e   :  { %10763 = vmatmul.mubr.msk.f32.vlgmr.msra.gmra.mxu1 %vm239_vm1, %v220_v10 }
  0x4f   :  { %10765 = vmatprep.mubr.msk.f32.mxu1 %vm239_vm1, %v221_v11 }
  0x50   :  { %10694 = vmatmul.mubr.msk.f32.gmra.mxu0 %vm239_vm1, %v174_v7 }
  0x51   :  { %10696 = vmatprep.mubr.msk.f32.mxu0 %vm239_vm1, %v175_v8 }
  0x52   :  { %10766 = vmatmul.mubr.msk.f32.gmra.mxu1 %vm239_vm1, %v222_v14 }
  0x53   :  { %10768 = vmatprep.mubr.msk.f32.mxu1 %vm239_vm1, %v223_v15 }
  0x54   :  { %10697 = vmatmul.mubr.msk.f32.gmra.mxu0 %vm239_vm1, %v176_v12 }
  0x55   :  { %10699 = vmatprep.mubr.msk.f32.mxu0 %vm239_vm1, %v177_v13 }
  0x56   :  { %10769 = vmatmul.mubr.msk.f32.gmra.mxu1 %vm239_vm1, %v224_v18 }
  0x58   :  { %10700 = vmatmul.mubr.msk.f32.gmra.mxu0 %vm239_vm1, %v178_v16 }
  0x59   :  { %10702 = vmatprep.mubr.msk.f32.mxu0 %vm239_vm1, %v179_v17 }
  0x5a   :  { %88 = vsyncpa [#allocation6], 0  ;;  %v181_v21 = vld [vmem:[%s11559_s5 + $0x50] sm:$0xff]  ;;  %10771 = vmatprep.mubr.msk.f32.mxu1 %vm239_vm1, %v225_v19  ;;  %v226_v22 = vld [vmem:[%s11559_s5 + $0x1b8] sm:$0xff]  ;;  %vm4365_vm2 = vcmask 195584   ;;  %vm5569_vm3 = vcmask 1045504  }
  0x5b   :  { %v227_v23 = vld [vmem:[%s11559_s5 + $0x1c0] sm:$0xff]  ;;  %v182_v24 = vld [vmem:[%s11559_s5 + $0x58] sm:$0xff]  ;;  %10772 = vmatmul.mubr.msk.f32.gmra.mxu1 %vm239_vm1, %v226_v22  ;;  %v228_v26 = vld [vmem:[%s11559_s5 + $0x1c8] sm:$0xff]  ;;  %vm5556_vm4 = vcmask 48128   ;;  %s16508_s0 = sld [smem:[#allocation8_spill]]  ;;  %vm5791_vm5 = vcmask 392384  }
  0x5c   :  { %10703 = vmatmul.mubr.msk.f32.gmra.mxu0 %vm239_vm1, %v180_v20  ;;  %v183_v25 = vld [vmem:[%s11559_s5 + $0x60] sm:$0xff]  ;;  %10774 = vmatprep.mubr.msk.f32.mxu1 %vm239_vm1, %v227_v23  ;;  %v229_v27 = vld [vmem:[%s11559_s5 + $0x1d0] sm:$0xff]  ;;  %v184_v28 = vld [vmem:[%s11559_s5 + $0x68] sm:$0xff]  ;;  %s16510_s9 = sld [smem:[#allocation10_spill]]  ;;  %vm5817_vm6 = vcmask 392192   ;;  %vm11546_vm7 = vmmov 0  }
  0x5d   :  { %10705 = vmatprep.mubr.msk.f32.mxu0 %vm239_vm1, %v181_v21  ;;  %v185_v29 = vld [vmem:[%s11559_s5 + $0x70] sm:$0xff]  ;;  %v230_v30 = vld [vmem:[%s11559_s5 + $0x1d8] sm:$0xff]  ;;  %v231_v31 = vld [vmem:[%s11559_s5 + $0x1e0] sm:$0xff]  ;;  %vm5940_vm8 = vcmask 261120   ;;  %vm6686_vm9 = vcmask 1043456   ;;  %vm6682_vm10 = vcmask 97280  }
  0x5e   :  { %v186_v32 = vld [vmem:[%s11559_s5 + $0x78] sm:$0xff]  ;;  %v187_v33 = vld [vmem:[%s11559_s5 + $0x80] sm:$0xff]  ;;  %v232_v34 = vld [vmem:[%s11559_s5 + $0x1e8] sm:$0xff]  ;;  %s16524_s7 = sld [smem:[#allocation18_spill]]  ;;  %vm6854_vm11 = vcmask 785792   ;;  %vm6881_vm12 = vcmask 785408  }
  0x5f   :  { %10775 = vmatmul.mubr.msk.f32.gmra.mxu1 %vm239_vm1, %v228_v26  ;;  %v233_v35 = vld [vmem:[%s11559_s5 + $0x1f0] sm:$0xff]  ;;  %v188_v36 = vld [vmem:[%s11559_s5 + $0x88] sm:$0xff]  ;;  %v234_v38 = vld [vmem:[%s11559_s5 + $0x1f8] sm:$0xff]  ;;  %s16525_s10 = sld [smem:[#allocation22_spill]]  ;;  %vm6971_vm13 = vcmask 64512   ;;  %s11549_s28 = smov 96  }
  0x60   :  { %10706 = vmatmul.mubr.msk.f32.gmra.mxu0 %vm239_vm1, %v182_v24  ;;  %10777 = vmatprep.mubr.msk.f32.mxu1 %vm239_vm1, %v229_v27  ;;  %v189_v37 = vld [vmem:[%s11559_s5 + $0x90] sm:$0xff]  ;;  %v190_v39 = vld [vmem:[%s11559_s5 + $0x98] sm:$0xff]  ;;  %v191_v40 = vld [vmem:[%s11559_s5 + $0xa0] sm:$0xff]  ;;  %s16526_s11 = sld [smem:[#allocation23_spill]]  ;;  %vm7890_vm14 = vcmask 1042176   ;;  %vm7891_vm15 = vcmask 519170  }
  0x61   :  { %10708 = vmatprep.mubr.msk.f32.mxu0 %vm239_vm1, %v183_v25  ;;  %v192_v41 = vld [vmem:[%s11559_s5 + $0xa8] sm:$0xff]  ;;  %v193_v42 = vld [vmem:[%s11559_s5 + $0xb0] sm:$0xff]  ;;  %v194_v43 = vld [vmem:[%s11559_s5 + $0xb8] sm:$0xff]  ;;  %s16527_s15 = sld [smem:[#allocation30_spill]]  ;;  %vm7875_vm0 = vcmask 779264  }
  0x62   :  { %v195_v44 = vld [vmem:[%s11559_s5 + $0xc0] sm:$0xff]  ;;  %v196_v45 = vld [vmem:[%s11559_s5 + $0xc8] sm:$0xff]  ;;  %v197_v46 = vld [vmem:[%s11559_s5 + $0xd0] sm:$0xff]  ;;  %s16528_s16 = sld [smem:[#allocation31_spill]] }
  0x63   :  { %10778 = vmatmul.mubr.msk.f32.gmra.mxu1 %vm239_vm1, %v230_v30  ;;  %v198_v47 = vld [vmem:[%s11559_s5 + $0xd8] sm:$0xff]  ;;  %v199_v48 = vld [vmem:[%s11559_s5 + $0xe0] sm:$0xff]  ;;  %v200_v49 = vld [vmem:[%s11559_s5 + $0xe8] sm:$0xff]  ;;  %s16529_s18 = sld [smem:[#allocation27_spill]] }
  0x64   :  { %10709 = vmatmul.mubr.msk.f32.gmra.mxu0 %vm239_vm1, %v184_v28  ;;  %10780 = vmatprep.mubr.msk.f32.mxu1 %vm239_vm1, %v231_v31  ;;  %v201_v50 = vld [vmem:[%s11559_s5 + $0xf0] sm:$0xff]  ;;  %v202_v51 = vld [vmem:[%s11559_s5 + $0xf8] sm:$0xff]  ;;  %v203_v52 = vld [vmem:[%s11559_s5 + $0x100] sm:$0xff]  ;;  %s16530_s22 = sld [smem:[#allocation24_spill]] }
  0x65   :  { %10711 = vmatprep.mubr.msk.f32.mxu0 %vm239_vm1, %v185_v29  ;;  %v204_v53 = vld [vmem:[%s11559_s5 + $0x108] sm:$0xff]  ;;  %v205_v54 = vld [vmem:[%s11559_s5 + $0x110] sm:$0xff]  ;;  %v206_v55 = vld [vmem:[%s11559_s5 + $0x118] sm:$0xff]  ;;  %s16531_s23 = sld [smem:[#allocation25_spill]] }
  0x66   :  { %v207_v56 = vld [vmem:[%s11559_s5 + $0x120] sm:$0xff]  ;;  %v208_v57 = vld [vmem:[%s11559_s5 + $0x128] sm:$0xff]  ;;  %v209_v58 = vld [vmem:[%s11559_s5 + $0x130] sm:$0xff]  ;;  %s16532_s26 = sld [smem:[#allocation26_spill]] }
  0x67   :  { %10781 = vmatmul.mubr.msk.f32.gmra.mxu1 %vm239_vm1, %v232_v34  ;;  %v210_v59 = vld [vmem:[%s11559_s5 + $0x138] sm:$0xff]  ;;  %v211_v60 = vld [vmem:[%s11559_s5 + $0x140] sm:$0xff]  ;;  %v212_v61 = vld [vmem:[%s11559_s5 + $0x148] sm:$0xff]  ;;  %s16533_s1 = sld [smem:[#allocation28_spill]] }
  0x68   :  { %10712 = vmatmul.mubr.msk.f32.gmra.mxu0 %vm239_vm1, %v186_v32  ;;  %10783 = vmatprep.mubr.msk.f32.mxu1 %vm239_vm1, %v233_v35  ;;  %v213_v62 = vld [vmem:[%s11559_s5 + $0x150] sm:$0xff]  ;;  %v214_v63 = vld [vmem:[%s11559_s5 + $0x158] sm:$0xff]  ;;  %v215_v0 = vld [vmem:[%s11559_s5 + $0x160] sm:$0xff]  ;;  %s16534_s2 = sld [smem:[#allocation29_spill]] }
  0x69   :  { %10714 = vmatprep.mubr.msk.f32.mxu0 %vm239_vm1, %v187_v33  ;;  %v216_v1 = vld [vmem:[%s11559_s5 + $0x168] sm:$0xff]  ;;  %v217_v2 = vld [vmem:[%s11559_s5 + $0x170] sm:$0xff]  ;;  %v218_v3 = vld [vmem:[%s11559_s5 + $0x178] sm:$0xff]  ;;  %s16509_s5 = sld [smem:[#allocation9_spill]] }
  0x6a   :  { %v1028_v4 = vld [vmem:[%s11579_s21 + $0x8] sm:$0xff] }
  0x6b   :  { %10784 = vmatmul.mubr.msk.f32.gmra.mxu1 %vm239_vm1, %v234_v38  ;;  %v8215_v5 = vld [vmem:[%s11579_s21 + $0x208] sm:$0xff] }
  0x6c   :  { %10715 = vmatmul.mubr.msk.f32.gmra.mxu0 %vm239_vm1, %v188_v36  ;;  %1155 = vmatprep.mubr.f32.mxu1 %v1028_v4 }
  0x6d   :  { %10717 = vmatprep.mubr.msk.f32.mxu0 %vm239_vm1, %v189_v37 }
  0x70   :  { %10718 = vmatmul.mubr.msk.f32.gmra.mxu0 %vm239_vm1, %v190_v39 }
  0x71   :  { %10720 = vmatprep.mubr.msk.f32.mxu0 %vm239_vm1, %v191_v40 }
  0x74   :  { %10721 = vmatmul.mubr.msk.f32.gmra.mxu0 %vm239_vm1, %v192_v41 }
  0x75   :  { %10723 = vmatprep.mubr.msk.f32.mxu0 %vm239_vm1, %v193_v42 }
  0x78   :  { %10724 = vmatmul.mubr.msk.f32.gmra.mxu0 %vm239_vm1, %v194_v43  ;;  %v11953_v43 = vld [vmem:[%s11569_s13] ss:$0 sm:$0xff]  ;;  %s11544_s13 = smov 24  }
  0x79   :  { %10726 = vmatprep.mubr.msk.f32.mxu0 %vm239_vm1, %v195_v44 }
  0x7c   :  { %10727 = vmatmul.mubr.msk.f32.gmra.mxu0 %vm239_vm1, %v196_v45 }
  0x7d   :  { %10729 = vmatprep.mubr.msk.f32.mxu0 %vm239_vm1, %v197_v46 }
  0x80   :  { %10730 = vmatmul.mubr.msk.f32.gmra.mxu0 %vm239_vm1, %v198_v47 }
  0x81   :  { %10732 = vmatprep.mubr.msk.f32.mxu0 %vm239_vm1, %v199_v48 }
  0x84   :  { %10733 = vmatmul.mubr.msk.f32.gmra.mxu0 %vm239_vm1, %v200_v49  ;;  %v11960_v49 = vld [vmem:[%s11574_s17] ss:$0 sm:$0xff]  ;;  %s16511_s17 = sld [smem:[#allocation11_spill]] }
  0x85   :  { %10735 = vmatprep.mubr.msk.f32.mxu0 %vm239_vm1, %v201_v50 }
  0x88   :  { %10736 = vmatmul.mubr.msk.f32.gmra.mxu0 %vm239_vm1, %v202_v51 }
  0x89   :  { %10738 = vmatprep.mubr.msk.f32.mxu0 %vm239_vm1, %v203_v52 }
  0x8c   :  { %10739 = vmatmul.mubr.msk.f32.gmra.mxu0 %vm239_vm1, %v204_v53 }
  0x8d   :  { %10741 = vmatprep.mubr.msk.f32.mxu0 %vm239_vm1, %v205_v54 }
  0x90   :  { %10742 = vmatmul.mubr.msk.f32.gmra.mxu0 %vm239_vm1, %v206_v55 }
  0x91   :  { %10744 = vmatprep.mubr.msk.f32.mxu0 %vm239_vm1, %v207_v56 }
  0x94   :  { %10745 = vmatmul.mubr.msk.f32.gmra.mxu0 %vm239_vm1, %v208_v57 }
  0x95   :  { %10747 = vmatprep.mubr.msk.f32.mxu0 %vm239_vm1, %v209_v58 }
  0x98   :  { %10748 = vmatmul.mubr.msk.f32.gmra.mxu0 %vm239_vm1, %v210_v59 }
  0x99   :  { %10750 = vmatprep.mubr.msk.f32.mxu0 %vm239_vm1, %v211_v60 }
  0x9c   :  { %10751 = vmatmul.mubr.msk.f32.gmra.mxu0 %vm239_vm1, %v212_v61 }
  0x9d   :  { %10753 = vmatprep.mubr.msk.f32.mxu0 %vm239_vm1, %v213_v62 }
  0xa0   :  { %10754 = vmatmul.mubr.msk.f32.gmra.mxu0 %vm239_vm1, %v214_v63 }
  0xa1   :  { %10756 = vmatprep.mubr.msk.f32.mxu0 %vm239_vm1, %v215_v0 }
  0xa4   :  { %10757 = vmatmul.mubr.msk.f32.gmra.mxu0 %vm239_vm1, %v216_v1 }
  0xa5   :  { %10759 = vmatprep.mubr.msk.f32.mxu0 %vm239_vm1, %v217_v2 }
  0xa8   :  { %10760 = vmatmul.mubr.msk.f32.gmra.mxu0 %vm239_vm1, %v218_v3  ;;  %vm7892_vm1 = vmor %vm7891_vm15, %vm7890_vm14 }
  0xa9   :  { %1510 = vmatprep.mubr.f32.mxu0 %v8215_v5 }
 0x10c   :  { %v11900_v6 = vpop.f32.mrf.mxu0 }
 0x10e   :  { %v11902_v7 = vpop.f32.mrf.mxu0  ;;  %v11920_v20 = vpop.f32.mrf.mxu1 }
 0x10f   :  { %15815 = vst [vmem:[#allocation32_spill] sm:$0xff] %v11920_v20 }
 0x110   :  { %v11904_v8 = vpop.f32.mrf.mxu0  ;;  %v11922_v23 = vpop.f32.mrf.mxu1 }
 0x111   :  { %15816 = vst [vmem:[#allocation33_spill] sm:$0xff] %v11922_v23 }
 0x112   :  { %v11906_v9 = vpop.f32.mrf.mxu0  ;;  %v11928_v26 = vpop.f32.mrf.mxu1 }
 0x114   :  { %v11908_v10 = vpop.f32.mrf.mxu0  ;;  %v11934_v29 = vpop.f32.mrf.mxu1 }
 0x116   :  { %v11910_v11 = vpop.f32.mrf.mxu0  ;;  %v11940_v32 = vpop.f32.mrf.mxu1 }
 0x118   :  { %v11912_v12 = vpop.f32.mrf.mxu0  ;;  %v11946_v35 = vpop.f32.mrf.mxu1 }
 0x11a   :  { %v11914_v13 = vpop.f32.mrf.mxu0 }
 0x11b   :  { %v11948_v38 = vpop.f32.mrf.mxu1 }
 0x11c   :  { %v11916_v14 = vpop.f32.mrf.mxu0 }
 0x11d   :  { %v11950_v41 = vpop.f32.mrf.mxu1 }
 0x11e   :  { %v11918_v15 = vpop.f32.mrf.mxu0 }
 0x11f   :  { %v11956_v46 = vpop.f32.mrf.mxu1 }
 0x120   :  { %v10707_v16 = vpop.f32.mrf.mxu0 }
 0x121   :  { %v11969_v58 = vpop.f32.mrf.mxu1  ;;  %v839_v2 = vmul.f32 %v10707_v16, %v11953_v43 }
 0x122   :  { %v552_v17 = vpop.f32.mrf.mxu0 }
 0x123   :  { %v838_v16 = vmul.f32 %v11953_v43, %v552_v17  ;;  %v837_v17 = vmul.f32 %v11916_v14, %v11953_v43 }
 0x124   :  { %v10710_v18 = vpop.f32.mrf.mxu0 }
 0x125   :  { %v841_v52 = vmul.f32 %v10710_v18, %v11953_v43 }
 0x126   :  { %v562_v19 = vpop.f32.mrf.mxu0 }
 0x127   :  { %v840_v59 = vmul.f32 %v11953_v43, %v562_v19  ;;  %v912_v3 = vadd.f32 %v11960_v49, %v841_v52 }
 0x128   :  { %v10713_v21 = vpop.f32.mrf.mxu0 }
 0x129   :  { %v843_v44 = vmul.f32 %v10713_v21, %v11953_v43 }
 0x12a   :  { %v572_v22 = vpop.f32.mrf.mxu0 }
 0x12b   :  { %v842_v47 = vmul.f32 %v11953_v43, %v572_v22  ;;  %v914_v53 = vadd.f32 %v11960_v49, %v843_v44  ;;  %v11992_v22 = vpop.f32.mrf.mxu1 }
 0x12c   :  { %v11924_v24 = vpop.f32.mrf.mxu0 }
 0x12d   :  { %v913_v60 = vadd.f32 %v11960_v49, %v842_v47  ;;  %v11982_v4 = vmax.f32 %v914_v53, 0.0  ;;  %v12023_v14 = vpop.f32.mrf.mxu1 }
 0x12e   :  { %v11926_v25 = vpop.f32.mrf.mxu0 }
 0x130   :  { %v11930_v27 = vpop.f32.mrf.mxu0 }
 0x132   :  { %v11932_v28 = vpop.f32.mrf.mxu0 }
 0x134   :  { %v11936_v30 = vpop.f32.mrf.mxu0 }
 0x136   :  { %v11938_v31 = vpop.f32.mrf.mxu0 }
 0x138   :  { %v11942_v33 = vpop.f32.mrf.mxu0 }
 0x13a   :  { %v11944_v34 = vpop.f32.mrf.mxu0 }
 0x13c   :  { %v10728_v36 = vpop.f32.mrf.mxu0 }
 0x13d   :  { %v853_v44 = vmul.f32 %v10728_v36, %v11953_v43 }
 0x13e   :  { %v622_v37 = vpop.f32.mrf.mxu0 }
 0x140   :  { %v10731_v39 = vpop.f32.mrf.mxu0 }
 0x141   :  { %v855_v62 = vmul.f32 %v10731_v39, %v11953_v43  ;;  %v911_v39 = vadd.f32 %v11960_v49, %v840_v59  ;;  %v924_v59 = vadd.f32 %v11960_v49, %v853_v44 }
 0x142   :  { %v632_v40 = vpop.f32.mrf.mxu0 }
 0x143   :  { %v854_v18 = vmul.f32 %v11953_v43, %v632_v40 }
 0x144   :  { %v10734_v42 = vpop.f32.mrf.mxu0 }
 0x145   :  { %v857_v50 = vmul.f32 %v10734_v42, %v11953_v43  ;;  %v11996_v42 = vmax.f32 %v913_v60, 0.0  ;;  %v925_v52 = vadd.f32 %v11960_v49, %v854_v18  ;;  %v834_v18 = vmul.f32 %v11953_v43, %v11914_v13 }
 0x146   :  { %v642_v45 = vpop.f32.mrf.mxu0  ;;  %v833_v13 = vmul.f32 %v11908_v10, %v11953_v43 }
 0x147   :  { %v856_v55 = vmul.f32 %v11953_v43, %v642_v45  ;;  %v928_v63 = vadd.f32 %v11960_v49, %v857_v50  ;;  %v926_v45 = vadd.f32 %v11960_v49, %v855_v62  ;;  %v12011_v50 = vmax.f32 %v912_v3, 0.0 }
 0x148   :  { %v10737_v48 = vpop.f32.mrf.mxu0  ;;  %v908_v62 = vadd.f32 %v11960_v49, %v837_v17  ;;  %v12053_v3 = vmax.f32 %v925_v52, 0.0 }
 0x149   :  { %v859_v51 = vmul.f32 %v10737_v48, %v11953_v43  ;;  %v927_v19 = vadd.f32 %v11960_v49, %v856_v55  ;;  %v12004_v47 = vmax.f32 %v928_v63, 0.0  ;;  %v910_v48 = vadd.f32 %v11960_v49, %v839_v2 }
 0x14a   :  { %v652_v54 = vpop.f32.mrf.mxu0  ;;  %v909_v55 = vadd.f32 %v11960_v49, %v838_v16  ;;  %v12037_v60 = vmax.f32 %v926_v45, 0.0  ;;  %v12071_v45 = vmax.f32 %v924_v59, 0.0 }
 0x14b   :  { %v930_v56 = vadd.f32 %v11960_v49, %v859_v51  ;;  %v858_v57 = vmul.f32 %v11953_v43, %v652_v54  ;;  %v852_v51 = vmul.f32 %v11953_v43, %v622_v37  ;;  %v12019_v53 = vmax.f32 %v927_v19, 0.0 }
 0x14c   :  { %v11973_v61 = vpop.f32.mrf.mxu0  ;;  %v836_v54 = vmul.f32 %v11953_v43, %v11918_v15  ;;  %15822 = vst [vmem:[#allocation39_spill] sm:$0xff] %v12037_v60  ;;  %v835_v15 = vmul.f32 %v11912_v12, %v11953_v43  ;;  %v12044_v63 = vmax.f32 %v910_v48, 0.0  ;;  %v12057_v12 = vpop.f32.mrf.mxu1  ;;  %v12062_v16 = vmax.f32 %v909_v55, 0.0 }
 0x14d   :  { %15817 = vst [vmem:[#allocation34_spill] sm:$0xff] %v11973_v61  ;;  %v11977_v0 = vmax.f32 %v930_v56, 0.0  ;;  %v929_v1 = vadd.f32 %v11960_v49, %v858_v57  ;;  %v12028_v56 = vmax.f32 %v911_v39, 0.0  ;;  %v851_v57 = vmul.f32 %v11942_v33, %v11953_v43 }
 0x14e   :  { %v11984_v5 = vpop.f32.mrf.mxu0  ;;  %v923_v2 = vadd.f32 %v11960_v49, %v852_v51  ;;  %v907_v19 = vadd.f32 %v11960_v49, %v836_v54  ;;  %15823 = vst [vmem:[#allocation40_spill] sm:$0xff] %v12062_v16  ;;  %v849_v39 = vmul.f32 %v11936_v30, %v11953_v43  ;;  %v906_v17 = vadd.f32 %v11960_v49, %v835_v15  ;;  %v12091_v10 = vpop.f32.mrf.mxu1 }
 0x14f   :  { %15818 = vst [vmem:[#allocation35_spill] sm:$0xff] %v11977_v0  ;;  %15819 = vst [vmem:[#allocation36_spill] sm:$0xff] %v11984_v5  ;;  %v11988_v21 = vmax.f32 %v929_v1, 0.0  ;;  %8918 = vmatprep.subr.mxu1 %v11977_v0  ;;  %9078 = vmatprep.subr.mxu0 %v11977_v0  ;;  %v850_v1 = vmul.f32 %v11953_v43, %v11944_v34  ;;  %v922_v44 = vadd.f32 %v11960_v49, %v851_v57 }
 0x150   :  { %8919 = vmatpush3.msra.mxu1 %v11982_v4  ;;  %9079 = vmatpush3.msra.mxu0 %v11982_v4  ;;  %v12000_v40 = vpop.f32.mrf.mxu0  ;;  %v12078_v48 = vmax.f32 %v908_v62, 0.0  ;;  %v848_v51 = vmul.f32 %v11953_v43, %v11938_v31  ;;  %v12087_v54 = vmax.f32 %v923_v2, 0.0  ;;  %v832_v55 = vmul.f32 %v11953_v43, %v11910_v11 }
 0x151   :  { %15820 = vst [vmem:[#allocation37_spill] sm:$0xff] %v11988_v21  ;;  %8920 = vmatprep.subr.mxu1 %v11988_v21  ;;  %9080 = vmatprep.subr.mxu0 %v11988_v21  ;;  %v921_v52 = vadd.f32 %v11960_v49, %v850_v1  ;;  %v905_v57 = vadd.f32 %v11960_v49, %v834_v18  ;;  %v12096_v59 = vmax.f32 %v907_v19, 0.0  ;;  %v12105_v1 = vmax.f32 %v922_v44, 0.0 }
 0x152   :  { %8921 = vmatpush3.msra.mxu1 %v11996_v42  ;;  %9081 = vmatpush3.msra.mxu0 %v11996_v42  ;;  %v12015_v36 = vpop.f32.mrf.mxu0  ;;  %v847_v15 = vmul.f32 %v11930_v27, %v11953_v43  ;;  %v920_v62 = vadd.f32 %v11960_v49, %v849_v39  ;;  %v831_v11 = vmul.f32 %v11904_v8, %v11953_v43  ;;  %v12112_v18 = vmax.f32 %v906_v17, 0.0  ;;  %v10785_v8 = vpop.f32.mrf.mxu1 }
 0x153   :  { %15821 = vst [vmem:[#allocation38_spill] sm:$0xff] %v12015_v36  ;;  %8922 = vmatprep.subr.mxu1 %v12004_v47  ;;  %9082 = vmatprep.subr.mxu0 %v12004_v47  ;;  %15824 = vst [vmem:[#allocation41_spill] sm:$0xff] %v12105_v1  ;;  %v904_v2 = vadd.f32 %v11960_v49, %v833_v13  ;;  %v846_v19 = vmul.f32 %v11953_v43, %v11932_v28  ;;  %v12121_v44 = vmax.f32 %v921_v52, 0.0 }
 0x154   :  { %8923 = vmatpush3.msra.mxu1 %v12011_v50  ;;  %9083 = vmatpush3.msra.mxu0 %v12011_v50  ;;  %v12032_v37 = vpop.f32.mrf.mxu0  ;;  %v919_v39 = vadd.f32 %v11960_v49, %v848_v51  ;;  %v830_v13 = vmul.f32 %v11953_v43, %v11906_v9  ;;  %v903_v17 = vadd.f32 %v11960_v49, %v832_v55  ;;  %v12128_v5 = vmax.f32 %v905_v57, 0.0 }
 0x155   :  { %8924 = vmatprep.subr.mxu1 %v12019_v53  ;;  %9084 = vmatprep.subr.mxu0 %v12019_v53  ;;  %15825 = vst [vmem:[#allocation42_spill] sm:$0xff] %v12121_v44  ;;  %v845_v51 = vmul.f32 %v11924_v24, %v11953_v43  ;;  %v918_v52 = vadd.f32 %v11960_v49, %v847_v15  ;;  %v12137_v23 = vmax.f32 %v920_v62, 0.0  ;;  %v12144_v57 = vmax.f32 %v904_v2, 0.0 }
 0x156   :  { %8925 = vmatpush3.msra.mxu1 %v12028_v56  ;;  %9085 = vmatpush3.msra.mxu0 %v12028_v56  ;;  %v12048_v33 = vpop.f32.mrf.mxu0  ;;  %15826 = vst [vmem:[#allocation43_spill] sm:$0xff] %v12128_v5  ;;  %v829_v9 = vmul.f32 %v11900_v6, %v11953_v43  ;;  %v902_v55 = vadd.f32 %v11960_v49, %v831_v11  ;;  %v12154_v20 = vmax.f32 %v919_v39, 0.0  ;;  %v812_v6 = vpop.f32.mrf.mxu1  ;;  %v12161_v36 = vmax.f32 %v903_v17, 0.0 }
 0x157   :  { %8926 = vmatprep.subr.mxu1 %v12037_v60  ;;  %9086 = vmatprep.subr.mxu0 %v12037_v60  ;;  %15827 = vst [vmem:[#allocation44_spill] sm:$0xff] %v12137_v23  ;;  %15828 = vst [vmem:[#allocation45_spill] sm:$0xff] %v12144_v57  ;;  %v891_v15 = vmul.f32 %v10785_v8, %v11953_v43  ;;  %v844_v62 = vmul.f32 %v11953_v43, %v11926_v25  ;;  %v12166_v39 = vmax.f32 %v918_v52, 0.0 }
 0x158   :  { %8927 = vmatpush3.msra.mxu1 %v12044_v63  ;;  %9087 = vmatpush3.msra.mxu0 %v12044_v63  ;;  %v12066_v34 = vpop.f32.mrf.mxu0  ;;  %v917_v61 = vadd.f32 %v11960_v49, %v846_v19  ;;  %15829 = vst [vmem:[#allocation46_spill] sm:$0xff] %v12154_v20  ;;  %v828_v11 = vmul.f32 %v11953_v43, %v11902_v7  ;;  %15830 = vst [vmem:[#allocation47_spill] sm:$0xff] %v12161_v36  ;;  %v12171_v7 = vmax.f32 %v902_v55, 0.0 }
 0x159   :  { %8928 = vmatprep.subr.mxu1 %v12053_v3  ;;  %9088 = vmatprep.subr.mxu0 %v12053_v3  ;;  %v901_v2 = vadd.f32 %v11960_v49, %v830_v13  ;;  %v916_v19 = vadd.f32 %v11960_v49, %v845_v51  ;;  %15831 = vst [vmem:[#allocation48_spill] sm:$0xff] %v12166_v39 }
 0x15a   :  { %8929 = vmatpush3.msra.mxu1 %v12062_v16  ;;  %9089 = vmatpush3.msra.mxu0 %v12062_v16  ;;  %v12082_v30 = vpop.f32.mrf.mxu0  ;;  %v900_v8 = vadd.f32 %v11960_v49, %v829_v9  ;;  %15832 = vst [vmem:[#allocation49_spill] sm:$0xff] %v12171_v7  ;;  %v962_v17 = vadd.f32 %v11960_v49, %v891_v15  ;;  %v12178_v52 = vmax.f32 %v917_v61, 0.0 }
 0x15b   :  { %8930 = vmatprep.subr.mxu1 %v12071_v45  ;;  %9090 = vmatprep.subr.mxu0 %v12071_v45  ;;  %v915_v51 = vadd.f32 %v11960_v49, %v844_v62  ;;  %v899_v9 = vadd.f32 %v11960_v49, %v828_v11  ;;  %v12183_v55 = vmax.f32 %v901_v2, 0.0  ;;  %v12187_v15 = vmax.f32 %v916_v19, 0.0 }
 0x15c   :  { %8931 = vmatpush3.msra.mxu1 %v12078_v48  ;;  %9091 = vmatpush3.msra.mxu0 %v12078_v48  ;;  %v12100_v31 = vpop.f32.mrf.mxu0  ;;  %15833 = vst [vmem:[#allocation50_spill] sm:$0xff] %v12178_v52  ;;  %v889_v62 = vmul.f32 %v12057_v12, %v11953_v43  ;;  %v12196_v11 = vmax.f32 %v962_v17, 0.0 }
 0x15d   :  { %8932 = vmatprep.subr.mxu1 %v12087_v54  ;;  %9092 = vmatprep.subr.mxu0 %v12087_v54  ;;  %15834 = vst [vmem:[#allocation51_spill] sm:$0xff] %v12183_v55  ;;  %15835 = vst [vmem:[#allocation52_spill] sm:$0xff] %v12187_v15  ;;  %v12208_v17 = vmax.f32 %v899_v9, 0.0  ;;  %v8214_v9 = vld [vmem:[%s11579_s21 + $0x200] sm:$0xff] }
 0x15e   :  { %8933 = vmatpush3.msra.mxu1 %v12096_v59  ;;  %9093 = vmatpush3.msra.mxu0 %v12096_v59  ;;  %v12116_v27 = vpop.f32.mrf.mxu0  ;;  %15837 = vst [vmem:[#allocation54_spill] sm:$0xff] %v12196_v11 }
 0x15f   :  { %8934 = vmatprep.subr.mxu1 %v12105_v1  ;;  %9094 = vmatprep.subr.mxu0 %v12105_v1  ;;  %15839 = vst [vmem:[#allocation56_spill] sm:$0xff] %v12208_v17 }
 0x160   :  { %8935 = vmatpush3.msra.mxu1 %v12112_v18  ;;  %9095 = vmatpush3.msra.mxu0 %v12112_v18  ;;  %v12132_v28 = vpop.f32.mrf.mxu0 }
 0x161   :  { %8936 = vmatprep.subr.mxu1 %v12121_v44  ;;  %9096 = vmatprep.subr.mxu0 %v12121_v44 }
 0x162   :  { %8937 = vmatpush3.msra.mxu1 %v12128_v5  ;;  %9097 = vmatpush3.msra.mxu0 %v12128_v5  ;;  %v12148_v24 = vpop.f32.mrf.mxu0 }
 0x163   :  { %8938 = vmatprep.subr.mxu1 %v12137_v23  ;;  %9098 = vmatprep.subr.mxu0 %v12137_v23 }
 0x164   :  { %8939 = vmatpush3.msra.mxu1 %v12144_v57  ;;  %9099 = vmatpush3.msra.mxu0 %v12144_v57  ;;  %v10758_v25 = vpop.f32.mrf.mxu0  ;;  %v890_v57 = vmul.f32 %v11953_v43, %v812_v6  ;;  %v12194_v6 = vmax.f32 %v900_v8, 0.0 }
 0x165   :  { %8940 = vmatprep.subr.mxu1 %v12154_v20  ;;  %9100 = vmatprep.subr.mxu0 %v12154_v20 }
 0x166   :  { %8941 = vmatpush3.msra.mxu1 %v12161_v36  ;;  %9101 = vmatpush3.msra.mxu0 %v12161_v36  ;;  %v722_v13 = vpop.f32.mrf.mxu0  ;;  %15836 = vst [vmem:[#allocation53_spill] sm:$0xff] %v12194_v6  ;;  %v961_v2 = vadd.f32 %v11960_v49, %v890_v57  ;;  %v888_v57 = vmul.f32 %v11953_v43, %v12091_v10 }
 0x167   :  { %8942 = vmatprep.subr.mxu1 %v12166_v39  ;;  %9102 = vmatprep.subr.mxu0 %v12166_v39 }
 0x168   :  { %8943 = vmatpush3.msra.mxu1 %v12171_v7  ;;  %9103 = vmatpush3.msra.mxu0 %v12171_v7  ;;  %v10761_v36 = vpop.f32.mrf.mxu0  ;;  %v12201_v7 = vmax.f32 %v915_v51, 0.0  ;;  %v1027_v51 = vld [vmem:[%s11579_s21] sm:$0xff]  ;;  %v12223_v10 = vmax.f32 %v961_v2, 0.0  ;;  %v1032_v2 = vld [vmem:[%s11579_s21 + $0x28] sm:$0xff] }
 0x169   :  { %v875_v61 = vmul.f32 %v10761_v36, %v11953_v43  ;;  %8944 = vmatprep.subr.mxu1 %v12178_v52  ;;  %9104 = vmatprep.subr.mxu0 %v12178_v52  ;;  %v873_v36 = vmul.f32 %v10758_v25, %v11953_v43  ;;  %v960_v25 = vadd.f32 %v11960_v49, %v889_v62 }
 0x16a   :  { %8945 = vmatpush3.msra.mxu1 %v12183_v55  ;;  %9105 = vmatpush3.msra.mxu0 %v12183_v55  ;;  %v732_v19 = vpop.f32.mrf.mxu0  ;;  %15838 = vst [vmem:[#allocation55_spill] sm:$0xff] %v12201_v7 }
 0x16b   :  { %v946_v12 = vadd.f32 %v11960_v49, %v875_v61  ;;  %v874_v8 = vmul.f32 %v11953_v43, %v732_v19  ;;  %8946 = vmatprep.subr.mxu1 %v12187_v15  ;;  %9106 = vmatprep.subr.mxu0 %v12187_v15  ;;  %v872_v61 = vmul.f32 %v11953_v43, %v722_v13 }
 0x16c   :  { %8947 = vmatpush3.msra.mxu1 %v12194_v6  ;;  %9107 = vmatpush3.msra.mxu0 %v12194_v6  ;;  %v887_v13 = vmul.f32 %v11992_v22, %v11953_v43  ;;  %v944_v62 = vadd.f32 %v11960_v49, %v873_v36  ;;  %v8219_v36 = vld [vmem:[%s11579_s21 + $0x228] sm:$0xff] }
 0x16d   :  { %v12217_v55 = vmax.f32 %v946_v12, 0.0  ;;  %v945_v19 = vadd.f32 %v11960_v49, %v874_v8  ;;  %8948 = vmatprep.subr.mxu1 %v12201_v7  ;;  %9108 = vmatprep.subr.mxu0 %v12201_v7  ;;  %v959_v8 = vadd.f32 %v11960_v49, %v888_v57  ;;  %v12238_v7 = vmax.f32 %v960_v25, 0.0 }
 0x16e   :  { %8949 = vmatpush3.msra.mxu1 %v12208_v17  ;;  %9109 = vmatpush3.msra.mxu0 %v12208_v17  ;;  %v871_v17 = vmul.f32 %v12132_v28, %v11953_v43  ;;  %v943_v22 = vadd.f32 %v11960_v49, %v872_v61  ;;  %v886_v57 = vmul.f32 %v11953_v43, %v12023_v14  ;;  %v12252_v25 = vmax.f32 %v944_v62, 0.0  ;;  %v8218_v61 = vld [vmem:[%s11579_s21 + $0x220] sm:$0xff]  ;;  %v1036_v62 = vld [vmem:[%s11579_s21 + $0x48] sm:$0xff] }
 0x16f   :  { %v12230_v12 = vmax.f32 %v945_v19, 0.0  ;;  %1156 = vmatmul.mubr.f32.vlgmr.msra.gmra.mxu1 %v1027_v51  ;;  %8998 = vmatprep.subr.mxu1 %v12196_v11  ;;  %v1031_v51 = vld [vmem:[%s11579_s21 + $0x20] sm:$0xff]  ;;  %v958_v19 = vadd.f32 %v11960_v49, %v887_v13  ;;  %v870_v28 = vmul.f32 %v11953_v43, %v12148_v24  ;;  %v885_v14 = vmul.f32 %v11956_v46, %v11953_v43 }
 0x170   :  { %1511 = vmatmul.mubr.f32.vlgmr.msra.gmra.mxu0 %v8214_v9  ;;  %9238 = vmatprep.subr.mxu0 %v11977_v0  ;;  %v12256_v9 = vmax.f32 %v959_v8, 0.0  ;;  %v942_v13 = vadd.f32 %v11960_v49, %v871_v17  ;;  %v957_v24 = vadd.f32 %v11960_v49, %v886_v57  ;;  %v869_v8 = vmul.f32 %v12100_v31, %v11953_v43  ;;  %v8223_v17 = vld [vmem:[%s11579_s21 + $0x248] sm:$0xff] }
 0x171   :  { %8999 = vmatpush3.msra.mxu1 %v12217_v55  ;;  %9239 = vmatpush3.msra.mxu0 %v11982_v4  ;;  %v941_v46 = vadd.f32 %v11960_v49, %v870_v28  ;;  %v956_v57 = vadd.f32 %v11960_v49, %v885_v14  ;;  %v868_v31 = vmul.f32 %v11953_v43, %v12116_v27 }
 0x172   :  { %9000 = vmatprep.subr.mxu1 %v12223_v10  ;;  %9240 = vmatprep.subr.mxu0 %v11988_v21  ;;  %15840 = vst [vmem:[#allocation57_spill] sm:$0xff] %v12256_v9  ;;  %v12262_v21 = vmax.f32 %v943_v22, 0.0  ;;  %v884_v22 = vmul.f32 %v11953_v43, %v11969_v58  ;;  %v12288_v28 = vmax.f32 %v957_v24, 0.0  ;;  %v883_v58 = vmul.f32 %v11948_v38, %v11953_v43 }
 0x173   :  { %1160 = vmatprep.mubr.f32.mxu1 %v1032_v2  ;;  %9001 = vmatpush3.msra.mxu1 %v12230_v12  ;;  %v12270_v2 = vmax.f32 %v958_v19, 0.0  ;;  %v8222_v19 = vld [vmem:[%s11579_s21 + $0x240] sm:$0xff]  ;;  %v12294_v27 = vmax.f32 %v941_v46, 0.0  ;;  %v867_v24 = vmul.f32 %v12066_v34, %v11953_v43  ;;  %v939_v38 = vadd.f32 %v11960_v49, %v868_v31 }
 0x174   :  { %1515 = vmatprep.mubr.f32.mxu0 %v8219_v36  ;;  %9241 = vmatpush3.msra.mxu0 %v11996_v42  ;;  %v1035_v36 = vld [vmem:[%s11579_s21 + $0x40] sm:$0xff]  ;;  %v955_v14 = vadd.f32 %v11960_v49, %v884_v22 }
 0x175   :  { %1161 = vmatmul.mubr.f32.gmra.mxu1 %v1031_v51  ;;  %9002 = vmatprep.subr.mxu1 %v12238_v7  ;;  %v12284_v51 = vmax.f32 %v942_v13, 0.0  ;;  %v1040_v13 = vld [vmem:[%s11579_s21 + $0x68] sm:$0xff]  ;;  %v1039_v46 = vld [vmem:[%s11579_s21 + $0x60] sm:$0xff]  ;;  %v938_v31 = vadd.f32 %v11960_v49, %v867_v24 }
 0x176   :  { %1516 = vmatmul.mubr.f32.gmra.mxu0 %v8218_v61  ;;  %9242 = vmatprep.subr.mxu0 %v12004_v47  ;;  %v940_v61 = vadd.f32 %v11960_v49, %v869_v8  ;;  %v8227_v8 = vld [vmem:[%s11579_s21 + $0x268] sm:$0xff]  ;;  %v8226_v34 = vld [vmem:[%s11579_s21 + $0x260] sm:$0xff] }
 0x177   :  { %9003 = vmatpush3.msra.mxu1 %v12252_v25  ;;  %9243 = vmatpush3.msra.mxu0 %v12011_v50  ;;  %v1043_v24 = vld [vmem:[%s11579_s21 + $0x80] sm:$0xff] }
 0x178   :  { %9004 = vmatprep.subr.mxu1 %v12256_v9  ;;  %9244 = vmatprep.subr.mxu0 %v12019_v53  ;;  %v12312_v22 = vmax.f32 %v940_v61, 0.0  ;;  %v881_v61 = vmul.f32 %v11940_v32, %v11953_v43 }
 0x179   :  { %1165 = vmatprep.mubr.f32.mxu1 %v1036_v62  ;;  %9005 = vmatpush3.msra.mxu1 %v12262_v21  ;;  %v12302_v62 = vmax.f32 %v956_v57, 0.0  ;;  %v12318_v57 = vmax.f32 %v955_v14, 0.0 }
 0x17a   :  { %1520 = vmatprep.mubr.f32.mxu0 %v8223_v17  ;;  %9245 = vmatpush3.msra.mxu0 %v12028_v56  ;;  %v954_v17 = vadd.f32 %v11960_v49, %v883_v58  ;;  %v12324_v58 = vmax.f32 %v939_v38, 0.0  ;;  %v865_v38 = vmul.f32 %v12032_v37, %v11953_v43  ;;  %v864_v37 = vmul.f32 %v11953_v43, %v12048_v33  ;;  %v8235_v33 = vld [vmem:[%s11579_s21 + $0x2a8] sm:$0xff] }
 0x17b   :  { %1166 = vmatmul.mubr.f32.gmra.mxu1 %v1035_v36  ;;  %9006 = vmatprep.subr.mxu1 %v12270_v2  ;;  %v882_v36 = vmul.f32 %v11953_v43, %v11950_v41  ;;  %15841 = vst [vmem:[#allocation58_spill] sm:$0xff] %v12318_v57  ;;  %v1044_v41 = vld [vmem:[%s11579_s21 + $0x88] sm:$0xff] }
 0x17c   :  { %1521 = vmatmul.mubr.f32.gmra.mxu0 %v8222_v19  ;;  %9246 = vmatprep.subr.mxu0 %v12037_v60  ;;  %v866_v19 = vmul.f32 %v11953_v43, %v12082_v30  ;;  %v12331_v14 = vmax.f32 %v954_v17, 0.0  ;;  %v8231_v30 = vld [vmem:[%s11579_s21 + $0x288] sm:$0xff]  ;;  %v880_v17 = vmul.f32 %v11953_v43, %v11946_v35  ;;  %v879_v35 = vmul.f32 %v11928_v26, %v11953_v43 }
 0x17d   :  { %9007 = vmatpush3.msra.mxu1 %v12284_v51  ;;  %9247 = vmatpush3.msra.mxu0 %v12044_v63 }
 0x17e   :  { %9008 = vmatprep.subr.mxu1 %v12288_v28  ;;  %9248 = vmatprep.subr.mxu0 %v12053_v3  ;;  %v937_v32 = vadd.f32 %v11960_v49, %v866_v19  ;;  %v936_v19 = vadd.f32 %v11960_v49, %v865_v38  ;;  %v8234_v38 = vld [vmem:[%s11579_s21 + $0x2a0] sm:$0xff] }
 0x17f   :  { %1170 = vmatprep.mubr.f32.mxu1 %v1040_v13  ;;  %9009 = vmatpush3.msra.mxu1 %v12294_v27  ;;  %v953_v13 = vadd.f32 %v11960_v49, %v882_v36 }
 0x180   :  { %1525 = vmatprep.mubr.f32.mxu0 %v8227_v8  ;;  %9249 = vmatpush3.msra.mxu0 %v12062_v16  ;;  %v12342_v8 = vmax.f32 %v938_v31, 0.0  ;;  %v1048_v31 = vld [vmem:[%s11579_s21 + $0xa8] sm:$0xff] }
 0x181   :  { %1171 = vmatmul.mubr.f32.gmra.mxu1 %v1039_v46  ;;  %9010 = vmatprep.subr.mxu1 %v12302_v62  ;;  %v8230_v46 = vld [vmem:[%s11579_s21 + $0x280] sm:$0xff]  ;;  %v12354_v36 = vmax.f32 %v953_v13, 0.0  ;;  %v863_v13 = vmul.f32 %v12000_v40, %v11953_v43 }
 0x182   :  { %1526 = vmatmul.mubr.f32.gmra.mxu0 %v8226_v34  ;;  %9250 = vmatprep.subr.mxu0 %v12071_v45  ;;  %v952_v34 = vadd.f32 %v11960_v49, %v881_v61  ;;  %v951_v61 = vadd.f32 %v11960_v49, %v880_v17  ;;  %v15845_v17 = vld [vmem:[#allocation38_spill] sm:$0xff] }
 0x183   :  { %9011 = vmatpush3.msra.mxu1 %v12312_v22  ;;  %9251 = vmatpush3.msra.mxu0 %v12078_v48  ;;  %15842 = vst [vmem:[#allocation59_spill] sm:$0xff] %v12354_v36  ;;  %v862_v40 = vmul.f32 %v11953_v43, %v15845_v17  ;;  %v15851_v17 = vld [vmem:[#allocation34_spill] sm:$0xff] }
 0x184   :  { %9012 = vmatprep.subr.mxu1 %v12318_v57  ;;  %9252 = vmatprep.subr.mxu0 %v12087_v54  ;;  %v12372_v26 = vmax.f32 %v952_v34, 0.0  ;;  %v12383_v34 = vmax.f32 %v936_v19, 0.0  ;;  %v15850_v19 = vld [vmem:[#allocation45_spill] sm:$0xff] }
 0x185   :  { %1175 = vmatprep.mubr.f32.mxu1 %v1044_v41  ;;  %9013 = vmatpush3.msra.mxu1 %v12324_v58  ;;  %v12361_v41 = vmax.f32 %v937_v32, 0.0  ;;  %v878_v32 = vmul.f32 %v11953_v43, %v11934_v29  ;;  %v1052_v29 = vld [vmem:[%s11579_s21 + $0xc8] sm:$0xff] }
 0x186   :  { %1530 = vmatprep.mubr.f32.mxu0 %v8231_v30  ;;  %9253 = vmatpush3.msra.mxu0 %v12096_v59  ;;  %v1047_v30 = vld [vmem:[%s11579_s21 + $0xa0] sm:$0xff]  ;;  %15844 = vst [vmem:[#allocation61_spill] sm:$0xff] %v12372_v26  ;;  %15846 = vst [vmem:[#allocation38_spill] sm:$0xff] %v12383_v34 }
 0x187   :  { %1176 = vmatmul.mubr.f32.gmra.mxu1 %v1043_v24  ;;  %9014 = vmatprep.subr.mxu1 %v12331_v14  ;;  %15843 = vst [vmem:[#allocation60_spill] sm:$0xff] %v12361_v41  ;;  %v935_v24 = vadd.f32 %v11960_v49, %v864_v37  ;;  %v12386_v37 = vmax.f32 %v951_v61, 0.0  ;;  %v949_v61 = vadd.f32 %v11960_v49, %v878_v32 }
 0x188   :  { %1531 = vmatmul.mubr.f32.gmra.mxu0 %v8230_v46  ;;  %9254 = vmatprep.subr.mxu0 %v12105_v1  ;;  %v950_v46 = vadd.f32 %v11960_v49, %v879_v35  ;;  %v934_v35 = vadd.f32 %v11960_v49, %v863_v13  ;;  %v933_v13 = vadd.f32 %v11960_v49, %v862_v40 }
 0x189   :  { %9015 = vmatpush3.msra.mxu1 %v12342_v8  ;;  %9255 = vmatpush3.msra.mxu0 %v12112_v18  ;;  %15847 = vst [vmem:[#allocation62_spill] sm:$0xff] %v12386_v37  ;;  %v12418_v40 = vmax.f32 %v949_v61, 0.0 }
 0x18a   :  { %9016 = vmatprep.subr.mxu1 %v12354_v36  ;;  %9256 = vmatprep.subr.mxu0 %v12121_v44 }
 0x18b   :  { %1180 = vmatprep.mubr.f32.mxu1 %v1048_v31  ;;  %9017 = vmatpush3.msra.mxu1 %v12361_v41  ;;  %v15848_v31 = vld [vmem:[#allocation32_spill] sm:$0xff] }
 0x18c   :  { %1535 = vmatprep.mubr.f32.mxu0 %v8235_v33  ;;  %9257 = vmatpush3.msra.mxu0 %v12128_v5  ;;  %v877_v33 = vmul.f32 %v15848_v31, %v11953_v43  ;;  %v12393_v5 = vmax.f32 %v935_v24, 0.0  ;;  %v12404_v31 = vmax.f32 %v950_v46, 0.0  ;;  %v8238_v24 = vld [vmem:[%s11579_s21 + $0x2c0] sm:$0xff] }
 0x18d   :  { %1181 = vmatmul.mubr.f32.gmra.mxu1 %v1047_v30  ;;  %9018 = vmatprep.subr.mxu1 %v12372_v26  ;;  %v8239_v30 = vld [vmem:[%s11579_s21 + $0x2c8] sm:$0xff] }
 0x18e   :  { %1536 = vmatmul.mubr.f32.gmra.mxu0 %v8234_v38  ;;  %9258 = vmatprep.subr.mxu0 %v12137_v23  ;;  %15849 = vst [vmem:[#allocation32_spill] sm:$0xff] %v12393_v5  ;;  %v1051_v38 = vld [vmem:[%s11579_s21 + $0xc0] sm:$0xff]  ;;  %v861_v23 = vmul.f32 %v15851_v17, %v11953_v43  ;;  %15852 = vst [vmem:[#allocation34_spill] sm:$0xff] %v12404_v31  ;;  %v12415_v17 = vmax.f32 %v934_v35, 0.0 }
 0x18f   :  { %9019 = vmatpush3.msra.mxu1 %v12383_v34  ;;  %9259 = vmatpush3.msra.mxu0 %v15850_v19  ;;  %v15853_v19 = vld [vmem:[#allocation33_spill] sm:$0xff]  ;;  %v15855_v34 = vld [vmem:[#allocation36_spill] sm:$0xff]  ;;  %v1055_v35 = vld [vmem:[%s11579_s21 + $0xe0] sm:$0xff] }
 0x190   :  { %9020 = vmatprep.subr.mxu1 %v12386_v37  ;;  %9260 = vmatprep.subr.mxu0 %v12154_v20  ;;  %v876_v32 = vmul.f32 %v11953_v43, %v15853_v19  ;;  %v15854_v37 = vld [vmem:[#allocation47_spill] sm:$0xff]  ;;  %v948_v20 = vadd.f32 %v11960_v49, %v877_v33  ;;  %v860_v46 = vmul.f32 %v11953_v43, %v15855_v34  ;;  %v15859_v43 = vld [vmem:[#allocation49_spill] sm:$0xff] }
 0x191   :  { %1185 = vmatprep.mubr.f32.mxu1 %v1052_v29  ;;  %9021 = vmatpush3.msra.mxu1 %v12393_v5  ;;  %15856 = vst [vmem:[#allocation33_spill] sm:$0xff] %v12415_v17  ;;  %15857 = vst [vmem:[#allocation36_spill] sm:$0xff] %v12418_v40  ;;  %v1056_v29 = vld [vmem:[%s11579_s21 + $0xe8] sm:$0xff]  ;;  %v932_v19 = vadd.f32 %v11960_v49, %v861_v23  ;;  %v8242_v23 = vld [vmem:[%s11579_s21 + $0x2e0] sm:$0xff] }
 0x192   :  { %1540 = vmatprep.mubr.f32.mxu0 %v8239_v30  ;;  %9261 = vmatpush3.msra.mxu0 %v15854_v37  ;;  %v12423_v30 = vmax.f32 %v933_v13, 0.0  ;;  %v8243_v34 = vld [vmem:[%s11579_s21 + $0x2e8] sm:$0xff]  ;;  %v947_v33 = vadd.f32 %v11960_v49, %v876_v32  ;;  %v12432_v61 = vmax.f32 %v948_v20, 0.0 }
 0x193   :  { %1186 = vmatmul.mubr.f32.gmra.mxu1 %v1051_v38  ;;  %9022 = vmatprep.subr.mxu1 %v12404_v31  ;;  %v931_v38 = vadd.f32 %v11960_v49, %v860_v46  ;;  %v15861_v13 = vld [vmem:[#allocation51_spill] sm:$0xff] }
 0x194   :  { %1541 = vmatmul.mubr.f32.gmra.mxu0 %v8238_v24  ;;  %9262 = vmatprep.subr.mxu0 %v12166_v39  ;;  %15858 = vst [vmem:[#allocation63_spill] sm:$0xff] %v12423_v30  ;;  %15860 = vst [vmem:[#allocation64_spill] sm:$0xff] %v12432_v61  ;;  %v12438_v24 = vmax.f32 %v932_v19, 0.0  ;;  %v12441_v32 = vmax.f32 %v947_v33, 0.0  ;;  %v1060_v20 = vld [vmem:[%s11579_s21 + $0x108] sm:$0xff]  ;;  %v1059_v19 = vld [vmem:[%s11579_s21 + $0x100] sm:$0xff] }
 0x195   :  { %9023 = vmatpush3.msra.mxu1 %v12415_v17  ;;  %9263 = vmatpush3.msra.mxu0 %v15859_v43  ;;  %v12445_v49 = vmax.f32 %v931_v38, 0.0  ;;  %v8247_v46 = vld [vmem:[%s11579_s21 + $0x308] sm:$0xff] }
 0x196   :  { %9024 = vmatprep.subr.mxu1 %v12418_v40  ;;  %9264 = vmatprep.subr.mxu0 %v12178_v52  ;;  %15862 = vst [vmem:[#allocation65_spill] sm:$0xff] %v12438_v24  ;;  %15863 = vst [vmem:[#allocation66_spill] sm:$0xff] %v12441_v32  ;;  %v15866_v33 = vld [vmem:[#allocation56_spill] sm:$0xff] }
 0x197   :  { %1190 = vmatprep.mubr.f32.mxu1 %v1056_v29  ;;  %9025 = vmatpush3.msra.mxu1 %v12423_v30  ;;  %15864 = vst [vmem:[#allocation67_spill] sm:$0xff] %v12445_v49  ;;  %v15865_v29 = vld [vmem:[#allocation55_spill] sm:$0xff] }
 0x198   :  { %1545 = vmatprep.mubr.f32.mxu0 %v8243_v34  ;;  %9265 = vmatpush3.msra.mxu0 %v15861_v13  ;;  %v8246_v34 = vld [vmem:[%s11579_s21 + $0x300] sm:$0xff]  ;;  %v8251_v38 = vld [vmem:[%s11579_s21 + $0x328] sm:$0xff] }
 0x199   :  { %1191 = vmatmul.mubr.f32.gmra.mxu1 %v1055_v35  ;;  %9026 = vmatprep.subr.mxu1 %v12432_v61  ;;  %v1064_v35 = vld [vmem:[%s11579_s21 + $0x128] sm:$0xff] }
 0x19a   :  { %1546 = vmatmul.mubr.f32.gmra.mxu0 %v8242_v23  ;;  %9266 = vmatprep.subr.mxu0 %v12187_v15  ;;  %v1063_v23 = vld [vmem:[%s11579_s21 + $0x120] sm:$0xff] }
 0x19b   :  { %9027 = vmatpush3.msra.mxu1 %v12438_v24  ;;  %9267 = vmatpush3.msra.mxu0 %v12194_v6 }
 0x19c   :  { %9028 = vmatprep.subr.mxu1 %v12441_v32  ;;  %9268 = vmatprep.subr.mxu0 %v15865_v29  ;;  %v8250_v29 = vld [vmem:[%s11579_s21 + $0x320] sm:$0xff] }
 0x19d   :  { %1195 = vmatprep.mubr.f32.mxu1 %v1060_v20  ;;  %9029 = vmatpush3.msra.mxu1 %v12445_v49  ;;  %v1068_v20 = vld [vmem:[%s11579_s21 + $0x148] sm:$0xff] }
 0x19e   :  { %1550 = vmatprep.mubr.f32.mxu0 %v8247_v46  ;;  %9269 = vmatpush3.msra.mxu0 %v15866_v33  ;;  %v8255_v46 = vld [vmem:[%s11579_s21 + $0x348] sm:$0xff]  ;;  %v1030_v33 = vld [vmem:[%s11579_s21 + $0x18] sm:$0xff] }
 0x19f   :  { %1196 = vmatmul.mubr.f32.gmra.mxu1 %v1059_v19  ;;  %1551 = vmatmul.mubr.f32.gmra.mxu0 %v8246_v34  ;;  %v1067_v19 = vld [vmem:[%s11579_s21 + $0x140] sm:$0xff]  ;;  %v8279_v49 = vld [vmem:[%s11579_s21 + $0x408] sm:$0xff] }
 0x1a0   :  { %9158 = vmatprep.subr.mxu1 %v12196_v11  ;;  %9398 = vmatprep.subr.mxu0 %v11977_v0  ;;  %v8254_v34 = vld [vmem:[%s11579_s21 + $0x340] sm:$0xff]  ;;  %v1072_v11 = vld [vmem:[%s11579_s21 + $0x168] sm:$0xff] }
 0x1a1   :  { %1200 = vmatprep.mubr.f32.mxu1 %v1064_v35  ;;  %1555 = vmatprep.mubr.f32.mxu0 %v8251_v38  ;;  %v8259_v0 = vld [vmem:[%s11579_s21 + $0x368] sm:$0xff]  ;;  %v1071_v35 = vld [vmem:[%s11579_s21 + $0x160] sm:$0xff] }
 0x1a2   :  { %v8258_v38 = vld [vmem:[%s11579_s21 + $0x360] sm:$0xff] }
 0x1a3   :  { %1201 = vmatmul.mubr.f32.gmra.mxu1 %v1063_v23  ;;  %1556 = vmatmul.mubr.f32.gmra.mxu0 %v8250_v29  ;;  %v1076_v23 = vld [vmem:[%s11579_s21 + $0x188] sm:$0xff] }
 0x1a4   :  { %1205 = vmatprep.mubr.f32.mxu1 %v1068_v20  ;;  %1560 = vmatprep.mubr.f32.mxu0 %v8255_v46  ;;  %v8263_v29 = vld [vmem:[%s11579_s21 + $0x388] sm:$0xff]  ;;  %v1075_v20 = vld [vmem:[%s11579_s21 + $0x180] sm:$0xff] }
 0x1a5   :  { %v8262_v46 = vld [vmem:[%s11579_s21 + $0x380] sm:$0xff] }
 0x1a7   :  { %1206 = vmatmul.mubr.f32.gmra.mxu1 %v1067_v19  ;;  %1561 = vmatmul.mubr.f32.gmra.mxu0 %v8254_v34  ;;  %v1080_v19 = vld [vmem:[%s11579_s21 + $0x1a8] sm:$0xff]  ;;  %v8266_v34 = vld [vmem:[%s11579_s21 + $0x3a0] sm:$0xff] }
 0x1a8   :  { %1210 = vmatprep.mubr.f32.mxu1 %v1072_v11  ;;  %1565 = vmatprep.mubr.f32.mxu0 %v8259_v0  ;;  %v8267_v11 = vld [vmem:[%s11579_s21 + $0x3a8] sm:$0xff]  ;;  %v1079_v0 = vld [vmem:[%s11579_s21 + $0x1a0] sm:$0xff] }
 0x1ab   :  { %1211 = vmatmul.mubr.f32.gmra.mxu1 %v1071_v35  ;;  %1566 = vmatmul.mubr.f32.gmra.mxu0 %v8258_v38  ;;  %v1084_v35 = vld [vmem:[%s11579_s21 + $0x1c8] sm:$0xff] }
 0x1ac   :  { %1215 = vmatprep.mubr.f32.mxu1 %v1076_v23  ;;  %1570 = vmatprep.mubr.f32.mxu0 %v8263_v29  ;;  %v8271_v38 = vld [vmem:[%s11579_s21 + $0x3c8] sm:$0xff]  ;;  %v1083_v23 = vld [vmem:[%s11579_s21 + $0x1c0] sm:$0xff] }
 0x1ad   :  { %v8270_v29 = vld [vmem:[%s11579_s21 + $0x3c0] sm:$0xff] }
 0x1af   :  { %1216 = vmatmul.mubr.f32.gmra.mxu1 %v1075_v20  ;;  %1571 = vmatmul.mubr.f32.gmra.mxu0 %v8262_v46  ;;  %v1088_v20 = vld [vmem:[%s11579_s21 + $0x1e8] sm:$0xff] }
 0x1b0   :  { %1220 = vmatprep.mubr.f32.mxu1 %v1080_v19  ;;  %1575 = vmatprep.mubr.f32.mxu0 %v8267_v11  ;;  %v8275_v46 = vld [vmem:[%s11579_s21 + $0x3e8] sm:$0xff]  ;;  %v1087_v19 = vld [vmem:[%s11579_s21 + $0x1e0] sm:$0xff] }
 0x1b1   :  { %v8274_v11 = vld [vmem:[%s11579_s21 + $0x3e0] sm:$0xff] }
 0x1b3   :  { %1221 = vmatmul.mubr.f32.gmra.mxu1 %v1079_v0  ;;  %1576 = vmatmul.mubr.f32.gmra.mxu0 %v8266_v34  ;;  %v1029_v0 = vld [vmem:[%s11579_s21 + $0x10] sm:$0xff]  ;;  %v8278_v34 = vld [vmem:[%s11579_s21 + $0x400] sm:$0xff] }
 0x1b4   :  { %1225 = vmatprep.mubr.f32.mxu1 %v1084_v35  ;;  %1580 = vmatprep.mubr.f32.mxu0 %v8271_v38  ;;  %v1034_v35 = vld [vmem:[%s11579_s21 + $0x38] sm:$0xff] }
 0x1b5   :  { %v15867_v38 = vld [vmem:[#allocation37_spill] sm:$0xff] }
 0x1b7   :  { %1226 = vmatmul.mubr.f32.gmra.mxu1 %v1083_v23  ;;  %1581 = vmatmul.mubr.f32.gmra.mxu0 %v8270_v29  ;;  %v8283_v23 = vld [vmem:[%s11579_s21 + $0x428] sm:$0xff]  ;;  %v1038_v29 = vld [vmem:[%s11579_s21 + $0x58] sm:$0xff] }
 0x1b8   :  { %1230 = vmatprep.mubr.f32.mxu1 %v1088_v20  ;;  %1585 = vmatprep.mubr.f32.mxu0 %v8275_v46  ;;  %v8287_v20 = vld [vmem:[%s11579_s21 + $0x448] sm:$0xff]  ;;  %v1037_v46 = vld [vmem:[%s11579_s21 + $0x50] sm:$0xff] }
 0x1bb   :  { %1231 = vmatmul.mubr.f32.gmra.mxu1 %v1087_v19  ;;  %1586 = vmatmul.mubr.f32.gmra.mxu0 %v8274_v11  ;;  %v8286_v19 = vld [vmem:[%s11579_s21 + $0x440] sm:$0xff]  ;;  %v1042_v11 = vld [vmem:[%s11579_s21 + $0x78] sm:$0xff] }
 0x1bc   :  { %1300 = vmatprep.mubr.f32.mxu1 %v1030_v33  ;;  %1881 = vmatprep.mubr.f32.mxu0 %v8279_v49  ;;  %v1033_v49 = vld [vmem:[%s11579_s21 + $0x30] sm:$0xff]  ;;  %v8282_v33 = vld [vmem:[%s11579_s21 + $0x420] sm:$0xff] }
 0x1bf   :  { %1301 = vmatmul.mubr.f32.vlgmr.msra.gmra.mxu1 %v1029_v0  ;;  %1882 = vmatmul.mubr.f32.vlgmr.msra.gmra.mxu0 %v8278_v34  ;;  %v8291_v0 = vld [vmem:[%s11579_s21 + $0x468] sm:$0xff]  ;;  %v1041_v34 = vld [vmem:[%s11579_s21 + $0x70] sm:$0xff] }
 0x1c0   :  { %9159 = vmatpush3.msra.mxu1 %v12217_v55  ;;  %9399 = vmatpush3.msra.mxu0 %v11982_v4 }
 0x1c1   :  { %9160 = vmatprep.subr.mxu1 %v12223_v10  ;;  %9400 = vmatprep.subr.mxu0 %v15867_v38 }
 0x1c2   :  { %9161 = vmatpush3.msra.mxu1 %v12230_v12  ;;  %9401 = vmatpush3.msra.mxu0 %v11996_v42 }
 0x1c3   :  { %1305 = vmatprep.mubr.f32.mxu1 %v1034_v35  ;;  %9162 = vmatprep.subr.mxu1 %v12238_v7  ;;  %v8290_v35 = vld [vmem:[%s11579_s21 + $0x460] sm:$0xff] }
 0x1c4   :  { %1886 = vmatprep.mubr.f32.mxu0 %v8283_v23  ;;  %9402 = vmatprep.subr.mxu0 %v12004_v47  ;;  %v1046_v23 = vld [vmem:[%s11579_s21 + $0x98] sm:$0xff] }
 0x1c5   :  { %1306 = vmatmul.mubr.f32.gmra.mxu1 %v1033_v49  ;;  %1887 = vmatmul.mubr.f32.gmra.mxu0 %v8282_v33  ;;  %v8295_v49 = vld [vmem:[%s11579_s21 + $0x488] sm:$0xff]  ;;  %v1045_v33 = vld [vmem:[%s11579_s21 + $0x90] sm:$0xff] }
 0x1c6   :  { %9163 = vmatpush3.msra.mxu1 %v12252_v25  ;;  %9403 = vmatpush3.msra.mxu0 %v12011_v50 }
 0x1c7   :  { %9164 = vmatprep.subr.mxu1 %v12256_v9  ;;  %9404 = vmatprep.subr.mxu0 %v12019_v53 }
 0x1c8   :  { %9165 = vmatpush3.msra.mxu1 %v12262_v21  ;;  %9405 = vmatpush3.msra.mxu0 %v12028_v56 }
 0x1c9   :  { %1310 = vmatprep.mubr.f32.mxu1 %v1038_v29  ;;  %9166 = vmatprep.subr.mxu1 %v12270_v2  ;;  %v8294_v29 = vld [vmem:[%s11579_s21 + $0x480] sm:$0xff] }
 0x1ca   :  { %1891 = vmatprep.mubr.f32.mxu0 %v8287_v20  ;;  %9406 = vmatprep.subr.mxu0 %v12037_v60  ;;  %v1050_v20 = vld [vmem:[%s11579_s21 + $0xb8] sm:$0xff] }
 0x1cb   :  { %1311 = vmatmul.mubr.f32.gmra.mxu1 %v1037_v46  ;;  %1892 = vmatmul.mubr.f32.gmra.mxu0 %v8286_v19  ;;  %v8299_v46 = vld [vmem:[%s11579_s21 + $0x4a8] sm:$0xff] }
 0x1cc   :  { %9167 = vmatpush3.msra.mxu1 %v12284_v51  ;;  %9407 = vmatpush3.msra.mxu0 %v12044_v63  ;;  %v15868_v19 = vld [vmem:[#allocation43_spill] sm:$0xff] }
 0x1cd   :  { %9168 = vmatprep.subr.mxu1 %v12288_v28  ;;  %9408 = vmatprep.subr.mxu0 %v12053_v3 }
 0x1ce   :  { %9169 = vmatpush3.msra.mxu1 %v12294_v27  ;;  %9409 = vmatpush3.msra.mxu0 %v12062_v16 }
 0x1cf   :  { %1315 = vmatprep.mubr.f32.mxu1 %v1042_v11  ;;  %9170 = vmatprep.subr.mxu1 %v12302_v62  ;;  %v1049_v11 = vld [vmem:[%s11579_s21 + $0xb0] sm:$0xff] }
 0x1d0   :  { %1896 = vmatprep.mubr.f32.mxu0 %v8291_v0  ;;  %9410 = vmatprep.subr.mxu0 %v12071_v45  ;;  %v8298_v0 = vld [vmem:[%s11579_s21 + $0x4a0] sm:$0xff] }
 0x1d1   :  { %1316 = vmatmul.mubr.f32.gmra.mxu1 %v1041_v34  ;;  %1897 = vmatmul.mubr.f32.gmra.mxu0 %v8290_v35  ;;  %v15869_v34 = vld [vmem:[#allocation44_spill] sm:$0xff]  ;;  %v15870_v35 = vld [vmem:[#allocation38_spill] sm:$0xff] }
 0x1d2   :  { %9171 = vmatpush3.msra.mxu1 %v12312_v22  ;;  %9411 = vmatpush3.msra.mxu0 %v12078_v48 }
 0x1d3   :  { %9172 = vmatprep.subr.mxu1 %v12318_v57  ;;  %9412 = vmatprep.subr.mxu0 %v12087_v54 }
 0x1d4   :  { %9173 = vmatpush3.msra.mxu1 %v12324_v58  ;;  %9413 = vmatpush3.msra.mxu0 %v12096_v59 }
 0x1d5   :  { %1320 = vmatprep.mubr.f32.mxu1 %v1046_v23  ;;  %9174 = vmatprep.subr.mxu1 %v12331_v14  ;;  %v15871_v23 = vld [vmem:[#allocation45_spill] sm:$0xff] }
 0x1d6   :  { %1901 = vmatprep.mubr.f32.mxu0 %v8295_v49  ;;  %9414 = vmatprep.subr.mxu0 %v12105_v1  ;;  %v1054_v49 = vld [vmem:[%s11579_s21 + $0xd8] sm:$0xff] }
 0x1d7   :  { %1321 = vmatmul.mubr.f32.gmra.mxu1 %v1045_v33  ;;  %1902 = vmatmul.mubr.f32.gmra.mxu0 %v8294_v29  ;;  %v15872_v33 = vld [vmem:[#allocation62_spill] sm:$0xff] }
 0x1d8   :  { %9175 = vmatpush3.msra.mxu1 %v12342_v8  ;;  %9415 = vmatpush3.msra.mxu0 %v12112_v18  ;;  %v15873_v29 = vld [vmem:[#allocation46_spill] sm:$0xff] }
 0x1d9   :  { %9176 = vmatprep.subr.mxu1 %v12354_v36  ;;  %9416 = vmatprep.subr.mxu0 %v12121_v44 }
 0x1da   :  { %9177 = vmatpush3.msra.mxu1 %v12361_v41  ;;  %9417 = vmatpush3.msra.mxu0 %v15868_v19  ;;  %v8303_v19 = vld [vmem:[%s11579_s21 + $0x4c8] sm:$0xff] }
 0x1db   :  { %1325 = vmatprep.mubr.f32.mxu1 %v1050_v20  ;;  %9178 = vmatprep.subr.mxu1 %v12372_v26  ;;  %v1053_v20 = vld [vmem:[%s11579_s21 + $0xd0] sm:$0xff] }
 0x1dc   :  { %1906 = vmatprep.mubr.f32.mxu0 %v8299_v46  ;;  %9418 = vmatprep.subr.mxu0 %v15869_v34  ;;  %v8302_v46 = vld [vmem:[%s11579_s21 + $0x4c0] sm:$0xff] }
 0x1dd   :  { %1326 = vmatmul.mubr.f32.gmra.mxu1 %v1049_v11  ;;  %1907 = vmatmul.mubr.f32.gmra.mxu0 %v8298_v0  ;;  %v1058_v11 = vld [vmem:[%s11579_s21 + $0xf8] sm:$0xff]  ;;  %v8307_v0 = vld [vmem:[%s11579_s21 + $0x4e8] sm:$0xff] }
 0x1de   :  { %9179 = vmatpush3.msra.mxu1 %v15870_v35  ;;  %9419 = vmatpush3.msra.mxu0 %v15871_v23 }
 0x1df   :  { %9180 = vmatprep.subr.mxu1 %v15872_v33  ;;  %9420 = vmatprep.subr.mxu0 %v15873_v29 }
 0x1e0   :  { %9181 = vmatpush3.msra.mxu1 %v12393_v5  ;;  %9421 = vmatpush3.msra.mxu0 %v15854_v37 }
 0x1e1   :  { %1330 = vmatprep.mubr.f32.mxu1 %v1054_v49  ;;  %9182 = vmatprep.subr.mxu1 %v12404_v31  ;;  %v8306_v49 = vld [vmem:[%s11579_s21 + $0x4e0] sm:$0xff] }
 0x1e2   :  { %1911 = vmatprep.mubr.f32.mxu0 %v8303_v19  ;;  %9422 = vmatprep.subr.mxu0 %v12166_v39  ;;  %v1057_v19 = vld [vmem:[%s11579_s21 + $0xf0] sm:$0xff] }
 0x1e3   :  { %1331 = vmatmul.mubr.f32.gmra.mxu1 %v1053_v20  ;;  %1912 = vmatmul.mubr.f32.gmra.mxu0 %v8302_v46  ;;  %v1062_v20 = vld [vmem:[%s11579_s21 + $0x118] sm:$0xff]  ;;  %v8311_v46 = vld [vmem:[%s11579_s21 + $0x508] sm:$0xff] }
 0x1e4   :  { %9183 = vmatpush3.msra.mxu1 %v12415_v17  ;;  %9423 = vmatpush3.msra.mxu0 %v15859_v43 }
 0x1e5   :  { %9184 = vmatprep.subr.mxu1 %v12418_v40  ;;  %9424 = vmatprep.subr.mxu0 %v12178_v52 }
 0x1e6   :  { %9185 = vmatpush3.msra.mxu1 %v12423_v30  ;;  %9425 = vmatpush3.msra.mxu0 %v15861_v13  ;;  %v15874_v13 = vld [vmem:[#allocation55_spill] sm:$0xff] }
 0x1e7   :  { %1335 = vmatprep.mubr.f32.mxu1 %v1058_v11  ;;  %9186 = vmatprep.subr.mxu1 %v12432_v61  ;;  %v15875_v11 = vld [vmem:[#allocation67_spill] sm:$0xff] }
 0x1e8   :  { %1916 = vmatprep.mubr.f32.mxu0 %v8307_v0  ;;  %9426 = vmatprep.subr.mxu0 %v12187_v15  ;;  %v15876_v0 = vld [vmem:[#allocation56_spill] sm:$0xff]  ;;  %v15877_v15 = vld [vmem:[#allocation54_spill] sm:$0xff] }
 0x1e9   :  { %1336 = vmatmul.mubr.f32.gmra.mxu1 %v1057_v19  ;;  %1917 = vmatmul.mubr.f32.gmra.mxu0 %v8306_v49  ;;  %v1061_v19 = vld [vmem:[%s11579_s21 + $0x110] sm:$0xff]  ;;  %v8310_v49 = vld [vmem:[%s11579_s21 + $0x500] sm:$0xff]  ;;  %v8343_v61 = vld [vmem:[%s11579_s21 + $0x608] sm:$0xff] }
 0x1ea   :  { %9187 = vmatpush3.msra.mxu1 %v12438_v24  ;;  %9427 = vmatpush3.msra.mxu0 %v12194_v6  ;;  %v1066_v24 = vld [vmem:[%s11579_s21 + $0x138] sm:$0xff]  ;;  %v8315_v6 = vld [vmem:[%s11579_s21 + $0x528] sm:$0xff] }
 0x1eb   :  { %9188 = vmatprep.subr.mxu1 %v12441_v32  ;;  %9428 = vmatprep.subr.mxu0 %v15874_v13  ;;  %v15878_v32 = vld [vmem:[#allocation35_spill] sm:$0xff]  ;;  %v8217_v13 = vld [vmem:[%s11579_s21 + $0x218] sm:$0xff] }
 0x1ec   :  { %9189 = vmatpush3.msra.mxu1 %v15875_v11  ;;  %9429 = vmatpush3.msra.mxu0 %v15876_v0  ;;  %v1065_v0 = vld [vmem:[%s11579_s21 + $0x130] sm:$0xff]  ;;  %v8314_v11 = vld [vmem:[%s11579_s21 + $0x520] sm:$0xff] }
 0x1ed   :  { %1340 = vmatprep.mubr.f32.mxu1 %v1062_v20  ;;  %1921 = vmatprep.mubr.f32.mxu0 %v8311_v46  ;;  %v1070_v20 = vld [vmem:[%s11579_s21 + $0x158] sm:$0xff]  ;;  %v8319_v46 = vld [vmem:[%s11579_s21 + $0x548] sm:$0xff] }
 0x1ee   :  { %9318 = vmatprep.subr.mxu1 %v15877_v15  ;;  %9558 = vmatprep.subr.mxu0 %v15878_v32  ;;  %v1069_v15 = vld [vmem:[%s11579_s21 + $0x150] sm:$0xff]  ;;  %v8318_v32 = vld [vmem:[%s11579_s21 + $0x540] sm:$0xff] }
 0x1ef   :  { %1341 = vmatmul.mubr.f32.gmra.mxu1 %v1061_v19  ;;  %1922 = vmatmul.mubr.f32.gmra.mxu0 %v8310_v49  ;;  %v1074_v19 = vld [vmem:[%s11579_s21 + $0x178] sm:$0xff]  ;;  %v8322_v49 = vld [vmem:[%s11579_s21 + $0x560] sm:$0xff] }
 0x1f0   :  { %1345 = vmatprep.mubr.f32.mxu1 %v1066_v24  ;;  %1926 = vmatprep.mubr.f32.mxu0 %v8315_v6  ;;  %v8323_v24 = vld [vmem:[%s11579_s21 + $0x568] sm:$0xff]  ;;  %v1073_v6 = vld [vmem:[%s11579_s21 + $0x170] sm:$0xff] }
 0x1f3   :  { %1346 = vmatmul.mubr.f32.gmra.mxu1 %v1065_v0  ;;  %1927 = vmatmul.mubr.f32.gmra.mxu0 %v8314_v11  ;;  %v1078_v0 = vld [vmem:[%s11579_s21 + $0x198] sm:$0xff]  ;;  %v8327_v11 = vld [vmem:[%s11579_s21 + $0x588] sm:$0xff] }
 0x1f4   :  { %1350 = vmatprep.mubr.f32.mxu1 %v1070_v20  ;;  %1931 = vmatprep.mubr.f32.mxu0 %v8319_v46  ;;  %v1077_v20 = vld [vmem:[%s11579_s21 + $0x190] sm:$0xff]  ;;  %v8326_v46 = vld [vmem:[%s11579_s21 + $0x580] sm:$0xff] }
 0x1f7   :  { %1351 = vmatmul.mubr.f32.gmra.mxu1 %v1069_v15  ;;  %1932 = vmatmul.mubr.f32.gmra.mxu0 %v8318_v32  ;;  %v1082_v15 = vld [vmem:[%s11579_s21 + $0x1b8] sm:$0xff]  ;;  %v8331_v32 = vld [vmem:[%s11579_s21 + $0x5a8] sm:$0xff] }
 0x1f8   :  { %1355 = vmatprep.mubr.f32.mxu1 %v1074_v19  ;;  %1936 = vmatprep.mubr.f32.mxu0 %v8323_v24  ;;  %v1081_v19 = vld [vmem:[%s11579_s21 + $0x1b0] sm:$0xff]  ;;  %v8330_v24 = vld [vmem:[%s11579_s21 + $0x5a0] sm:$0xff] }
 0x1fb   :  { %1356 = vmatmul.mubr.f32.gmra.mxu1 %v1073_v6  ;;  %1937 = vmatmul.mubr.f32.gmra.mxu0 %v8322_v49  ;;  %v1086_v6 = vld [vmem:[%s11579_s21 + $0x1d8] sm:$0xff]  ;;  %v8335_v49 = vld [vmem:[%s11579_s21 + $0x5c8] sm:$0xff] }
 0x1fc   :  { %1360 = vmatprep.mubr.f32.mxu1 %v1078_v0  ;;  %1941 = vmatprep.mubr.f32.mxu0 %v8327_v11  ;;  %v1085_v0 = vld [vmem:[%s11579_s21 + $0x1d0] sm:$0xff]  ;;  %v8334_v11 = vld [vmem:[%s11579_s21 + $0x5c0] sm:$0xff] }
 0x1ff   :  { %1361 = vmatmul.mubr.f32.gmra.mxu1 %v1077_v20  ;;  %1942 = vmatmul.mubr.f32.gmra.mxu0 %v8326_v46  ;;  %v1090_v20 = vld [vmem:[%s11579_s21 + $0x1f8] sm:$0xff]  ;;  %v8339_v46 = vld [vmem:[%s11579_s21 + $0x5e8] sm:$0xff] }
 0x200   :  { %1365 = vmatprep.mubr.f32.mxu1 %v1082_v15  ;;  %1946 = vmatprep.mubr.f32.mxu0 %v8331_v32  ;;  %v1089_v15 = vld [vmem:[%s11579_s21 + $0x1f0] sm:$0xff]  ;;  %v8338_v32 = vld [vmem:[%s11579_s21 + $0x5e0] sm:$0xff] }
 0x203   :  { %1366 = vmatmul.mubr.f32.gmra.mxu1 %v1081_v19  ;;  %1947 = vmatmul.mubr.f32.gmra.mxu0 %v8330_v24  ;;  %v8216_v19 = vld [vmem:[%s11579_s21 + $0x210] sm:$0xff]  ;;  %v8342_v24 = vld [vmem:[%s11579_s21 + $0x600] sm:$0xff] }
 0x204   :  { %1370 = vmatprep.mubr.f32.mxu1 %v1086_v6  ;;  %1951 = vmatprep.mubr.f32.mxu0 %v8335_v49  ;;  %v8221_v6 = vld [vmem:[%s11579_s21 + $0x238] sm:$0xff]  ;;  %v8347_v49 = vld [vmem:[%s11579_s21 + $0x628] sm:$0xff] }
 0x207   :  { %1371 = vmatmul.mubr.f32.gmra.mxu1 %v1085_v0  ;;  %1952 = vmatmul.mubr.f32.gmra.mxu0 %v8334_v11  ;;  %v8225_v0 = vld [vmem:[%s11579_s21 + $0x258] sm:$0xff]  ;;  %v8351_v11 = vld [vmem:[%s11579_s21 + $0x648] sm:$0xff] }
 0x208   :  { %1375 = vmatprep.mubr.f32.mxu1 %v1090_v20  ;;  %1956 = vmatprep.mubr.f32.mxu0 %v8339_v46  ;;  %v8224_v20 = vld [vmem:[%s11579_s21 + $0x250] sm:$0xff]  ;;  %v8350_v46 = vld [vmem:[%s11579_s21 + $0x640] sm:$0xff] }
 0x20b   :  { %1376 = vmatmul.mubr.f32.gmra.mxu1 %v1089_v15  ;;  %1957 = vmatmul.mubr.f32.gmra.mxu0 %v8338_v32  ;;  %v8229_v15 = vld [vmem:[%s11579_s21 + $0x278] sm:$0xff]  ;;  %v8355_v32 = vld [vmem:[%s11579_s21 + $0x668] sm:$0xff] }
 0x20c   :  { %1655 = vmatprep.mubr.f32.mxu1 %v8217_v13  ;;  %2252 = vmatprep.mubr.f32.mxu0 %v8343_v61  ;;  %v8220_v61 = vld [vmem:[%s11579_s21 + $0x230] sm:$0xff]  ;;  %v8346_v13 = vld [vmem:[%s11579_s21 + $0x620] sm:$0xff] }
 0x20f   :  { %1656 = vmatmul.mubr.f32.vlgmr.msra.gmra.mxu1 %v8216_v19  ;;  %2253 = vmatmul.mubr.f32.vlgmr.msra.gmra.mxu0 %v8342_v24  ;;  %v8228_v19 = vld [vmem:[%s11579_s21 + $0x270] sm:$0xff]  ;;  %v8354_v24 = vld [vmem:[%s11579_s21 + $0x660] sm:$0xff] }
 0x210   :  { %9319 = vmatpush3.msra.mxu1 %v12217_v55  ;;  %9559 = vmatpush3.msra.mxu0 %v11982_v4 }
 0x211   :  { %9320 = vmatprep.subr.mxu1 %v12223_v10  ;;  %9560 = vmatprep.subr.mxu0 %v15867_v38 }
 0x212   :  { %9321 = vmatpush3.msra.mxu1 %v12230_v12  ;;  %9561 = vmatpush3.msra.mxu0 %v11996_v42 }
 0x213   :  { %1660 = vmatprep.mubr.f32.mxu1 %v8221_v6  ;;  %9322 = vmatprep.subr.mxu1 %v12238_v7  ;;  %v8233_v6 = vld [vmem:[%s11579_s21 + $0x298] sm:$0xff] }
 0x214   :  { %2257 = vmatprep.mubr.f32.mxu0 %v8347_v49  ;;  %9562 = vmatprep.subr.mxu0 %v12004_v47  ;;  %v8359_v49 = vld [vmem:[%s11579_s21 + $0x688] sm:$0xff] }
 0x215   :  { %1661 = vmatmul.mubr.f32.gmra.mxu1 %v8220_v61  ;;  %2258 = vmatmul.mubr.f32.gmra.mxu0 %v8346_v13  ;;  %v8232_v61 = vld [vmem:[%s11579_s21 + $0x290] sm:$0xff]  ;;  %v8358_v13 = vld [vmem:[%s11579_s21 + $0x680] sm:$0xff] }
 0x216   :  { %9323 = vmatpush3.msra.mxu1 %v12252_v25  ;;  %9563 = vmatpush3.msra.mxu0 %v12011_v50 }
 0x217   :  { %9324 = vmatprep.subr.mxu1 %v12256_v9  ;;  %9564 = vmatprep.subr.mxu0 %v12019_v53 }
 0x218   :  { %9325 = vmatpush3.msra.mxu1 %v12262_v21  ;;  %9565 = vmatpush3.msra.mxu0 %v12028_v56 }
 0x219   :  { %1665 = vmatprep.mubr.f32.mxu1 %v8225_v0  ;;  %9326 = vmatprep.subr.mxu1 %v12270_v2  ;;  %v8237_v0 = vld [vmem:[%s11579_s21 + $0x2b8] sm:$0xff] }
 0x21a   :  { %2262 = vmatprep.mubr.f32.mxu0 %v8351_v11  ;;  %9566 = vmatprep.subr.mxu0 %v12037_v60  ;;  %v8363_v11 = vld [vmem:[%s11579_s21 + $0x6a8] sm:$0xff] }
 0x21b   :  { %1666 = vmatmul.mubr.f32.gmra.mxu1 %v8224_v20  ;;  %2263 = vmatmul.mubr.f32.gmra.mxu0 %v8350_v46  ;;  %v15879_v20 = vld [vmem:[#allocation43_spill] sm:$0xff]  ;;  %v8236_v46 = vld [vmem:[%s11579_s21 + $0x2b0] sm:$0xff] }
 0x21c   :  { %9327 = vmatpush3.msra.mxu1 %v12284_v51  ;;  %9567 = vmatpush3.msra.mxu0 %v12044_v63 }
 0x21d   :  { %9328 = vmatprep.subr.mxu1 %v12288_v28  ;;  %9568 = vmatprep.subr.mxu0 %v12053_v3 }
 0x21e   :  { %9329 = vmatpush3.msra.mxu1 %v12294_v27  ;;  %9569 = vmatpush3.msra.mxu0 %v12062_v16 }
 0x21f   :  { %1670 = vmatprep.mubr.f32.mxu1 %v8229_v15  ;;  %9330 = vmatprep.subr.mxu1 %v12302_v62  ;;  %v8362_v15 = vld [vmem:[%s11579_s21 + $0x6a0] sm:$0xff] }
 0x220   :  { %2267 = vmatprep.mubr.f32.mxu0 %v8355_v32  ;;  %9570 = vmatprep.subr.mxu0 %v12071_v45  ;;  %v8241_v32 = vld [vmem:[%s11579_s21 + $0x2d8] sm:$0xff] }
 0x221   :  { %1671 = vmatmul.mubr.f32.gmra.mxu1 %v8228_v19  ;;  %2268 = vmatmul.mubr.f32.gmra.mxu0 %v8354_v24  ;;  %v8367_v19 = vld [vmem:[%s11579_s21 + $0x6c8] sm:$0xff] }
 0x222   :  { %9331 = vmatpush3.msra.mxu1 %v12312_v22  ;;  %9571 = vmatpush3.msra.mxu0 %v12078_v48 }
 0x223   :  { %9332 = vmatprep.subr.mxu1 %v12318_v57  ;;  %9572 = vmatprep.subr.mxu0 %v12087_v54 }
 0x224   :  { %9333 = vmatpush3.msra.mxu1 %v12324_v58  ;;  %9573 = vmatpush3.msra.mxu0 %v12096_v59 }
 0x225   :  { %1675 = vmatprep.mubr.f32.mxu1 %v8233_v6  ;;  %9334 = vmatprep.subr.mxu1 %v12331_v14  ;;  %v8240_v6 = vld [vmem:[%s11579_s21 + $0x2d0] sm:$0xff] }
 0x226   :  { %2272 = vmatprep.mubr.f32.mxu0 %v8359_v49  ;;  %9574 = vmatprep.subr.mxu0 %v12105_v1  ;;  %v8366_v49 = vld [vmem:[%s11579_s21 + $0x6c0] sm:$0xff] }
 0x227   :  { %1676 = vmatmul.mubr.f32.gmra.mxu1 %v8232_v61  ;;  %2273 = vmatmul.mubr.f32.gmra.mxu0 %v8358_v13 }
 0x228   :  { %9335 = vmatpush3.msra.mxu1 %v12342_v8  ;;  %9575 = vmatpush3.msra.mxu0 %v12112_v18 }
 0x229   :  { %9336 = vmatprep.subr.mxu1 %v12354_v36  ;;  %9576 = vmatprep.subr.mxu0 %v12121_v44 }
 0x22a   :  { %9337 = vmatpush3.msra.mxu1 %v12361_v41  ;;  %9577 = vmatpush3.msra.mxu0 %v15879_v20 }
 0x22b   :  { %1680 = vmatprep.mubr.f32.mxu1 %v8237_v0  ;;  %9338 = vmatprep.subr.mxu1 %v12372_v26 }
 0x22c   :  { %2277 = vmatprep.mubr.f32.mxu0 %v8363_v11  ;;  %9578 = vmatprep.subr.mxu0 %v15869_v34  ;;  %v8245_v11 = vld [vmem:[%s11579_s21 + $0x2f8] sm:$0xff] }
 0x22d   :  { %1681 = vmatmul.mubr.f32.gmra.mxu1 %v8236_v46  ;;  %2278 = vmatmul.mubr.f32.gmra.mxu0 %v8362_v15  ;;  %v8371_v46 = vld [vmem:[%s11579_s21 + $0x6e8] sm:$0xff] }
 0x22e   :  { %9339 = vmatpush3.msra.mxu1 %v15870_v35  ;;  %9579 = vmatpush3.msra.mxu0 %v15871_v23 }
 0x22f   :  { %9340 = vmatprep.subr.mxu1 %v15872_v33  ;;  %9580 = vmatprep.subr.mxu0 %v15873_v29  ;;  %v12684_v24 = vpop.f32.mrf.mxu1 }
 0x230   :  { %9341 = vmatpush3.msra.mxu1 %v12393_v5  ;;  %9581 = vmatpush3.msra.mxu0 %v15854_v37  ;;  %v12690_v61 = vpop.f32.mrf.mxu0 }
 0x231   :  { %15880 = vst [vmem:[#allocation37_spill] sm:$0xff] %v12690_v61  ;;  %1685 = vmatprep.mubr.f32.mxu1 %v8241_v32  ;;  %9342 = vmatprep.subr.mxu1 %v12404_v31  ;;  %v12693_v13 = vpop.f32.mrf.mxu1  ;;  %v15883_v32 = vld [vmem:[#allocation51_spill] sm:$0xff] }
 0x232   :  { %2282 = vmatprep.mubr.f32.mxu0 %v8367_v19  ;;  %9582 = vmatprep.subr.mxu0 %v12166_v39  ;;  %v12696_v0 = vpop.f32.mrf.mxu0  ;;  %v8244_v19 = vld [vmem:[%s11579_s21 + $0x2f0] sm:$0xff] }
 0x233   :  { %15881 = vst [vmem:[#allocation68_spill] sm:$0xff] %v12696_v0  ;;  %1686 = vmatmul.mubr.f32.gmra.mxu1 %v8240_v6  ;;  %2283 = vmatmul.mubr.f32.gmra.mxu0 %v8366_v49  ;;  %v8370_v6 = vld [vmem:[%s11579_s21 + $0x6e0] sm:$0xff]  ;;  %v15885_v0 = vld [vmem:[#allocation64_spill] sm:$0xff] }
 0x234   :  { %9343 = vmatpush3.msra.mxu1 %v12415_v17  ;;  %9583 = vmatpush3.msra.mxu0 %v15859_v43 }
 0x235   :  { %9344 = vmatprep.subr.mxu1 %v12418_v40  ;;  %9584 = vmatprep.subr.mxu0 %v12178_v52  ;;  %v12704_v15 = vpop.f32.mrf.mxu1  ;;  %v15887_v52 = vld [vmem:[#allocation52_spill] sm:$0xff]  ;;  %v15892_v40 = vld [vmem:[#allocation55_spill] sm:$0xff] }
 0x236   :  { %15882 = vst [vmem:[#allocation69_spill] sm:$0xff] %v12704_v15  ;;  %9345 = vmatpush3.msra.mxu1 %v12423_v30  ;;  %9585 = vmatpush3.msra.mxu0 %v15883_v32  ;;  %v12710_v49 = vpop.f32.mrf.mxu0  ;;  %v15889_v32 = vld [vmem:[#allocation65_spill] sm:$0xff] }
 0x237   :  { %15884 = vst [vmem:[#allocation70_spill] sm:$0xff] %v12710_v49  ;;  %1690 = vmatprep.mubr.f32.mxu1 %v8245_v11  ;;  %9346 = vmatprep.subr.mxu1 %v15885_v0  ;;  %v12713_v61 = vpop.f32.mrf.mxu1  ;;  %v15890_v30 = vld [vmem:[#allocation53_spill] sm:$0xff]  ;;  %v8375_v49 = vld [vmem:[%s11579_s21 + $0x708] sm:$0xff]  ;;  %v15891_v0 = vld [vmem:[#allocation66_spill] sm:$0xff] }
 0x238   :  { %15886 = vst [vmem:[#allocation71_spill] sm:$0xff] %v12713_v61  ;;  %2287 = vmatprep.mubr.f32.mxu0 %v8371_v46  ;;  %9586 = vmatprep.subr.mxu0 %v15887_v52  ;;  %v12716_v15 = vpop.f32.mrf.mxu0  ;;  %v8249_v11 = vld [vmem:[%s11579_s21 + $0x318] sm:$0xff]  ;;  %v15894_v46 = vld [vmem:[#allocation67_spill] sm:$0xff]  ;;  %v15895_v52 = vld [vmem:[#allocation56_spill] sm:$0xff] }
 0x239   :  { %15888 = vst [vmem:[#allocation72_spill] sm:$0xff] %v12716_v15  ;;  %1691 = vmatmul.mubr.f32.gmra.mxu1 %v8244_v19  ;;  %2288 = vmatmul.mubr.f32.gmra.mxu0 %v8370_v6  ;;  %v8248_v19 = vld [vmem:[%s11579_s21 + $0x310] sm:$0xff]  ;;  %v8374_v6 = vld [vmem:[%s11579_s21 + $0x700] sm:$0xff] }
 0x23a   :  { %9347 = vmatpush3.msra.mxu1 %v15889_v32  ;;  %9587 = vmatpush3.msra.mxu0 %v15890_v30  ;;  %v8253_v30 = vld [vmem:[%s11579_s21 + $0x338] sm:$0xff] }
 0x23b   :  { %9348 = vmatprep.subr.mxu1 %v15891_v0  ;;  %9588 = vmatprep.subr.mxu0 %v15892_v40  ;;  %v12724_v61 = vpop.f32.mrf.mxu1  ;;  %v8379_v0 = vld [vmem:[%s11579_s21 + $0x728] sm:$0xff]  ;;  %v15898_v40 = vld [vmem:[#allocation54_spill] sm:$0xff] }
 0x23c   :  { %15893 = vst [vmem:[#allocation73_spill] sm:$0xff] %v12724_v61  ;;  %9349 = vmatpush3.msra.mxu1 %v15894_v46  ;;  %9589 = vmatpush3.msra.mxu0 %v15895_v52  ;;  %v12730_v15 = vpop.f32.mrf.mxu0  ;;  %v15899_v61 = vld [vmem:[#allocation35_spill] sm:$0xff] }
 0x23d   :  { %15896 = vst [vmem:[#allocation74_spill] sm:$0xff] %v12730_v15  ;;  %1695 = vmatprep.mubr.f32.mxu1 %v8249_v11  ;;  %2292 = vmatprep.mubr.f32.mxu0 %v8375_v49  ;;  %v12734_v32 = vpop.f32.mrf.mxu1  ;;  %v8252_v11 = vld [vmem:[%s11579_s21 + $0x330] sm:$0xff]  ;;  %v8378_v49 = vld [vmem:[%s11579_s21 + $0x720] sm:$0xff]  ;;  %v8257_v15 = vld [vmem:[%s11579_s21 + $0x358] sm:$0xff] }
 0x23e   :  { %15897 = vst [vmem:[#allocation75_spill] sm:$0xff] %v12734_v32  ;;  %9478 = vmatprep.subr.mxu1 %v15898_v40  ;;  %9718 = vmatprep.subr.mxu0 %v15899_v61  ;;  %v12738_v46 = vpop.f32.mrf.mxu0  ;;  %v8383_v52 = vld [vmem:[%s11579_s21 + $0x748] sm:$0xff] }
 0x23f   :  { %15900 = vst [vmem:[#allocation76_spill] sm:$0xff] %v12738_v46  ;;  %1696 = vmatmul.mubr.f32.gmra.mxu1 %v8248_v19  ;;  %2293 = vmatmul.mubr.f32.gmra.mxu0 %v8374_v6  ;;  %v8261_v6 = vld [vmem:[%s11579_s21 + $0x378] sm:$0xff]  ;;  %v8387_v61 = vld [vmem:[%s11579_s21 + $0x768] sm:$0xff] }
 0x240   :  { %1700 = vmatprep.mubr.f32.mxu1 %v8253_v30  ;;  %2297 = vmatprep.mubr.f32.mxu0 %v8379_v0  ;;  %v8256_v30 = vld [vmem:[%s11579_s21 + $0x350] sm:$0xff]  ;;  %v8382_v0 = vld [vmem:[%s11579_s21 + $0x740] sm:$0xff] }
 0x241   :  { %v12744_v43 = vpop.f32.mrf.mxu1 }
 0x242   :  { %15901 = vst [vmem:[#allocation77_spill] sm:$0xff] %v12744_v43  ;;  %v12746_v32 = vpop.f32.mrf.mxu0 }
 0x243   :  { %15902 = vst [vmem:[#allocation78_spill] sm:$0xff] %v12746_v32  ;;  %1701 = vmatmul.mubr.f32.gmra.mxu1 %v8252_v11  ;;  %2298 = vmatmul.mubr.f32.gmra.mxu0 %v8378_v49  ;;  %v12748_v46 = vpop.f32.mrf.mxu1  ;;  %v8260_v11 = vld [vmem:[%s11579_s21 + $0x370] sm:$0xff] }
 0x244   :  { %15903 = vst [vmem:[#allocation79_spill] sm:$0xff] %v12748_v46  ;;  %1705 = vmatprep.mubr.f32.mxu1 %v8257_v15  ;;  %2302 = vmatprep.mubr.f32.mxu0 %v8383_v52  ;;  %v12752_v19 = vpop.f32.mrf.mxu0  ;;  %v8386_v15 = vld [vmem:[%s11579_s21 + $0x760] sm:$0xff]  ;;  %v8265_v52 = vld [vmem:[%s11579_s21 + $0x398] sm:$0xff]  ;;  %v8391_v46 = vld [vmem:[%s11579_s21 + $0x788] sm:$0xff] }
 0x245   :  { %15904 = vst [vmem:[#allocation80_spill] sm:$0xff] %v12752_v19 }
 0x247   :  { %1706 = vmatmul.mubr.f32.gmra.mxu1 %v8256_v30  ;;  %2303 = vmatmul.mubr.f32.gmra.mxu0 %v8382_v0  ;;  %v12756_v32 = vpop.f32.mrf.mxu1  ;;  %v8264_v30 = vld [vmem:[%s11579_s21 + $0x390] sm:$0xff]  ;;  %v8269_v0 = vld [vmem:[%s11579_s21 + $0x3b8] sm:$0xff] }
 0x248   :  { %15905 = vst [vmem:[#allocation81_spill] sm:$0xff] %v12756_v32  ;;  %1710 = vmatprep.mubr.f32.mxu1 %v8261_v6  ;;  %2307 = vmatprep.mubr.f32.mxu0 %v8387_v61  ;;  %v12760_v49 = vpop.f32.mrf.mxu0  ;;  %v8390_v61 = vld [vmem:[%s11579_s21 + $0x780] sm:$0xff]  ;;  %v8395_v6 = vld [vmem:[%s11579_s21 + $0x7a8] sm:$0xff] }
 0x249   :  { %15906 = vst [vmem:[#allocation82_spill] sm:$0xff] %v12760_v49  ;;  %v12764_v43 = vpop.f32.mrf.mxu1 }
 0x24a   :  { %15907 = vst [vmem:[#allocation83_spill] sm:$0xff] %v12764_v43  ;;  %v12766_v19 = vpop.f32.mrf.mxu0  ;;  %v8399_v43 = vld [vmem:[%s11579_s21 + $0x7c8] sm:$0xff] }
 0x24b   :  { %15908 = vst [vmem:[#allocation84_spill] sm:$0xff] %v12766_v19  ;;  %1711 = vmatmul.mubr.f32.gmra.mxu1 %v8260_v11  ;;  %2308 = vmatmul.mubr.f32.gmra.mxu0 %v8386_v15  ;;  %v8394_v11 = vld [vmem:[%s11579_s21 + $0x7a0] sm:$0xff] }
 0x24c   :  { %1715 = vmatprep.mubr.f32.mxu1 %v8265_v52  ;;  %2312 = vmatprep.mubr.f32.mxu0 %v8391_v46  ;;  %v8268_v46 = vld [vmem:[%s11579_s21 + $0x3b0] sm:$0xff]  ;;  %v8273_v52 = vld [vmem:[%s11579_s21 + $0x3d8] sm:$0xff] }
 0x24d   :  { %v12772_v32 = vpop.f32.mrf.mxu1 }
 0x24e   :  { %15909 = vst [vmem:[#allocation85_spill] sm:$0xff] %v12772_v32  ;;  %v12774_v49 = vpop.f32.mrf.mxu0 }
 0x24f   :  { %15910 = vst [vmem:[#allocation86_spill] sm:$0xff] %v12774_v49  ;;  %1716 = vmatmul.mubr.f32.gmra.mxu1 %v8264_v30  ;;  %2313 = vmatmul.mubr.f32.gmra.mxu0 %v8390_v61  ;;  %v12776_v19 = vpop.f32.mrf.mxu1  ;;  %v8272_v30 = vld [vmem:[%s11579_s21 + $0x3d0] sm:$0xff]  ;;  %v8398_v61 = vld [vmem:[%s11579_s21 + $0x7c0] sm:$0xff] }
 0x250   :  { %15911 = vst [vmem:[#allocation87_spill] sm:$0xff] %v12776_v19  ;;  %1720 = vmatprep.mubr.f32.mxu1 %v8269_v0  ;;  %2317 = vmatprep.mubr.f32.mxu0 %v8395_v6  ;;  %v12780_v15 = vpop.f32.mrf.mxu0  ;;  %v8277_v6 = vld [vmem:[%s11579_s21 + $0x3f8] sm:$0xff]  ;;  %v8403_v19 = vld [vmem:[%s11579_s21 + $0x7e8] sm:$0xff] }
 0x251   :  { %15912 = vst [vmem:[#allocation88_spill] sm:$0xff] %v12780_v15 }
 0x253   :  { %1721 = vmatmul.mubr.f32.gmra.mxu1 %v8268_v46  ;;  %2318 = vmatmul.mubr.f32.gmra.mxu0 %v8394_v11  ;;  %v12784_v49 = vpop.f32.mrf.mxu1  ;;  %v8276_v46 = vld [vmem:[%s11579_s21 + $0x3f0] sm:$0xff]  ;;  %v8402_v11 = vld [vmem:[%s11579_s21 + $0x7e0] sm:$0xff] }
 0x254   :  { %15913 = vst [vmem:[#allocation89_spill] sm:$0xff] %v12784_v49  ;;  %1725 = vmatprep.mubr.f32.mxu1 %v8273_v52  ;;  %2322 = vmatprep.mubr.f32.mxu0 %v8399_v43  ;;  %v12788_v0 = vpop.f32.mrf.mxu0  ;;  %v8281_v52 = vld [vmem:[%s11579_s21 + $0x418] sm:$0xff]  ;;  %v8407_v43 = vld [vmem:[%s11579_s21 + $0x808] sm:$0xff] }
 0x255   :  { %15914 = vst [vmem:[#allocation90_spill] sm:$0xff] %v12788_v0  ;;  %v12792_v32 = vpop.f32.mrf.mxu1 }
 0x256   :  { %15915 = vst [vmem:[#allocation91_spill] sm:$0xff] %v12792_v32  ;;  %v12794_v15 = vpop.f32.mrf.mxu0 }
 0x257   :  { %15916 = vst [vmem:[#allocation92_spill] sm:$0xff] %v12794_v15  ;;  %1726 = vmatmul.mubr.f32.gmra.mxu1 %v8272_v30  ;;  %2323 = vmatmul.mubr.f32.gmra.mxu0 %v8398_v61  ;;  %v8280_v30 = vld [vmem:[%s11579_s21 + $0x410] sm:$0xff]  ;;  %v8406_v61 = vld [vmem:[%s11579_s21 + $0x800] sm:$0xff] }
 0x258   :  { %1730 = vmatprep.mubr.f32.mxu1 %v8277_v6  ;;  %2327 = vmatprep.mubr.f32.mxu0 %v8403_v19 }
 0x259   :  { %v12800_v49 = vpop.f32.mrf.mxu1 }
 0x25a   :  { %v12802_v0 = vpop.f32.mrf.mxu0 }
 0x25b   :  { %15917 = vst [vmem:[#allocation93_spill] sm:$0xff] %v12802_v0  ;;  %1731 = vmatmul.mubr.f32.gmra.mxu1 %v8276_v46  ;;  %2328 = vmatmul.mubr.f32.gmra.mxu0 %v8402_v11  ;;  %v12804_v32 = vpop.f32.mrf.mxu1  ;;  %v8285_v46 = vld [vmem:[%s11579_s21 + $0x438] sm:$0xff]  ;;  %v8411_v11 = vld [vmem:[%s11579_s21 + $0x828] sm:$0xff] }
 0x25c   :  { %2026 = vmatprep.mubr.f32.mxu1 %v8281_v52  ;;  %2623 = vmatprep.mubr.f32.mxu0 %v8407_v43  ;;  %v12808_v19 = vpop.f32.mrf.mxu0 }
 0x25d   :  { %15918 = vst [vmem:[#allocation94_spill] sm:$0xff] %v12808_v19 }
 0x25f   :  { %2027 = vmatmul.mubr.f32.vlgmr.msra.gmra.mxu1 %v8280_v30  ;;  %2624 = vmatmul.mubr.f32.vlgmr.msra.gmra.mxu0 %v8406_v61  ;;  %v12810_v6 = vpop.f32.mrf.mxu1  ;;  %v12812_v15 = vpop.f32.mrf.mxu0  ;;  %v8284_v30 = vld [vmem:[%s11579_s21 + $0x430] sm:$0xff]  ;;  %v8410_v61 = vld [vmem:[%s11579_s21 + $0x820] sm:$0xff] }
 0x260   :  { %15919 = vst [vmem:[#allocation95_spill] sm:$0xff] %v12812_v15  ;;  %9479 = vmatpush3.msra.mxu1 %v12217_v55  ;;  %9719 = vmatpush3.msra.mxu0 %v11982_v4 }
 0x261   :  { %9480 = vmatprep.subr.mxu1 %v12223_v10  ;;  %9720 = vmatprep.subr.mxu0 %v15867_v38  ;;  %v12820_v52 = vpop.f32.mrf.mxu1  ;;  %v12822_v43 = vpop.f32.mrf.mxu0 }
 0x262   :  { %15920 = vst [vmem:[#allocation96_spill] sm:$0xff] %v12822_v43  ;;  %9481 = vmatpush3.msra.mxu1 %v12230_v12  ;;  %9721 = vmatpush3.msra.mxu0 %v11996_v42 }
 0x263   :  { %2031 = vmatprep.mubr.f32.mxu1 %v8285_v46  ;;  %9482 = vmatprep.subr.mxu1 %v12238_v7  ;;  %v12829_v15 = vpop.f32.mrf.mxu1  ;;  %v12831_v19 = vpop.f32.mrf.mxu0  ;;  %v8289_v46 = vld [vmem:[%s11579_s21 + $0x458] sm:$0xff] }
 0x264   :  { %15921 = vst [vmem:[#allocation97_spill] sm:$0xff] %v12829_v15  ;;  %15922 = vst [vmem:[#allocation98_spill] sm:$0xff] %v12831_v19  ;;  %2628 = vmatprep.mubr.f32.mxu0 %v8411_v11  ;;  %9722 = vmatprep.subr.mxu0 %v12004_v47  ;;  %v8415_v11 = vld [vmem:[%s11579_s21 + $0x848] sm:$0xff] }
 0x265   :  { %2032 = vmatmul.mubr.f32.gmra.mxu1 %v8284_v30  ;;  %2629 = vmatmul.mubr.f32.gmra.mxu0 %v8410_v61  ;;  %v12834_v43 = vpop.f32.mrf.mxu1  ;;  %v12836_v0 = vpop.f32.mrf.mxu0  ;;  %v8288_v30 = vld [vmem:[%s11579_s21 + $0x450] sm:$0xff]  ;;  %v8414_v61 = vld [vmem:[%s11579_s21 + $0x840] sm:$0xff] }
 0x266   :  { %15923 = vst [vmem:[#allocation99_spill] sm:$0xff] %v12836_v0  ;;  %9483 = vmatpush3.msra.mxu1 %v12252_v25  ;;  %9723 = vmatpush3.msra.mxu0 %v12011_v50 }
 0x267   :  { %9484 = vmatprep.subr.mxu1 %v12256_v9  ;;  %9724 = vmatprep.subr.mxu0 %v12019_v53  ;;  %v12844_v19 = vpop.f32.mrf.mxu1  ;;  %v12846_v15 = vpop.f32.mrf.mxu0 }
 0x268   :  { %15924 = vst [vmem:[#allocation100_spill] sm:$0xff] %v12844_v19  ;;  %15925 = vst [vmem:[#allocation101_spill] sm:$0xff] %v12846_v15  ;;  %9485 = vmatpush3.msra.mxu1 %v12262_v21  ;;  %9725 = vmatpush3.msra.mxu0 %v12028_v56 }
 0x269   :  { %2036 = vmatprep.mubr.f32.mxu1 %v8289_v46  ;;  %9486 = vmatprep.subr.mxu1 %v12270_v2  ;;  %v12853_v0 = vpop.f32.mrf.mxu1  ;;  %v12855_v9 = vpop.f32.mrf.mxu0  ;;  %v8293_v46 = vld [vmem:[%s11579_s21 + $0x478] sm:$0xff] }
 0x26a   :  { %15926 = vst [vmem:[#allocation102_spill] sm:$0xff] %v12855_v9  ;;  %2633 = vmatprep.mubr.f32.mxu0 %v8415_v11  ;;  %9726 = vmatprep.subr.mxu0 %v12037_v60  ;;  %v8419_v11 = vld [vmem:[%s11579_s21 + $0x868] sm:$0xff] }
 0x26b   :  { %2037 = vmatmul.mubr.f32.gmra.mxu1 %v8288_v30  ;;  %2634 = vmatmul.mubr.f32.gmra.mxu0 %v8414_v61  ;;  %v12858_v15 = vpop.f32.mrf.mxu1  ;;  %v12860_v19 = vpop.f32.mrf.mxu0  ;;  %v8292_v30 = vld [vmem:[%s11579_s21 + $0x470] sm:$0xff]  ;;  %v8418_v61 = vld [vmem:[%s11579_s21 + $0x860] sm:$0xff] }
 0x26c   :  { %15927 = vst [vmem:[#allocation103_spill] sm:$0xff] %v12858_v15  ;;  %15928 = vst [vmem:[#allocation104_spill] sm:$0xff] %v12860_v19  ;;  %9487 = vmatpush3.msra.mxu1 %v12284_v51  ;;  %9727 = vmatpush3.msra.mxu0 %v12044_v63 }
 0x26d   :  { %9488 = vmatprep.subr.mxu1 %v12288_v28  ;;  %9728 = vmatprep.subr.mxu0 %v12053_v3  ;;  %v12868_v9 = vpop.f32.mrf.mxu1  ;;  %v12870_v60 = vpop.f32.mrf.mxu0 }
 0x26e   :  { %15929 = vst [vmem:[#allocation105_spill] sm:$0xff] %v12870_v60  ;;  %9489 = vmatpush3.msra.mxu1 %v12294_v27  ;;  %9729 = vmatpush3.msra.mxu0 %v12062_v16 }
 0x26f   :  { %2041 = vmatprep.mubr.f32.mxu1 %v8293_v46  ;;  %9490 = vmatprep.subr.mxu1 %v12302_v62  ;;  %v12877_v19 = vpop.f32.mrf.mxu1  ;;  %v12879_v15 = vpop.f32.mrf.mxu0  ;;  %v8297_v46 = vld [vmem:[%s11579_s21 + $0x498] sm:$0xff] }
 0x270   :  { %15930 = vst [vmem:[#allocation106_spill] sm:$0xff] %v12877_v19  ;;  %15931 = vst [vmem:[#allocation107_spill] sm:$0xff] %v12879_v15  ;;  %2638 = vmatprep.mubr.f32.mxu0 %v8419_v11  ;;  %9730 = vmatprep.subr.mxu0 %v12071_v45  ;;  %v8423_v11 = vld [vmem:[%s11579_s21 + $0x888] sm:$0xff] }
 0x271   :  { %2042 = vmatmul.mubr.f32.gmra.mxu1 %v8292_v30  ;;  %2639 = vmatmul.mubr.f32.gmra.mxu0 %v8418_v61  ;;  %v12882_v60 = vpop.f32.mrf.mxu1  ;;  %v12884_v16 = vpop.f32.mrf.mxu0  ;;  %v8296_v30 = vld [vmem:[%s11579_s21 + $0x490] sm:$0xff]  ;;  %v8422_v61 = vld [vmem:[%s11579_s21 + $0x880] sm:$0xff] }
 0x272   :  { %15932 = vst [vmem:[#allocation108_spill] sm:$0xff] %v12884_v16  ;;  %9491 = vmatpush3.msra.mxu1 %v12312_v22  ;;  %9731 = vmatpush3.msra.mxu0 %v12078_v48 }
 0x273   :  { %9492 = vmatprep.subr.mxu1 %v12318_v57  ;;  %9732 = vmatprep.subr.mxu0 %v12087_v54  ;;  %v12892_v15 = vpop.f32.mrf.mxu1  ;;  %v12894_v19 = vpop.f32.mrf.mxu0 }
 0x274   :  { %15933 = vst [vmem:[#allocation109_spill] sm:$0xff] %v12892_v15  ;;  %15934 = vst [vmem:[#allocation110_spill] sm:$0xff] %v12894_v19  ;;  %9493 = vmatpush3.msra.mxu1 %v12324_v58  ;;  %9733 = vmatpush3.msra.mxu0 %v12096_v59 }
 0x275   :  { %2046 = vmatprep.mubr.f32.mxu1 %v8297_v46  ;;  %9494 = vmatprep.subr.mxu1 %v12331_v14  ;;  %v12901_v16 = vpop.f32.mrf.mxu1  ;;  %v12903_v57 = vpop.f32.mrf.mxu0  ;;  %v8301_v46 = vld [vmem:[%s11579_s21 + $0x4b8] sm:$0xff] }
 0x276   :  { %15935 = vst [vmem:[#allocation111_spill] sm:$0xff] %v12903_v57  ;;  %2643 = vmatprep.mubr.f32.mxu0 %v8423_v11  ;;  %9734 = vmatprep.subr.mxu0 %v12105_v1  ;;  %v8427_v11 = vld [vmem:[%s11579_s21 + $0x8a8] sm:$0xff] }
 0x277   :  { %2047 = vmatmul.mubr.f32.gmra.mxu1 %v8296_v30  ;;  %2644 = vmatmul.mubr.f32.gmra.mxu0 %v8422_v61  ;;  %v12906_v19 = vpop.f32.mrf.mxu1  ;;  %v12908_v15 = vpop.f32.mrf.mxu0  ;;  %v8300_v30 = vld [vmem:[%s11579_s21 + $0x4b0] sm:$0xff]  ;;  %v8426_v61 = vld [vmem:[%s11579_s21 + $0x8a0] sm:$0xff] }
 0x278   :  { %15936 = vst [vmem:[#allocation112_spill] sm:$0xff] %v12906_v19  ;;  %15937 = vst [vmem:[#allocation113_spill] sm:$0xff] %v12908_v15  ;;  %9495 = vmatpush3.msra.mxu1 %v12342_v8  ;;  %9735 = vmatpush3.msra.mxu0 %v12112_v18 }
 0x279   :  { %9496 = vmatprep.subr.mxu1 %v12354_v36  ;;  %9736 = vmatprep.subr.mxu0 %v12121_v44  ;;  %v12916_v57 = vpop.f32.mrf.mxu1  ;;  %v12918_v1 = vpop.f32.mrf.mxu0 }
 0x27a   :  { %15938 = vst [vmem:[#allocation114_spill] sm:$0xff] %v12918_v1  ;;  %9497 = vmatpush3.msra.mxu1 %v12361_v41  ;;  %9737 = vmatpush3.msra.mxu0 %v15879_v20 }
 0x27b   :  { %2051 = vmatprep.mubr.f32.mxu1 %v8301_v46  ;;  %9498 = vmatprep.subr.mxu1 %v12372_v26  ;;  %v12925_v15 = vpop.f32.mrf.mxu1  ;;  %v12927_v19 = vpop.f32.mrf.mxu0  ;;  %v8305_v46 = vld [vmem:[%s11579_s21 + $0x4d8] sm:$0xff] }
 0x27c   :  { %15939 = vst [vmem:[#allocation115_spill] sm:$0xff] %v12925_v15  ;;  %15940 = vst [vmem:[#allocation116_spill] sm:$0xff] %v12927_v19  ;;  %2648 = vmatprep.mubr.f32.mxu0 %v8427_v11  ;;  %9738 = vmatprep.subr.mxu0 %v15869_v34  ;;  %v8431_v11 = vld [vmem:[%s11579_s21 + $0x8c8] sm:$0xff] }
 0x27d   :  { %2052 = vmatmul.mubr.f32.gmra.mxu1 %v8300_v30  ;;  %2649 = vmatmul.mubr.f32.gmra.mxu0 %v8426_v61  ;;  %v12930_v1 = vpop.f32.mrf.mxu1  ;;  %v12932_v20 = vpop.f32.mrf.mxu0  ;;  %v8304_v30 = vld [vmem:[%s11579_s21 + $0x4d0] sm:$0xff]  ;;  %v8430_v61 = vld [vmem:[%s11579_s21 + $0x8c0] sm:$0xff] }
 0x27e   :  { %15941 = vst [vmem:[#allocation117_spill] sm:$0xff] %v12932_v20  ;;  %9499 = vmatpush3.msra.mxu1 %v15870_v35  ;;  %9739 = vmatpush3.msra.mxu0 %v15871_v23 }
 0x27f   :  { %9500 = vmatprep.subr.mxu1 %v15872_v33  ;;  %9740 = vmatprep.subr.mxu0 %v15873_v29  ;;  %v9030_v19 = vpop.f32.mrf.mxu1  ;;  %v12940_v15 = vpop.f32.mrf.mxu0  ;;  %v8952_v29 = vadd.f32 %v12693_v13, %v12684_v24  ;;  %v8435_v24 = vld [vmem:[%s11579_s21 + $0x8e8] sm:$0xff] }
 0x280   :  { %15942 = vst [vmem:[#allocation118_spill] sm:$0xff] %v12940_v15  ;;  %9501 = vmatpush3.msra.mxu1 %v12393_v5  ;;  %9741 = vmatpush3.msra.mxu0 %v15854_v37  ;;  %v8309_v37 = vld [vmem:[%s11579_s21 + $0x4f8] sm:$0xff]  ;;  %v15946_v5 = vld [vmem:[#allocation36_spill] sm:$0xff] }
 0x281   :  { %2056 = vmatprep.mubr.f32.mxu1 %v8305_v46  ;;  %9502 = vmatprep.subr.mxu1 %v12404_v31  ;;  %v9031_v20 = vpop.f32.mrf.mxu1  ;;  %v12947_v23 = vpop.f32.mrf.mxu0  ;;  %v15944_v46 = vld [vmem:[#allocation49_spill] sm:$0xff] }
 0x282   :  { %15943 = vst [vmem:[#allocation119_spill] sm:$0xff] %v12947_v23  ;;  %2653 = vmatprep.mubr.f32.mxu0 %v8431_v11  ;;  %9742 = vmatprep.subr.mxu0 %v12166_v39  ;;  %v9032_v15 = vadd.f32 %v9031_v20, %v9030_v19  ;;  %v15947_v23 = vld [vmem:[#allocation50_spill] sm:$0xff]  ;;  %v15949_v39 = vld [vmem:[#allocation63_spill] sm:$0xff]  ;;  %v8308_v19 = vld [vmem:[%s11579_s21 + $0x4f0] sm:$0xff] }
 0x283   :  { %2057 = vmatmul.mubr.f32.gmra.mxu1 %v8304_v30  ;;  %2654 = vmatmul.mubr.f32.gmra.mxu0 %v8430_v61  ;;  %v15950_v20 = vld [vmem:[#allocation51_spill] sm:$0xff]  ;;  %v15951_v61 = vld [vmem:[#allocation64_spill] sm:$0xff] }
 0x284   :  { %9503 = vmatpush3.msra.mxu1 %v12415_v17  ;;  %9743 = vmatpush3.msra.mxu0 %v15944_v46  ;;  %v12955_v31 = vadd.f32 %v9032_v15, %v8952_v29  ;;  %v8434_v30 = vld [vmem:[%s11579_s21 + $0x8e0] sm:$0xff]  ;;  %v15955_v46 = vld [vmem:[#allocation52_spill] sm:$0xff] }
 0x285   :  { %9504 = vmatprep.subr.mxu1 %v15946_v5  ;;  %9744 = vmatprep.subr.mxu0 %v15947_v23  ;;  %v9033_v13 = vpop.f32.mrf.mxu1  ;;  %v12960_v11 = vpop.f32.mrf.mxu0  ;;  %v15954_v23 = vld [vmem:[#allocation71_spill] sm:$0xff]  ;;  %v15959_v17 = vld [vmem:[#allocation66_spill] sm:$0xff] }
 0x286   :  { %15945 = vst [vmem:[#allocation120_spill] sm:$0xff] %v12955_v31  ;;  %15948 = vst [vmem:[#allocation121_spill] sm:$0xff] %v12960_v11  ;;  %9505 = vmatpush3.msra.mxu1 %v15949_v39  ;;  %9745 = vmatpush3.msra.mxu0 %v15950_v20  ;;  %v15953_v31 = vld [vmem:[#allocation69_spill] sm:$0xff]  ;;  %v8439_v39 = vld [vmem:[%s11579_s21 + $0x908] sm:$0xff] }
 0x287   :  { %2061 = vmatprep.mubr.f32.mxu1 %v8309_v37  ;;  %9506 = vmatprep.subr.mxu1 %v15951_v61  ;;  %v9034_v29 = vpop.f32.mrf.mxu1  ;;  %v12967_v15 = vpop.f32.mrf.mxu0  ;;  %v8955_v5 = vadd.f32 %v15954_v23, %v15953_v31  ;;  %v15956_v20 = vld [vmem:[#allocation65_spill] sm:$0xff]  ;;  %v15960_v31 = vld [vmem:[#allocation55_spill] sm:$0xff] }
 0x288   :  { %15952 = vst [vmem:[#allocation122_spill] sm:$0xff] %v12967_v15  ;;  %2658 = vmatprep.mubr.f32.mxu0 %v8435_v24  ;;  %9746 = vmatprep.subr.mxu0 %v15955_v46  ;;  %v9035_v11 = vadd.f32 %v9034_v29, %v9033_v13  ;;  %v15957_v37 = vld [vmem:[#allocation53_spill] sm:$0xff]  ;;  %v15962_v13 = vld [vmem:[#allocation67_spill] sm:$0xff] }
 0x289   :  { %2062 = vmatmul.mubr.f32.gmra.mxu1 %v8308_v19  ;;  %2659 = vmatmul.mubr.f32.gmra.mxu0 %v8434_v30  ;;  %v8313_v61 = vld [vmem:[%s11579_s21 + $0x518] sm:$0xff]  ;;  %v15963_v19 = vld [vmem:[#allocation56_spill] sm:$0xff]  ;;  %v8438_v29 = vld [vmem:[%s11579_s21 + $0x900] sm:$0xff] }
 0x28a   :  { %9507 = vmatpush3.msra.mxu1 %v15956_v20  ;;  %9747 = vmatpush3.msra.mxu0 %v15957_v37  ;;  %v12976_v15 = vadd.f32 %v9035_v11, %v8955_v5  ;;  %v8312_v30 = vld [vmem:[%s11579_s21 + $0x510] sm:$0xff]  ;;  %v8317_v5 = vld [vmem:[%s11579_s21 + $0x538] sm:$0xff]  ;;  %v8443_v11 = vld [vmem:[%s11579_s21 + $0x928] sm:$0xff] }
 0x28b   :  { %9508 = vmatprep.subr.mxu1 %v15959_v17  ;;  %9748 = vmatprep.subr.mxu0 %v15960_v31  ;;  %v9036_v23 = vpop.f32.mrf.mxu1  ;;  %v12980_v24 = vpop.f32.mrf.mxu0  ;;  %v15965_v31 = vld [vmem:[#allocation73_spill] sm:$0xff]  ;;  %v15966_v37 = vld [vmem:[#allocation75_spill] sm:$0xff] }
 0x28c   :  { %15958 = vst [vmem:[#allocation69_spill] sm:$0xff] %v12976_v15  ;;  %15961 = vst [vmem:[#allocation71_spill] sm:$0xff] %v12980_v24  ;;  %9509 = vmatpush3.msra.mxu1 %v15962_v13  ;;  %9749 = vmatpush3.msra.mxu0 %v15963_v19  ;;  %v8958_v24 = vadd.f32 %v15966_v37, %v15965_v31  ;;  %v15967_v13 = vld [vmem:[#allocation35_spill] sm:$0xff] }
 0x28d   :  { %2066 = vmatprep.mubr.f32.mxu1 %v8313_v61  ;;  %2663 = vmatprep.mubr.f32.mxu0 %v8439_v39  ;;  %v9037_v15 = vpop.f32.mrf.mxu1  ;;  %v12988_v17 = vpop.f32.mrf.mxu0  ;;  %v8316_v39 = vld [vmem:[%s11579_s21 + $0x530] sm:$0xff]  ;;  %v8442_v61 = vld [vmem:[%s11579_s21 + $0x920] sm:$0xff]  ;;  %v8447_v46 = vld [vmem:[%s11579_s21 + $0x948] sm:$0xff] }
 0x28e   :  { %15964 = vst [vmem:[#allocation123_spill] sm:$0xff] %v12988_v17  ;;  %9638 = vmatprep.subr.mxu1 %v15898_v40  ;;  %9878 = vmatprep.subr.mxu0 %v15967_v13  ;;  %v9038_v19 = vadd.f32 %v9037_v15, %v9036_v23  ;;  %v8321_v17 = vld [vmem:[%s11579_s21 + $0x558] sm:$0xff]  ;;  %v8451_v13 = vld [vmem:[%s11579_s21 + $0x968] sm:$0xff] }
 0x28f   :  { %2067 = vmatmul.mubr.f32.gmra.mxu1 %v8312_v30  ;;  %2664 = vmatmul.mubr.f32.gmra.mxu0 %v8438_v29  ;;  %v15971_v30 = vld [vmem:[#allocation77_spill] sm:$0xff]  ;;  %v15972_v29 = vld [vmem:[#allocation79_spill] sm:$0xff] }
 0x290   :  { %2071 = vmatprep.mubr.f32.mxu1 %v8317_v5  ;;  %2668 = vmatprep.mubr.f32.mxu0 %v8443_v11  ;;  %v12996_v20 = vadd.f32 %v9038_v19, %v8958_v24  ;;  %v8961_v5 = vadd.f32 %v15972_v29, %v15971_v30  ;;  %v8320_v24 = vld [vmem:[%s11579_s21 + $0x550] sm:$0xff]  ;;  %v8446_v19 = vld [vmem:[%s11579_s21 + $0x940] sm:$0xff]  ;;  %v8329_v30 = vld [vmem:[%s11579_s21 + $0x598] sm:$0xff] }
 0x291   :  { %v9039_v37 = vpop.f32.mrf.mxu1  ;;  %v13000_v31 = vpop.f32.mrf.mxu0  ;;  %v8455_v29 = vld [vmem:[%s11579_s21 + $0x988] sm:$0xff] }
 0x292   :  { %15968 = vst [vmem:[#allocation73_spill] sm:$0xff] %v12996_v20  ;;  %15969 = vst [vmem:[#allocation75_spill] sm:$0xff] %v13000_v31  ;;  %v8325_v20 = vld [vmem:[%s11579_s21 + $0x578] sm:$0xff] }
 0x293   :  { %2072 = vmatmul.mubr.f32.gmra.mxu1 %v8316_v39  ;;  %2669 = vmatmul.mubr.f32.gmra.mxu0 %v8442_v61  ;;  %v9040_v15 = vpop.f32.mrf.mxu1  ;;  %v13002_v23 = vpop.f32.mrf.mxu0 }
 0x294   :  { %15970 = vst [vmem:[#allocation124_spill] sm:$0xff] %v13002_v23  ;;  %2076 = vmatprep.mubr.f32.mxu1 %v8321_v17  ;;  %2673 = vmatprep.mubr.f32.mxu0 %v8447_v46  ;;  %v9041_v11 = vadd.f32 %v9040_v15, %v9039_v37  ;;  %v8324_v17 = vld [vmem:[%s11579_s21 + $0x570] sm:$0xff]  ;;  %v8450_v46 = vld [vmem:[%s11579_s21 + $0x960] sm:$0xff]  ;;  %v8333_v23 = vld [vmem:[%s11579_s21 + $0x5b8] sm:$0xff] }
 0x296   :  { %v13010_v31 = vadd.f32 %v9041_v11, %v8961_v5  ;;  %v15976_v5 = vld [vmem:[#allocation81_spill] sm:$0xff]  ;;  %v15977_v11 = vld [vmem:[#allocation83_spill] sm:$0xff] }
 0x297   :  { %2077 = vmatmul.mubr.f32.gmra.mxu1 %v8320_v24  ;;  %2674 = vmatmul.mubr.f32.gmra.mxu0 %v8446_v19  ;;  %v9042_v39 = vpop.f32.mrf.mxu1  ;;  %v13012_v61 = vpop.f32.mrf.mxu0  ;;  %v8964_v24 = vadd.f32 %v15977_v11, %v15976_v5  ;;  %v8458_v5 = vld [vmem:[%s11579_s21 + $0x9a0] sm:$0xff] }
 0x298   :  { %15973 = vst [vmem:[#allocation77_spill] sm:$0xff] %v13010_v31  ;;  %15974 = vst [vmem:[#allocation79_spill] sm:$0xff] %v13012_v61  ;;  %2081 = vmatprep.mubr.f32.mxu1 %v8325_v20  ;;  %2678 = vmatprep.mubr.f32.mxu0 %v8451_v13  ;;  %v8328_v20 = vld [vmem:[%s11579_s21 + $0x590] sm:$0xff]  ;;  %v8454_v13 = vld [vmem:[%s11579_s21 + $0x980] sm:$0xff] }
 0x299   :  { %v9043_v37 = vpop.f32.mrf.mxu1  ;;  %v13018_v15 = vpop.f32.mrf.mxu0  ;;  %v8459_v31 = vld [vmem:[%s11579_s21 + $0x9a8] sm:$0xff] }
 0x29a   :  { %15975 = vst [vmem:[#allocation125_spill] sm:$0xff] %v13018_v15  ;;  %v9044_v19 = vadd.f32 %v9043_v37, %v9042_v39  ;;  %v8332_v37 = vld [vmem:[%s11579_s21 + $0x5b0] sm:$0xff] }
 0x29b   :  { %2082 = vmatmul.mubr.f32.gmra.mxu1 %v8324_v17  ;;  %2679 = vmatmul.mubr.f32.gmra.mxu0 %v8450_v46  ;;  %v15981_v46 = vld [vmem:[#allocation85_spill] sm:$0xff] }
 0x29c   :  { %2086 = vmatprep.mubr.f32.mxu1 %v8329_v30  ;;  %2683 = vmatprep.mubr.f32.mxu0 %v8455_v29  ;;  %v13024_v61 = vadd.f32 %v9044_v19, %v8964_v24  ;;  %v15982_v30 = vld [vmem:[#allocation87_spill] sm:$0xff]  ;;  %v8337_v24 = vld [vmem:[%s11579_s21 + $0x5d8] sm:$0xff] }
 0x29d   :  { %v9045_v40 = vpop.f32.mrf.mxu1  ;;  %v13028_v15 = vpop.f32.mrf.mxu0  ;;  %v8967_v29 = vadd.f32 %v15982_v30, %v15981_v46  ;;  %v8463_v19 = vld [vmem:[%s11579_s21 + $0x9c8] sm:$0xff]  ;;  %v8341_v46 = vld [vmem:[%s11579_s21 + $0x5f8] sm:$0xff] }
 0x29e   :  { %15978 = vst [vmem:[#allocation81_spill] sm:$0xff] %v13024_v61  ;;  %15979 = vst [vmem:[#allocation83_spill] sm:$0xff] %v13028_v15  ;;  %v8467_v30 = vld [vmem:[%s11579_s21 + $0x9e8] sm:$0xff] }
 0x29f   :  { %2087 = vmatmul.mubr.f32.gmra.mxu1 %v8328_v20  ;;  %2684 = vmatmul.mubr.f32.gmra.mxu0 %v8454_v13  ;;  %v9046_v39 = vpop.f32.mrf.mxu1  ;;  %v13030_v17 = vpop.f32.mrf.mxu0 }
 0x2a0   :  { %15980 = vst [vmem:[#allocation126_spill] sm:$0xff] %v13030_v17  ;;  %2091 = vmatprep.mubr.f32.mxu1 %v8333_v23  ;;  %2688 = vmatprep.mubr.f32.mxu0 %v8459_v31  ;;  %v9047_v11 = vadd.f32 %v9046_v39, %v9045_v40  ;;  %v8336_v23 = vld [vmem:[%s11579_s21 + $0x5d0] sm:$0xff]  ;;  %v8462_v31 = vld [vmem:[%s11579_s21 + $0x9c0] sm:$0xff]  ;;  %v8345_v17 = vld [vmem:[%s11579_s21 + $0x618] sm:$0xff] }
 0x2a2   :  { %v13038_v15 = vadd.f32 %v9047_v11, %v8967_v29  ;;  %v15986_v29 = vld [vmem:[#allocation89_spill] sm:$0xff]  ;;  %v15987_v11 = vld [vmem:[#allocation91_spill] sm:$0xff] }
 0x2a3   :  { %2092 = vmatmul.mubr.f32.gmra.mxu1 %v8332_v37  ;;  %2689 = vmatmul.mubr.f32.gmra.mxu0 %v8458_v5  ;;  %v9048_v20 = vpop.f32.mrf.mxu1  ;;  %v13040_v13 = vpop.f32.mrf.mxu0  ;;  %v8970_v37 = vadd.f32 %v15987_v11, %v15986_v29 }
 0x2a4   :  { %15983 = vst [vmem:[#allocation85_spill] sm:$0xff] %v13038_v15  ;;  %15984 = vst [vmem:[#allocation87_spill] sm:$0xff] %v13040_v13  ;;  %2096 = vmatprep.mubr.f32.mxu1 %v8337_v24  ;;  %2693 = vmatprep.mubr.f32.mxu0 %v8463_v19  ;;  %v8340_v24 = vld [vmem:[%s11579_s21 + $0x5f0] sm:$0xff]  ;;  %v8466_v19 = vld [vmem:[%s11579_s21 + $0x9e0] sm:$0xff] }
 0x2a5   :  { %v9049_v40 = vpop.f32.mrf.mxu1  ;;  %v13046_v39 = vpop.f32.mrf.mxu0  ;;  %v8471_v15 = vld [vmem:[%s11579_s21 + $0xa08] sm:$0xff] }
 0x2a6   :  { %15985 = vst [vmem:[#allocation127_spill] sm:$0xff] %v13046_v39  ;;  %v9050_v5 = vadd.f32 %v9049_v40, %v9048_v20  ;;  %v8973_v20 = vadd.f32 %v12804_v32, %v12800_v49  ;;  %v8349_v32 = vld [vmem:[%s11579_s21 + $0x638] sm:$0xff]  ;;  %v8475_v49 = vld [vmem:[%s11579_s21 + $0xa28] sm:$0xff] }
 0x2a7   :  { %2097 = vmatmul.mubr.f32.gmra.mxu1 %v8336_v23  ;;  %2694 = vmatmul.mubr.f32.gmra.mxu0 %v8462_v31  ;;  %v8344_v23 = vld [vmem:[%s11579_s21 + $0x610] sm:$0xff]  ;;  %v8470_v31 = vld [vmem:[%s11579_s21 + $0xa00] sm:$0xff] }
 0x2a8   :  { %2101 = vmatprep.mubr.f32.mxu1 %v8341_v46  ;;  %2698 = vmatprep.mubr.f32.mxu0 %v8467_v30  ;;  %v13052_v13 = vadd.f32 %v9050_v5, %v8970_v37  ;;  %v8348_v37 = vld [vmem:[%s11579_s21 + $0x630] sm:$0xff]  ;;  %v8474_v5 = vld [vmem:[%s11579_s21 + $0xa20] sm:$0xff] }
 0x2a9   :  { %v9051_v61 = vpop.f32.mrf.mxu1  ;;  %v13056_v33 = vpop.f32.mrf.mxu0  ;;  %v16016_v39 = vld [vmem:[#allocation62_spill] sm:$0xff] }
 0x2aa   :  { %15988 = vst [vmem:[#allocation89_spill] sm:$0xff] %v13056_v33  ;;  %v16014_v33 = vld [vmem:[#allocation115_spill] sm:$0xff] }
 0x2ab   :  { %2102 = vmatmul.mubr.f32.gmra.mxu1 %v8340_v24  ;;  %2699 = vmatmul.mubr.f32.gmra.mxu0 %v8466_v19  ;;  %v9052_v29 = vpop.f32.mrf.mxu1  ;;  %v13062_v30 = vpop.f32.mrf.mxu0 }
 0x2ac   :  { %2397 = vmatprep.mubr.f32.mxu1 %v8345_v17  ;;  %2994 = vmatprep.mubr.f32.mxu0 %v8471_v15  ;;  %v9053_v46 = vadd.f32 %v9052_v29, %v9051_v61  ;;  %15989 = vst [vmem:[#allocation91_spill] sm:$0xff] %v13062_v30  ;;  %v8976_v17 = vadd.f32 %v12820_v52, %v12810_v6 }
 0x2ae   :  { %v13064_v40 = vadd.f32 %v9053_v46, %v8973_v20  ;;  %v15992_v20 = vld [vmem:[#allocation97_spill] sm:$0xff] }
 0x2af   :  { %2398 = vmatmul.mubr.f32.vlgmr.msra.gmra.mxu1 %v8344_v23  ;;  %2995 = vmatmul.mubr.f32.vlgmr.msra.gmra.mxu0 %v8470_v31  ;;  %v9054_v11 = vpop.f32.mrf.mxu1  ;;  %v13072_v15 = vpop.f32.mrf.mxu0  ;;  %v8979_v23 = vadd.f32 %v12834_v43, %v15992_v20  ;;  %v8353_v31 = vld [vmem:[%s11579_s21 + $0x658] sm:$0xff] }
 0x2b0   :  { %9639 = vmatpush3.msra.mxu1 %v12217_v55  ;;  %9879 = vmatpush3.msra.mxu0 %v11982_v4  ;;  %15990 = vst [vmem:[#allocation128_spill] sm:$0xff] %v13072_v15  ;;  %v16007_v15 = vld [vmem:[#allocation41_spill] sm:$0xff] }
 0x2b1   :  { %9640 = vmatprep.subr.mxu1 %v12223_v10  ;;  %9880 = vmatprep.subr.mxu0 %v15867_v38  ;;  %v9055_v61 = vpop.f32.mrf.mxu1  ;;  %v13084_v52 = vpop.f32.mrf.mxu0 }
 0x2b2   :  { %9641 = vmatpush3.msra.mxu1 %v12230_v12  ;;  %9881 = vmatpush3.msra.mxu0 %v11996_v42  ;;  %v9056_v24 = vadd.f32 %v9055_v61, %v9054_v11  ;;  %15991 = vst [vmem:[#allocation129_spill] sm:$0xff] %v13084_v52  ;;  %v15993_v11 = vld [vmem:[#allocation57_spill] sm:$0xff]  ;;  %v16002_v52 = vld [vmem:[#allocation106_spill] sm:$0xff] }
 0x2b3   :  { %2402 = vmatprep.mubr.f32.mxu1 %v8349_v32  ;;  %9642 = vmatprep.subr.mxu1 %v12238_v7  ;;  %v9057_v19 = vpop.f32.mrf.mxu1  ;;  %v8479_v32 = vld [vmem:[%s11579_s21 + $0xa48] sm:$0xff]  ;;  %v8352_v61 = vld [vmem:[%s11579_s21 + $0x650] sm:$0xff] }
 0x2b4   :  { %2999 = vmatprep.mubr.f32.mxu0 %v8475_v49  ;;  %9882 = vmatprep.subr.mxu0 %v12004_v47  ;;  %v13082_v29 = vadd.f32 %v9056_v24, %v8976_v17  ;;  %v8478_v17 = vld [vmem:[%s11579_s21 + $0xa40] sm:$0xff]  ;;  %v15995_v24 = vld [vmem:[#allocation100_spill] sm:$0xff] }
 0x2b5   :  { %2403 = vmatmul.mubr.f32.gmra.mxu1 %v8348_v37  ;;  %3000 = vmatmul.mubr.f32.gmra.mxu0 %v8474_v5  ;;  %v9058_v6 = vpop.f32.mrf.mxu1  ;;  %v13101_v5 = vpop.f32.mrf.mxu0 }
 0x2b6   :  { %9643 = vmatpush3.msra.mxu1 %v12252_v25  ;;  %9883 = vmatpush3.msra.mxu0 %v12011_v50  ;;  %v9059_v46 = vadd.f32 %v9058_v6, %v9057_v19  ;;  %15994 = vst [vmem:[#allocation97_spill] sm:$0xff] %v13101_v5  ;;  %v8982_v19 = vadd.f32 %v12853_v0, %v15995_v24  ;;  %v15996_v6 = vld [vmem:[#allocation39_spill] sm:$0xff] }
 0x2b7   :  { %9644 = vmatprep.subr.mxu1 %v15993_v11  ;;  %9884 = vmatprep.subr.mxu0 %v12019_v53  ;;  %v9060_v49 = vpop.f32.mrf.mxu1  ;;  %v8483_v0 = vld [vmem:[%s11579_s21 + $0xa68] sm:$0xff]  ;;  %v13114_v24 = vpop.f32.mrf.mxu0  ;;  %v8482_v5 = vld [vmem:[%s11579_s21 + $0xa60] sm:$0xff] }
 0x2b8   :  { %9645 = vmatpush3.msra.mxu1 %v12262_v21  ;;  %9885 = vmatpush3.msra.mxu0 %v12028_v56  ;;  %v13098_v43 = vadd.f32 %v9059_v46, %v8979_v23  ;;  %15997 = vst [vmem:[#allocation57_spill] sm:$0xff] %v13114_v24 }
 0x2b9   :  { %2407 = vmatprep.mubr.f32.mxu1 %v8353_v31  ;;  %9646 = vmatprep.subr.mxu1 %v12270_v2  ;;  %v9061_v37 = vpop.f32.mrf.mxu1  ;;  %v8357_v31 = vld [vmem:[%s11579_s21 + $0x678] sm:$0xff] }
 0x2ba   :  { %3004 = vmatprep.mubr.f32.mxu0 %v8479_v32  ;;  %9886 = vmatprep.subr.mxu0 %v15996_v6  ;;  %v9062_v20 = vadd.f32 %v9061_v37, %v9060_v49  ;;  %v15998_v49 = vld [vmem:[#allocation103_spill] sm:$0xff]  ;;  %v8356_v37 = vld [vmem:[%s11579_s21 + $0x670] sm:$0xff] }
 0x2bb   :  { %2408 = vmatmul.mubr.f32.gmra.mxu1 %v8352_v61  ;;  %3005 = vmatmul.mubr.f32.gmra.mxu0 %v8478_v17  ;;  %v9063_v23 = vpop.f32.mrf.mxu1  ;;  %v8985_v61 = vadd.f32 %v12868_v9, %v15998_v49  ;;  %v15999_v17 = vld [vmem:[#allocation40_spill] sm:$0xff]  ;;  %v13126_v49 = vpop.f32.mrf.mxu0 }
 0x2bc   :  { %9647 = vmatpush3.msra.mxu1 %v12284_v51  ;;  %9887 = vmatpush3.msra.mxu0 %v12044_v63  ;;  %v13109_v46 = vadd.f32 %v9062_v20, %v8982_v19  ;;  %16001 = vst [vmem:[#allocation39_spill] sm:$0xff] %v13126_v49 }
 0x2bd   :  { %9648 = vmatprep.subr.mxu1 %v12288_v28  ;;  %9888 = vmatprep.subr.mxu0 %v12053_v3  ;;  %v9064_v32 = vpop.f32.mrf.mxu1 }
 0x2be   :  { %9649 = vmatpush3.msra.mxu1 %v12294_v27  ;;  %9889 = vmatpush3.msra.mxu0 %v15999_v17  ;;  %v9065_v19 = vadd.f32 %v9064_v32, %v9063_v23  ;;  %v8988_v23 = vadd.f32 %v12882_v60, %v16002_v52  ;;  %v16003_v32 = vld [vmem:[#allocation58_spill] sm:$0xff] }
 0x2bf   :  { %2412 = vmatprep.mubr.f32.mxu1 %v8357_v31  ;;  %9650 = vmatprep.subr.mxu1 %v12302_v62  ;;  %v9066_v20 = vpop.f32.mrf.mxu1  ;;  %v8361_v31 = vld [vmem:[%s11579_s21 + $0x698] sm:$0xff] }
 0x2c0   :  { %3009 = vmatprep.mubr.f32.mxu0 %v8483_v0  ;;  %9890 = vmatprep.subr.mxu0 %v12071_v45  ;;  %v13124_v24 = vadd.f32 %v9065_v19, %v8985_v61  ;;  %v8487_v61 = vld [vmem:[%s11579_s21 + $0xa88] sm:$0xff]  ;;  %v8486_v19 = vld [vmem:[%s11579_s21 + $0xa80] sm:$0xff] }
 0x2c1   :  { %2413 = vmatmul.mubr.f32.gmra.mxu1 %v8356_v37  ;;  %3010 = vmatmul.mubr.f32.gmra.mxu0 %v8482_v5  ;;  %v9067_v9 = vpop.f32.mrf.mxu1  ;;  %v8360_v5 = vld [vmem:[%s11579_s21 + $0x690] sm:$0xff] }
 0x2c2   :  { %16000 = vst [vmem:[#allocation100_spill] sm:$0xff] %v13124_v24  ;;  %9651 = vmatpush3.msra.mxu1 %v12312_v22  ;;  %9891 = vmatpush3.msra.mxu0 %v12078_v48  ;;  %v9068_v0 = vadd.f32 %v9067_v9, %v9066_v20  ;;  %v13143_v20 = vpop.f32.mrf.mxu0  ;;  %v16006_v9 = vld [vmem:[#allocation109_spill] sm:$0xff] }
 0x2c3   :  { %9652 = vmatprep.subr.mxu1 %v16003_v32  ;;  %9892 = vmatprep.subr.mxu0 %v12087_v54  ;;  %v9069_v37 = vpop.f32.mrf.mxu1  ;;  %16005 = vst [vmem:[#allocation106_spill] sm:$0xff] %v13143_v20  ;;  %v8991_v49 = vadd.f32 %v12901_v16, %v16006_v9  ;;  %v8491_v16 = vld [vmem:[%s11579_s21 + $0xaa8] sm:$0xff]  ;;  %v8490_v20 = vld [vmem:[%s11579_s21 + $0xaa0] sm:$0xff] }
 0x2c4   :  { %9653 = vmatpush3.msra.mxu1 %v12324_v58  ;;  %9893 = vmatpush3.msra.mxu0 %v12096_v59  ;;  %v13140_v60 = vadd.f32 %v9068_v0, %v8988_v23  ;;  %v13156_v9 = vpop.f32.mrf.mxu0 }
 0x2c5   :  { %2417 = vmatprep.mubr.f32.mxu1 %v8361_v31  ;;  %9654 = vmatprep.subr.mxu1 %v12331_v14  ;;  %v9070_v52 = vpop.f32.mrf.mxu1  ;;  %v8365_v31 = vld [vmem:[%s11579_s21 + $0x6b8] sm:$0xff]  ;;  %16009 = vst [vmem:[#allocation109_spill] sm:$0xff] %v13156_v9 }
 0x2c6   :  { %16004 = vst [vmem:[#allocation103_spill] sm:$0xff] %v13140_v60  ;;  %3014 = vmatprep.mubr.f32.mxu0 %v8487_v61  ;;  %9894 = vmatprep.subr.mxu0 %v16007_v15  ;;  %v9071_v30 = vadd.f32 %v9070_v52, %v9069_v37  ;;  %v16010_v37 = vld [vmem:[#allocation112_spill] sm:$0xff] }
 0x2c7   :  { %2418 = vmatmul.mubr.f32.gmra.mxu1 %v8360_v5  ;;  %3015 = vmatmul.mubr.f32.gmra.mxu0 %v8486_v19  ;;  %v9072_v23 = vpop.f32.mrf.mxu1  ;;  %v8994_v5 = vadd.f32 %v12916_v57, %v16010_v37  ;;  %v16011_v19 = vld [vmem:[#allocation43_spill] sm:$0xff]  ;;  %v8364_v52 = vld [vmem:[%s11579_s21 + $0x6b0] sm:$0xff]  ;;  %v13168_v37 = vpop.f32.mrf.mxu0 }
 0x2c8   :  { %9655 = vmatpush3.msra.mxu1 %v12342_v8  ;;  %9895 = vmatpush3.msra.mxu0 %v12112_v18  ;;  %v13151_v0 = vadd.f32 %v9071_v30, %v8991_v49  ;;  %16013 = vst [vmem:[#allocation112_spill] sm:$0xff] %v13168_v37  ;;  %v8368_v37 = vld [vmem:[%s11579_s21 + $0x6d0] sm:$0xff] }
 0x2c9   :  { %9656 = vmatprep.subr.mxu1 %v12354_v36  ;;  %9896 = vmatprep.subr.mxu0 %v12121_v44  ;;  %v9073_v61 = vpop.f32.mrf.mxu1 }
 0x2ca   :  { %16008 = vst [vmem:[#allocation58_spill] sm:$0xff] %v13151_v0  ;;  %9657 = vmatpush3.msra.mxu1 %v12361_v41  ;;  %9897 = vmatpush3.msra.mxu0 %v16011_v19  ;;  %v9074_v30 = vadd.f32 %v9073_v61, %v9072_v23  ;;  %v8997_v23 = vadd.f32 %v12930_v1, %v16014_v33  ;;  %v8369_v61 = vld [vmem:[%s11579_s21 + $0x6d8] sm:$0xff] }
 0x2cb   :  { %2422 = vmatprep.mubr.f32.mxu1 %v8365_v31  ;;  %9658 = vmatprep.subr.mxu1 %v12372_v26  ;;  %v9075_v49 = vpop.f32.mrf.mxu1  ;;  %v16015_v31 = vld [vmem:[#allocation45_spill] sm:$0xff]  ;;  %v16021_v33 = vld [vmem:[#allocation34_spill] sm:$0xff] }
 0x2cc   :  { %3019 = vmatprep.mubr.f32.mxu0 %v8491_v16  ;;  %9898 = vmatprep.subr.mxu0 %v15869_v34  ;;  %v13166_v9 = vadd.f32 %v9074_v30, %v8994_v5  ;;  %v16017_v5 = vld [vmem:[#allocation46_spill] sm:$0xff]  ;;  %v8495_v30 = vld [vmem:[%s11579_s21 + $0xac8] sm:$0xff] }
 0x2cd   :  { %2423 = vmatmul.mubr.f32.gmra.mxu1 %v8364_v52  ;;  %3020 = vmatmul.mubr.f32.gmra.mxu0 %v8490_v20  ;;  %v9076_v57 = vpop.f32.mrf.mxu1  ;;  %v16019_v20 = vld [vmem:[#allocation47_spill] sm:$0xff]  ;;  %v16119_v0 = vld [vmem:[#allocation118_spill] sm:$0xff] }
 0x2ce   :  { %16012 = vst [vmem:[#allocation41_spill] sm:$0xff] %v13166_v9  ;;  %9659 = vmatpush3.msra.mxu1 %v15870_v35  ;;  %9899 = vmatpush3.msra.mxu0 %v16015_v31  ;;  %v9077_v16 = vadd.f32 %v9076_v57, %v9075_v49  ;;  %v16018_v9 = vld [vmem:[#allocation32_spill] sm:$0xff]  ;;  %v8494_v34 = vld [vmem:[%s11579_s21 + $0xac0] sm:$0xff]  ;;  %v13185_v57 = vpop.f32.mrf.mxu0 }
 0x2cf   :  { %9660 = vmatprep.subr.mxu1 %v16016_v39  ;;  %9900 = vmatprep.subr.mxu0 %v16017_v5  ;;  %v9190_v52 = vpop.f32.mrf.mxu1  ;;  %16022 = vst [vmem:[#allocation130_spill] sm:$0xff] %v13185_v57  ;;  %v16023_v39 = vld [vmem:[#allocation37_spill] sm:$0xff]  ;;  %v16024_v5 = vld [vmem:[#allocation68_spill] sm:$0xff]  ;;  %v16030_v57 = vld [vmem:[#allocation50_spill] sm:$0xff] }
 0x2d0   :  { %9661 = vmatpush3.msra.mxu1 %v16018_v9  ;;  %9901 = vmatpush3.msra.mxu0 %v16019_v20  ;;  %v13182_v1 = vadd.f32 %v9077_v16, %v8997_v23  ;;  %v9112_v31 = vadd.f32 %v16024_v5, %v16023_v39  ;;  %v16025_v35 = vld [vmem:[#allocation48_spill] sm:$0xff]  ;;  %v16026_v23 = vld [vmem:[#allocation33_spill] sm:$0xff] }
 0x2d1   :  { %2427 = vmatprep.mubr.f32.mxu1 %v8369_v61  ;;  %9662 = vmatprep.subr.mxu1 %v16021_v33  ;;  %v9191_v49 = vpop.f32.mrf.mxu1  ;;  %v16027_v61 = vld [vmem:[#allocation49_spill] sm:$0xff]  ;;  %v16029_v33 = vld [vmem:[#allocation36_spill] sm:$0xff] }
 0x2d2   :  { %16020 = vst [vmem:[#allocation115_spill] sm:$0xff] %v13182_v1  ;;  %3024 = vmatprep.mubr.f32.mxu0 %v8495_v30  ;;  %9902 = vmatprep.subr.mxu0 %v16025_v35  ;;  %v9192_v20 = vadd.f32 %v9191_v49, %v9190_v52  ;;  %v8373_v16 = vld [vmem:[%s11579_s21 + $0x6f8] sm:$0xff]  ;;  %v8499_v39 = vld [vmem:[%s11579_s21 + $0xae8] sm:$0xff]  ;;  %v13198_v30 = vpop.f32.mrf.mxu0 }
 0x2d3   :  { %2428 = vmatmul.mubr.f32.gmra.mxu1 %v8368_v37  ;;  %3025 = vmatmul.mubr.f32.gmra.mxu0 %v8494_v34  ;;  %16031 = vst [vmem:[#allocation68_spill] sm:$0xff] %v13198_v30  ;;  %v16032_v35 = vld [vmem:[#allocation63_spill] sm:$0xff]  ;;  %v8372_v34 = vld [vmem:[%s11579_s21 + $0x6f0] sm:$0xff] }
 0x2d4   :  { %9663 = vmatpush3.msra.mxu1 %v16026_v23  ;;  %9903 = vmatpush3.msra.mxu0 %v16027_v61  ;;  %v13193_v1 = vadd.f32 %v9192_v20, %v9112_v31  ;;  %v16033_v52 = vld [vmem:[#allocation51_spill] sm:$0xff]  ;;  %v16035_v20 = vld [vmem:[#allocation64_spill] sm:$0xff]  ;;  %v16040_v9 = vld [vmem:[#allocation65_spill] sm:$0xff] }
 0x2d5   :  { %9664 = vmatprep.subr.mxu1 %v16029_v33  ;;  %9904 = vmatprep.subr.mxu0 %v16030_v57  ;;  %v9193_v5 = vpop.f32.mrf.mxu1  ;;  %v8498_v37 = vld [vmem:[%s11579_s21 + $0xae0] sm:$0xff]  ;;  %v16037_v61 = vld [vmem:[#allocation72_spill] sm:$0xff]  ;;  %v8377_v31 = vld [vmem:[%s11579_s21 + $0x718] sm:$0xff] }
 0x2d6   :  { %16028 = vst [vmem:[#allocation37_spill] sm:$0xff] %v13193_v1  ;;  %9665 = vmatpush3.msra.mxu1 %v16032_v35  ;;  %9905 = vmatpush3.msra.mxu0 %v16033_v52  ;;  %v16036_v57 = vld [vmem:[#allocation70_spill] sm:$0xff]  ;;  %v16038_v30 = vld [vmem:[#allocation52_spill] sm:$0xff]  ;;  %v13210_v35 = vpop.f32.mrf.mxu0  ;;  %v16052_v49 = vld [vmem:[#allocation35_spill] sm:$0xff] }
 0x2d7   :  { %2432 = vmatprep.mubr.f32.mxu1 %v8373_v16  ;;  %9666 = vmatprep.subr.mxu1 %v16035_v20  ;;  %v9194_v33 = vpop.f32.mrf.mxu1  ;;  %v9115_v23 = vadd.f32 %v16037_v61, %v16036_v57  ;;  %16039 = vst [vmem:[#allocation70_spill] sm:$0xff] %v13210_v35  ;;  %v16041_v16 = vld [vmem:[#allocation53_spill] sm:$0xff]  ;;  %v8503_v20 = vld [vmem:[%s11579_s21 + $0xb08] sm:$0xff]  ;;  %v16043_v57 = vld [vmem:[#allocation66_spill] sm:$0xff] }
 0x2d8   :  { %3029 = vmatprep.mubr.f32.mxu0 %v8499_v39  ;;  %9906 = vmatprep.subr.mxu0 %v16038_v30  ;;  %v9195_v52 = vadd.f32 %v9194_v33, %v9193_v5  ;;  %v16044_v61 = vld [vmem:[#allocation55_spill] sm:$0xff]  ;;  %v16046_v5 = vld [vmem:[#allocation56_spill] sm:$0xff] }
 0x2d9   :  { %2433 = vmatmul.mubr.f32.gmra.mxu1 %v8372_v34  ;;  %3030 = vmatmul.mubr.f32.gmra.mxu0 %v8498_v37  ;;  %v16045_v33 = vld [vmem:[#allocation67_spill] sm:$0xff]  ;;  %v8376_v34 = vld [vmem:[%s11579_s21 + $0x710] sm:$0xff] }
 0x2da   :  { %9667 = vmatpush3.msra.mxu1 %v16040_v9  ;;  %9907 = vmatpush3.msra.mxu0 %v16041_v16  ;;  %v13216_v1 = vadd.f32 %v9195_v52, %v9115_v23  ;;  %v8502_v37 = vld [vmem:[%s11579_s21 + $0xb00] sm:$0xff]  ;;  %v8381_v23 = vld [vmem:[%s11579_s21 + $0x738] sm:$0xff]  ;;  %v8507_v52 = vld [vmem:[%s11579_s21 + $0xb28] sm:$0xff] }
 0x2db   :  { %9668 = vmatprep.subr.mxu1 %v16043_v57  ;;  %9908 = vmatprep.subr.mxu0 %v16044_v61  ;;  %v9196_v39 = vpop.f32.mrf.mxu1  ;;  %v13228_v61 = vpop.f32.mrf.mxu0  ;;  %v16049_v16 = vld [vmem:[#allocation74_spill] sm:$0xff] }
 0x2dc   :  { %16042 = vst [vmem:[#allocation72_spill] sm:$0xff] %v13216_v1  ;;  %9669 = vmatpush3.msra.mxu1 %v16045_v33  ;;  %9909 = vmatpush3.msra.mxu0 %v16046_v5  ;;  %16048 = vst [vmem:[#allocation131_spill] sm:$0xff] %v13228_v61  ;;  %v16050_v33 = vld [vmem:[#allocation76_spill] sm:$0xff]  ;;  %v16051_v5 = vld [vmem:[#allocation54_spill] sm:$0xff] }
 0x2dd   :  { %2437 = vmatprep.mubr.f32.mxu1 %v8377_v31  ;;  %3034 = vmatprep.mubr.f32.mxu0 %v8503_v20  ;;  %v9197_v57 = vpop.f32.mrf.mxu1  ;;  %v9118_v30 = vadd.f32 %v16050_v33, %v16049_v16  ;;  %v8380_v31 = vld [vmem:[%s11579_s21 + $0x730] sm:$0xff]  ;;  %v8506_v20 = vld [vmem:[%s11579_s21 + $0xb20] sm:$0xff]  ;;  %v8385_v61 = vld [vmem:[%s11579_s21 + $0x758] sm:$0xff]  ;;  %v13240_v33 = vpop.f32.mrf.mxu0 }
 0x2de   :  { %9798 = vmatprep.subr.mxu1 %v16051_v5  ;;  %10038 = vmatprep.subr.mxu0 %v16052_v49  ;;  %v9198_v26 = vadd.f32 %v9197_v57, %v9196_v39  ;;  %v8511_v1 = vld [vmem:[%s11579_s21 + $0xb48] sm:$0xff]  ;;  %16054 = vst [vmem:[#allocation76_spill] sm:$0xff] %v13240_v33  ;;  %v8389_v5 = vld [vmem:[%s11579_s21 + $0x778] sm:$0xff] }
 0x2df   :  { %2438 = vmatmul.mubr.f32.gmra.mxu1 %v8376_v34  ;;  %3035 = vmatmul.mubr.f32.gmra.mxu0 %v8502_v37  ;;  %v16056_v34 = vld [vmem:[#allocation78_spill] sm:$0xff]  ;;  %v16057_v37 = vld [vmem:[#allocation80_spill] sm:$0xff]  ;;  %v13250_v35 = vpop.f32.mrf.mxu0 }
 0x2e0   :  { %2442 = vmatprep.mubr.f32.mxu1 %v8381_v23  ;;  %3039 = vmatprep.mubr.f32.mxu0 %v8507_v52  ;;  %v13236_v9 = vadd.f32 %v9198_v26, %v9118_v30  ;;  %v9121_v23 = vadd.f32 %v16057_v37, %v16056_v34  ;;  %v8384_v26 = vld [vmem:[%s11579_s21 + $0x750] sm:$0xff]  ;;  %v8510_v30 = vld [vmem:[%s11579_s21 + $0xb40] sm:$0xff]  ;;  %v8515_v33 = vld [vmem:[%s11579_s21 + $0xb68] sm:$0xff]  ;;  %16058 = vst [vmem:[#allocation78_spill] sm:$0xff] %v13250_v35 }
 0x2e1   :  { %v9199_v16 = vpop.f32.mrf.mxu1  ;;  %v8519_v34 = vld [vmem:[%s11579_s21 + $0xb88] sm:$0xff]  ;;  %v13260_v35 = vpop.f32.mrf.mxu0 }
 0x2e2   :  { %16053 = vst [vmem:[#allocation74_spill] sm:$0xff] %v13236_v9  ;;  %16061 = vst [vmem:[#allocation132_spill] sm:$0xff] %v13260_v35 }
 0x2e3   :  { %2443 = vmatmul.mubr.f32.gmra.mxu1 %v8380_v31  ;;  %3040 = vmatmul.mubr.f32.gmra.mxu0 %v8506_v20  ;;  %v9200_v39 = vpop.f32.mrf.mxu1  ;;  %v13270_v35 = vpop.f32.mrf.mxu0 }
 0x2e4   :  { %2447 = vmatprep.mubr.f32.mxu1 %v8385_v61  ;;  %3044 = vmatprep.mubr.f32.mxu0 %v8511_v1  ;;  %v9201_v52 = vadd.f32 %v9200_v39, %v9199_v16  ;;  %v8388_v61 = vld [vmem:[%s11579_s21 + $0x770] sm:$0xff]  ;;  %v8514_v1 = vld [vmem:[%s11579_s21 + $0xb60] sm:$0xff]  ;;  %v8393_v39 = vld [vmem:[%s11579_s21 + $0x798] sm:$0xff] }
 0x2e5   :  { %v8397_v16 = vld [vmem:[%s11579_s21 + $0x7b8] sm:$0xff]  ;;  %v13280_v49 = vpop.f32.mrf.mxu0 }
 0x2e6   :  { %v13252_v57 = vadd.f32 %v9201_v52, %v9121_v23  ;;  %v16062_v23 = vld [vmem:[#allocation82_spill] sm:$0xff] }
 0x2e7   :  { %2448 = vmatmul.mubr.f32.gmra.mxu1 %v8384_v26  ;;  %3045 = vmatmul.mubr.f32.gmra.mxu0 %v8510_v30  ;;  %v9202_v31 = vpop.f32.mrf.mxu1  ;;  %v16063_v26 = vld [vmem:[#allocation84_spill] sm:$0xff] }
 0x2e8   :  { %16059 = vst [vmem:[#allocation80_spill] sm:$0xff] %v13252_v57  ;;  %2452 = vmatprep.mubr.f32.mxu1 %v8389_v5  ;;  %3049 = vmatprep.mubr.f32.mxu0 %v8515_v33  ;;  %v9124_v30 = vadd.f32 %v16063_v26, %v16062_v23  ;;  %v8392_v5 = vld [vmem:[%s11579_s21 + $0x790] sm:$0xff]  ;;  %v8518_v33 = vld [vmem:[%s11579_s21 + $0xb80] sm:$0xff]  ;;  %v8523_v57 = vld [vmem:[%s11579_s21 + $0xba8] sm:$0xff] }
 0x2e9   :  { %v9203_v37 = vpop.f32.mrf.mxu1  ;;  %16065 = vst [vmem:[#allocation84_spill] sm:$0xff] %v13270_v35  ;;  %v8522_v26 = vld [vmem:[%s11579_s21 + $0xba0] sm:$0xff]  ;;  %v8527_v35 = vld [vmem:[%s11579_s21 + $0xbc8] sm:$0xff] }
 0x2ea   :  { %v9204_v52 = vadd.f32 %v9203_v37, %v9202_v31  ;;  %v8396_v37 = vld [vmem:[%s11579_s21 + $0x7b0] sm:$0xff] }
 0x2eb   :  { %2453 = vmatmul.mubr.f32.gmra.mxu1 %v8388_v61  ;;  %3050 = vmatmul.mubr.f32.gmra.mxu0 %v8514_v1  ;;  %v16067_v1 = vld [vmem:[#allocation86_spill] sm:$0xff] }
 0x2ec   :  { %2457 = vmatprep.mubr.f32.mxu1 %v8393_v39  ;;  %3054 = vmatprep.mubr.f32.mxu0 %v8519_v34  ;;  %v13266_v9 = vadd.f32 %v9204_v52, %v9124_v30  ;;  %v16068_v39 = vld [vmem:[#allocation88_spill] sm:$0xff]  ;;  %v8401_v52 = vld [vmem:[%s11579_s21 + $0x7d8] sm:$0xff]  ;;  %16069 = vst [vmem:[#allocation86_spill] sm:$0xff] %v13280_v49  ;;  %v13290_v49 = vpop.f32.mrf.mxu0 }
 0x2ed   :  { %v9205_v20 = vpop.f32.mrf.mxu1  ;;  %v9127_v34 = vadd.f32 %v16068_v39, %v16067_v1  ;;  %v8531_v1 = vld [vmem:[%s11579_s21 + $0xbe8] sm:$0xff]  ;;  %16072 = vst [vmem:[#allocation133_spill] sm:$0xff] %v13290_v49  ;;  %v16083_v49 = vld [vmem:[#allocation98_spill] sm:$0xff] }
 0x2ee   :  { %16064 = vst [vmem:[#allocation82_spill] sm:$0xff] %v13266_v9  ;;  %v13300_v23 = vpop.f32.mrf.mxu0 }
 0x2ef   :  { %2458 = vmatmul.mubr.f32.gmra.mxu1 %v8392_v5  ;;  %3055 = vmatmul.mubr.f32.gmra.mxu0 %v8518_v33  ;;  %v9206_v61 = vpop.f32.mrf.mxu1 }
 0x2f0   :  { %2462 = vmatprep.mubr.f32.mxu1 %v8397_v16  ;;  %3059 = vmatprep.mubr.f32.mxu0 %v8523_v57  ;;  %v9207_v30 = vadd.f32 %v9206_v61, %v9205_v20  ;;  %v8400_v16 = vld [vmem:[%s11579_s21 + $0x7d0] sm:$0xff]  ;;  %v8526_v57 = vld [vmem:[%s11579_s21 + $0xbc0] sm:$0xff]  ;;  %v8405_v61 = vld [vmem:[%s11579_s21 + $0x7f8] sm:$0xff] }
 0x2f1   :  { %v8409_v20 = vld [vmem:[%s11579_s21 + $0x818] sm:$0xff] }
 0x2f2   :  { %v13282_v31 = vadd.f32 %v9207_v30, %v9127_v34  ;;  %v16073_v34 = vld [vmem:[#allocation90_spill] sm:$0xff] }
 0x2f3   :  { %2463 = vmatmul.mubr.f32.gmra.mxu1 %v8396_v37  ;;  %3060 = vmatmul.mubr.f32.gmra.mxu0 %v8522_v26  ;;  %v9208_v5 = vpop.f32.mrf.mxu1  ;;  %v16074_v37 = vld [vmem:[#allocation92_spill] sm:$0xff]  ;;  %16075 = vst [vmem:[#allocation90_spill] sm:$0xff] %v13300_v23 }
 0x2f4   :  { %16070 = vst [vmem:[#allocation88_spill] sm:$0xff] %v13282_v31  ;;  %2467 = vmatprep.mubr.f32.mxu1 %v8401_v52  ;;  %3064 = vmatprep.mubr.f32.mxu0 %v8527_v35  ;;  %v9130_v26 = vadd.f32 %v16074_v37, %v16073_v34  ;;  %v8404_v35 = vld [vmem:[%s11579_s21 + $0x7f0] sm:$0xff]  ;;  %v8530_v52 = vld [vmem:[%s11579_s21 + $0xbe0] sm:$0xff]  ;;  %v8535_v31 = vld [vmem:[%s11579_s21 + $0xc08] sm:$0xff]  ;;  %v13308_v37 = vpop.f32.mrf.mxu0 }
 0x2f5   :  { %v9209_v39 = vpop.f32.mrf.mxu1  ;;  %16078 = vst [vmem:[#allocation92_spill] sm:$0xff] %v13308_v37  ;;  %v8546_v37 = vld [vmem:[%s11579_s21 + $0xc60] sm:$0xff] }
 0x2f6   :  { %v9210_v30 = vadd.f32 %v9209_v39, %v9208_v5  ;;  %v8534_v39 = vld [vmem:[%s11579_s21 + $0xc00] sm:$0xff] }
 0x2f7   :  { %2468 = vmatmul.mubr.f32.gmra.mxu1 %v8400_v16  ;;  %3065 = vmatmul.mubr.f32.gmra.mxu0 %v8526_v57  ;;  %v16076_v16 = vld [vmem:[#allocation93_spill] sm:$0xff]  ;;  %v16077_v57 = vld [vmem:[#allocation94_spill] sm:$0xff] }
 0x2f8   :  { %2472 = vmatprep.mubr.f32.mxu1 %v8405_v61  ;;  %3069 = vmatprep.mubr.f32.mxu0 %v8531_v1  ;;  %v13296_v9 = vadd.f32 %v9210_v30, %v9130_v26  ;;  %v9133_v61 = vadd.f32 %v16077_v57, %v16076_v16  ;;  %v8408_v1 = vld [vmem:[%s11579_s21 + $0x810] sm:$0xff] }
 0x2f9   :  { %v9211_v33 = vpop.f32.mrf.mxu1  ;;  %v16081_v16 = vld [vmem:[#allocation96_spill] sm:$0xff] }
 0x2fb   :  { %2473 = vmatmul.mubr.f32.gmra.mxu1 %v8404_v35  ;;  %3070 = vmatmul.mubr.f32.gmra.mxu0 %v8530_v52  ;;  %v9212_v5 = vpop.f32.mrf.mxu1  ;;  %v8413_v35 = vld [vmem:[%s11579_s21 + $0x838] sm:$0xff]  ;;  %v13320_v52 = vpop.f32.mrf.mxu0 }
 0x2fc   :  { %2768 = vmatprep.mubr.f32.mxu1 %v8409_v20  ;;  %3365 = vmatprep.mubr.f32.mxu0 %v8535_v31  ;;  %v9213_v34 = vadd.f32 %v9212_v5, %v9211_v33  ;;  %v8539_v33 = vld [vmem:[%s11579_s21 + $0xc28] sm:$0xff]  ;;  %16079 = vst [vmem:[#allocation93_spill] sm:$0xff] %v13320_v52 }
 0x2fd   :  { %v16080_v5 = vld [vmem:[#allocation95_spill] sm:$0xff] }
 0x2fe   :  { %v13310_v26 = vadd.f32 %v9213_v34, %v9133_v61  ;;  %v9136_v57 = vadd.f32 %v16081_v16, %v16080_v5  ;;  %v8412_v61 = vld [vmem:[%s11579_s21 + $0x830] sm:$0xff]  ;;  %v13332_v16 = vpop.f32.mrf.mxu0  ;;  %v16084_v52 = vld [vmem:[#allocation99_spill] sm:$0xff] }
 0x2ff   :  { %2769 = vmatmul.mubr.f32.vlgmr.msra.gmra.mxu1 %v8408_v1  ;;  %3366 = vmatmul.mubr.f32.vlgmr.msra.gmra.mxu0 %v8534_v39  ;;  %v9214_v30 = vpop.f32.mrf.mxu1  ;;  %v8538_v1 = vld [vmem:[%s11579_s21 + $0xc20] sm:$0xff]  ;;  %16082 = vst [vmem:[#allocation94_spill] sm:$0xff] %v13332_v16 }
 0x300   :  { %9799 = vmatpush3.msra.mxu1 %v12217_v55  ;;  %10039 = vmatpush3.msra.mxu0 %v11982_v4 }
 0x301   :  { %9800 = vmatprep.subr.mxu1 %v12223_v10  ;;  %10040 = vmatprep.subr.mxu0 %v15867_v38  ;;  %v9215_v20 = vpop.f32.mrf.mxu1 }
 0x302   :  { %9801 = vmatpush3.msra.mxu1 %v12230_v12  ;;  %10041 = vmatpush3.msra.mxu0 %v11996_v42  ;;  %v9216_v39 = vadd.f32 %v9215_v20, %v9214_v30  ;;  %v9139_v30 = vadd.f32 %v16084_v52, %v16083_v49  ;;  %v8416_v49 = vld [vmem:[%s11579_s21 + $0x850] sm:$0xff]  ;;  %v8542_v52 = vld [vmem:[%s11579_s21 + $0xc40] sm:$0xff] }
 0x303   :  { %2773 = vmatprep.mubr.f32.mxu1 %v8413_v35  ;;  %9802 = vmatprep.subr.mxu1 %v12238_v7  ;;  %v9217_v34 = vpop.f32.mrf.mxu1  ;;  %v8417_v35 = vld [vmem:[%s11579_s21 + $0x858] sm:$0xff] }
 0x304   :  { %3370 = vmatprep.mubr.f32.mxu0 %v8539_v33  ;;  %10042 = vmatprep.subr.mxu0 %v12004_v47  ;;  %v13330_v31 = vadd.f32 %v9216_v39, %v9136_v57  ;;  %v8543_v57 = vld [vmem:[%s11579_s21 + $0xc48] sm:$0xff]  ;;  %v16087_v33 = vld [vmem:[#allocation102_spill] sm:$0xff] }
 0x305   :  { %2774 = vmatmul.mubr.f32.gmra.mxu1 %v8412_v61  ;;  %3371 = vmatmul.mubr.f32.gmra.mxu0 %v8538_v1  ;;  %v9218_v5 = vpop.f32.mrf.mxu1 }
 0x306   :  { %9803 = vmatpush3.msra.mxu1 %v12252_v25  ;;  %10043 = vmatpush3.msra.mxu0 %v12011_v50  ;;  %v9219_v20 = vadd.f32 %v9218_v5, %v9217_v34  ;;  %v13351_v34 = vpop.f32.mrf.mxu0  ;;  %v16086_v5 = vld [vmem:[#allocation101_spill] sm:$0xff] }
 0x307   :  { %9804 = vmatprep.subr.mxu1 %v15993_v11  ;;  %10044 = vmatprep.subr.mxu0 %v12019_v53  ;;  %v9220_v61 = vpop.f32.mrf.mxu1  ;;  %16085 = vst [vmem:[#allocation95_spill] sm:$0xff] %v13351_v34  ;;  %v9142_v16 = vadd.f32 %v16087_v33, %v16086_v5  ;;  %v8547_v33 = vld [vmem:[%s11579_s21 + $0xc68] sm:$0xff] }
 0x308   :  { %9805 = vmatpush3.msra.mxu1 %v12262_v21  ;;  %10045 = vmatpush3.msra.mxu0 %v12028_v56  ;;  %v13348_v1 = vadd.f32 %v9219_v20, %v9139_v30 }
 0x309   :  { %2778 = vmatprep.mubr.f32.mxu1 %v8417_v35  ;;  %9806 = vmatprep.subr.mxu1 %v12270_v2  ;;  %v9221_v39 = vpop.f32.mrf.mxu1  ;;  %v8421_v35 = vld [vmem:[%s11579_s21 + $0x878] sm:$0xff] }
 0x30a   :  { %3375 = vmatprep.mubr.f32.mxu0 %v8543_v57  ;;  %10046 = vmatprep.subr.mxu0 %v15996_v6  ;;  %v9222_v23 = vadd.f32 %v9221_v39, %v9220_v61  ;;  %v13366_v57 = vpop.f32.mrf.mxu0  ;;  %v16089_v39 = vld [vmem:[#allocation104_spill] sm:$0xff] }
 0x30b   :  { %2779 = vmatmul.mubr.f32.gmra.mxu1 %v8416_v49  ;;  %3376 = vmatmul.mubr.f32.gmra.mxu0 %v8542_v52  ;;  %v9223_v30 = vpop.f32.mrf.mxu1  ;;  %16088 = vst [vmem:[#allocation96_spill] sm:$0xff] %v13366_v57  ;;  %v16090_v49 = vld [vmem:[#allocation105_spill] sm:$0xff] }
 0x30c   :  { %9807 = vmatpush3.msra.mxu1 %v12284_v51  ;;  %10047 = vmatpush3.msra.mxu0 %v12044_v63  ;;  %v13361_v20 = vadd.f32 %v9222_v23, %v9142_v16  ;;  %v9145_v5 = vadd.f32 %v16090_v49, %v16089_v39  ;;  %v8420_v52 = vld [vmem:[%s11579_s21 + $0x870] sm:$0xff]  ;;  %v13380_v49 = vpop.f32.mrf.mxu0 }
 0x30d   :  { %9808 = vmatprep.subr.mxu1 %v12288_v28  ;;  %10048 = vmatprep.subr.mxu0 %v12053_v3  ;;  %v9224_v61 = vpop.f32.mrf.mxu1  ;;  %16092 = vst [vmem:[#allocation99_spill] sm:$0xff] %v13380_v49  ;;  %v16094_v23 = vld [vmem:[#allocation108_spill] sm:$0xff] }
 0x30e   :  { %9809 = vmatpush3.msra.mxu1 %v12294_v27  ;;  %10049 = vmatpush3.msra.mxu0 %v15999_v17  ;;  %v9225_v16 = vadd.f32 %v9224_v61, %v9223_v30  ;;  %v16093_v17 = vld [vmem:[#allocation107_spill] sm:$0xff] }
 0x30f   :  { %2783 = vmatprep.mubr.f32.mxu1 %v8421_v35  ;;  %9810 = vmatprep.subr.mxu1 %v12302_v62  ;;  %v9226_v34 = vpop.f32.mrf.mxu1  ;;  %v9148_v30 = vadd.f32 %v16094_v23, %v16093_v17  ;;  %v8425_v35 = vld [vmem:[%s11579_s21 + $0x898] sm:$0xff]  ;;  %v8424_v17 = vld [vmem:[%s11579_s21 + $0x890] sm:$0xff] }
 0x310   :  { %3380 = vmatprep.mubr.f32.mxu0 %v8547_v33  ;;  %10050 = vmatprep.subr.mxu0 %v12071_v45  ;;  %v13378_v39 = vadd.f32 %v9225_v16, %v9145_v5  ;;  %v13399_v16 = vpop.f32.mrf.mxu0  ;;  %v16098_v33 = vld [vmem:[#allocation111_spill] sm:$0xff] }
 0x311   :  { %2784 = vmatmul.mubr.f32.gmra.mxu1 %v8420_v52  ;;  %3381 = vmatmul.mubr.f32.gmra.mxu0 %v8546_v37  ;;  %v9227_v57 = vpop.f32.mrf.mxu1  ;;  %v8551_v37 = vld [vmem:[%s11579_s21 + $0xc88] sm:$0xff]  ;;  %v8550_v52 = vld [vmem:[%s11579_s21 + $0xc80] sm:$0xff]  ;;  %16096 = vst [vmem:[#allocation102_spill] sm:$0xff] %v13399_v16  ;;  %v16103_v16 = vld [vmem:[#allocation61_spill] sm:$0xff] }
 0x312   :  { %16091 = vst [vmem:[#allocation98_spill] sm:$0xff] %v13378_v39  ;;  %9811 = vmatpush3.msra.mxu1 %v12312_v22  ;;  %10051 = vmatpush3.msra.mxu0 %v12078_v48  ;;  %v9228_v61 = vadd.f32 %v9227_v57, %v9226_v34  ;;  %v16097_v57 = vld [vmem:[#allocation110_spill] sm:$0xff] }
 0x313   :  { %9812 = vmatprep.subr.mxu1 %v16003_v32  ;;  %10052 = vmatprep.subr.mxu0 %v12087_v54  ;;  %v9229_v5 = vpop.f32.mrf.mxu1  ;;  %v9151_v49 = vadd.f32 %v16098_v33, %v16097_v57  ;;  %v8555_v33 = vld [vmem:[%s11579_s21 + $0xca8] sm:$0xff]  ;;  %v8554_v39 = vld [vmem:[%s11579_s21 + $0xca0] sm:$0xff] }
 0x314   :  { %9813 = vmatpush3.msra.mxu1 %v12324_v58  ;;  %10053 = vmatpush3.msra.mxu0 %v12096_v59  ;;  %v13396_v23 = vadd.f32 %v9228_v61, %v9148_v30 }
 0x315   :  { %2788 = vmatprep.mubr.f32.mxu1 %v8425_v35  ;;  %9814 = vmatprep.subr.mxu1 %v12331_v14  ;;  %v9230_v34 = vpop.f32.mrf.mxu1  ;;  %v8429_v35 = vld [vmem:[%s11579_s21 + $0x8b8] sm:$0xff] }
 0x316   :  { %16095 = vst [vmem:[#allocation101_spill] sm:$0xff] %v13396_v23  ;;  %3385 = vmatprep.mubr.f32.mxu0 %v8551_v37  ;;  %10054 = vmatprep.subr.mxu0 %v16007_v15  ;;  %v9231_v24 = vadd.f32 %v9230_v34, %v9229_v5  ;;  %v13414_v37 = vpop.f32.mrf.mxu0  ;;  %v16101_v34 = vld [vmem:[#allocation113_spill] sm:$0xff] }
 0x317   :  { %2789 = vmatmul.mubr.f32.gmra.mxu1 %v8424_v17  ;;  %3386 = vmatmul.mubr.f32.gmra.mxu0 %v8550_v52  ;;  %v9232_v30 = vpop.f32.mrf.mxu1  ;;  %16100 = vst [vmem:[#allocation105_spill] sm:$0xff] %v13414_v37  ;;  %v16102_v17 = vld [vmem:[#allocation114_spill] sm:$0xff]  ;;  %v8428_v52 = vld [vmem:[%s11579_s21 + $0x8b0] sm:$0xff] }
 0x318   :  { %9815 = vmatpush3.msra.mxu1 %v12342_v8  ;;  %10055 = vmatpush3.msra.mxu0 %v12112_v18  ;;  %v13409_v61 = vadd.f32 %v9231_v24, %v9151_v49  ;;  %v9154_v57 = vadd.f32 %v16102_v17, %v16101_v34  ;;  %v16104_v37 = vld [vmem:[#allocation44_spill] sm:$0xff]  ;;  %v13428_v17 = vpop.f32.mrf.mxu0  ;;  %v16108_v24 = vld [vmem:[#allocation117_spill] sm:$0xff] }
 0x319   :  { %9816 = vmatprep.subr.mxu1 %v12354_v36  ;;  %10056 = vmatprep.subr.mxu0 %v12121_v44  ;;  %v9233_v5 = vpop.f32.mrf.mxu1  ;;  %16106 = vst [vmem:[#allocation108_spill] sm:$0xff] %v13428_v17  ;;  %v16114_v17 = vld [vmem:[#allocation32_spill] sm:$0xff] }
 0x31a   :  { %16099 = vst [vmem:[#allocation104_spill] sm:$0xff] %v13409_v61  ;;  %9817 = vmatpush3.msra.mxu1 %v12361_v41  ;;  %10057 = vmatpush3.msra.mxu0 %v16011_v19  ;;  %v9234_v49 = vadd.f32 %v9233_v5, %v9232_v30  ;;  %v16107_v19 = vld [vmem:[#allocation116_spill] sm:$0xff]  ;;  %v16110_v5 = vld [vmem:[#allocation45_spill] sm:$0xff]  ;;  %v16128_v41 = vld [vmem:[#allocation63_spill] sm:$0xff] }
 0x31b   :  { %2793 = vmatprep.mubr.f32.mxu1 %v8429_v35  ;;  %9818 = vmatprep.subr.mxu1 %v16103_v16  ;;  %v9235_v23 = vpop.f32.mrf.mxu1  ;;  %v9157_v30 = vadd.f32 %v16108_v24, %v16107_v19  ;;  %v16109_v35 = vld [vmem:[#allocation38_spill] sm:$0xff]  ;;  %v16115_v16 = vld [vmem:[#allocation47_spill] sm:$0xff]  ;;  %v8432_v19 = vld [vmem:[%s11579_s21 + $0x8d0] sm:$0xff] }
 0x31c   :  { %3390 = vmatprep.mubr.f32.mxu0 %v8555_v33  ;;  %10058 = vmatprep.subr.mxu0 %v16104_v37  ;;  %v13426_v34 = vadd.f32 %v9234_v49, %v9154_v57  ;;  %v8433_v61 = vld [vmem:[%s11579_s21 + $0x8d8] sm:$0xff]  ;;  %v8558_v24 = vld [vmem:[%s11579_s21 + $0xcc0] sm:$0xff] }
 0x31d   :  { %2794 = vmatmul.mubr.f32.gmra.mxu1 %v8428_v52  ;;  %3391 = vmatmul.mubr.f32.gmra.mxu0 %v8554_v39  ;;  %v9236_v60 = vpop.f32.mrf.mxu1  ;;  %v16112_v49 = vld [vmem:[#allocation62_spill] sm:$0xff]  ;;  %v8559_v39 = vld [vmem:[%s11579_s21 + $0xcc8] sm:$0xff] }
 0x31e   :  { %16105 = vst [vmem:[#allocation107_spill] sm:$0xff] %v13426_v34  ;;  %9819 = vmatpush3.msra.mxu1 %v16109_v35  ;;  %10059 = vmatpush3.msra.mxu0 %v16110_v5  ;;  %v9237_v57 = vadd.f32 %v9236_v60, %v9235_v23  ;;  %v16113_v52 = vld [vmem:[#allocation46_spill] sm:$0xff]  ;;  %v13447_v60 = vpop.f32.mrf.mxu0  ;;  %v16120_v34 = vld [vmem:[#allocation119_spill] sm:$0xff] }
 0x31f   :  { %9820 = vmatprep.subr.mxu1 %v16112_v49  ;;  %10060 = vmatprep.subr.mxu0 %v16113_v52  ;;  %v9350_v37 = vpop.f32.mrf.mxu1  ;;  %v16117_v5 = vld [vmem:[#allocation34_spill] sm:$0xff]  ;;  %16118 = vst [vmem:[#allocation111_spill] sm:$0xff] %v13447_v60  ;;  %v9272_v33 = vadd.f32 %v16120_v34, %v16119_v0  ;;  %v16121_v52 = vld [vmem:[#allocation48_spill] sm:$0xff] }
 0x320   :  { %9821 = vmatpush3.msra.mxu1 %v16114_v17  ;;  %10061 = vmatpush3.msra.mxu0 %v16115_v16  ;;  %v13444_v35 = vadd.f32 %v9237_v57, %v9157_v30  ;;  %v16124_v57 = vld [vmem:[#allocation49_spill] sm:$0xff]  ;;  %v16125_v49 = vld [vmem:[#allocation36_spill] sm:$0xff]  ;;  %v16126_v0 = vld [vmem:[#allocation50_spill] sm:$0xff] }
 0x321   :  { %2798 = vmatprep.mubr.f32.mxu1 %v8433_v61  ;;  %9822 = vmatprep.subr.mxu1 %v16117_v5  ;;  %v9351_v23 = vpop.f32.mrf.mxu1  ;;  %v16123_v61 = vld [vmem:[#allocation33_spill] sm:$0xff]  ;;  %v8563_v34 = vld [vmem:[%s11579_s21 + $0xce8] sm:$0xff] }
 0x322   :  { %16116 = vst [vmem:[#allocation110_spill] sm:$0xff] %v13444_v35  ;;  %3395 = vmatprep.mubr.f32.mxu0 %v8559_v39  ;;  %10062 = vmatprep.subr.mxu0 %v16121_v52  ;;  %v9352_v30 = vadd.f32 %v9351_v23, %v9350_v37  ;;  %v8437_v60 = vld [vmem:[%s11579_s21 + $0x8f8] sm:$0xff]  ;;  %v13460_v39 = vpop.f32.mrf.mxu0  ;;  %v16129_v17 = vld [vmem:[#allocation51_spill] sm:$0xff]  ;;  %v8436_v37 = vld [vmem:[%s11579_s21 + $0x8f0] sm:$0xff] }
 0x323   :  { %2799 = vmatmul.mubr.f32.gmra.mxu1 %v8432_v19  ;;  %3396 = vmatmul.mubr.f32.gmra.mxu0 %v8558_v24  ;;  %16127 = vst [vmem:[#allocation113_spill] sm:$0xff] %v13460_v39  ;;  %v8562_v19 = vld [vmem:[%s11579_s21 + $0xce0] sm:$0xff]  ;;  %v16130_v24 = vld [vmem:[#allocation120_spill] sm:$0xff]  ;;  %v16131_v23 = vld [vmem:[#allocation37_spill] sm:$0xff] }
 0x324   :  { %9823 = vmatpush3.msra.mxu1 %v16123_v61  ;;  %10063 = vmatpush3.msra.mxu0 %v16124_v57  ;;  %v2029_v5 = vadd.f32 %v9352_v30, %v9272_v33  ;;  %v16132_v35 = vmax.f32 %v16130_v24, %v16131_v23  ;;  %v16134_v30 = vld [vmem:[#allocation64_spill] sm:$0xff]  ;;  %v16136_v39 = vld [vmem:[#allocation122_spill] sm:$0xff]  ;;  %v13475_v57 = vpop.f32.mrf.mxu0  ;;  %v16139_v24 = vld [vmem:[#allocation65_spill] sm:$0xff] }
 0x325   :  { %9824 = vmatprep.subr.mxu1 %v16125_v49  ;;  %10064 = vmatprep.subr.mxu0 %v16126_v0  ;;  %v9353_v52 = vpop.f32.mrf.mxu1  ;;  %v16135_v0 = vld [vmem:[#allocation121_spill] sm:$0xff]  ;;  %16138 = vst [vmem:[#allocation116_spill] sm:$0xff] %v13475_v57  ;;  %v16146_v57 = vld [vmem:[#allocation72_spill] sm:$0xff]  ;;  %v16153_v61 = vld [vmem:[#allocation35_spill] sm:$0xff] }
 0x326   :  { %9825 = vmatpush3.msra.mxu1 %v16128_v41  ;;  %10065 = vmatpush3.msra.mxu0 %v16129_v17  ;;  %v13469_v33 = vmax.f32 %v16132_v35, %v2029_v5  ;;  %v9275_v49 = vadd.f32 %v16136_v39, %v16135_v0  ;;  %v16137_v41 = vld [vmem:[#allocation52_spill] sm:$0xff]  ;;  %v16140_v35 = vld [vmem:[#allocation53_spill] sm:$0xff]  ;;  %v16141_v0 = vld [vmem:[#allocation66_spill] sm:$0xff] }
 0x327   :  { %2803 = vmatprep.mubr.f32.mxu1 %v8437_v60  ;;  %9826 = vmatprep.subr.mxu1 %v16134_v30  ;;  %v9354_v16 = vpop.f32.mrf.mxu1  ;;  %v8441_v5 = vld [vmem:[%s11579_s21 + $0x918] sm:$0xff]  ;;  %v8567_v60 = vld [vmem:[%s11579_s21 + $0xd08] sm:$0xff] }
 0x328   :  { %16133 = vst [vmem:[#allocation114_spill] sm:$0xff] %v13469_v33  ;;  %3400 = vmatprep.mubr.f32.mxu0 %v8563_v34  ;;  %10066 = vmatprep.subr.mxu0 %v16137_v41  ;;  %v9355_v17 = vadd.f32 %v9354_v16, %v9353_v52  ;;  %v16142_v34 = vld [vmem:[#allocation55_spill] sm:$0xff]  ;;  %v16144_v16 = vld [vmem:[#allocation56_spill] sm:$0xff]  ;;  %v16152_v30 = vld [vmem:[#allocation54_spill] sm:$0xff] }
 0x329   :  { %2804 = vmatmul.mubr.f32.gmra.mxu1 %v8436_v37  ;;  %3401 = vmatmul.mubr.f32.gmra.mxu0 %v8562_v19  ;;  %v16143_v33 = vld [vmem:[#allocation67_spill] sm:$0xff]  ;;  %v8440_v52 = vld [vmem:[%s11579_s21 + $0x910] sm:$0xff] }
 0x32a   :  { %9827 = vmatpush3.msra.mxu1 %v16139_v24  ;;  %10067 = vmatpush3.msra.mxu0 %v16140_v35  ;;  %v2034_v23 = vadd.f32 %v9355_v17, %v9275_v49  ;;  %v8566_v37 = vld [vmem:[%s11579_s21 + $0xd00] sm:$0xff]  ;;  %v16145_v19 = vld [vmem:[#allocation69_spill] sm:$0xff]  ;;  %v8571_v49 = vld [vmem:[%s11579_s21 + $0xd28] sm:$0xff] }
 0x32b   :  { %9828 = vmatprep.subr.mxu1 %v16141_v0  ;;  %10068 = vmatprep.subr.mxu0 %v16142_v34  ;;  %v9356_v39 = vpop.f32.mrf.mxu1  ;;  %v16147_v24 = vmax.f32 %v16145_v19, %v16146_v57  ;;  %v8445_v17 = vld [vmem:[%s11579_s21 + $0x938] sm:$0xff]  ;;  %v13494_v34 = vpop.f32.mrf.mxu0  ;;  %v16150_v0 = vld [vmem:[#allocation71_spill] sm:$0xff] }
 0x32c   :  { %9829 = vmatpush3.msra.mxu1 %v16143_v33  ;;  %10069 = vmatpush3.msra.mxu0 %v16144_v16  ;;  %16149 = vst [vmem:[#allocation118_spill] sm:$0xff] %v13494_v34  ;;  %v16151_v16 = vld [vmem:[#allocation123_spill] sm:$0xff] }
 0x32d   :  { %v13490_v41 = vmax.f32 %v16147_v24, %v2034_v23  ;;  %2808 = vmatprep.mubr.f32.mxu1 %v8441_v5  ;;  %3405 = vmatprep.mubr.f32.mxu0 %v8567_v60  ;;  %v9357_v33 = vpop.f32.mrf.mxu1  ;;  %v9278_v35 = vadd.f32 %v16151_v16, %v16150_v0  ;;  %v8444_v24 = vld [vmem:[%s11579_s21 + $0x930] sm:$0xff]  ;;  %v8570_v5 = vld [vmem:[%s11579_s21 + $0xd20] sm:$0xff]  ;;  %v8449_v23 = vld [vmem:[%s11579_s21 + $0x958] sm:$0xff]  ;;  %v13504_v34 = vpop.f32.mrf.mxu0 }
 0x32e   :  { %9958 = vmatprep.subr.mxu1 %v16152_v30  ;;  %10198 = vmatprep.subr.mxu0 %v16153_v61  ;;  %v9358_v57 = vadd.f32 %v9357_v33, %v9356_v39  ;;  %v8575_v19 = vld [vmem:[%s11579_s21 + $0xd48] sm:$0xff]  ;;  %16154 = vst [vmem:[#allocation119_spill] sm:$0xff] %v13504_v34  ;;  %v16155_v16 = vld [vmem:[#allocation73_spill] sm:$0xff] }
 0x32f   :  { %16148 = vst [vmem:[#allocation117_spill] sm:$0xff] %v13490_v41  ;;  %2809 = vmatmul.mubr.f32.gmra.mxu1 %v8440_v52  ;;  %3406 = vmatmul.mubr.f32.gmra.mxu0 %v8566_v37  ;;  %v16156_v41 = vld [vmem:[#allocation74_spill] sm:$0xff]  ;;  %v16159_v52 = vld [vmem:[#allocation75_spill] sm:$0xff]  ;;  %v16160_v37 = vld [vmem:[#allocation124_spill] sm:$0xff] }
 0x330   :  { %2813 = vmatprep.mubr.f32.mxu1 %v8445_v17  ;;  %3410 = vmatprep.mubr.f32.mxu0 %v8571_v49  ;;  %v2039_v60 = vadd.f32 %v9358_v57, %v9278_v35  ;;  %v16157_v61 = vmax.f32 %v16155_v16, %v16156_v41  ;;  %v9281_v17 = vadd.f32 %v16160_v37, %v16159_v52  ;;  %v8448_v35 = vld [vmem:[%s11579_s21 + $0x950] sm:$0xff]  ;;  %v8574_v49 = vld [vmem:[%s11579_s21 + $0xd40] sm:$0xff]  ;;  %v8453_v34 = vld [vmem:[%s11579_s21 + $0x978] sm:$0xff]  ;;  %v13517_v41 = vpop.f32.mrf.mxu0 }
 0x331   :  { %v9359_v0 = vpop.f32.mrf.mxu1  ;;  %v8579_v30 = vld [vmem:[%s11579_s21 + $0xd68] sm:$0xff]  ;;  %16161 = vst [vmem:[#allocation37_spill] sm:$0xff] %v13517_v41  ;;  %v16162_v16 = vld [vmem:[#allocation77_spill] sm:$0xff] }
 0x332   :  { %v13509_v33 = vmax.f32 %v16157_v61, %v2039_v60  ;;  %v16163_v61 = vld [vmem:[#allocation80_spill] sm:$0xff] }
 0x333   :  { %2814 = vmatmul.mubr.f32.gmra.mxu1 %v8444_v24  ;;  %3411 = vmatmul.mubr.f32.gmra.mxu0 %v8570_v5  ;;  %v9360_v39 = vpop.f32.mrf.mxu1  ;;  %v9457_v5 = vpop.f32.mrf.mxu0  ;;  %v16164_v52 = vmax.f32 %v16162_v16, %v16163_v61  ;;  %v8456_v16 = vld [vmem:[%s11579_s21 + $0x990] sm:$0xff] }
 0x334   :  { %16158 = vst [vmem:[#allocation120_spill] sm:$0xff] %v13509_v33  ;;  %2818 = vmatprep.mubr.f32.mxu1 %v8449_v23  ;;  %3415 = vmatprep.mubr.f32.mxu0 %v8575_v19  ;;  %v9361_v57 = vadd.f32 %v9360_v39, %v9359_v0  ;;  %v8452_v23 = vld [vmem:[%s11579_s21 + $0x970] sm:$0xff]  ;;  %v8578_v19 = vld [vmem:[%s11579_s21 + $0xd60] sm:$0xff]  ;;  %v8457_v0 = vld [vmem:[%s11579_s21 + $0x998] sm:$0xff] }
 0x335   :  { %v8583_v39 = vld [vmem:[%s11579_s21 + $0xd88] sm:$0xff] }
 0x336   :  { %v2044_v60 = vadd.f32 %v9361_v57, %v9281_v17  ;;  %v16167_v57 = vld [vmem:[#allocation125_spill] sm:$0xff] }
 0x337   :  { %2819 = vmatmul.mubr.f32.gmra.mxu1 %v8448_v35  ;;  %3416 = vmatmul.mubr.f32.gmra.mxu0 %v8574_v49  ;;  %v9362_v24 = vpop.f32.mrf.mxu1  ;;  %v9458_v35 = vpop.f32.mrf.mxu0  ;;  %v16166_v49 = vld [vmem:[#allocation79_spill] sm:$0xff] }
 0x338   :  { %2823 = vmatprep.mubr.f32.mxu1 %v8453_v34  ;;  %3420 = vmatprep.mubr.f32.mxu0 %v8579_v30  ;;  %v13524_v37 = vmax.f32 %v16164_v52, %v2044_v60  ;;  %v9284_v41 = vadd.f32 %v16167_v57, %v16166_v49  ;;  %v13530_v30 = vadd.f32 %v9458_v35, %v9457_v5  ;;  %v8582_v60 = vld [vmem:[%s11579_s21 + $0xd80] sm:$0xff]  ;;  %v8461_v52 = vld [vmem:[%s11579_s21 + $0x9b8] sm:$0xff]  ;;  %v8460_v57 = vld [vmem:[%s11579_s21 + $0x9b0] sm:$0xff] }
 0x339   :  { %v9363_v17 = vpop.f32.mrf.mxu1  ;;  %v9460_v33 = vpop.f32.mrf.mxu0  ;;  %v16169_v49 = vld [vmem:[#allocation81_spill] sm:$0xff]  ;;  %v16175_v35 = vld [vmem:[#allocation126_spill] sm:$0xff] }
 0x33a   :  { %16165 = vst [vmem:[#allocation121_spill] sm:$0xff] %v13524_v37  ;;  %v9364_v34 = vadd.f32 %v9363_v17, %v9362_v24  ;;  %16168 = vst [vmem:[#allocation122_spill] sm:$0xff] %v13530_v30  ;;  %v8587_v37 = vld [vmem:[%s11579_s21 + $0xda8] sm:$0xff]  ;;  %v16170_v24 = vld [vmem:[#allocation82_spill] sm:$0xff] }
 0x33b   :  { %2824 = vmatmul.mubr.f32.gmra.mxu1 %v8452_v23  ;;  %3421 = vmatmul.mubr.f32.gmra.mxu0 %v8578_v19  ;;  %v9461_v36 = vpop.f32.mrf.mxu0  ;;  %v16171_v5 = vmax.f32 %v16169_v49, %v16170_v24  ;;  %v8591_v49 = vld [vmem:[%s11579_s21 + $0xdc8] sm:$0xff] }
 0x33c   :  { %2828 = vmatprep.mubr.f32.mxu1 %v8457_v0  ;;  %3425 = vmatprep.mubr.f32.mxu0 %v8583_v39  ;;  %v2049_v61 = vadd.f32 %v9364_v34, %v9284_v41  ;;  %v13541_v23 = vadd.f32 %v9461_v36, %v9460_v33  ;;  %v16174_v39 = vld [vmem:[#allocation83_spill] sm:$0xff] }
 0x33d   :  { %v9365_v44 = vpop.f32.mrf.mxu1  ;;  %v9463_v0 = vpop.f32.mrf.mxu0  ;;  %v9287_v41 = vadd.f32 %v16175_v35, %v16174_v39  ;;  %v8586_v34 = vld [vmem:[%s11579_s21 + $0xda0] sm:$0xff]  ;;  %v16178_v39 = vld [vmem:[#allocation88_spill] sm:$0xff]  ;;  %v8469_v35 = vld [vmem:[%s11579_s21 + $0x9f8] sm:$0xff] }
 0x33e   :  { %v13539_v17 = vmax.f32 %v16171_v5, %v2049_v61  ;;  %16173 = vst [vmem:[#allocation72_spill] sm:$0xff] %v13541_v23  ;;  %v8465_v61 = vld [vmem:[%s11579_s21 + $0x9d8] sm:$0xff]  ;;  %v8599_v23 = vld [vmem:[%s11579_s21 + $0xe08] sm:$0xff] }
 0x33f   :  { %2829 = vmatmul.mubr.f32.gmra.mxu1 %v8456_v16  ;;  %3426 = vmatmul.mubr.f32.gmra.mxu0 %v8582_v60  ;;  %v9366_v19 = vpop.f32.mrf.mxu1  ;;  %v9464_v36 = vpop.f32.mrf.mxu0  ;;  %v16177_v5 = vld [vmem:[#allocation85_spill] sm:$0xff] }
 0x340   :  { %16172 = vst [vmem:[#allocation69_spill] sm:$0xff] %v13539_v17  ;;  %2833 = vmatprep.mubr.f32.mxu1 %v8461_v52  ;;  %3430 = vmatprep.mubr.f32.mxu0 %v8587_v37  ;;  %v9367_v30 = vadd.f32 %v9366_v19, %v9365_v44  ;;  %v13549_v16 = vadd.f32 %v9464_v36, %v9463_v0  ;;  %v8464_v37 = vld [vmem:[%s11579_s21 + $0x9d0] sm:$0xff]  ;;  %v8590_v52 = vld [vmem:[%s11579_s21 + $0xdc0] sm:$0xff] }
 0x341   :  { %v9466_v24 = vpop.f32.mrf.mxu0  ;;  %v16179_v44 = vmax.f32 %v16177_v5, %v16178_v39  ;;  %v8468_v5 = vld [vmem:[%s11579_s21 + $0x9f0] sm:$0xff] }
 0x342   :  { %v2054_v33 = vadd.f32 %v9367_v30, %v9287_v41  ;;  %16176 = vst [vmem:[#allocation71_spill] sm:$0xff] %v13549_v16  ;;  %v8595_v30 = vld [vmem:[%s11579_s21 + $0xde8] sm:$0xff] }
 0x343   :  { %2834 = vmatmul.mubr.f32.gmra.mxu1 %v8460_v57  ;;  %3431 = vmatmul.mubr.f32.gmra.mxu0 %v8586_v34  ;;  %v9368_v60 = vpop.f32.mrf.mxu1  ;;  %v9467_v41 = vpop.f32.mrf.mxu0  ;;  %v16181_v57 = vld [vmem:[#allocation87_spill] sm:$0xff] }
 0x344   :  { %2838 = vmatprep.mubr.f32.mxu1 %v8465_v61  ;;  %3435 = vmatprep.mubr.f32.mxu0 %v8591_v49  ;;  %v13556_v19 = vmax.f32 %v16179_v44, %v2054_v33  ;;  %v16182_v34 = vld [vmem:[#allocation127_spill] sm:$0xff]  ;;  %v13562_v49 = vadd.f32 %v9467_v41, %v9466_v24  ;;  %v8473_v44 = vld [vmem:[%s11579_s21 + $0xa18] sm:$0xff]  ;;  %v8472_v41 = vld [vmem:[%s11579_s21 + $0xa10] sm:$0xff] }
 0x345   :  { %v9369_v0 = vpop.f32.mrf.mxu1  ;;  %v9290_v36 = vadd.f32 %v16182_v34, %v16181_v57  ;;  %v9469_v16 = vpop.f32.mrf.mxu0  ;;  %v8594_v33 = vld [vmem:[%s11579_s21 + $0xde0] sm:$0xff]  ;;  %v16183_v57 = vmax.f32 %v13052_v13, %v13296_v9 }
 0x346   :  { %16180 = vst [vmem:[#allocation123_spill] sm:$0xff] %v13556_v19  ;;  %v9370_v61 = vadd.f32 %v9369_v0, %v9368_v60  ;;  %v8598_v34 = vld [vmem:[%s11579_s21 + $0xe00] sm:$0xff] }
 0x347   :  { %2839 = vmatmul.mubr.f32.gmra.mxu1 %v8464_v37  ;;  %3436 = vmatmul.mubr.f32.gmra.mxu0 %v8590_v52  ;;  %v9470_v17 = vpop.f32.mrf.mxu0 }
 0x348   :  { %2843 = vmatprep.mubr.f32.mxu1 %v8469_v35  ;;  %3440 = vmatprep.mubr.f32.mxu0 %v8595_v30  ;;  %v2059_v39 = vadd.f32 %v9370_v61, %v9290_v36  ;;  %v13573_v24 = vadd.f32 %v9470_v17, %v9469_v16  ;;  %v16184_v35 = vld [vmem:[#allocation89_spill] sm:$0xff]  ;;  %v16185_v30 = vld [vmem:[#allocation91_spill] sm:$0xff] }
 0x349   :  { %v9371_v19 = vpop.f32.mrf.mxu1  ;;  %v9472_v52 = vpop.f32.mrf.mxu0  ;;  %v9293_v0 = vadd.f32 %v16185_v30, %v16184_v35  ;;  %v16190_v30 = vld [vmem:[#allocation97_spill] sm:$0xff] }
 0x34a   :  { %v13571_v60 = vmax.f32 %v16183_v57, %v2059_v39  ;;  %v16187_v57 = vld [vmem:[#allocation128_spill] sm:$0xff] }
 0x34b   :  { %2844 = vmatmul.mubr.f32.gmra.mxu1 %v8468_v5  ;;  %3441 = vmatmul.mubr.f32.gmra.mxu0 %v8594_v33  ;;  %v9372_v37 = vpop.f32.mrf.mxu1  ;;  %v9473_v61 = vpop.f32.mrf.mxu0  ;;  %v8477_v5 = vld [vmem:[%s11579_s21 + $0xa38] sm:$0xff] }
 0x34c   :  { %3139 = vmatprep.mubr.f32.mxu1 %v8473_v44  ;;  %3736 = vmatprep.mubr.f32.mxu0 %v8599_v23  ;;  %v9373_v36 = vadd.f32 %v9372_v37, %v9371_v19  ;;  %v13579_v9 = vadd.f32 %v9473_v61, %v9472_v52  ;;  %v16186_v23 = vmax.f32 %v13064_v40, %v13310_v26  ;;  %v8476_v19 = vld [vmem:[%s11579_s21 + $0xa30] sm:$0xff] }
 0x34d   :  { %v9475_v16 = vpop.f32.mrf.mxu0  ;;  %v16188_v37 = vld [vmem:[#allocation129_spill] sm:$0xff] }
 0x34e   :  { %v2064_v13 = vadd.f32 %v9373_v36, %v9293_v0  ;;  %v9296_v52 = vadd.f32 %v16188_v37, %v16187_v57  ;;  %v16191_v0 = vld [vmem:[#allocation57_spill] sm:$0xff] }
 0x34f   :  { %3140 = vmatmul.mubr.f32.vlgmr.msra.gmra.mxu1 %v8472_v41  ;;  %3737 = vmatmul.mubr.f32.vlgmr.msra.gmra.mxu0 %v8598_v34  ;;  %v9374_v17 = vpop.f32.mrf.mxu1  ;;  %v9476_v44 = vpop.f32.mrf.mxu0  ;;  %v9299_v41 = vadd.f32 %v16191_v0, %v16190_v30  ;;  %v8480_v61 = vld [vmem:[%s11579_s21 + $0xa50] sm:$0xff]  ;;  %v16201_v30 = vmax.f32 %v13109_v46, %v13361_v20 }
 0x350   :  { %9959 = vmatpush3.msra.mxu1 %v12217_v55  ;;  %10199 = vmatpush3.msra.mxu0 %v11982_v4  ;;  %v13587_v33 = vmax.f32 %v16186_v23, %v2064_v13  ;;  %v13596_v35 = vadd.f32 %v9476_v44, %v9475_v16  ;;  %v16195_v23 = vld [vmem:[#allocation106_spill] sm:$0xff] }
 0x351   :  { %9960 = vmatprep.subr.mxu1 %v12223_v10  ;;  %10200 = vmatprep.subr.mxu0 %v15867_v38  ;;  %v9375_v39 = vpop.f32.mrf.mxu1  ;;  %v9590_v38 = vpop.f32.mrf.mxu0 }
 0x352   :  { %9961 = vmatpush3.msra.mxu1 %v12230_v12  ;;  %10201 = vmatpush3.msra.mxu0 %v11996_v42  ;;  %v9376_v4 = vadd.f32 %v9375_v39, %v9374_v17  ;;  %16189 = vst [vmem:[#allocation35_spill] sm:$0xff] %v13596_v35  ;;  %v8481_v42 = vld [vmem:[%s11579_s21 + $0xa58] sm:$0xff] }
 0x353   :  { %3144 = vmatprep.mubr.f32.mxu1 %v8477_v5  ;;  %9962 = vmatprep.subr.mxu1 %v12238_v7  ;;  %v9377_v40 = vpop.f32.mrf.mxu1  ;;  %v9591_v36 = vpop.f32.mrf.mxu0  ;;  %v16194_v5 = vld [vmem:[#allocation39_spill] sm:$0xff]  ;;  %v8485_v39 = vld [vmem:[%s11579_s21 + $0xa78] sm:$0xff] }
 0x354   :  { %10202 = vmatprep.subr.mxu0 %v12004_v47  ;;  %3145 = vmatmul.mubr.f32.gmra.mxu1 %v8476_v19  ;;  %v2069_v26 = vadd.f32 %v9376_v4, %v9296_v52  ;;  %v16192_v47 = vmax.f32 %v13082_v29, %v13330_v31  ;;  %v13613_v16 = vadd.f32 %v9591_v36, %v9590_v38  ;;  %v16197_v4 = vld [vmem:[#allocation40_spill] sm:$0xff]  ;;  %v16199_v38 = vld [vmem:[#allocation109_spill] sm:$0xff] }
 0x355   :  { %9963 = vmatpush3.msra.mxu1 %v12252_v25  ;;  %10203 = vmatpush3.msra.mxu0 %v12011_v50  ;;  %v9378_v34 = vpop.f32.mrf.mxu1  ;;  %v9593_v31 = vpop.f32.mrf.mxu0  ;;  %v9302_v19 = vadd.f32 %v16195_v23, %v16194_v5 }
 0x356   :  { %9964 = vmatprep.subr.mxu1 %v15993_v11  ;;  %10204 = vmatprep.subr.mxu0 %v12019_v53  ;;  %v13611_v13 = vmax.f32 %v16192_v47, %v2069_v26  ;;  %v9379_v17 = vadd.f32 %v9378_v34, %v9377_v40  ;;  %16193 = vst [vmem:[#allocation73_spill] sm:$0xff] %v13613_v16  ;;  %v16200_v26 = vld [vmem:[#allocation112_spill] sm:$0xff] }
 0x357   :  { %9965 = vmatpush3.msra.mxu1 %v12262_v21  ;;  %10205 = vmatpush3.msra.mxu0 %v12028_v56  ;;  %v9380_v50 = vpop.f32.mrf.mxu1  ;;  %v16196_v56 = vmax.f32 %v13098_v43, %v13348_v1  ;;  %v9594_v52 = vpop.f32.mrf.mxu0 }
 0x358   :  { %3149 = vmatprep.mubr.f32.mxu1 %v8481_v42  ;;  %9966 = vmatprep.subr.mxu1 %v12270_v2  ;;  %v2074_v53 = vadd.f32 %v9379_v17, %v9299_v41  ;;  %v13634_v40 = vadd.f32 %v9594_v52, %v9593_v31  ;;  %v8489_v42 = vld [vmem:[%s11579_s21 + $0xa98] sm:$0xff] }
 0x359   :  { %10206 = vmatprep.subr.mxu0 %v15996_v6  ;;  %3150 = vmatmul.mubr.f32.gmra.mxu1 %v8480_v61  ;;  %v9381_v29 = vpop.f32.mrf.mxu1  ;;  %v8484_v6 = vld [vmem:[%s11579_s21 + $0xa70] sm:$0xff]  ;;  %v9596_v1 = vpop.f32.mrf.mxu0  ;;  %v16203_v17 = vld [vmem:[#allocation130_spill] sm:$0xff] }
 0x35a   :  { %9967 = vmatpush3.msra.mxu1 %v12284_v51  ;;  %10207 = vmatpush3.msra.mxu0 %v12044_v63  ;;  %v13627_v44 = vmax.f32 %v16196_v56, %v2074_v53  ;;  %v9382_v57 = vadd.f32 %v9381_v29, %v9380_v50  ;;  %16198 = vst [vmem:[#allocation74_spill] sm:$0xff] %v13634_v40  ;;  %v8488_v61 = vld [vmem:[%s11579_s21 + $0xa90] sm:$0xff] }
 0x35b   :  { %9968 = vmatprep.subr.mxu1 %v12288_v28  ;;  %10208 = vmatprep.subr.mxu0 %v12053_v3  ;;  %v9383_v37 = vpop.f32.mrf.mxu1  ;;  %v9305_v3 = vadd.f32 %v16200_v26, %v16199_v38  ;;  %v9597_v36 = vpop.f32.mrf.mxu0  ;;  %v16205_v53 = vld [vmem:[#allocation100_spill] sm:$0xff]  ;;  %v16214_v38 = vld [vmem:[#allocation43_spill] sm:$0xff]  ;;  %v16216_v26 = vld [vmem:[#allocation101_spill] sm:$0xff] }
 0x35c   :  { %9969 = vmatpush3.msra.mxu1 %v12294_v27  ;;  %10209 = vmatpush3.msra.mxu0 %v16197_v4  ;;  %v2079_v63 = vadd.f32 %v9382_v57, %v9302_v19  ;;  %v13651_v47 = vadd.f32 %v9597_v36, %v9596_v1  ;;  %v8493_v19 = vld [vmem:[%s11579_s21 + $0xab8] sm:$0xff]  ;;  %v16209_v57 = vld [vmem:[#allocation59_spill] sm:$0xff]  ;;  %v16213_v1 = vld [vmem:[#allocation60_spill] sm:$0xff] }
 0x35d   :  { %3154 = vmatprep.mubr.f32.mxu1 %v8485_v39  ;;  %9970 = vmatprep.subr.mxu1 %v12302_v62  ;;  %v9384_v43 = vpop.f32.mrf.mxu1  ;;  %v9599_v20 = vpop.f32.mrf.mxu0  ;;  %v8508_v40 = vld [vmem:[%s11579_s21 + $0xb30] sm:$0xff] }
 0x35e   :  { %10210 = vmatprep.subr.mxu0 %v12071_v45  ;;  %3155 = vmatmul.mubr.f32.gmra.mxu1 %v8484_v6  ;;  %v13643_v0 = vmax.f32 %v16201_v30, %v2079_v63  ;;  %v9385_v41 = vadd.f32 %v9384_v43, %v9383_v37  ;;  %16202 = vst [vmem:[#allocation75_spill] sm:$0xff] %v13651_v47  ;;  %v16210_v6 = vld [vmem:[#allocation42_spill] sm:$0xff]  ;;  %v8492_v37 = vld [vmem:[%s11579_s21 + $0xab0] sm:$0xff] }
 0x35f   :  { %9971 = vmatpush3.msra.mxu1 %v12312_v22  ;;  %10211 = vmatpush3.msra.mxu0 %v12078_v48  ;;  %v9386_v34 = vpop.f32.mrf.mxu1  ;;  %v16204_v48 = vld [vmem:[#allocation68_spill] sm:$0xff]  ;;  %v16211_v63 = vld [vmem:[#allocation70_spill] sm:$0xff] }
 0x360   :  { %9972 = vmatprep.subr.mxu1 %v16003_v32  ;;  %10212 = vmatprep.subr.mxu0 %v12087_v54  ;;  %v2084_v45 = vadd.f32 %v9385_v41, %v9305_v3  ;;  %v9308_v50 = vadd.f32 %v16204_v48, %v16203_v17  ;;  %v16206_v54 = vld [vmem:[#allocation98_spill] sm:$0xff]  ;;  %v16222_v17 = vld [vmem:[#allocation45_spill] sm:$0xff] }
 0x361   :  { %9973 = vmatpush3.msra.mxu1 %v12324_v58  ;;  %10213 = vmatpush3.msra.mxu0 %v12096_v59  ;;  %v9387_v46 = vpop.f32.mrf.mxu1  ;;  %v16207_v29 = vmax.f32 %v16205_v53, %v16206_v54  ;;  %v9600_v59 = vpop.f32.mrf.mxu0  ;;  %v8497_v48 = vld [vmem:[%s11579_s21 + $0xad8] sm:$0xff]  ;;  %v16223_v54 = vld [vmem:[#allocation76_spill] sm:$0xff] }
 0x362   :  { %3159 = vmatprep.mubr.f32.mxu1 %v8489_v42  ;;  %9974 = vmatprep.subr.mxu1 %v12331_v14  ;;  %v9388_v5 = vadd.f32 %v9387_v46, %v9386_v34  ;;  %v13667_v56 = vadd.f32 %v9600_v59, %v9599_v20  ;;  %v16218_v42 = vld [vmem:[#allocation61_spill] sm:$0xff]  ;;  %v16221_v20 = vld [vmem:[#allocation38_spill] sm:$0xff] }
 0x363   :  { %v13661_v31 = vmax.f32 %v16207_v29, %v2084_v45  ;;  %10214 = vmatprep.subr.mxu0 %v16007_v15  ;;  %3160 = vmatmul.mubr.f32.gmra.mxu1 %v8488_v61  ;;  %v9389_v23 = vpop.f32.mrf.mxu1  ;;  %v9602_v4 = vpop.f32.mrf.mxu0  ;;  %v16212_v15 = vld [vmem:[#allocation131_spill] sm:$0xff]  ;;  %v16219_v61 = vld [vmem:[#allocation44_spill] sm:$0xff]  ;;  %v16224_v29 = vld [vmem:[#allocation78_spill] sm:$0xff] }
 0x364   :  { %9975 = vmatpush3.msra.mxu1 %v12342_v8  ;;  %10215 = vmatpush3.msra.mxu0 %v12112_v18  ;;  %v2089_v39 = vadd.f32 %v9388_v5, %v9308_v50  ;;  %16208 = vst [vmem:[#allocation124_spill] sm:$0xff] %v13667_v56  ;;  %v9311_v43 = vadd.f32 %v16212_v15, %v16211_v63  ;;  %v16215_v18 = vld [vmem:[#allocation103_spill] sm:$0xff]  ;;  %v16226_v59 = vld [vmem:[#allocation46_spill] sm:$0xff]  ;;  %v16230_v63 = vld [vmem:[#allocation32_spill] sm:$0xff] }
 0x365   :  { %9976 = vmatprep.subr.mxu1 %v16209_v57  ;;  %10216 = vmatprep.subr.mxu0 %v16210_v6  ;;  %v9390_v52 = vpop.f32.mrf.mxu1  ;;  %v16217_v3 = vmax.f32 %v16215_v18, %v16216_v26  ;;  %v9603_v36 = vpop.f32.mrf.mxu0  ;;  %v9314_v5 = vadd.f32 %v16224_v29, %v16223_v54  ;;  %v16228_v6 = vld [vmem:[#allocation104_spill] sm:$0xff]  ;;  %v16231_v15 = vld [vmem:[#allocation47_spill] sm:$0xff]  ;;  %v16232_v18 = vld [vmem:[#allocation34_spill] sm:$0xff] }
 0x366   :  { %9977 = vmatpush3.msra.mxu1 %v16213_v1  ;;  %10217 = vmatpush3.msra.mxu0 %v16214_v38  ;;  %v9391_v41 = vadd.f32 %v9390_v52, %v9389_v23  ;;  %v13683_v46 = vadd.f32 %v9603_v36, %v9602_v4  ;;  %v16225_v23 = vld [vmem:[#allocation62_spill] sm:$0xff]  ;;  %v16238_v54 = vld [vmem:[#allocation49_spill] sm:$0xff] }
 0x367   :  { %v13679_v30 = vmax.f32 %v16217_v3, %v2089_v39  ;;  %3164 = vmatprep.mubr.f32.mxu1 %v8493_v19  ;;  %9978 = vmatprep.subr.mxu1 %v16218_v42  ;;  %v9392_v34 = vpop.f32.mrf.mxu1  ;;  %v9605_v53 = vpop.f32.mrf.mxu0  ;;  %v8496_v19 = vld [vmem:[%s11579_s21 + $0xad0] sm:$0xff]  ;;  %v16227_v39 = vld [vmem:[#allocation58_spill] sm:$0xff] }
 0x368   :  { %10218 = vmatprep.subr.mxu0 %v16219_v61  ;;  %3165 = vmatmul.mubr.f32.gmra.mxu1 %v8492_v37  ;;  %v2094_v45 = vadd.f32 %v9391_v41, %v9311_v43  ;;  %16220 = vst [vmem:[#allocation77_spill] sm:$0xff] %v13683_v46  ;;  %v16229_v37 = vmax.f32 %v16227_v39, %v16228_v6  ;;  %v16234_v41 = vld [vmem:[#allocation48_spill] sm:$0xff]  ;;  %v8501_v29 = vld [vmem:[%s11579_s21 + $0xaf8] sm:$0xff] }
 0x369   :  { %9979 = vmatpush3.msra.mxu1 %v16221_v20  ;;  %10219 = vmatpush3.msra.mxu0 %v16222_v17  ;;  %v9393_v50 = vpop.f32.mrf.mxu1  ;;  %v9606_v38 = vpop.f32.mrf.mxu0  ;;  %v16258_v46 = vld [vmem:[#allocation66_spill] sm:$0xff] }
 0x36a   :  { %9980 = vmatprep.subr.mxu1 %v16225_v23  ;;  %10220 = vmatprep.subr.mxu0 %v16226_v59  ;;  %v13696_v52 = vmax.f32 %v16229_v37, %v2094_v45  ;;  %v9394_v4 = vadd.f32 %v9393_v50, %v9392_v34  ;;  %v13701_v3 = vadd.f32 %v9606_v38, %v9605_v53  ;;  %v16235_v34 = vld [vmem:[#allocation132_spill] sm:$0xff]  ;;  %v16237_v50 = vld [vmem:[#allocation33_spill] sm:$0xff]  ;;  %v16240_v59 = vld [vmem:[#allocation107_spill] sm:$0xff] }
 0x36b   :  { %9981 = vmatpush3.msra.mxu1 %v16230_v63  ;;  %10221 = vmatpush3.msra.mxu0 %v16231_v15  ;;  %v9395_v43 = vpop.f32.mrf.mxu1  ;;  %v9608_v61 = vpop.f32.mrf.mxu0  ;;  %v16236_v45 = vld [vmem:[#allocation84_spill] sm:$0xff]  ;;  %v16244_v37 = vld [vmem:[#allocation50_spill] sm:$0xff]  ;;  %v16245_v38 = vld [vmem:[#allocation63_spill] sm:$0xff] }
 0x36c   :  { %3169 = vmatprep.mubr.f32.mxu1 %v8497_v48  ;;  %9982 = vmatprep.subr.mxu1 %v16232_v18  ;;  %v2099_v26 = vadd.f32 %v9394_v4, %v9314_v5  ;;  %16233 = vst [vmem:[#allocation80_spill] sm:$0xff] %v13701_v3  ;;  %v9317_v17 = vadd.f32 %v16236_v45, %v16235_v34  ;;  %v16239_v48 = vld [vmem:[#allocation41_spill] sm:$0xff]  ;;  %v16243_v5 = vld [vmem:[#allocation36_spill] sm:$0xff]  ;;  %v16253_v3 = vld [vmem:[#allocation110_spill] sm:$0xff] }
 0x36d   :  { %10222 = vmatprep.subr.mxu0 %v16234_v41  ;;  %3170 = vmatmul.mubr.f32.gmra.mxu1 %v8496_v19  ;;  %v9396_v36 = vpop.f32.mrf.mxu1  ;;  %v16241_v39 = vmax.f32 %v16239_v48, %v16240_v59  ;;  %v8500_v19 = vld [vmem:[%s11579_s21 + $0xaf0] sm:$0xff]  ;;  %v9609_v15 = vpop.f32.mrf.mxu0  ;;  %v16246_v41 = vld [vmem:[#allocation51_spill] sm:$0xff]  ;;  %v16264_v56 = vld [vmem:[#allocation54_spill] sm:$0xff] }
 0x36e   :  { %9983 = vmatpush3.msra.mxu1 %v16237_v50  ;;  %10223 = vmatpush3.msra.mxu0 %v16238_v54  ;;  %v9397_v53 = vadd.f32 %v9396_v36, %v9395_v43  ;;  %v13719_v45 = vadd.f32 %v9609_v15, %v9608_v61  ;;  %v16249_v54 = vld [vmem:[#allocation86_spill] sm:$0xff]  ;;  %v16250_v48 = vld [vmem:[#allocation133_spill] sm:$0xff] }
 0x36f   :  { %v13712_v6 = vmax.f32 %v16241_v39, %v2099_v26  ;;  %9984 = vmatprep.subr.mxu1 %v16243_v5  ;;  %10224 = vmatprep.subr.mxu0 %v16244_v37  ;;  %v9510_v4 = vpop.f32.mrf.mxu1  ;;  %v16248_v26 = vld [vmem:[#allocation64_spill] sm:$0xff]  ;;  %v9611_v36 = vpop.f32.mrf.mxu0  ;;  %v9432_v59 = vadd.f32 %v16250_v48, %v16249_v54  ;;  %v16252_v37 = vld [vmem:[#allocation115_spill] sm:$0xff]  ;;  %v8505_v15 = vld [vmem:[%s11579_s21 + $0xb18] sm:$0xff] }
 0x370   :  { %9985 = vmatpush3.msra.mxu1 %v16245_v38  ;;  %10225 = vmatpush3.msra.mxu0 %v16246_v41  ;;  %v2104_v34 = vadd.f32 %v9397_v53, %v9317_v17  ;;  %16247 = vst [vmem:[#allocation125_spill] sm:$0xff] %v13719_v45  ;;  %v16251_v39 = vld [vmem:[#allocation52_spill] sm:$0xff]  ;;  %v16254_v41 = vmax.f32 %v16252_v37, %v16253_v3  ;;  %v16257_v53 = vld [vmem:[#allocation53_spill] sm:$0xff]  ;;  %v16259_v54 = vld [vmem:[#allocation55_spill] sm:$0xff] }
 0x371   :  { %16242 = vst [vmem:[#allocation79_spill] sm:$0xff] %v13712_v6  ;;  %3174 = vmatprep.mubr.f32.mxu1 %v8501_v29  ;;  %9986 = vmatprep.subr.mxu1 %v16248_v26  ;;  %v9511_v43 = vpop.f32.mrf.mxu1  ;;  %v16256_v29 = vld [vmem:[#allocation65_spill] sm:$0xff]  ;;  %v9612_v45 = vpop.f32.mrf.mxu0 }
 0x372   :  { %10226 = vmatprep.subr.mxu0 %v16251_v39  ;;  %3175 = vmatmul.mubr.f32.gmra.mxu1 %v8500_v19  ;;  %v13728_v17 = vmax.f32 %v16254_v41, %v2104_v34  ;;  %v9512_v61 = vadd.f32 %v9511_v43, %v9510_v4  ;;  %v8504_v48 = vld [vmem:[%s11579_s21 + $0xb10] sm:$0xff]  ;;  %v8603_v39 = vld [vmem:[%s11579_s21 + $0xe28] sm:$0xff]  ;;  %v13739_v3 = vadd.f32 %v9612_v45, %v9611_v36  ;;  %v8509_v43 = vld [vmem:[%s11579_s21 + $0xb38] sm:$0xff] }
 0x373   :  { %9987 = vmatpush3.msra.mxu1 %v16256_v29  ;;  %10227 = vmatpush3.msra.mxu0 %v16257_v53  ;;  %v16262_v34 = vld [vmem:[#allocation67_spill] sm:$0xff]  ;;  %v16263_v4 = vld [vmem:[#allocation56_spill] sm:$0xff]  ;;  %v9614_v53 = vpop.f32.mrf.mxu0 }
 0x374   :  { %16255 = vst [vmem:[#allocation81_spill] sm:$0xff] %v13728_v17  ;;  %9988 = vmatprep.subr.mxu1 %v16258_v46  ;;  %10228 = vmatprep.subr.mxu0 %v16259_v54  ;;  %v13736_v19 = vadd.f32 %v9512_v61, %v9432_v59  ;;  %16261 = vst [vmem:[#allocation83_spill] sm:$0xff] %v13739_v3  ;;  %v8602_v41 = vld [vmem:[%s11579_s21 + $0xe20] sm:$0xff]  ;;  %v8607_v54 = vld [vmem:[%s11579_s21 + $0xe48] sm:$0xff] }
 0x375   :  { %9989 = vmatpush3.msra.mxu1 %v16262_v34  ;;  %10229 = vmatpush3.msra.mxu0 %v16263_v4  ;;  %v9513_v37 = vpop.f32.mrf.mxu1  ;;  %v9615_v36 = vpop.f32.mrf.mxu0  ;;  %v16266_v3 = vld [vmem:[#allocation90_spill] sm:$0xff]  ;;  %v16267_v4 = vld [vmem:[#allocation92_spill] sm:$0xff] }
 0x376   :  { %16260 = vst [vmem:[#allocation82_spill] sm:$0xff] %v13736_v19  ;;  %3179 = vmatprep.mubr.f32.mxu1 %v8505_v15  ;;  %10118 = vmatprep.subr.mxu1 %v16264_v56  ;;  %v9435_v47 = vadd.f32 %v16267_v4, %v16266_v3  ;;  %v13752_v15 = vadd.f32 %v9615_v36, %v9614_v53  ;;  %v8513_v17 = vld [vmem:[%s11579_s21 + $0xb58] sm:$0xff]  ;;  %v8606_v61 = vld [vmem:[%s11579_s21 + $0xe40] sm:$0xff] }
 0x377   :  { %3180 = vmatmul.mubr.f32.gmra.mxu1 %v8504_v48  ;;  %v9514_v45 = vpop.f32.mrf.mxu1  ;;  %3741 = vmatprep.mubr.f32.mxu0 %v8603_v39  ;;  %v9617_v19 = vpop.f32.mrf.mxu0  ;;  %v8611_v39 = vld [vmem:[%s11579_s21 + $0xe68] sm:$0xff]  ;;  %v16272_v36 = vld [vmem:[#allocation93_spill] sm:$0xff] }
 0x378   :  { %3184 = vmatprep.mubr.f32.mxu1 %v8509_v43  ;;  %v9515_v16 = vadd.f32 %v9514_v45, %v9513_v37  ;;  %3742 = vmatmul.mubr.f32.gmra.mxu0 %v8602_v41  ;;  %16268 = vst [vmem:[#allocation126_spill] sm:$0xff] %v13752_v15  ;;  %v8512_v43 = vld [vmem:[%s11579_s21 + $0xb50] sm:$0xff]  ;;  %v8615_v15 = vld [vmem:[%s11579_s21 + $0xe88] sm:$0xff] }
 0x379   :  { %3746 = vmatprep.mubr.f32.mxu0 %v8607_v54  ;;  %v9618_v3 = vpop.f32.mrf.mxu0  ;;  %v8517_v54 = vld [vmem:[%s11579_s21 + $0xb78] sm:$0xff]  ;;  %v8516_v41 = vld [vmem:[%s11579_s21 + $0xb70] sm:$0xff] }
 0x37a   :  { %v13756_v48 = vadd.f32 %v9515_v16, %v9435_v47  ;;  %v13762_v53 = vadd.f32 %v9618_v3, %v9617_v19  ;;  %v8610_v16 = vld [vmem:[%s11579_s21 + $0xe60] sm:$0xff] }
 0x37b   :  { %3185 = vmatmul.mubr.f32.gmra.mxu1 %v8508_v40  ;;  %v9516_v59 = vpop.f32.mrf.mxu1  ;;  %v9620_v47 = vpop.f32.mrf.mxu0  ;;  %v16273_v40 = vld [vmem:[#allocation94_spill] sm:$0xff] }
 0x37c   :  { %16269 = vst [vmem:[#allocation85_spill] sm:$0xff] %v13756_v48  ;;  %3189 = vmatprep.mubr.f32.mxu1 %v8513_v17  ;;  %3747 = vmatmul.mubr.f32.gmra.mxu0 %v8606_v61  ;;  %16271 = vst [vmem:[#allocation88_spill] sm:$0xff] %v13762_v53  ;;  %v9438_v4 = vadd.f32 %v16273_v40, %v16272_v36  ;;  %v8614_v53 = vld [vmem:[%s11579_s21 + $0xe80] sm:$0xff] }
 0x37d   :  { %v9517_v45 = vpop.f32.mrf.mxu1  ;;  %3751 = vmatprep.mubr.f32.mxu0 %v8611_v39  ;;  %v9621_v35 = vpop.f32.mrf.mxu0  ;;  %v8521_v39 = vld [vmem:[%s11579_s21 + $0xb98] sm:$0xff] }
 0x37e   :  { %v9518_v17 = vadd.f32 %v9517_v45, %v9516_v59  ;;  %v13772_v61 = vadd.f32 %v9621_v35, %v9620_v47  ;;  %v8520_v35 = vld [vmem:[%s11579_s21 + $0xb90] sm:$0xff]  ;;  %v8618_v45 = vld [vmem:[%s11579_s21 + $0xea0] sm:$0xff] }
 0x37f   :  { %3190 = vmatmul.mubr.f32.gmra.mxu1 %v8512_v43  ;;  %v9623_v36 = vpop.f32.mrf.mxu0  ;;  %v8619_v43 = vld [vmem:[%s11579_s21 + $0xea8] sm:$0xff] }
 0x380   :  { %3194 = vmatprep.mubr.f32.mxu1 %v8517_v54  ;;  %v13770_v19 = vadd.f32 %v9518_v17, %v9438_v4  ;;  %3752 = vmatmul.mubr.f32.gmra.mxu0 %v8610_v16  ;;  %16275 = vst [vmem:[#allocation127_spill] sm:$0xff] %v13772_v61  ;;  %v16277_v4 = vld [vmem:[#allocation95_spill] sm:$0xff]  ;;  %v16278_v17 = vld [vmem:[#allocation96_spill] sm:$0xff]  ;;  %v8525_v61 = vld [vmem:[%s11579_s21 + $0xbb8] sm:$0xff] }
 0x381   :  { %v9519_v3 = vpop.f32.mrf.mxu1  ;;  %3756 = vmatprep.mubr.f32.mxu0 %v8615_v15  ;;  %v9624_v40 = vpop.f32.mrf.mxu0  ;;  %v9441_v16 = vadd.f32 %v16278_v17, %v16277_v4 }
 0x382   :  { %16274 = vst [vmem:[#allocation87_spill] sm:$0xff] %v13770_v19  ;;  %v13782_v15 = vadd.f32 %v9624_v40, %v9623_v36  ;;  %v8622_v40 = vld [vmem:[%s11579_s21 + $0xec0] sm:$0xff] }
 0x383   :  { %3195 = vmatmul.mubr.f32.gmra.mxu1 %v8516_v41  ;;  %v9520_v54 = vpop.f32.mrf.mxu1  ;;  %v9626_v19 = vpop.f32.mrf.mxu0  ;;  %v8623_v41 = vld [vmem:[%s11579_s21 + $0xec8] sm:$0xff] }
 0x384   :  { %3199 = vmatprep.mubr.f32.mxu1 %v8521_v39  ;;  %v9521_v47 = vadd.f32 %v9520_v54, %v9519_v3  ;;  %3757 = vmatmul.mubr.f32.gmra.mxu0 %v8614_v53  ;;  %16279 = vst [vmem:[#allocation89_spill] sm:$0xff] %v13782_v15  ;;  %v8524_v39 = vld [vmem:[%s11579_s21 + $0xbb0] sm:$0xff]  ;;  %v8627_v15 = vld [vmem:[%s11579_s21 + $0xee8] sm:$0xff] }
 0x385   :  { %3761 = vmatprep.mubr.f32.mxu0 %v8619_v43  ;;  %v9627_v4 = vpop.f32.mrf.mxu0  ;;  %v8529_v43 = vld [vmem:[%s11579_s21 + $0xbd8] sm:$0xff]  ;;  %v8528_v3 = vld [vmem:[%s11579_s21 + $0xbd0] sm:$0xff] }
 0x386   :  { %v13786_v59 = vadd.f32 %v9521_v47, %v9441_v16  ;;  %v13792_v36 = vadd.f32 %v9627_v4, %v9626_v19  ;;  %v16283_v16 = vld [vmem:[#allocation99_spill] sm:$0xff] }
 0x387   :  { %3200 = vmatmul.mubr.f32.gmra.mxu1 %v8520_v35  ;;  %v9522_v48 = vpop.f32.mrf.mxu1  ;;  %v9629_v17 = vpop.f32.mrf.mxu0  ;;  %v16284_v35 = vld [vmem:[#allocation102_spill] sm:$0xff] }
 0x388   :  { %16280 = vst [vmem:[#allocation91_spill] sm:$0xff] %v13786_v59  ;;  %3204 = vmatprep.mubr.f32.mxu1 %v8525_v61  ;;  %3762 = vmatmul.mubr.f32.gmra.mxu0 %v8618_v45  ;;  %16282 = vst [vmem:[#allocation128_spill] sm:$0xff] %v13792_v36  ;;  %v9444_v47 = vadd.f32 %v16284_v35, %v16283_v16  ;;  %v8626_v36 = vld [vmem:[%s11579_s21 + $0xee0] sm:$0xff] }
 0x389   :  { %v9523_v54 = vpop.f32.mrf.mxu1  ;;  %3766 = vmatprep.mubr.f32.mxu0 %v8623_v41  ;;  %v9630_v37 = vpop.f32.mrf.mxu0  ;;  %v8533_v41 = vld [vmem:[%s11579_s21 + $0xbf8] sm:$0xff]  ;;  %v8630_v59 = vld [vmem:[%s11579_s21 + $0xf00] sm:$0xff] }
 0x38a   :  { %v9524_v61 = vadd.f32 %v9523_v54, %v9522_v48  ;;  %v13802_v45 = vadd.f32 %v9630_v37, %v9629_v17  ;;  %v8532_v37 = vld [vmem:[%s11579_s21 + $0xbf0] sm:$0xff] }
 0x38b   :  { %3205 = vmatmul.mubr.f32.gmra.mxu1 %v8524_v39  ;;  %v9632_v16 = vpop.f32.mrf.mxu0  ;;  %v8631_v39 = vld [vmem:[%s11579_s21 + $0xf08] sm:$0xff] }
 0x38c   :  { %3209 = vmatprep.mubr.f32.mxu1 %v8529_v43  ;;  %v13800_v19 = vadd.f32 %v9524_v61, %v9444_v47  ;;  %3767 = vmatmul.mubr.f32.gmra.mxu0 %v8622_v40  ;;  %16286 = vst [vmem:[#allocation97_spill] sm:$0xff] %v13802_v45  ;;  %v16288_v47 = vld [vmem:[#allocation105_spill] sm:$0xff]  ;;  %v16289_v61 = vld [vmem:[#allocation108_spill] sm:$0xff] }
 0x38d   :  { %v9525_v4 = vpop.f32.mrf.mxu1  ;;  %3771 = vmatprep.mubr.f32.mxu0 %v8627_v15  ;;  %v9633_v35 = vpop.f32.mrf.mxu0  ;;  %v9447_v40 = vadd.f32 %v16289_v61, %v16288_v47  ;;  %v8537_v45 = vld [vmem:[%s11579_s21 + $0xc18] sm:$0xff]  ;;  %v16293_v61 = vld [vmem:[#allocation111_spill] sm:$0xff] }
 0x38e   :  { %16285 = vst [vmem:[#allocation129_spill] sm:$0xff] %v13800_v19  ;;  %v13812_v15 = vadd.f32 %v9633_v35, %v9632_v16 }
 0x38f   :  { %3210 = vmatmul.mubr.f32.gmra.mxu1 %v8528_v3  ;;  %v9526_v43 = vpop.f32.mrf.mxu1  ;;  %v9635_v54 = vpop.f32.mrf.mxu0  ;;  %v8635_v3 = vld [vmem:[%s11579_s21 + $0xf28] sm:$0xff] }
 0x390   :  { %3214 = vmatprep.mubr.f32.mxu1 %v8533_v41  ;;  %v9527_v17 = vadd.f32 %v9526_v43, %v9525_v4  ;;  %3772 = vmatmul.mubr.f32.gmra.mxu0 %v8626_v36  ;;  %16290 = vst [vmem:[#allocation57_spill] sm:$0xff] %v13812_v15  ;;  %v8536_v41 = vld [vmem:[%s11579_s21 + $0xc10] sm:$0xff]  ;;  %v16291_v4 = vld [vmem:[#allocation123_spill] sm:$0xff] }
 0x391   :  { %3776 = vmatprep.mubr.f32.mxu0 %v8631_v39  ;;  %v9636_v47 = vpop.f32.mrf.mxu0  ;;  %v8541_v39 = vld [vmem:[%s11579_s21 + $0xc38] sm:$0xff]  ;;  %v8634_v15 = vld [vmem:[%s11579_s21 + $0xf20] sm:$0xff] }
 0x392   :  { %v13816_v19 = vadd.f32 %v9527_v17, %v9447_v40  ;;  %v13822_v16 = vadd.f32 %v9636_v47, %v9635_v54  ;;  %v16294_v40 = vld [vmem:[#allocation113_spill] sm:$0xff] }
 0x393   :  { %3215 = vmatmul.mubr.f32.gmra.mxu1 %v8532_v37  ;;  %v9528_v48 = vpop.f32.mrf.mxu1  ;;  %v9750_v35 = vpop.f32.mrf.mxu0  ;;  %v9450_v37 = vadd.f32 %v16294_v40, %v16293_v61  ;;  %v16296_v40 = vld [vmem:[#allocation116_spill] sm:$0xff] }
 0x394   :  { %3510 = vmatprep.mubr.f32.mxu1 %v8537_v45  ;;  %3777 = vmatmul.mubr.f32.gmra.mxu0 %v8630_v59  ;;  %16292 = vst [vmem:[#allocation39_spill] sm:$0xff] %v13822_v16  ;;  %v8639_v45 = vld [vmem:[%s11579_s21 + $0xf48] sm:$0xff]  ;;  %v8540_v59 = vld [vmem:[%s11579_s21 + $0xc30] sm:$0xff]  ;;  %v8646_v16 = vld [vmem:[%s11579_s21 + $0xf80] sm:$0xff] }
 0x395   :  { %v9529_v43 = vpop.f32.mrf.mxu1  ;;  %3781 = vmatprep.mubr.f32.mxu0 %v8635_v3  ;;  %v9751_v53 = vpop.f32.mrf.mxu0  ;;  %v8545_v3 = vld [vmem:[%s11579_s21 + $0xc58] sm:$0xff] }
 0x396   :  { %v9530_v17 = vadd.f32 %v9529_v43, %v9528_v48  ;;  %v13833_v47 = vadd.f32 %v9751_v53, %v9750_v35  ;;  %v8643_v43 = vld [vmem:[%s11579_s21 + $0xf68] sm:$0xff] }
 0x397   :  { %3511 = vmatmul.mubr.f32.vlgmr.msra.gmra.mxu1 %v8536_v41  ;;  %v9753_v48 = vpop.f32.mrf.mxu0 }
 0x398   :  { %10119 = vmatpush3.msra.mxu1 %v12217_v55  ;;  %3515 = vmatprep.mubr.f32.mxu1 %v8541_v39  ;;  %v13831_v54 = vadd.f32 %v9530_v17, %v9450_v37  ;;  %16295 = vst [vmem:[#allocation106_spill] sm:$0xff] %v13833_v47  ;;  %v8638_v39 = vld [vmem:[%s11579_s21 + $0xf40] sm:$0xff] }
 0x399   :  { %10120 = vmatprep.subr.mxu1 %v12223_v10  ;;  %v9531_v61 = vpop.f32.mrf.mxu1  ;;  %3782 = vmatmul.mubr.f32.gmra.mxu0 %v8634_v15  ;;  %v9754_v35 = vpop.f32.mrf.mxu0  ;;  %v16297_v37 = vld [vmem:[#allocation118_spill] sm:$0xff]  ;;  %v8544_v15 = vld [vmem:[%s11579_s21 + $0xc50] sm:$0xff] }
 0x39a   :  { %10121 = vmatpush3.msra.mxu1 %v12230_v12  ;;  %3786 = vmatprep.mubr.f32.mxu0 %v8639_v45  ;;  %v9453_v17 = vadd.f32 %v16297_v37, %v16296_v40  ;;  %v13847_v47 = vadd.f32 %v9754_v35, %v9753_v48  ;;  %v8549_v45 = vld [vmem:[%s11579_s21 + $0xc78] sm:$0xff]  ;;  %v8642_v40 = vld [vmem:[%s11579_s21 + $0xf60] sm:$0xff] }
 0x39b   :  { %10122 = vmatprep.subr.mxu1 %v12238_v7  ;;  %3516 = vmatmul.mubr.f32.gmra.mxu1 %v8540_v59  ;;  %v9532_v53 = vpop.f32.mrf.mxu1  ;;  %v9756_v59 = vpop.f32.mrf.mxu0 }
 0x39c   :  { %10123 = vmatpush3.msra.mxu1 %v12252_v25  ;;  %3520 = vmatprep.mubr.f32.mxu1 %v8545_v3  ;;  %v9533_v36 = vadd.f32 %v9532_v53, %v9531_v61  ;;  %16298 = vst [vmem:[#allocation40_spill] sm:$0xff] %v13847_v47  ;;  %v8647_v61 = vld [vmem:[%s11579_s21 + $0xf88] sm:$0xff]  ;;  %v8548_v53 = vld [vmem:[%s11579_s21 + $0xc70] sm:$0xff] }
 0x39d   :  { %10124 = vmatprep.subr.mxu1 %v15993_v11  ;;  %3787 = vmatmul.mubr.f32.gmra.mxu0 %v8638_v39  ;;  %v9757_v48 = vpop.f32.mrf.mxu0 }
 0x39e   :  { %10125 = vmatpush3.msra.mxu1 %v12262_v21  ;;  %v13852_v41 = vadd.f32 %v9533_v36, %v9453_v17  ;;  %3791 = vmatprep.mubr.f32.mxu0 %v8643_v43  ;;  %v13861_v35 = vadd.f32 %v9757_v48, %v9756_v59  ;;  %v8553_v36 = vld [vmem:[%s11579_s21 + $0xc98] sm:$0xff]  ;;  %v16301_v17 = vld [vmem:[#allocation119_spill] sm:$0xff] }
 0x39f   :  { %10126 = vmatprep.subr.mxu1 %v12270_v2  ;;  %3521 = vmatmul.mubr.f32.gmra.mxu1 %v8544_v15  ;;  %v9534_v3 = vpop.f32.mrf.mxu1  ;;  %v9759_v37 = vpop.f32.mrf.mxu0  ;;  %v16302_v15 = vld [vmem:[#allocation37_spill] sm:$0xff]  ;;  %v8651_v48 = vld [vmem:[%s11579_s21 + $0xfa8] sm:$0xff] }
 0x3a0   :  { %16299 = vst [vmem:[#allocation109_spill] sm:$0xff] %v13852_v41  ;;  %10127 = vmatpush3.msra.mxu1 %v12284_v51  ;;  %3525 = vmatprep.mubr.f32.mxu1 %v8549_v45  ;;  %16300 = vst [vmem:[#allocation112_spill] sm:$0xff] %v13861_v35  ;;  %v9456_v47 = vadd.f32 %v16302_v15, %v16301_v17  ;;  %v8650_v15 = vld [vmem:[%s11579_s21 + $0xfa0] sm:$0xff] }
 0x3a1   :  { %10128 = vmatprep.subr.mxu1 %v12288_v28  ;;  %v9535_v43 = vpop.f32.mrf.mxu1  ;;  %3792 = vmatmul.mubr.f32.gmra.mxu0 %v8642_v40  ;;  %v9760_v39 = vpop.f32.mrf.mxu0  ;;  %v8552_v40 = vld [vmem:[%s11579_s21 + $0xc90] sm:$0xff] }
 0x3a2   :  { %10129 = vmatpush3.msra.mxu1 %v12294_v27  ;;  %v9536_v45 = vadd.f32 %v9535_v43, %v9534_v3  ;;  %3796 = vmatprep.mubr.f32.mxu0 %v8647_v61  ;;  %v13875_v17 = vadd.f32 %v9760_v39, %v9759_v37  ;;  %v8557_v3 = vld [vmem:[%s11579_s21 + $0xcb8] sm:$0xff]  ;;  %v8655_v39 = vld [vmem:[%s11579_s21 + $0xfc8] sm:$0xff]  ;;  %v8654_v43 = vld [vmem:[%s11579_s21 + $0xfc0] sm:$0xff] }
 0x3a3   :  { %10130 = vmatprep.subr.mxu1 %v12302_v62  ;;  %3526 = vmatmul.mubr.f32.gmra.mxu1 %v8548_v53  ;;  %v9537_v59 = vpop.f32.mrf.mxu1  ;;  %v9762_v53 = vpop.f32.mrf.mxu0 }
 0x3a4   :  { %10131 = vmatpush3.msra.mxu1 %v12312_v22  ;;  %3530 = vmatprep.mubr.f32.mxu1 %v8553_v36  ;;  %v13873_v35 = vadd.f32 %v9536_v45, %v9456_v47  ;;  %16304 = vst [vmem:[#allocation68_spill] sm:$0xff] %v13875_v17  ;;  %v16305_v45 = vld [vmem:[#allocation122_spill] sm:$0xff] }
 0x3a5   :  { %10132 = vmatprep.subr.mxu1 %v16003_v32  ;;  %v9538_v61 = vpop.f32.mrf.mxu1  ;;  %3797 = vmatmul.mubr.f32.gmra.mxu0 %v8646_v16  ;;  %v9763_v37 = vpop.f32.mrf.mxu0  ;;  %v8556_v16 = vld [vmem:[%s11579_s21 + $0xcb0] sm:$0xff] }
 0x3a6   :  { %16303 = vst [vmem:[#allocation130_spill] sm:$0xff] %v13873_v35  ;;  %10133 = vmatpush3.msra.mxu1 %v12324_v58  ;;  %v9539_v36 = vadd.f32 %v9538_v61, %v9537_v59  ;;  %3801 = vmatprep.mubr.f32.mxu0 %v8651_v48  ;;  %v13890_v41 = vadd.f32 %v9763_v37, %v9762_v53  ;;  %v8561_v59 = vld [vmem:[%s11579_s21 + $0xcd8] sm:$0xff] }
 0x3a7   :  { %10134 = vmatprep.subr.mxu1 %v12331_v14  ;;  %3531 = vmatmul.mubr.f32.gmra.mxu1 %v8552_v40  ;;  %v9540_v47 = vpop.f32.mrf.mxu1  ;;  %v9765_v40 = vpop.f32.mrf.mxu0 }
 0x3a8   :  { %10135 = vmatpush3.msra.mxu1 %v12342_v8  ;;  %3535 = vmatprep.mubr.f32.mxu1 %v8557_v3  ;;  %v13888_v17 = vadd.f32 %v9539_v36, %v16305_v45  ;;  %16307 = vst [vmem:[#allocation98_spill] sm:$0xff] %v13890_v41  ;;  %v8659_v36 = vld [vmem:[%s11579_s21 + $0xfe8] sm:$0xff]  ;;  %v8658_v3 = vld [vmem:[%s11579_s21 + $0xfe0] sm:$0xff] }
 0x3a9   :  { %10136 = vmatprep.subr.mxu1 %v16209_v57  ;;  %v9541_v48 = vpop.f32.mrf.mxu1  ;;  %3802 = vmatmul.mubr.f32.gmra.mxu0 %v8650_v15  ;;  %v9766_v37 = vpop.f32.mrf.mxu0  ;;  %v8560_v15 = vld [vmem:[%s11579_s21 + $0xcd0] sm:$0xff] }
 0x3aa   :  { %16306 = vst [vmem:[#allocation100_spill] sm:$0xff] %v13888_v17  ;;  %10137 = vmatpush3.msra.mxu1 %v16213_v1  ;;  %v9542_v61 = vadd.f32 %v9541_v48, %v9540_v47  ;;  %3806 = vmatprep.mubr.f32.mxu0 %v8655_v39  ;;  %v16308_v45 = vld [vmem:[#allocation72_spill] sm:$0xff]  ;;  %v13905_v35 = vadd.f32 %v9766_v37, %v9765_v40  ;;  %v8565_v47 = vld [vmem:[%s11579_s21 + $0xcf8] sm:$0xff] }
 0x3ab   :  { %10138 = vmatprep.subr.mxu1 %v16218_v42  ;;  %3536 = vmatmul.mubr.f32.gmra.mxu1 %v8556_v16  ;;  %v9543_v53 = vpop.f32.mrf.mxu1  ;;  %v9768_v16 = vpop.f32.mrf.mxu0 }
 0x3ac   :  { %10139 = vmatpush3.msra.mxu1 %v16221_v20  ;;  %3540 = vmatprep.mubr.f32.mxu1 %v8561_v59  ;;  %v13903_v41 = vadd.f32 %v9542_v61, %v16308_v45  ;;  %16309 = vst [vmem:[#allocation59_spill] sm:$0xff] %v13905_v35  ;;  %v8663_v61 = vld [vmem:[%s11579_s21 + $0x1008] sm:$0xff]  ;;  %v8662_v59 = vld [vmem:[%s11579_s21 + $0x1000] sm:$0xff] }
 0x3ad   :  { %10140 = vmatprep.subr.mxu1 %v16225_v23  ;;  %v9544_v39 = vpop.f32.mrf.mxu1  ;;  %3807 = vmatmul.mubr.f32.gmra.mxu0 %v8654_v43  ;;  %v9769_v37 = vpop.f32.mrf.mxu0  ;;  %v8564_v43 = vld [vmem:[%s11579_s21 + $0xcf0] sm:$0xff]  ;;  %v16310_v45 = vld [vmem:[#allocation71_spill] sm:$0xff] }
 0x3ae   :  { %10141 = vmatpush3.msra.mxu1 %v16230_v63  ;;  %v9545_v48 = vadd.f32 %v9544_v39, %v9543_v53  ;;  %3811 = vmatprep.mubr.f32.mxu0 %v8659_v36  ;;  %v13920_v17 = vadd.f32 %v9769_v37, %v9768_v16  ;;  %v8569_v53 = vld [vmem:[%s11579_s21 + $0xd18] sm:$0xff] }
 0x3af   :  { %10142 = vmatprep.subr.mxu1 %v16232_v18  ;;  %3541 = vmatmul.mubr.f32.gmra.mxu1 %v8560_v15  ;;  %v9546_v40 = vpop.f32.mrf.mxu1  ;;  %v9771_v15 = vpop.f32.mrf.mxu0 }
 0x3b0   :  { %10143 = vmatpush3.msra.mxu1 %v16237_v50  ;;  %3545 = vmatprep.mubr.f32.mxu1 %v8565_v47  ;;  %v13918_v35 = vadd.f32 %v9545_v48, %v16310_v45  ;;  %16311 = vst [vmem:[#allocation42_spill] sm:$0xff] %v13920_v17  ;;  %v8667_v48 = vld [vmem:[%s11579_s21 + $0x1028] sm:$0xff] }
 0x3b1   :  { %10144 = vmatprep.subr.mxu1 %v16243_v5  ;;  %v9547_v36 = vpop.f32.mrf.mxu1  ;;  %3812 = vmatmul.mubr.f32.gmra.mxu0 %v8658_v3  ;;  %v8568_v3 = vld [vmem:[%s11579_s21 + $0xd10] sm:$0xff]  ;;  %v9772_v45 = vpop.f32.mrf.mxu0 }
 0x3b2   :  { %10145 = vmatpush3.msra.mxu1 %v16245_v38  ;;  %v9548_v39 = vadd.f32 %v9547_v36, %v9546_v40  ;;  %4107 = vmatprep.mubr.f32.mxu0 %v8663_v61  ;;  %v8573_v40 = vld [vmem:[%s11579_s21 + $0xd38] sm:$0xff] }
 0x3b3   :  { %10146 = vmatprep.subr.mxu1 %v16248_v26  ;;  %3546 = vmatmul.mubr.f32.gmra.mxu1 %v8564_v43  ;;  %v9549_v16 = vpop.f32.mrf.mxu1  ;;  %v13937_v43 = vadd.f32 %v9772_v45, %v9771_v15  ;;  %v8572_v15 = vld [vmem:[%s11579_s21 + $0xd30] sm:$0xff] }
 0x3b4   :  { %10147 = vmatpush3.msra.mxu1 %v16256_v29  ;;  %3550 = vmatprep.mubr.f32.mxu1 %v8569_v53  ;;  %v13933_v37 = vadd.f32 %v9548_v39, %v13562_v49  ;;  %v8666_v49 = vld [vmem:[%s11579_s21 + $0x1020] sm:$0xff]  ;;  %v13943_v39 = vpop.f32.mrf.mxu0 }
 0x3b5   :  { %10148 = vmatprep.subr.mxu1 %v16258_v46  ;;  %v9550_v61 = vpop.f32.mrf.mxu1  ;;  %4108 = vmatmul.mubr.f32.vlgmr.msra.gmra.mxu0 %v8662_v59  ;;  %16312 = vst [vmem:[#allocation70_spill] sm:$0xff] %v13937_v43  ;;  %16313 = vst [vmem:[#allocation131_spill] sm:$0xff] %v13943_v39  ;;  %v8671_v59 = vld [vmem:[%s11579_s21 + $0x1048] sm:$0xff] }
 0x3b6   :  { %10149 = vmatpush3.msra.mxu1 %v16262_v34  ;;  %v9551_v36 = vadd.f32 %v9550_v61, %v9549_v16  ;;  %4112 = vmatprep.mubr.f32.mxu0 %v8667_v48  ;;  %v13951_v43 = vpop.f32.mrf.mxu0  ;;  %v8577_v16 = vld [vmem:[%s11579_s21 + $0xd58] sm:$0xff] }
 0x3b7   :  { %10278 = vmatprep.subr.mxu1 %v16264_v56  ;;  %3551 = vmatmul.mubr.f32.gmra.mxu1 %v8568_v3  ;;  %v9552_v47 = vpop.f32.mrf.mxu1  ;;  %16314 = vst [vmem:[#allocation60_spill] sm:$0xff] %v13951_v43  ;;  %v8670_v3 = vld [vmem:[%s11579_s21 + $0x1040] sm:$0xff]  ;;  %v8581_v61 = vld [vmem:[%s11579_s21 + $0xd78] sm:$0xff] }
 0x3b8   :  { %3555 = vmatprep.mubr.f32.mxu1 %v8573_v40  ;;  %v13949_v45 = vadd.f32 %v9551_v36, %v13573_v24  ;;  %v13957_v53 = vpop.f32.mrf.mxu0  ;;  %v8675_v24 = vld [vmem:[%s11579_s21 + $0x1068] sm:$0xff]  ;;  %v8576_v36 = vld [vmem:[%s11579_s21 + $0xd50] sm:$0xff] }
 0x3b9   :  { %v9553_v48 = vpop.f32.mrf.mxu1  ;;  %4113 = vmatmul.mubr.f32.gmra.mxu0 %v8666_v49  ;;  %16315 = vst [vmem:[#allocation43_spill] sm:$0xff] %v13957_v53 }
 0x3ba   :  { %v9554_v56 = vadd.f32 %v9553_v48, %v9552_v47  ;;  %4117 = vmatprep.mubr.f32.mxu0 %v8671_v59  ;;  %v13964_v49 = vpop.f32.mrf.mxu0  ;;  %v8585_v59 = vld [vmem:[%s11579_s21 + $0xd98] sm:$0xff] }
 0x3bb   :  { %3556 = vmatmul.mubr.f32.gmra.mxu1 %v8572_v15  ;;  %v9555_v40 = vpop.f32.mrf.mxu1  ;;  %16317 = vst [vmem:[#allocation101_spill] sm:$0xff] %v13964_v49  ;;  %v8674_v15 = vld [vmem:[%s11579_s21 + $0x1060] sm:$0xff] }
 0x3bc   :  { %3560 = vmatprep.mubr.f32.mxu1 %v8577_v16  ;;  %v13962_v43 = vadd.f32 %v9554_v56, %v13579_v9  ;;  %v13970_v53 = vpop.f32.mrf.mxu0  ;;  %v8679_v9 = vld [vmem:[%s11579_s21 + $0x1088] sm:$0xff]  ;;  %v8580_v56 = vld [vmem:[%s11579_s21 + $0xd70] sm:$0xff] }
 0x3bd   :  { %v9556_v47 = vpop.f32.mrf.mxu1  ;;  %4118 = vmatmul.mubr.f32.gmra.mxu0 %v8670_v3  ;;  %16318 = vst [vmem:[#allocation61_spill] sm:$0xff] %v13970_v53  ;;  %v16319_v49 = vld [vmem:[#allocation35_spill] sm:$0xff] }
 0x3be   :  { %16316 = vst [vmem:[#allocation103_spill] sm:$0xff] %v13962_v43  ;;  %v9557_v48 = vadd.f32 %v9556_v47, %v9555_v40  ;;  %4122 = vmatprep.mubr.f32.mxu0 %v8675_v24  ;;  %v13977_v3 = vpop.f32.mrf.mxu0  ;;  %v16322_v24 = vld [vmem:[#allocation81_spill] sm:$0xff]  ;;  %v8678_v53 = vld [vmem:[%s11579_s21 + $0x1080] sm:$0xff] }
 0x3bf   :  { %3561 = vmatmul.mubr.f32.gmra.mxu1 %v8576_v36  ;;  %v9670_v16 = vpop.f32.mrf.mxu1  ;;  %16321 = vst [vmem:[#allocation38_spill] sm:$0xff] %v13977_v3  ;;  %v16326_v47 = vld [vmem:[#allocation114_spill] sm:$0xff] }
 0x3c0   :  { %3565 = vmatprep.mubr.f32.mxu1 %v8581_v61  ;;  %v13975_v39 = vadd.f32 %v9557_v48, %v16319_v49  ;;  %v13983_v17 = vpop.f32.mrf.mxu0  ;;  %v8683_v61 = vld [vmem:[%s11579_s21 + $0x10a8] sm:$0xff]  ;;  %v8584_v49 = vld [vmem:[%s11579_s21 + $0xd90] sm:$0xff] }
 0x3c1   :  { %v9671_v40 = vpop.f32.mrf.mxu1  ;;  %4123 = vmatmul.mubr.f32.gmra.mxu0 %v8674_v15  ;;  %16323 = vst [vmem:[#allocation45_spill] sm:$0xff] %v13983_v17  ;;  %v16324_v48 = vld [vmem:[#allocation73_spill] sm:$0xff] }
 0x3c2   :  { %16320 = vst [vmem:[#allocation44_spill] sm:$0xff] %v13975_v39  ;;  %v9672_v36 = vadd.f32 %v9671_v40, %v9670_v16  ;;  %4127 = vmatprep.mubr.f32.mxu0 %v8679_v9  ;;  %v13988_v43 = vpop.f32.mrf.mxu0  ;;  %v8589_v15 = vld [vmem:[%s11579_s21 + $0xdb8] sm:$0xff] }
 0x3c3   :  { %3566 = vmatmul.mubr.f32.gmra.mxu1 %v8580_v56  ;;  %16325 = vst [vmem:[#allocation76_spill] sm:$0xff] %v13988_v43  ;;  %v16327_v16 = vld [vmem:[#allocation82_spill] sm:$0xff] }
 0x3c4   :  { %3570 = vmatprep.mubr.f32.mxu1 %v8585_v59  ;;  %v2771_v3 = vadd.f32 %v9672_v36, %v16324_v48  ;;  %v16328_v9 = vmax.f32 %v16326_v47, %v16327_v16  ;;  %v8682_v56 = vld [vmem:[%s11579_s21 + $0x10a0] sm:$0xff]  ;;  %v13997_v17 = vpop.f32.mrf.mxu0  ;;  %v8687_v36 = vld [vmem:[%s11579_s21 + $0x10c8] sm:$0xff]  ;;  %v8588_v48 = vld [vmem:[%s11579_s21 + $0xdb0] sm:$0xff] }
 0x3c5   :  { %v9673_v6 = vpop.f32.mrf.mxu1  ;;  %4128 = vmatmul.mubr.f32.gmra.mxu0 %v8678_v53  ;;  %16330 = vst [vmem:[#allocation62_spill] sm:$0xff] %v13997_v17  ;;  %v8593_v39 = vld [vmem:[%s11579_s21 + $0xdd8] sm:$0xff] }
 0x3c6   :  { %v13994_v40 = vmax.f32 %v16328_v9, %v2771_v3  ;;  %4132 = vmatprep.mubr.f32.mxu0 %v8683_v61  ;;  %v14001_v53 = vpop.f32.mrf.mxu0  ;;  %v16332_v47 = vld [vmem:[#allocation74_spill] sm:$0xff]  ;;  %v8691_v9 = vld [vmem:[%s11579_s21 + $0x10e8] sm:$0xff]  ;;  %v16334_v17 = vld [vmem:[#allocation117_spill] sm:$0xff] }
 0x3c7   :  { %3571 = vmatmul.mubr.f32.gmra.mxu1 %v8584_v49  ;;  %v9674_v59 = vpop.f32.mrf.mxu1  ;;  %16331 = vst [vmem:[#allocation46_spill] sm:$0xff] %v14001_v53  ;;  %v8686_v61 = vld [vmem:[%s11579_s21 + $0x10c0] sm:$0xff] }
 0x3c8   :  { %16329 = vst [vmem:[#allocation78_spill] sm:$0xff] %v13994_v40  ;;  %3575 = vmatprep.mubr.f32.mxu1 %v8589_v15  ;;  %v9675_v43 = vadd.f32 %v9674_v59, %v9673_v6  ;;  %v14006_v16 = vpop.f32.mrf.mxu0  ;;  %v8592_v15 = vld [vmem:[%s11579_s21 + $0xdd0] sm:$0xff] }
 0x3c9   :  { %4133 = vmatmul.mubr.f32.gmra.mxu0 %v8682_v56  ;;  %16333 = vst [vmem:[#allocation58_spill] sm:$0xff] %v14006_v16  ;;  %v16335_v6 = vld [vmem:[#allocation85_spill] sm:$0xff] }
 0x3ca   :  { %v2776_v3 = vadd.f32 %v9675_v43, %v16332_v47  ;;  %4137 = vmatprep.mubr.f32.mxu0 %v8687_v36  ;;  %v16336_v59 = vmax.f32 %v16334_v17, %v16335_v6  ;;  %v14015_v56 = vpop.f32.mrf.mxu0  ;;  %v8597_v43 = vld [vmem:[%s11579_s21 + $0xdf8] sm:$0xff]  ;;  %v8596_v17 = vld [vmem:[%s11579_s21 + $0xdf0] sm:$0xff]  ;;  %v16340_v6 = vld [vmem:[#allocation75_spill] sm:$0xff] }
 0x3cb   :  { %3576 = vmatmul.mubr.f32.gmra.mxu1 %v8588_v48  ;;  %v9676_v49 = vpop.f32.mrf.mxu1  ;;  %16338 = vst [vmem:[#allocation32_spill] sm:$0xff] %v14015_v56  ;;  %v8690_v48 = vld [vmem:[%s11579_s21 + $0x10e0] sm:$0xff]  ;;  %v8601_v56 = vld [vmem:[%s11579_s21 + $0xe18] sm:$0xff] }
 0x3cc   :  { %3580 = vmatprep.mubr.f32.mxu1 %v8593_v39  ;;  %v14013_v53 = vmax.f32 %v16336_v59, %v2776_v3  ;;  %v14019_v16 = vpop.f32.mrf.mxu0  ;;  %v8695_v39 = vld [vmem:[%s11579_s21 + $0x1108] sm:$0xff] }
 0x3cd   :  { %v9677_v36 = vpop.f32.mrf.mxu1  ;;  %4138 = vmatmul.mubr.f32.gmra.mxu0 %v8686_v61  ;;  %16339 = vst [vmem:[#allocation47_spill] sm:$0xff] %v14019_v16  ;;  %v16342_v61 = vld [vmem:[#allocation120_spill] sm:$0xff] }
 0x3ce   :  { %16337 = vst [vmem:[#allocation104_spill] sm:$0xff] %v14013_v53  ;;  %v9678_v47 = vadd.f32 %v9677_v36, %v9676_v49  ;;  %4142 = vmatprep.mubr.f32.mxu0 %v8691_v9  ;;  %v14024_v59 = vpop.f32.mrf.mxu0  ;;  %v16343_v49 = vld [vmem:[#allocation87_spill] sm:$0xff] }
 0x3cf   :  { %3581 = vmatmul.mubr.f32.gmra.mxu1 %v8592_v15  ;;  %16341 = vst [vmem:[#allocation34_spill] sm:$0xff] %v14024_v59  ;;  %v16344_v9 = vmax.f32 %v16342_v61, %v16343_v49  ;;  %v8694_v15 = vld [vmem:[%s11579_s21 + $0x1100] sm:$0xff]  ;;  %v16347_v61 = vld [vmem:[#allocation124_spill] sm:$0xff] }
 0x3d0   :  { %3585 = vmatprep.mubr.f32.mxu1 %v8597_v43  ;;  %v2781_v3 = vadd.f32 %v9678_v47, %v16340_v6  ;;  %v14033_v16 = vpop.f32.mrf.mxu0  ;;  %v8699_v47 = vld [vmem:[%s11579_s21 + $0x1128] sm:$0xff]  ;;  %v8600_v6 = vld [vmem:[%s11579_s21 + $0xe10] sm:$0xff] }
 0x3d1   :  { %v9679_v53 = vpop.f32.mrf.mxu1  ;;  %4143 = vmatmul.mubr.f32.gmra.mxu0 %v8690_v48  ;;  %16345 = vst [vmem:[#allocation48_spill] sm:$0xff] %v14033_v16  ;;  %v8605_v48 = vld [vmem:[%s11579_s21 + $0xe38] sm:$0xff] }
 0x3d2   :  { %v14030_v36 = vmax.f32 %v16344_v9, %v2781_v3  ;;  %4147 = vmatprep.mubr.f32.mxu0 %v8695_v39  ;;  %v14037_v40 = vpop.f32.mrf.mxu0  ;;  %v8698_v39 = vld [vmem:[%s11579_s21 + $0x1120] sm:$0xff]  ;;  %v8703_v9 = vld [vmem:[%s11579_s21 + $0x1148] sm:$0xff] }
 0x3d3   :  { %3586 = vmatmul.mubr.f32.gmra.mxu1 %v8596_v17  ;;  %v9680_v43 = vpop.f32.mrf.mxu1  ;;  %16346 = vst [vmem:[#allocation132_spill] sm:$0xff] %v14037_v40 }
 0x3d4   :  { %3881 = vmatprep.mubr.f32.mxu1 %v8601_v56  ;;  %v9681_v59 = vadd.f32 %v9680_v43, %v9679_v53  ;;  %v14042_v49 = vpop.f32.mrf.mxu0  ;;  %v8604_v53 = vld [vmem:[%s11579_s21 + $0xe30] sm:$0xff]  ;;  %v16349_v43 = vld [vmem:[#allocation91_spill] sm:$0xff] }
 0x3d5   :  { %4148 = vmatmul.mubr.f32.gmra.mxu0 %v8694_v15  ;;  %v16348_v56 = vld [vmem:[#allocation121_spill] sm:$0xff] }
 0x3d6   :  { %v2786_v3 = vadd.f32 %v9681_v59, %v16347_v61  ;;  %4152 = vmatprep.mubr.f32.mxu0 %v8699_v47  ;;  %v16350_v40 = vmax.f32 %v16348_v56, %v16349_v43  ;;  %v14052_v59 = vpop.f32.mrf.mxu0  ;;  %v8609_v15 = vld [vmem:[%s11579_s21 + $0xe58] sm:$0xff]  ;;  %v8706_v56 = vld [vmem:[%s11579_s21 + $0x1160] sm:$0xff] }
 0x3d7   :  { %3882 = vmatmul.mubr.f32.vlgmr.msra.gmra.mxu1 %v8600_v6  ;;  %v9682_v17 = vpop.f32.mrf.mxu1  ;;  %v8702_v6 = vld [vmem:[%s11579_s21 + $0x1140] sm:$0xff]  ;;  %v16351_v61 = vld [vmem:[#allocation77_spill] sm:$0xff] }
 0x3d8   :  { %10279 = vmatpush3.msra.mxu1 %v12217_v55  ;;  %3886 = vmatprep.mubr.f32.mxu1 %v8605_v48  ;;  %v14050_v16 = vmax.f32 %v16350_v40, %v2786_v3  ;;  %v14058_v48 = vpop.f32.mrf.mxu0  ;;  %v8707_v40 = vld [vmem:[%s11579_s21 + $0x1168] sm:$0xff] }
 0x3d9   :  { %10280 = vmatprep.subr.mxu1 %v12223_v10  ;;  %v9683_v47 = vpop.f32.mrf.mxu1  ;;  %4153 = vmatmul.mubr.f32.gmra.mxu0 %v8698_v39  ;;  %v8608_v10 = vld [vmem:[%s11579_s21 + $0xe50] sm:$0xff] }
 0x3da   :  { %10281 = vmatpush3.msra.mxu1 %v12230_v12  ;;  %v9684_v55 = vadd.f32 %v9683_v47, %v9682_v17  ;;  %4157 = vmatprep.mubr.f32.mxu0 %v8703_v9  ;;  %v14065_v39 = vpop.f32.mrf.mxu0  ;;  %v8613_v12 = vld [vmem:[%s11579_s21 + $0xe78] sm:$0xff] }
 0x3db   :  { %10282 = vmatprep.subr.mxu1 %v12238_v7  ;;  %3887 = vmatmul.mubr.f32.gmra.mxu1 %v8604_v53  ;;  %v16352_v7 = vld [vmem:[#allocation69_spill] sm:$0xff] }
 0x3dc   :  { %10283 = vmatpush3.msra.mxu1 %v12252_v25  ;;  %3891 = vmatprep.mubr.f32.mxu1 %v8609_v15  ;;  %v2791_v3 = vadd.f32 %v9684_v55, %v16351_v61  ;;  %v16353_v9 = vld [vmem:[#allocation129_spill] sm:$0xff]  ;;  %v14076_v43 = vpop.f32.mrf.mxu0  ;;  %v8711_v15 = vld [vmem:[%s11579_s21 + $0x1188] sm:$0xff] }
 0x3dd   :  { %10284 = vmatprep.subr.mxu1 %v15993_v11  ;;  %v9685_v17 = vpop.f32.mrf.mxu1  ;;  %4158 = vmatmul.mubr.f32.gmra.mxu0 %v8702_v6  ;;  %v16354_v53 = vmax.f32 %v16352_v7, %v16353_v9  ;;  %v8617_v6 = vld [vmem:[%s11579_s21 + $0xe98] sm:$0xff]  ;;  %v8714_v9 = vld [vmem:[%s11579_s21 + $0x11a0] sm:$0xff] }
 0x3de   :  { %10285 = vmatpush3.msra.mxu1 %v12262_v21  ;;  %4162 = vmatprep.mubr.f32.mxu0 %v8707_v40  ;;  %v8612_v21 = vld [vmem:[%s11579_s21 + $0xe70] sm:$0xff]  ;;  %v14082_v55 = vpop.f32.mrf.mxu0 }
 0x3df   :  { %v14073_v25 = vmax.f32 %v16354_v53, %v2791_v3  ;;  %10286 = vmatprep.subr.mxu1 %v12270_v2  ;;  %3892 = vmatmul.mubr.f32.gmra.mxu1 %v8608_v10  ;;  %v9686_v11 = vpop.f32.mrf.mxu1  ;;  %v16355_v2 = vld [vmem:[#allocation80_spill] sm:$0xff]  ;;  %v8710_v10 = vld [vmem:[%s11579_s21 + $0x1180] sm:$0xff] }
 0x3e0   :  { %10287 = vmatpush3.msra.mxu1 %v12284_v51  ;;  %3896 = vmatprep.mubr.f32.mxu1 %v8613_v12  ;;  %v9687_v47 = vadd.f32 %v9686_v11, %v9685_v17  ;;  %v14089_v61 = vpop.f32.mrf.mxu0  ;;  %v8715_v3 = vld [vmem:[%s11579_s21 + $0x11a8] sm:$0xff] }
 0x3e1   :  { %10288 = vmatprep.subr.mxu1 %v12288_v28  ;;  %4163 = vmatmul.mubr.f32.gmra.mxu0 %v8706_v56  ;;  %v8616_v28 = vld [vmem:[%s11579_s21 + $0xe90] sm:$0xff] }
 0x3e2   :  { %10289 = vmatpush3.msra.mxu1 %v12294_v27  ;;  %v2796_v40 = vadd.f32 %v9687_v47, %v16355_v2  ;;  %4167 = vmatprep.mubr.f32.mxu0 %v8711_v15  ;;  %v16356_v27 = vmax.f32 %v16291_v4, %v13816_v19  ;;  %v14100_v17 = vpop.f32.mrf.mxu0  ;;  %v8719_v19 = vld [vmem:[%s11579_s21 + $0x11c8] sm:$0xff]  ;;  %v16357_v4 = vld [vmem:[#allocation125_spill] sm:$0xff] }
 0x3e3   :  { %10290 = vmatprep.subr.mxu1 %v12302_v62  ;;  %3897 = vmatmul.mubr.f32.gmra.mxu1 %v8612_v21  ;;  %v9688_v51 = vpop.f32.mrf.mxu1  ;;  %v8621_v62 = vld [vmem:[%s11579_s21 + $0xeb8] sm:$0xff]  ;;  %v8718_v21 = vld [vmem:[%s11579_s21 + $0x11c0] sm:$0xff]  ;;  %v8624_v2 = vld [vmem:[%s11579_s21 + $0xed0] sm:$0xff] }
 0x3e4   :  { %10291 = vmatpush3.msra.mxu1 %v12312_v22  ;;  %3901 = vmatprep.mubr.f32.mxu1 %v8617_v6  ;;  %v14098_v12 = vmax.f32 %v16356_v27, %v2796_v40  ;;  %v14106_v53 = vpop.f32.mrf.mxu0  ;;  %v8723_v6 = vld [vmem:[%s11579_s21 + $0x11e8] sm:$0xff] }
 0x3e5   :  { %10292 = vmatprep.subr.mxu1 %v16003_v32  ;;  %v9689_v7 = vpop.f32.mrf.mxu1  ;;  %4168 = vmatmul.mubr.f32.gmra.mxu0 %v8710_v10  ;;  %v8620_v32 = vld [vmem:[%s11579_s21 + $0xeb0] sm:$0xff]  ;;  %v8722_v10 = vld [vmem:[%s11579_s21 + $0x11e0] sm:$0xff] }
 0x3e6   :  { %10293 = vmatpush3.msra.mxu1 %v12324_v58  ;;  %v9690_v22 = vadd.f32 %v9689_v7, %v9688_v51  ;;  %4172 = vmatprep.mubr.f32.mxu0 %v8715_v3  ;;  %v14113_v11 = vpop.f32.mrf.mxu0  ;;  %v8625_v58 = vld [vmem:[%s11579_s21 + $0xed8] sm:$0xff] }
 0x3e7   :  { %10294 = vmatprep.subr.mxu1 %v12331_v14  ;;  %3902 = vmatmul.mubr.f32.gmra.mxu1 %v8616_v28  ;;  %v16358_v14 = vmax.f32 %v13571_v60, %v13831_v54  ;;  %v8629_v60 = vld [vmem:[%s11579_s21 + $0xef8] sm:$0xff]  ;;  %v16359_v54 = vld [vmem:[#allocation83_spill] sm:$0xff] }
 0x3e8   :  { %10295 = vmatpush3.msra.mxu1 %v12342_v8  ;;  %3906 = vmatprep.mubr.f32.mxu1 %v8621_v62  ;;  %v2801_v56 = vadd.f32 %v9690_v22, %v16357_v4  ;;  %v14124_v47 = vpop.f32.mrf.mxu0  ;;  %v16360_v3 = vld [vmem:[#allocation109_spill] sm:$0xff] }
 0x3e9   :  { %10296 = vmatprep.subr.mxu1 %v16209_v57  ;;  %v9691_v15 = vpop.f32.mrf.mxu1  ;;  %4173 = vmatmul.mubr.f32.gmra.mxu0 %v8714_v9  ;;  %v16361_v28 = vmax.f32 %v13587_v33, %v16360_v3  ;;  %v8633_v62 = vld [vmem:[%s11579_s21 + $0xf18] sm:$0xff]  ;;  %v8632_v33 = vld [vmem:[%s11579_s21 + $0xf10] sm:$0xff] }
 0x3ea   :  { %10297 = vmatpush3.msra.mxu1 %v16213_v1  ;;  %v14121_v8 = vmax.f32 %v16358_v14, %v2801_v56  ;;  %4177 = vmatprep.mubr.f32.mxu0 %v8719_v19  ;;  %v14130_v40 = vpop.f32.mrf.mxu0  ;;  %v16362_v9 = vld [vmem:[#allocation126_spill] sm:$0xff]  ;;  %v8636_v14 = vld [vmem:[%s11579_s21 + $0xf30] sm:$0xff] }
 0x3eb   :  { %10298 = vmatprep.subr.mxu1 %v16218_v42  ;;  %3907 = vmatmul.mubr.f32.gmra.mxu1 %v8620_v32  ;;  %v9692_v57 = vpop.f32.mrf.mxu1 }
 0x3ec   :  { %10299 = vmatpush3.msra.mxu1 %v16221_v20  ;;  %3911 = vmatprep.mubr.f32.mxu1 %v8625_v58  ;;  %v9693_v1 = vadd.f32 %v9692_v57, %v9691_v15  ;;  %v14137_v51 = vpop.f32.mrf.mxu0 }
 0x3ed   :  { %10300 = vmatprep.subr.mxu1 %v16225_v23  ;;  %4178 = vmatmul.mubr.f32.gmra.mxu0 %v8718_v21  ;;  %v8628_v23 = vld [vmem:[%s11579_s21 + $0xef0] sm:$0xff] }
 0x3ee   :  { %10301 = vmatpush3.msra.mxu1 %v16230_v63  ;;  %v2806_v42 = vadd.f32 %v9693_v1, %v16359_v54  ;;  %4182 = vmatprep.mubr.f32.mxu0 %v8723_v6  ;;  %v14147_v63 = vpop.f32.mrf.mxu0  ;;  %v16365_v21 = vld [vmem:[#allocation88_spill] sm:$0xff]  ;;  %v8641_v6 = vld [vmem:[%s11579_s21 + $0xf58] sm:$0xff] }
 0x3ef   :  { %10302 = vmatprep.subr.mxu1 %v16232_v18  ;;  %3912 = vmatmul.mubr.f32.gmra.mxu1 %v8624_v2  ;;  %v9694_v20 = vpop.f32.mrf.mxu1  ;;  %v16366_v2 = vld [vmem:[#allocation100_spill] sm:$0xff] }
 0x3f0   :  { %10303 = vmatpush3.msra.mxu1 %v16237_v50  ;;  %3916 = vmatprep.mubr.f32.mxu1 %v8629_v60  ;;  %v14145_v27 = vmax.f32 %v16361_v28, %v2806_v42  ;;  %v14152_v50 = vpop.f32.mrf.mxu0  ;;  %v8645_v28 = vld [vmem:[%s11579_s21 + $0xf78] sm:$0xff] }
 0x3f1   :  { %10304 = vmatprep.subr.mxu1 %v16243_v5  ;;  %v9695_v7 = vpop.f32.mrf.mxu1  ;;  %4183 = vmatmul.mubr.f32.gmra.mxu0 %v8722_v10  ;;  %v8640_v10 = vld [vmem:[%s11579_s21 + $0xf50] sm:$0xff] }
 0x3f2   :  { %10305 = vmatpush3.msra.mxu1 %v16245_v38  ;;  %v9696_v18 = vadd.f32 %v9695_v7, %v9694_v20  ;;  %v14158_v19 = vpop.f32.mrf.mxu0  ;;  %v8637_v38 = vld [vmem:[%s11579_s21 + $0xf38] sm:$0xff]  ;;  %v16368_v20 = vld [vmem:[#allocation127_spill] sm:$0xff] }
 0x3f3   :  { %10306 = vmatprep.subr.mxu1 %v16248_v26  ;;  %3917 = vmatmul.mubr.f32.gmra.mxu1 %v8628_v23  ;;  %v9697_v22 = vpop.f32.mrf.mxu1  ;;  %v16363_v26 = vld [vmem:[#allocation130_spill] sm:$0xff] }
 0x3f4   :  { %10307 = vmatpush3.msra.mxu1 %v16256_v29  ;;  %3921 = vmatprep.mubr.f32.mxu1 %v8633_v62  ;;  %v2811_v5 = vadd.f32 %v9696_v18, %v16362_v9  ;;  %v16364_v4 = vmax.f32 %v13611_v13, %v16363_v26  ;;  %v14168_v29 = vpop.f32.mrf.mxu0  ;;  %v16367_v13 = vmax.f32 %v13627_v44, %v16366_v2  ;;  %v16370_v9 = vld [vmem:[#allocation89_spill] sm:$0xff] }
 0x3f5   :  { %10308 = vmatprep.subr.mxu1 %v16258_v46  ;;  %v9698_v32 = vpop.f32.mrf.mxu1  ;;  %v16369_v44 = vmax.f32 %v13643_v0, %v13903_v41  ;;  %v16375_v2 = vmax.f32 %v13679_v30, %v13933_v37 }
 0x3f6   :  { %10309 = vmatpush3.msra.mxu1 %v16262_v34  ;;  %v14166_v56 = vmax.f32 %v16364_v4, %v2811_v5  ;;  %v9699_v58 = vadd.f32 %v9698_v32, %v9697_v22  ;;  %v14172_v57 = vpop.f32.mrf.mxu0  ;;  %v8649_v32 = vld [vmem:[%s11579_s21 + $0xf98] sm:$0xff]  ;;  %v16371_v4 = vmax.f32 %v13661_v31, %v13918_v35 }
 0x3f7   :  { %3922 = vmatmul.mubr.f32.gmra.mxu1 %v8632_v33  ;;  %v9700_v15 = vpop.f32.mrf.mxu1  ;;  %v8644_v33 = vld [vmem:[%s11579_s21 + $0xf70] sm:$0xff] }
 0x3f8   :  { %3926 = vmatprep.mubr.f32.mxu1 %v8637_v38  ;;  %v2816_v46 = vadd.f32 %v9699_v58, %v16365_v21  ;;  %v14180_v54 = vpop.f32.mrf.mxu0 }
 0x3f9   :  { %v9701_v34 = vpop.f32.mrf.mxu1 }
 0x3fa   :  { %v14178_v1 = vmax.f32 %v16367_v13, %v2816_v46  ;;  %v9702_v60 = vadd.f32 %v9701_v34, %v9700_v15  ;;  %v14184_v3 = vpop.f32.mrf.mxu0  ;;  %v8648_v15 = vld [vmem:[%s11579_s21 + $0xf90] sm:$0xff] }
 0x3fb   :  { %3927 = vmatmul.mubr.f32.gmra.mxu1 %v8636_v14  ;;  %v9703_v42 = vpop.f32.mrf.mxu1  ;;  %v16373_v14 = vld [vmem:[#allocation128_spill] sm:$0xff] }
 0x3fc   :  { %3931 = vmatprep.mubr.f32.mxu1 %v8641_v6  ;;  %v2821_v23 = vadd.f32 %v9702_v60, %v16368_v20  ;;  %v14194_v38 = vpop.f32.mrf.mxu0  ;;  %v8653_v6 = vld [vmem:[%s11579_s21 + $0xfb8] sm:$0xff]  ;;  %v8652_v60 = vld [vmem:[%s11579_s21 + $0xfb0] sm:$0xff] }
 0x3fd   :  { %v9704_v62 = vpop.f32.mrf.mxu1 }
 0x3fe   :  { %v14190_v7 = vmax.f32 %v16369_v44, %v2821_v23  ;;  %v9705_v18 = vadd.f32 %v9704_v62, %v9703_v42  ;;  %v14204_v46 = vpop.f32.mrf.mxu0  ;;  %v16377_v42 = vld [vmem:[#allocation97_spill] sm:$0xff]  ;;  %v16379_v62 = vmax.f32 %v13696_v52, %v13949_v45 }
 0x3ff   :  { %3932 = vmatmul.mubr.f32.gmra.mxu1 %v8640_v10  ;;  %v9706_v22 = vpop.f32.mrf.mxu1  ;;  %16374 = vst [vmem:[#allocation33_spill] sm:$0xff] %v14204_v46  ;;  %v8657_v23 = vld [vmem:[%s11579_s21 + $0xfd8] sm:$0xff] }
 0x400   :  { %3936 = vmatprep.mubr.f32.mxu1 %v8645_v28  ;;  %v2826_v5 = vadd.f32 %v9705_v18, %v16370_v9  ;;  %v14214_v20 = vpop.f32.mrf.mxu0  ;;  %v8656_v18 = vld [vmem:[%s11579_s21 + $0xfd0] sm:$0xff] }
 0x401   :  { %v9707_v26 = vpop.f32.mrf.mxu1  ;;  %16378 = vst [vmem:[#allocation41_spill] sm:$0xff] %v14214_v20  ;;  %v16417_v20 = vld [vmem:[#allocation61_spill] sm:$0xff] }
 0x402   :  { %v14200_v0 = vmax.f32 %v16371_v4, %v2826_v5  ;;  %v9708_v41 = vadd.f32 %v9707_v26, %v9706_v22  ;;  %v16380_v22 = vld [vmem:[#allocation57_spill] sm:$0xff]  ;;  %v14224_v9 = vpop.f32.mrf.mxu0  ;;  %v16382_v26 = vld [vmem:[#allocation79_spill] sm:$0xff] }
 0x403   :  { %3937 = vmatmul.mubr.f32.gmra.mxu1 %v8644_v33  ;;  %v9709_v58 = vpop.f32.mrf.mxu1  ;;  %16381 = vst [vmem:[#allocation107_spill] sm:$0xff] %v14224_v9  ;;  %v8661_v5 = vld [vmem:[%s11579_s21 + $0xff8] sm:$0xff]  ;;  %v16383_v4 = vld [vmem:[#allocation103_spill] sm:$0xff] }
 0x404   :  { %16372 = vst [vmem:[#allocation84_spill] sm:$0xff] %v14200_v0  ;;  %3941 = vmatprep.mubr.f32.mxu1 %v8649_v32  ;;  %v2831_v21 = vadd.f32 %v9708_v41, %v16373_v14  ;;  %v16384_v41 = vmax.f32 %v16382_v26, %v16383_v4  ;;  %v16385_v14 = vld [vmem:[#allocation39_spill] sm:$0xff]  ;;  %v16393_v26 = vld [vmem:[#allocation40_spill] sm:$0xff]  ;;  %v16422_v46 = vld [vmem:[#allocation45_spill] sm:$0xff] }
 0x405   :  { %v9710_v34 = vpop.f32.mrf.mxu1  ;;  %v16413_v9 = vld [vmem:[#allocation43_spill] sm:$0xff]  ;;  %v16433_v0 = vld [vmem:[#allocation32_spill] sm:$0xff] }
 0x406   :  { %v14210_v31 = vmax.f32 %v16375_v2, %v2831_v21  ;;  %v9711_v35 = vadd.f32 %v9710_v34, %v9709_v58  ;;  %v8665_v34 = vld [vmem:[%s11579_s21 + $0x1018] sm:$0xff] }
 0x407   :  { %3942 = vmatmul.mubr.f32.gmra.mxu1 %v8648_v15  ;;  %v9712_v13 = vpop.f32.mrf.mxu1  ;;  %v8660_v15 = vld [vmem:[%s11579_s21 + $0xff0] sm:$0xff] }
 0x408   :  { %16376 = vst [vmem:[#allocation49_spill] sm:$0xff] %v14210_v31  ;;  %3946 = vmatprep.mubr.f32.mxu1 %v8653_v6  ;;  %v2836_v10 = vadd.f32 %v9711_v35, %v16377_v42  ;;  %v14234_v6 = vpop.f32.mrf.mxu0  ;;  %v16387_v35 = vld [vmem:[#allocation44_spill] sm:$0xff] }
 0x409   :  { %v9713_v28 = vpop.f32.mrf.mxu1  ;;  %16386 = vst [vmem:[#allocation36_spill] sm:$0xff] %v14234_v6  ;;  %v16437_v6 = vld [vmem:[#allocation34_spill] sm:$0xff] }
 0x40a   :  { %v14220_v30 = vmax.f32 %v16379_v62, %v2836_v10  ;;  %v9714_v37 = vadd.f32 %v9713_v28, %v9712_v13  ;;  %v16388_v13 = vmax.f32 %v16322_v24, %v16387_v35  ;;  %v8664_v10 = vld [vmem:[%s11579_s21 + $0x1010] sm:$0xff]  ;;  %v8677_v35 = vld [vmem:[%s11579_s21 + $0x1078] sm:$0xff] }
 0x40b   :  { %3947 = vmatmul.mubr.f32.gmra.mxu1 %v8652_v60  ;;  %v9715_v44 = vpop.f32.mrf.mxu1 }
 0x40c   :  { %3951 = vmatprep.mubr.f32.mxu1 %v8657_v23  ;;  %v2841_v33 = vadd.f32 %v9714_v37, %v16380_v22  ;;  %v16389_v23 = vld [vmem:[#allocation106_spill] sm:$0xff]  ;;  %v14246_v37 = vpop.f32.mrf.mxu0 }
 0x40d   :  { %v9716_v32 = vpop.f32.mrf.mxu1  ;;  %16390 = vst [vmem:[#allocation50_spill] sm:$0xff] %v14246_v37 }
 0x40e   :  { %v14230_v52 = vmax.f32 %v16384_v41, %v2841_v33  ;;  %v9717_v45 = vadd.f32 %v9716_v32, %v9715_v44  ;;  %v8669_v44 = vld [vmem:[%s11579_s21 + $0x1038] sm:$0xff]  ;;  %v14252_v32 = vpop.f32.mrf.mxu0 }
 0x40f   :  { %3952 = vmatmul.mubr.f32.gmra.mxu1 %v8656_v18  ;;  %v9830_v58 = vpop.f32.mrf.mxu1  ;;  %v16391_v18 = vld [vmem:[#allocation78_spill] sm:$0xff]  ;;  %16392 = vst [vmem:[#allocation63_spill] sm:$0xff] %v14252_v32  ;;  %v16409_v32 = vld [vmem:[#allocation131_spill] sm:$0xff] }
 0x410   :  { %3956 = vmatprep.mubr.f32.mxu1 %v8661_v5  ;;  %v2846_v21 = vadd.f32 %v9717_v45, %v16385_v14  ;;  %v8668_v5 = vld [vmem:[%s11579_s21 + $0x1030] sm:$0xff]  ;;  %v8673_v41 = vld [vmem:[%s11579_s21 + $0x1058] sm:$0xff] }
 0x411   :  { %v9831_v2 = vpop.f32.mrf.mxu1 }
 0x412   :  { %v14240_v60 = vmax.f32 %v16388_v13, %v2846_v21  ;;  %v9832_v42 = vadd.f32 %v9831_v2, %v9830_v58  ;;  %v16394_v58 = vld [vmem:[#allocation104_spill] sm:$0xff]  ;;  %v14261_v2 = vpop.f32.mrf.mxu0 }
 0x413   :  { %3957 = vmatmul.mubr.f32.gmra.mxu1 %v8660_v15  ;;  %v8672_v21 = vld [vmem:[%s11579_s21 + $0x1050] sm:$0xff]  ;;  %16395 = vst [vmem:[#allocation51_spill] sm:$0xff] %v14261_v2 }
 0x414   :  { %4252 = vmatprep.mubr.f32.mxu1 %v8665_v34  ;;  %v14244_v28 = vadd.f32 %v9832_v42, %v16389_v23  ;;  %v9833_v62 = vpop.f32.mrf.mxu1  ;;  %v16396_v13 = vld [vmem:[#allocation112_spill] sm:$0xff] }
 0x416   :  { %v9834_v33 = vpop.f32.mrf.mxu1 }
 0x417   :  { %4253 = vmatmul.mubr.f32.vlgmr.msra.gmra.mxu1 %v8664_v10  ;;  %v9835_v24 = vadd.f32 %v9834_v33, %v9833_v62  ;;  %v8676_v62 = vld [vmem:[%s11579_s21 + $0x1070] sm:$0xff]  ;;  %v14270_v33 = vpop.f32.mrf.mxu0 }
 0x418   :  { %4257 = vmatprep.mubr.f32.mxu1 %v8669_v44  ;;  %16397 = vst [vmem:[#allocation64_spill] sm:$0xff] %v14270_v33 }
 0x419   :  { %v14255_v4 = vadd.f32 %v9835_v24, %v16393_v26  ;;  %v9836_v45 = vpop.f32.mrf.mxu1  ;;  %v16398_v26 = vld [vmem:[#allocation68_spill] sm:$0xff] }
 0x41b   :  { %4258 = vmatmul.mubr.f32.gmra.mxu1 %v8668_v5  ;;  %v9837_v14 = vpop.f32.mrf.mxu1  ;;  %v8681_v5 = vld [vmem:[%s11579_s21 + $0x1098] sm:$0xff] }
 0x41c   :  { %4262 = vmatprep.mubr.f32.mxu1 %v8673_v41  ;;  %v9838_v34 = vadd.f32 %v9837_v14, %v9836_v45  ;;  %v8680_v14 = vld [vmem:[%s11579_s21 + $0x1090] sm:$0xff] }
 0x41e   :  { %v14265_v42 = vadd.f32 %v9838_v34, %v16396_v13  ;;  %v9839_v10 = vpop.f32.mrf.mxu1  ;;  %v8685_v13 = vld [vmem:[%s11579_s21 + $0x10b8] sm:$0xff] }
 0x41f   :  { %4263 = vmatmul.mubr.f32.gmra.mxu1 %v8672_v21  ;;  %v14277_v21 = vpop.f32.mrf.mxu0 }
 0x420   :  { %4267 = vmatprep.mubr.f32.mxu1 %v8677_v35  ;;  %v9840_v44 = vpop.f32.mrf.mxu1  ;;  %16399 = vst [vmem:[#allocation86_spill] sm:$0xff] %v14277_v21 }
 0x421   :  { %v9841_v24 = vadd.f32 %v9840_v44, %v9839_v10  ;;  %v16400_v10 = vld [vmem:[#allocation98_spill] sm:$0xff] }
 0x423   :  { %4268 = vmatmul.mubr.f32.gmra.mxu1 %v8676_v62  ;;  %v14274_v41 = vadd.f32 %v9841_v24, %v16398_v26  ;;  %v9842_v45 = vpop.f32.mrf.mxu1  ;;  %v8684_v24 = vld [vmem:[%s11579_s21 + $0x10b0] sm:$0xff]  ;;  %v14286_v26 = vpop.f32.mrf.mxu0 }
 0x424   :  { %4272 = vmatprep.mubr.f32.mxu1 %v8681_v5  ;;  %16401 = vst [vmem:[#allocation133_spill] sm:$0xff] %v14286_v26  ;;  %v8689_v5 = vld [vmem:[%s11579_s21 + $0x10d8] sm:$0xff] }
 0x425   :  { %v9843_v35 = vpop.f32.mrf.mxu1 }
 0x426   :  { %v9844_v23 = vadd.f32 %v9843_v35, %v9842_v45  ;;  %v8688_v45 = vld [vmem:[%s11579_s21 + $0x10d0] sm:$0xff] }
 0x427   :  { %4273 = vmatmul.mubr.f32.gmra.mxu1 %v8680_v14  ;;  %v14292_v14 = vpop.f32.mrf.mxu0 }
 0x428   :  { %v14283_v62 = vadd.f32 %v9844_v23, %v16400_v10  ;;  %4277 = vmatprep.mubr.f32.mxu1 %v8685_v13  ;;  %v9845_v44 = vpop.f32.mrf.mxu1  ;;  %16402 = vst [vmem:[#allocation52_spill] sm:$0xff] %v14292_v14  ;;  %v16403_v23 = vld [vmem:[#allocation59_spill] sm:$0xff]  ;;  %v8693_v10 = vld [vmem:[%s11579_s21 + $0x10f8] sm:$0xff] }
 0x42a   :  { %v9846_v34 = vpop.f32.mrf.mxu1 }
 0x42b   :  { %4278 = vmatmul.mubr.f32.gmra.mxu1 %v8684_v24  ;;  %v9847_v22 = vadd.f32 %v9846_v34, %v9845_v44  ;;  %v8692_v24 = vld [vmem:[%s11579_s21 + $0x10f0] sm:$0xff]  ;;  %v14301_v34 = vpop.f32.mrf.mxu0  ;;  %v8697_v44 = vld [vmem:[%s11579_s21 + $0x1118] sm:$0xff] }
 0x42c   :  { %4282 = vmatprep.mubr.f32.mxu1 %v8689_v5  ;;  %16404 = vst [vmem:[#allocation115_spill] sm:$0xff] %v14301_v34  ;;  %v16405_v5 = vld [vmem:[#allocation42_spill] sm:$0xff] }
 0x42d   :  { %v14295_v35 = vadd.f32 %v9847_v22, %v16403_v23  ;;  %v9848_v13 = vpop.f32.mrf.mxu1  ;;  %v14310_v33 = vpop.f32.mrf.mxu0  ;;  %v8705_v23 = vld [vmem:[%s11579_s21 + $0x1158] sm:$0xff] }
 0x42e   :  { %16406 = vst [vmem:[#allocation110_spill] sm:$0xff] %v14310_v33  ;;  %v16410_v33 = vld [vmem:[#allocation60_spill] sm:$0xff] }
 0x42f   :  { %4283 = vmatmul.mubr.f32.gmra.mxu1 %v8688_v45  ;;  %v9849_v15 = vpop.f32.mrf.mxu1  ;;  %v8696_v45 = vld [vmem:[%s11579_s21 + $0x1110] sm:$0xff] }
 0x430   :  { %v9850_v21 = vadd.f32 %v9849_v15, %v9848_v13  ;;  %4287 = vmatprep.mubr.f32.mxu1 %v8693_v10  ;;  %v8701_v13 = vld [vmem:[%s11579_s21 + $0x1138] sm:$0xff] }
 0x431   :  { %v16407_v10 = vld [vmem:[#allocation70_spill] sm:$0xff] }
 0x432   :  { %v14305_v14 = vadd.f32 %v9850_v21, %v16405_v5  ;;  %v9851_v22 = vpop.f32.mrf.mxu1  ;;  %v8700_v21 = vld [vmem:[%s11579_s21 + $0x1130] sm:$0xff]  ;;  %v8709_v5 = vld [vmem:[%s11579_s21 + $0x1178] sm:$0xff] }
 0x433   :  { %4288 = vmatmul.mubr.f32.gmra.mxu1 %v8692_v24 }
 0x434   :  { %v9852_v26 = vpop.f32.mrf.mxu1  ;;  %4292 = vmatprep.mubr.f32.mxu1 %v8697_v44 }
 0x435   :  { %v9853_v15 = vadd.f32 %v9852_v26, %v9851_v22  ;;  %v9776_v26 = vadd.f32 %v16410_v33, %v16409_v32  ;;  %v16414_v32 = vld [vmem:[#allocation101_spill] sm:$0xff] }
 0x437   :  { %v14314_v34 = vadd.f32 %v9853_v15, %v16407_v10  ;;  %v9854_v2 = vpop.f32.mrf.mxu1  ;;  %4293 = vmatmul.mubr.f32.gmra.mxu1 %v8696_v45 }
 0x438   :  { %4297 = vmatprep.mubr.f32.mxu1 %v8701_v13  ;;  %v14317_v24 = vpop.f32.mrf.mxu0  ;;  %v8704_v13 = vld [vmem:[%s11579_s21 + $0x1150] sm:$0xff] }
 0x439   :  { %16408 = vst [vmem:[#allocation65_spill] sm:$0xff] %v14317_v24  ;;  %v9855_v44 = vpop.f32.mrf.mxu1 }
 0x43a   :  { %v9856_v22 = vadd.f32 %v9855_v44, %v9854_v2  ;;  %v14324_v37 = vpop.f32.mrf.mxu0  ;;  %v9779_v2 = vadd.f32 %v16414_v32, %v16413_v9  ;;  %v16418_v9 = vld [vmem:[#allocation38_spill] sm:$0xff] }
 0x43b   :  { %16411 = vst [vmem:[#allocation53_spill] sm:$0xff] %v14324_v37  ;;  %v9857_v15 = vpop.f32.mrf.mxu1  ;;  %4298 = vmatmul.mubr.f32.gmra.mxu1 %v8700_v21 }
 0x43c   :  { %v14326_v45 = vadd.f32 %v9856_v22, %v9776_v26  ;;  %4302 = vmatprep.mubr.f32.mxu1 %v8705_v23  ;;  %v14329_v10 = vpop.f32.mrf.mxu0  ;;  %v8708_v23 = vld [vmem:[%s11579_s21 + $0x1170] sm:$0xff] }
 0x43d   :  { %16412 = vst [vmem:[#allocation66_spill] sm:$0xff] %v14329_v10  ;;  %v9858_v24 = vpop.f32.mrf.mxu1  ;;  %v8713_v10 = vld [vmem:[%s11579_s21 + $0x1198] sm:$0xff] }
 0x43e   :  { %v9859_v33 = vadd.f32 %v9858_v24, %v9857_v15  ;;  %v14336_v44 = vpop.f32.mrf.mxu0  ;;  %v9782_v24 = vadd.f32 %v16418_v9, %v16417_v20  ;;  %v16423_v20 = vld [vmem:[#allocation76_spill] sm:$0xff] }
 0x43f   :  { %16415 = vst [vmem:[#allocation55_spill] sm:$0xff] %v14336_v44  ;;  %v9860_v37 = vpop.f32.mrf.mxu1  ;;  %4303 = vmatmul.mubr.f32.gmra.mxu1 %v8704_v13 }
 0x440   :  { %v14338_v21 = vadd.f32 %v9859_v33, %v9779_v2  ;;  %4307 = vmatprep.mubr.f32.mxu1 %v8709_v5  ;;  %v14341_v26 = vpop.f32.mrf.mxu0  ;;  %v8712_v5 = vld [vmem:[%s11579_s21 + $0x1190] sm:$0xff] }
 0x441   :  { %16416 = vst [vmem:[#allocation67_spill] sm:$0xff] %v14341_v26  ;;  %v9861_v22 = vpop.f32.mrf.mxu1  ;;  %v8717_v26 = vld [vmem:[%s11579_s21 + $0x11b8] sm:$0xff] }
 0x442   :  { %v9862_v15 = vadd.f32 %v9861_v22, %v9860_v37  ;;  %v14348_v32 = vpop.f32.mrf.mxu0  ;;  %v9785_v37 = vadd.f32 %v16423_v20, %v16422_v46  ;;  %v16428_v46 = vld [vmem:[#allocation46_spill] sm:$0xff] }
 0x443   :  { %16419 = vst [vmem:[#allocation56_spill] sm:$0xff] %v14348_v32  ;;  %v9863_v44 = vpop.f32.mrf.mxu1  ;;  %4308 = vmatmul.mubr.f32.gmra.mxu1 %v8708_v23 }
 0x444   :  { %v14350_v13 = vadd.f32 %v9862_v15, %v9782_v24  ;;  %4312 = vmatprep.mubr.f32.mxu1 %v8713_v10  ;;  %v14353_v2 = vpop.f32.mrf.mxu0  ;;  %v8716_v10 = vld [vmem:[%s11579_s21 + $0x11b0] sm:$0xff] }
 0x445   :  { %16421 = vst [vmem:[#allocation90_spill] sm:$0xff] %v14353_v2  ;;  %v9864_v33 = vpop.f32.mrf.mxu1  ;;  %v8721_v2 = vld [vmem:[%s11579_s21 + $0x11d8] sm:$0xff] }
 0x446   :  { %16420 = vst [vmem:[#allocation54_spill] sm:$0xff] %v14350_v13  ;;  %v9865_v22 = vadd.f32 %v9864_v33, %v9863_v44  ;;  %v14360_v9 = vpop.f32.mrf.mxu0  ;;  %v16427_v13 = vld [vmem:[#allocation62_spill] sm:$0xff] }
 0x447   :  { %16424 = vst [vmem:[#allocation92_spill] sm:$0xff] %v14360_v9  ;;  %v9866_v32 = vpop.f32.mrf.mxu1  ;;  %4313 = vmatmul.mubr.f32.gmra.mxu1 %v8712_v5  ;;  %v9788_v44 = vadd.f32 %v16428_v46, %v16427_v13 }
 0x448   :  { %v14362_v23 = vadd.f32 %v9865_v22, %v9785_v37  ;;  %4317 = vmatprep.mubr.f32.mxu1 %v8717_v26  ;;  %v14365_v24 = vpop.f32.mrf.mxu0  ;;  %v8720_v26 = vld [vmem:[%s11579_s21 + $0x11d0] sm:$0xff] }
 0x449   :  { %16426 = vst [vmem:[#allocation94_spill] sm:$0xff] %v14365_v24  ;;  %v9867_v15 = vpop.f32.mrf.mxu1  ;;  %v8725_v24 = vld [vmem:[%s11579_s21 + $0x11f8] sm:$0xff] }
 0x44a   :  { %16425 = vst [vmem:[#allocation93_spill] sm:$0xff] %v14362_v23  ;;  %v9868_v33 = vadd.f32 %v9867_v15, %v9866_v32  ;;  %v14372_v20 = vpop.f32.mrf.mxu0  ;;  %v16432_v23 = vld [vmem:[#allocation58_spill] sm:$0xff] }
 0x44b   :  { %16429 = vst [vmem:[#allocation95_spill] sm:$0xff] %v14372_v20  ;;  %v9869_v9 = vpop.f32.mrf.mxu1  ;;  %4318 = vmatmul.mubr.f32.gmra.mxu1 %v8716_v10  ;;  %v9791_v13 = vadd.f32 %v16433_v0, %v16432_v23  ;;  %v16436_v20 = vld [vmem:[#allocation47_spill] sm:$0xff] }
 0x44c   :  { %v14374_v5 = vadd.f32 %v9868_v33, %v9788_v44  ;;  %4322 = vmatprep.mubr.f32.mxu1 %v8721_v2  ;;  %v14377_v37 = vpop.f32.mrf.mxu0  ;;  %v8724_v2 = vld [vmem:[%s11579_s21 + $0x11f0] sm:$0xff]  ;;  %s16512_s21 = sld [smem:[#allocation12_spill]] }
 0x44d   :  { %16431 = vst [vmem:[#allocation99_spill] sm:$0xff] %v14377_v37  ;;  %v9870_v22 = vpop.f32.mrf.mxu1 }
 0x44e   :  { %16430 = vst [vmem:[#allocation96_spill] sm:$0xff] %v14374_v5  ;;  %v9871_v32 = vadd.f32 %v9870_v22, %v9869_v9  ;;  %v14384_v15 = vpop.f32.mrf.mxu0  ;;  %v9794_v5 = vadd.f32 %v16437_v6, %v16436_v20  ;;  %v16438_v22 = vld [vmem:[#allocation48_spill] sm:$0xff] }
 0x44f   :  { %16434 = vst [vmem:[#allocation102_spill] sm:$0xff] %v14384_v15  ;;  %v9872_v46 = vpop.f32.mrf.mxu1  ;;  %4323 = vmatmul.mubr.f32.gmra.mxu1 %v8720_v26 }
 0x450   :  { %v14386_v10 = vadd.f32 %v9871_v32, %v9791_v13  ;;  %4327 = vmatprep.mubr.f32.mxu1 %v8725_v24  ;;  %v14389_v44 = vpop.f32.mrf.mxu0  ;;  %v16439_v13 = vld [vmem:[#allocation132_spill] sm:$0xff] }
 0x451   :  { %16435 = vst [vmem:[#allocation105_spill] sm:$0xff] %v14389_v44  ;;  %v9873_v33 = vpop.f32.mrf.mxu1  ;;  %v9797_v32 = vadd.f32 %v16439_v13, %v16438_v22 }
 0x452   :  { %v9874_v31 = vadd.f32 %v9873_v33, %v9872_v46  ;;  %v14395_v9 = vpop.f32.mrf.mxu0  ;;  %v4351_v46 = vld [vmem:[%s11584_s25 + $0x10] sm:$0xff] }
 0x453   :  { %v9875_v0 = vpop.f32.mrf.mxu1  ;;  %4328 = vmatmul.mubr.f32.gmra.mxu1 %v8724_v2  ;;  %10786 = vmatprep.subr.mxu0 %v4351_v46 }
 0x454   :  { %v14397_v23 = vadd.f32 %v9874_v31, %v9794_v5  ;;  %v14403_v15 = vpop.f32.mrf.mxu0  ;;  %v9912_v31 = vadd.f32 %v14052_v59, %v14042_v49  ;;  %10787 = vmatpush3.msra.mxu0 %v4351_v46  ;;  %v4350_v59 = vld [vmem:[%s11584_s25 + $0x8] sm:$0xff] }
 0x455   :  { %v9876_v26 = vpop.f32.mrf.mxu1  ;;  %16440 = vst [vmem:[#allocation108_spill] sm:$0xff] %v14403_v15  ;;  %10788 = vmatprep.subr.mxu0 %v4350_v59 }
 0x456   :  { %v9877_v44 = vadd.f32 %v9876_v26, %v9875_v0  ;;  %v14411_v33 = vpop.f32.mrf.mxu0  ;;  %v16441_v0 = vmax.f32 %v16391_v18, %v14244_v28  ;;  %v16442_v28 = vmax.f32 %v16394_v58, %v14255_v4  ;;  %10789 = vmatpush3.msra.mxu0 %v4350_v59  ;;  %v9921_v4 = vadd.f32 %v14100_v17, %v14089_v61 }
 0x457   :  { %v9990_v37 = vpop.f32.mrf.mxu1  ;;  %v16445_v17 = vmax.f32 %v14073_v25, %v14283_v62 }
 0x458   :  { %v14405_v6 = vadd.f32 %v9877_v44, %v9797_v32  ;;  %v9915_v44 = vadd.f32 %v14065_v39, %v14058_v48  ;;  %v4349_v39 = vld [vmem:[%s11584_s25] sm:$0xff]  ;;  %s16513_s25 = sld [smem:[#allocation19_spill]] }
 0x459   :  { %v9991_v20 = vpop.f32.mrf.mxu1  ;;  %v14421_v15 = vpop.f32.mrf.mxu0  ;;  %10790 = vmatprep.subr.mxu0 %v4349_v39 }
 0x45a   :  { %v9992_v5 = vadd.f32 %v9991_v20, %v9990_v37  ;;  %v9918_v20 = vadd.f32 %v14082_v55, %v14076_v43  ;;  %10791 = vmatpush3.msra.mxu0 %v4349_v39 }
 0x45b   :  { %v9993_v2 = vpop.f32.mrf.mxu1 }
 0x45c   :  { %v3513_v22 = vadd.f32 %v9992_v5, %v9912_v31  ;;  %v14432_v5 = vpop.f32.mrf.mxu0 }
 0x45d   :  { %v9994_v13 = vpop.f32.mrf.mxu1 }
 0x45e   :  { %v14416_v26 = vmax.f32 %v16441_v0, %v3513_v22  ;;  %v9995_v32 = vadd.f32 %v9994_v13, %v9993_v2  ;;  %v16443_v22 = vmax.f32 %v14030_v36, %v14265_v42  ;;  %v14441_v55 = vpop.f32.mrf.mxu0 }
 0x45f   :  { %v9996_v24 = vpop.f32.mrf.mxu1 }
 0x460   :  { %v3518_v49 = vadd.f32 %v9995_v32, %v9915_v44  ;;  %v16444_v44 = vmax.f32 %v14050_v16, %v14274_v41  ;;  %v14450_v59 = vpop.f32.mrf.mxu0 }
 0x461   :  { %v9997_v37 = vpop.f32.mrf.mxu1 }
 0x462   :  { %v14427_v18 = vmax.f32 %v16442_v28, %v3518_v49  ;;  %v9998_v48 = vadd.f32 %v9997_v37, %v9996_v24  ;;  %v9924_v49 = vadd.f32 %v14113_v11, %v14106_v53  ;;  %v16446_v11 = vmax.f32 %v14098_v12, %v14295_v35 }
 0x463   :  { %v9999_v31 = vpop.f32.mrf.mxu1 }
 0x464   :  { %v3523_v2 = vadd.f32 %v9998_v48, %v9918_v20  ;;  %v9927_v20 = vadd.f32 %v14130_v40, %v14124_v47  ;;  %v14459_v48 = vpop.f32.mrf.mxu0  ;;  %v16447_v40 = vmax.f32 %v14121_v8, %v14305_v14 }
 0x465   :  { %v10000_v46 = vpop.f32.mrf.mxu1 }
 0x466   :  { %v14437_v13 = vmax.f32 %v16443_v22, %v3523_v2  ;;  %v10001_v58 = vadd.f32 %v10000_v46, %v9999_v31  ;;  %v9930_v2 = vadd.f32 %v14147_v63, %v14137_v51  ;;  %v14468_v46 = vpop.f32.mrf.mxu0  ;;  %v16448_v63 = vmax.f32 %v14145_v27, %v14314_v34 }
 0x467   :  { %v10002_v43 = vpop.f32.mrf.mxu1 }
 0x468   :  { %v3528_v24 = vadd.f32 %v10001_v58, %v9921_v4  ;;  %v9933_v58 = vadd.f32 %v14158_v19, %v14152_v50  ;;  %v16449_v19 = vmax.f32 %v14166_v56, %v14326_v45 }
 0x469   :  { %v10003_v0 = vpop.f32.mrf.mxu1 }
 0x46a   :  { %v14446_v32 = vmax.f32 %v16444_v44, %v3528_v24  ;;  %v10004_v36 = vadd.f32 %v10003_v0, %v10002_v43  ;;  %v14477_v43 = vpop.f32.mrf.mxu0  ;;  %v9936_v44 = vadd.f32 %v14172_v57, %v14168_v29  ;;  %v16450_v57 = vmax.f32 %v14178_v1, %v14338_v21 }
 0x46b   :  { %v10005_v42 = vpop.f32.mrf.mxu1 }
 0x46c   :  { %v3533_v37 = vadd.f32 %v10004_v36, %v9924_v49  ;;  %v14486_v49 = vpop.f32.mrf.mxu0 }
 0x46d   :  { %v10006_v61 = vpop.f32.mrf.mxu1 }
 0x46e   :  { %v14455_v28 = vmax.f32 %v16445_v17, %v3533_v37  ;;  %v10007_v16 = vadd.f32 %v10006_v61, %v10005_v42  ;;  %v9939_v37 = vadd.f32 %v14184_v3, %v14180_v54  ;;  %v14495_v61 = vpop.f32.mrf.mxu0  ;;  %v16452_v3 = vld [vmem:[#allocation54_spill] sm:$0xff] }
 0x46f   :  { %v10008_v41 = vpop.f32.mrf.mxu1 }
 0x470   :  { %v3538_v39 = vadd.f32 %v10007_v16, %v9927_v20  ;;  %v16451_v16 = vld [vmem:[#allocation33_spill] sm:$0xff] }
 0x471   :  { %v10009_v53 = vpop.f32.mrf.mxu1 }
 0x472   :  { %v14464_v31 = vmax.f32 %v16446_v11, %v3538_v39  ;;  %v10010_v25 = vadd.f32 %v10009_v53, %v10008_v41  ;;  %v9942_v41 = vadd.f32 %v16451_v16, %v14194_v38  ;;  %v14504_v39 = vpop.f32.mrf.mxu0  ;;  %v16453_v11 = vmax.f32 %v14190_v7, %v16452_v3 }
 0x473   :  { %v10011_v62 = vpop.f32.mrf.mxu1 }
 0x474   :  { %v3543_v22 = vadd.f32 %v10010_v25, %v9930_v2  ;;  %v16454_v25 = vld [vmem:[#allocation41_spill] sm:$0xff] }
 0x475   :  { %v10012_v47 = vpop.f32.mrf.mxu1 }
 0x476   :  { %v14473_v4 = vmax.f32 %v16447_v40, %v3543_v22  ;;  %v10013_v12 = vadd.f32 %v10012_v47, %v10011_v62  ;;  %v16455_v62 = vld [vmem:[#allocation107_spill] sm:$0xff]  ;;  %v14513_v47 = vpop.f32.mrf.mxu0 }
 0x477   :  { %v10014_v35 = vpop.f32.mrf.mxu1  ;;  %v9945_v22 = vadd.f32 %v16455_v62, %v16454_v25  ;;  %v16468_v25 = vld [vmem:[#allocation86_spill] sm:$0xff] }
 0x478   :  { %v3548_v24 = vadd.f32 %v10013_v12, %v9933_v58  ;;  %v16456_v58 = vld [vmem:[#allocation84_spill] sm:$0xff]  ;;  %v16457_v12 = vld [vmem:[#allocation93_spill] sm:$0xff] }
 0x479   :  { %v10015_v51 = vpop.f32.mrf.mxu1 }
 0x47a   :  { %v14482_v0 = vmax.f32 %v16448_v63, %v3548_v24  ;;  %v10016_v8 = vadd.f32 %v10015_v51, %v10014_v35  ;;  %v16458_v35 = vmax.f32 %v16456_v58, %v16457_v12  ;;  %v16459_v51 = vld [vmem:[#allocation36_spill] sm:$0xff]  ;;  %v16460_v63 = vld [vmem:[#allocation50_spill] sm:$0xff]  ;;  %v16469_v58 = vmax.f32 %v14230_v52, %v14397_v23 }
 0x47b   :  { %v10017_v14 = vpop.f32.mrf.mxu1 }
 0x47c   :  { %v3553_v36 = vadd.f32 %v10016_v8, %v9936_v44  ;;  %v9948_v44 = vadd.f32 %v16460_v63, %v16459_v51  ;;  %v16471_v51 = vld [vmem:[#allocation52_spill] sm:$0xff] }
 0x47d   :  { %v10018_v50 = vpop.f32.mrf.mxu1 }
 0x47e   :  { %v14491_v42 = vmax.f32 %v16449_v19, %v3553_v36  ;;  %v10019_v27 = vadd.f32 %v10018_v50, %v10017_v14  ;;  %v14522_v14 = vpop.f32.mrf.mxu0  ;;  %v16461_v19 = vld [vmem:[#allocation49_spill] sm:$0xff] }
 0x47f   :  { %v10020_v34 = vpop.f32.mrf.mxu1 }
 0x480   :  { %v3558_v17 = vadd.f32 %v10019_v27, %v9939_v37  ;;  %v16462_v37 = vld [vmem:[#allocation96_spill] sm:$0xff] }
 0x481   :  { %v10021_v29 = vpop.f32.mrf.mxu1  ;;  %v16463_v27 = vmax.f32 %v16461_v19, %v16462_v37  ;;  %v16473_v19 = vld [vmem:[#allocation115_spill] sm:$0xff]  ;;  %v16474_v37 = vld [vmem:[#allocation110_spill] sm:$0xff] }
 0x482   :  { %v14500_v20 = vmax.f32 %v16450_v57, %v3558_v17  ;;  %v10022_v56 = vadd.f32 %v10021_v29, %v10020_v34  ;;  %v16464_v17 = vld [vmem:[#allocation63_spill] sm:$0xff] }
 0x483   :  { %v10023_v45 = vpop.f32.mrf.mxu1  ;;  %v16465_v29 = vld [vmem:[#allocation51_spill] sm:$0xff] }
 0x484   :  { %v3563_v53 = vadd.f32 %v10022_v56, %v9942_v41  ;;  %v9951_v57 = vadd.f32 %v16465_v29, %v16464_v17  ;;  %v14531_v56 = vpop.f32.mrf.mxu0 }
 0x485   :  { %v10024_v54 = vpop.f32.mrf.mxu1 }
 0x486   :  { %v14509_v2 = vmax.f32 %v16453_v11, %v3563_v53  ;;  %v10025_v1 = vadd.f32 %v10024_v54, %v10023_v45  ;;  %v16466_v54 = vmax.f32 %v14220_v30, %v14386_v10  ;;  %v16467_v11 = vld [vmem:[#allocation64_spill] sm:$0xff] }
 0x487   :  { %v10026_v21 = vpop.f32.mrf.mxu1  ;;  %v9954_v62 = vadd.f32 %v16468_v25, %v16467_v11 }
 0x488   :  { %v3568_v40 = vadd.f32 %v10025_v1, %v9945_v22 }
 0x489   :  { %v10027_v38 = vpop.f32.mrf.mxu1 }
 0x48a   :  { %v14518_v24 = vmax.f32 %v16458_v35, %v3568_v40  ;;  %v10028_v7 = vadd.f32 %v10027_v38, %v10026_v21  ;;  %v14540_v21 = vpop.f32.mrf.mxu0  ;;  %v16470_v35 = vld [vmem:[#allocation133_spill] sm:$0xff] }
 0x48b   :  { %v10029_v8 = vpop.f32.mrf.mxu1  ;;  %v9957_v63 = vadd.f32 %v16471_v51, %v16470_v35 }
 0x48c   :  { %v3573_v36 = vadd.f32 %v10028_v7, %v9948_v44  ;;  %v14549_v44 = vpop.f32.mrf.mxu0 }
 0x48d   :  { %v10030_v50 = vpop.f32.mrf.mxu1 }
 0x48e   :  { %v14527_v34 = vmax.f32 %v16463_v27, %v3573_v36  ;;  %v10031_v16 = vadd.f32 %v10030_v50, %v10029_v8  ;;  %v16472_v36 = vmax.f32 %v14240_v60, %v14405_v6  ;;  %v10072_v27 = vadd.f32 %v16474_v37, %v16473_v19  ;;  %v14558_v17 = vpop.f32.mrf.mxu0 }
 0x48f   :  { %v10032_v41 = vpop.f32.mrf.mxu1 }
 0x490   :  { %v3578_v45 = vadd.f32 %v10031_v16, %v9951_v57  ;;  %v14566_v6 = vpop.f32.mrf.mxu0 }
 0x491   :  { %v10033_v53 = vpop.f32.mrf.mxu1 }
 0x492   :  { %v14536_v3 = vmax.f32 %v16466_v54, %v3578_v45  ;;  %v10034_v22 = vadd.f32 %v10033_v53, %v10032_v41  ;;  %v16475_v41 = vld [vmem:[#allocation65_spill] sm:$0xff]  ;;  %v14574_v35 = vpop.f32.mrf.mxu0 }
 0x493   :  { %v10035_v1 = vpop.f32.mrf.mxu1  ;;  %v16476_v45 = vld [vmem:[#allocation53_spill] sm:$0xff] }
 0x494   :  { %v3583_v40 = vadd.f32 %v10034_v22, %v9954_v62  ;;  %v10075_v53 = vadd.f32 %v16476_v45, %v16475_v41  ;;  %v16477_v22 = vld [vmem:[#allocation66_spill] sm:$0xff]  ;;  %v14582_v37 = vpop.f32.mrf.mxu0  ;;  %v16482_v41 = vld [vmem:[#allocation92_spill] sm:$0xff] }
 0x495   :  { %v10036_v38 = vpop.f32.mrf.mxu1 }
 0x496   :  { %v14545_v12 = vmax.f32 %v16469_v58, %v3583_v40  ;;  %v10037_v30 = vadd.f32 %v10036_v38, %v10035_v1  ;;  %v16478_v1 = vld [vmem:[#allocation55_spill] sm:$0xff] }
 0x497   :  { %v10150_v10 = vpop.f32.mrf.mxu1  ;;  %v10078_v40 = vadd.f32 %v16478_v1, %v16477_v22 }
 0x498   :  { %v3588_v7 = vadd.f32 %v10037_v30, %v9957_v63 }
 0x499   :  { %v10151_v8 = vpop.f32.mrf.mxu1 }
 0x49a   :  { %v14554_v50 = vmax.f32 %v16472_v36, %v3588_v7  ;;  %v10152_v52 = vadd.f32 %v10151_v8, %v10150_v10  ;;  %v16479_v10 = vld [vmem:[#allocation67_spill] sm:$0xff]  ;;  %v16480_v7 = vld [vmem:[#allocation56_spill] sm:$0xff] }
 0x49b   :  { %v10153_v23 = vpop.f32.mrf.mxu1  ;;  %v10081_v8 = vadd.f32 %v16480_v7, %v16479_v10 }
 0x49c   :  { %v14560_v29 = vadd.f32 %v10152_v52, %v10072_v27 }
 0x49d   :  { %v10154_v57 = vpop.f32.mrf.mxu1 }
 0x49e   :  { %v10155_v54 = vadd.f32 %v10154_v57, %v10153_v23  ;;  %v16481_v57 = vld [vmem:[#allocation90_spill] sm:$0xff] }
 0x49f   :  { %v10156_v60 = vpop.f32.mrf.mxu1  ;;  %v10084_v45 = vadd.f32 %v16482_v41, %v16481_v57  ;;  %v16486_v57 = vld [vmem:[#allocation102_spill] sm:$0xff] }
 0x4a0   :  { %v14568_v11 = vadd.f32 %v10155_v54, %v10075_v53 }
 0x4a1   :  { %v10157_v25 = vpop.f32.mrf.mxu1 }
 0x4a2   :  { %v10158_v38 = vadd.f32 %v10157_v25, %v10156_v60  ;;  %v14590_v60 = vpop.f32.mrf.mxu0 }
 0x4a3   :  { %v10159_v58 = vpop.f32.mrf.mxu1 }
 0x4a4   :  { %v14576_v51 = vadd.f32 %v10158_v38, %v10078_v40  ;;  %v16483_v40 = vld [vmem:[#allocation94_spill] sm:$0xff]  ;;  %v16484_v38 = vld [vmem:[#allocation95_spill] sm:$0xff]  ;;  %v14598_v7 = vpop.f32.mrf.mxu0 }
 0x4a5   :  { %v10160_v63 = vpop.f32.mrf.mxu1 }
 0x4a6   :  { %v10161_v36 = vadd.f32 %v10160_v63, %v10159_v58  ;;  %v10087_v58 = vadd.f32 %v16484_v38, %v16483_v40  ;;  %v14606_v23 = vpop.f32.mrf.mxu0 }
 0x4a7   :  { %v10162_v19 = vpop.f32.mrf.mxu1 }
 0x4a8   :  { %v14584_v27 = vadd.f32 %v10161_v36, %v10081_v8  ;;  %v14614_v30 = vpop.f32.mrf.mxu0 }
 0x4a9   :  { %v10163_v52 = vpop.f32.mrf.mxu1 }
 0x4aa   :  { %v10164_v53 = vadd.f32 %v10163_v52, %v10162_v19  ;;  %v16485_v52 = vld [vmem:[#allocation99_spill] sm:$0xff]  ;;  %v14622_v62 = vpop.f32.mrf.mxu0 }
 0x4ab   :  { %v10165_v54 = vpop.f32.mrf.mxu1  ;;  %v10090_v41 = vadd.f32 %v16486_v57, %v16485_v52 }
 0x4ac   :  { %v14592_v25 = vadd.f32 %v10164_v53, %v10084_v45 }
 0x4ad   :  { %v10166_v22 = vpop.f32.mrf.mxu1 }
 0x4ae   :  { %v10167_v63 = vadd.f32 %v10166_v22, %v10165_v54  ;;  %v16487_v22 = vld [vmem:[#allocation105_spill] sm:$0xff] }
 0x4af   :  { %v10168_v10 = vpop.f32.mrf.mxu1  ;;  %v10093_v38 = vadd.f32 %v14395_v9, %v16487_v22 }
 0x4b0   :  { %v14600_v8 = vadd.f32 %v10167_v63, %v10087_v58 }
 0x4b1   :  { %v10169_v36 = vpop.f32.mrf.mxu1 }
 0x4b2   :  { %v10170_v45 = vadd.f32 %v10169_v36, %v10168_v10  ;;  %v16488_v36 = vld [vmem:[#allocation108_spill] sm:$0xff] }
 0x4b3   :  { %v10171_v53 = vpop.f32.mrf.mxu1  ;;  %v10096_v57 = vadd.f32 %v14411_v33, %v16488_v36 }
 0x4b4   :  { %v14608_v1 = vadd.f32 %v10170_v45, %v10090_v41 }
 0x4b5   :  { %v10172_v40 = vpop.f32.mrf.mxu1 }
 0x4b6   :  { %v10173_v58 = vadd.f32 %v10172_v40, %v10171_v53  ;;  %v10099_v40 = vadd.f32 %v14432_v5, %v14421_v15 }
 0x4b7   :  { %v10174_v63 = vpop.f32.mrf.mxu1 }
 0x4b8   :  { %v14616_v19 = vadd.f32 %v10173_v58, %v10093_v38  ;;  %v14630_v58 = vpop.f32.mrf.mxu0 }
 0x4b9   :  { %v10175_v52 = vpop.f32.mrf.mxu1 }
 0x4ba   :  { %v10176_v41 = vadd.f32 %v10175_v52, %v10174_v63  ;;  %v10102_v52 = vadd.f32 %v14450_v59, %v14441_v55 }
 0x4bb   :  { %v10177_v45 = vpop.f32.mrf.mxu1 }
 0x4bc   :  { %v14624_v54 = vadd.f32 %v10176_v41, %v10096_v57  ;;  %v14638_v41 = vpop.f32.mrf.mxu0 }
 0x4bd   :  { %v10178_v9 = vpop.f32.mrf.mxu1 }
 0x4be   :  { %v10179_v22 = vadd.f32 %v10178_v9, %v10177_v45  ;;  %v10105_v45 = vadd.f32 %v14468_v46, %v14459_v48 }
 0x4bf   :  { %v10180_v38 = vpop.f32.mrf.mxu1 }
 0x4c0   :  { %v14632_v10 = vadd.f32 %v10179_v22, %v10099_v40  ;;  %v14646_v22 = vpop.f32.mrf.mxu0 }
 0x4c1   :  { %v10181_v33 = vpop.f32.mrf.mxu1 }
 0x4c2   :  { %v10182_v36 = vadd.f32 %v10181_v33, %v10180_v38  ;;  %v10108_v38 = vadd.f32 %v14486_v49, %v14477_v43 }
 0x4c3   :  { %v10183_v57 = vpop.f32.mrf.mxu1 }
 0x4c4   :  { %v14640_v53 = vadd.f32 %v10182_v36, %v10102_v52  ;;  %v14654_v36 = vpop.f32.mrf.mxu0 }
 0x4c5   :  { %v10184_v15 = vpop.f32.mrf.mxu1 }
 0x4c6   :  { %v10185_v9 = vadd.f32 %v10184_v15, %v10183_v57  ;;  %v10111_v57 = vadd.f32 %v14504_v39, %v14495_v61 }
 0x4c7   :  { %v10186_v40 = vpop.f32.mrf.mxu1 }
 0x4c8   :  { %v14648_v63 = vadd.f32 %v10185_v9, %v10105_v45  ;;  %v14662_v9 = vpop.f32.mrf.mxu0 }
 0x4c9   :  { %v10187_v55 = vpop.f32.mrf.mxu1 }
 0x4ca   :  { %v10188_v33 = vadd.f32 %v10187_v55, %v10186_v40  ;;  %v10114_v40 = vadd.f32 %v14522_v14, %v14513_v47 }
 0x4cb   :  { %v10189_v52 = vpop.f32.mrf.mxu1 }
 0x4cc   :  { %v14656_v5 = vadd.f32 %v10188_v33, %v10108_v38  ;;  %v14670_v33 = vpop.f32.mrf.mxu0 }
 0x4cd   :  { %v10190_v48 = vpop.f32.mrf.mxu1 }
 0x4ce   :  { %v10191_v15 = vadd.f32 %v10190_v48, %v10189_v52  ;;  %v10117_v52 = vadd.f32 %v14540_v21, %v14531_v56  ;;  %v16489_v56 = vmax.f32 %v14416_v26, %v14560_v29  ;;  %v10238_v26 = vadd.f32 %v14590_v60, %v14582_v37 }
 0x4cf   :  { %v10192_v45 = vpop.f32.mrf.mxu1 }
 0x4d0   :  { %v14664_v59 = vadd.f32 %v10191_v15, %v10111_v57  ;;  %v14678_v15 = vpop.f32.mrf.mxu0 }
 0x4d1   :  { %v10193_v43 = vpop.f32.mrf.mxu1 }
 0x4d2   :  { %v10194_v55 = vadd.f32 %v10193_v43, %v10192_v45  ;;  %v10232_v45 = vadd.f32 %v14558_v17, %v14549_v44  ;;  %v16490_v17 = vmax.f32 %v14427_v18, %v14568_v11  ;;  %v10241_v18 = vadd.f32 %v14606_v23, %v14598_v7 }
 0x4d3   :  { %v10195_v38 = vpop.f32.mrf.mxu1 }
 0x4d4   :  { %v14672_v46 = vadd.f32 %v10194_v55, %v10114_v40  ;;  %v10255_v55 = vpop.f32.mrf.mxu0 }
 0x4d5   :  { %v10196_v61 = vpop.f32.mrf.mxu1 }
 0x4d6   :  { %v10197_v48 = vadd.f32 %v10196_v61, %v10195_v38  ;;  %v10235_v38 = vadd.f32 %v14574_v35, %v14566_v6  ;;  %v16491_v35 = vmax.f32 %v14437_v13, %v14576_v51  ;;  %v10244_v13 = vadd.f32 %v14622_v62, %v14614_v30 }
 0x4d7   :  { %v10310_v57 = vpop.f32.mrf.mxu1 }
 0x4d8   :  { %v14680_v49 = vadd.f32 %v10197_v48, %v10117_v52  ;;  %v10257_v48 = vpop.f32.mrf.mxu0 }
 0x4d9   :  { %v10311_v47 = vpop.f32.mrf.mxu1 }
 0x4da   :  { %v10312_v43 = vadd.f32 %v10311_v47, %v10310_v57  ;;  %v10258_v47 = vpop.f32.mrf.mxu0 }
 0x4db   :  { %v10313_v40 = vpop.f32.mrf.mxu1 }
 0x4dc   :  { %v4255_v39 = vadd.f32 %v10312_v43, %v10232_v45  ;;  %v10260_v43 = vpop.f32.mrf.mxu0 }
 0x4dd   :  { %v10314_v16 = vpop.f32.mrf.mxu1 }
 0x4de   :  { %v14689_v21 = vmax.f32 %v16489_v56, %v4255_v39  ;;  %v10315_v61 = vadd.f32 %v10314_v16, %v10313_v40  ;;  %v16492_v40 = vmax.f32 %v14446_v32, %v14584_v27  ;;  %v10247_v32 = vadd.f32 %v14638_v41, %v14630_v58 }
 0x4df   :  { %v10316_v52 = vpop.f32.mrf.mxu1 }
 0x4e0   :  { %v4260_v14 = vadd.f32 %v10315_v61, %v10235_v38  ;;  %10792 = vmatprep.mubr.msk.f32.mxu0 %vm4365_vm2, %v14689_v21  ;;  %v10261_v61 = vpop.f32.mrf.mxu0 }
 0x4e1   :  { %v10317_v44 = vpop.f32.mrf.mxu1 }
 0x4e2   :  { %v14698_v57 = vmax.f32 %v16490_v17, %v4260_v14  ;;  %v10318_v29 = vadd.f32 %v10317_v44, %v10316_v52  ;;  %v16493_v52 = vmax.f32 %v14455_v28, %v14592_v25  ;;  %v10250_v28 = vadd.f32 %v14654_v36, %v14646_v22 }
 0x4e3   :  { %v10319_v39 = vpop.f32.mrf.mxu1 }
 0x4e4   :  { %v4265_v6 = vadd.f32 %v10318_v29, %v10238_v26  ;;  %10793 = vmatmul.mubr.msk.f32.vlgmr.msra.gmra.mxu0 %vm4365_vm2, %v14698_v57  ;;  %v10263_v26 = vpop.f32.mrf.mxu0  ;;  %v16494_v29 = vmax.f32 %v14464_v31, %v14600_v8  ;;  %v10253_v31 = vadd.f32 %v14670_v33, %v14662_v9  ;;  %v16497_v33 = vmax.f32 %v14491_v42, %v14624_v54 }
 0x4e5   :  { %v10320_v16 = vpop.f32.mrf.mxu1 }
 0x4e6   :  { %v14707_v45 = vmax.f32 %v16491_v35, %v4265_v6  ;;  %v10321_v11 = vadd.f32 %v10320_v16, %v10319_v39  ;;  %v10264_v16 = vpop.f32.mrf.mxu0  ;;  %v16495_v35 = vmax.f32 %v14473_v4, %v14608_v1  ;;  %v10256_v4 = vadd.f32 %v10255_v55, %v14678_v15 }
 0x4e7   :  { %v10322_v14 = vpop.f32.mrf.mxu1  ;;  %v16498_v55 = vmax.f32 %v14500_v20, %v14632_v10 }
 0x4e8   :  { %v4270_v37 = vadd.f32 %v10321_v11, %v10241_v18  ;;  %10795 = vmatprep.mubr.msk.f32.mxu0 %vm4365_vm2, %v14707_v45 }
 0x4e9   :  { %v10323_v60 = vpop.f32.mrf.mxu1 }
 0x4ea   :  { %v14716_v56 = vmax.f32 %v16492_v40, %v4270_v37  ;;  %v10324_v51 = vadd.f32 %v10323_v60, %v10322_v14  ;;  %v10266_v14 = vpop.f32.mrf.mxu0  ;;  %v16496_v37 = vmax.f32 %v14482_v0, %v14616_v19 }
 0x4eb   :  { %v10325_v38 = vpop.f32.mrf.mxu1 }
 0x4ec   :  { %v4275_v23 = vadd.f32 %v10324_v51, %v10244_v13  ;;  %10796 = vmatmul.mubr.msk.f32.gmra.mxu0 %vm4365_vm2, %v14716_v56  ;;  %v10267_v13 = vpop.f32.mrf.mxu0 }
 0x4ed   :  { %v10326_v7 = vpop.f32.mrf.mxu1 }
 0x4ee   :  { %v14725_v44 = vmax.f32 %v16493_v52, %v4275_v23  ;;  %v10327_v27 = vadd.f32 %v10326_v7, %v10325_v38  ;;  %v10259_v23 = vadd.f32 %v10258_v47, %v10257_v48  ;;  %v10269_v19 = vpop.f32.mrf.mxu0  ;;  %v16499_v47 = vmax.f32 %v14509_v2, %v14640_v53 }
 0x4ef   :  { %v10328_v17 = vpop.f32.mrf.mxu1 }
 0x4f0   :  { %v4280_v62 = vadd.f32 %v10327_v27, %v10247_v32  ;;  %10798 = vmatprep.mubr.msk.f32.mxu0 %vm4365_vm2, %v14725_v44  ;;  %v10262_v27 = vadd.f32 %v10261_v61, %v10260_v43  ;;  %v10270_v42 = vpop.f32.mrf.mxu0  ;;  %v16500_v61 = vmax.f32 %v14518_v24, %v14648_v63 }
 0x4f1   :  { %v10329_v30 = vpop.f32.mrf.mxu1 }
 0x4f2   :  { %v14734_v39 = vmax.f32 %v16494_v29, %v4280_v62  ;;  %v10330_v25 = vadd.f32 %v10329_v30, %v10328_v17  ;;  %v10265_v29 = vadd.f32 %v10264_v16, %v10263_v26  ;;  %v10272_v20 = vpop.f32.mrf.mxu0  ;;  %v16501_v16 = vmax.f32 %v14527_v34, %v14656_v5 }
 0x4f3   :  { %v10331_v6 = vpop.f32.mrf.mxu1 }
 0x4f4   :  { %v4285_v58 = vadd.f32 %v10330_v25, %v10250_v28  ;;  %10799 = vmatmul.mubr.msk.f32.gmra.mxu0 %vm4365_vm2, %v14734_v39  ;;  %v10273_v2 = vpop.f32.mrf.mxu0 }
 0x4f5   :  { %v10332_v41 = vpop.f32.mrf.mxu1 }
 0x4f6   :  { %v14743_v18 = vmax.f32 %v16495_v35, %v4285_v58  ;;  %v10333_v8 = vadd.f32 %v10332_v41, %v10331_v6  ;;  %v10268_v58 = vadd.f32 %v10267_v13, %v10266_v14  ;;  %v10275_v24 = vpop.f32.mrf.mxu0 }
 0x4f7   :  { %v10334_v11 = vpop.f32.mrf.mxu1 }
 0x4f8   :  { %v4290_v22 = vadd.f32 %v10333_v8, %v10253_v31  ;;  %10801 = vmatprep.mubr.msk.f32.mxu0 %vm4365_vm2, %v14743_v18  ;;  %v10271_v8 = vadd.f32 %v10270_v42, %v10269_v19  ;;  %v10276_v5 = vpop.f32.mrf.mxu0  ;;  %v8744_v19 = vld [vmem:[%s11629_s12 + $0x20] sm:$0xff] }
 0x4f9   :  { %v10335_v36 = vpop.f32.mrf.mxu1 }
 0x4fa   :  { %v14752_v60 = vmax.f32 %v16496_v37, %v4290_v22  ;;  %v10336_v1 = vadd.f32 %v10335_v36, %v10334_v11  ;;  %v16502_v36 = vmax.f32 %v14536_v3, %v14664_v59 }
 0x4fb   :  { %v10337_v40 = vpop.f32.mrf.mxu1 }
 0x4fc   :  { %v4295_v51 = vadd.f32 %v10336_v1, %v10256_v4  ;;  %10802 = vmatmul.mubr.msk.f32.gmra.mxu0 %vm4365_vm2, %v14752_v60  ;;  %v10274_v4 = vadd.f32 %v10273_v2, %v10272_v20 }
 0x4fd   :  { %v10338_v9 = vpop.f32.mrf.mxu1 }
 0x4fe   :  { %v14760_v38 = vmax.f32 %v16497_v33, %v4295_v51  ;;  %v10339_v7 = vadd.f32 %v10338_v9, %v10337_v40  ;;  %v16503_v51 = vmax.f32 %v14545_v12, %v14672_v46  ;;  %v10277_v33 = vadd.f32 %v10276_v5, %v10275_v24 }
 0x4ff   :  { %v10340_v0 = vpop.f32.mrf.mxu1 }
 0x500   :  { %v4300_v52 = vadd.f32 %v10339_v7, %v10259_v23  ;;  %10804 = vmatprep.mubr.msk.f32.mxu0 %vm4365_vm2, %v14760_v38  ;;  %v16504_v23 = vmax.f32 %v14554_v50, %v14680_v49 }
 0x501   :  { %v10341_v15 = vpop.f32.mrf.mxu1 }
 0x502   :  { %v14767_v32 = vmax.f32 %v16498_v55, %v4300_v52  ;;  %v10342_v17 = vadd.f32 %v10341_v15, %v10340_v0  ;;  %v4619_v0 = vld [vmem:[%s11629_s12] sm:$0xff] }
 0x503   :  { %v10343_v62 = vpop.f32.mrf.mxu1  ;;  %10848 = vmatprep.mubr.f32.mxu1 %v4619_v0 }
 0x504   :  { %v4305_v54 = vadd.f32 %v10342_v17, %v10262_v27  ;;  %10805 = vmatmul.mubr.msk.f32.gmra.mxu0 %vm4365_vm2, %v14767_v32 }
 0x505   :  { %v10344_v48 = vpop.f32.mrf.mxu1 }
 0x506   :  { %v14774_v30 = vmax.f32 %v16499_v47, %v4305_v54  ;;  %v10345_v28 = vadd.f32 %v10344_v48, %v10343_v62 }
 0x507   :  { %v10346_v25 = vpop.f32.mrf.mxu1 }
 0x508   :  { %v4310_v10 = vadd.f32 %v10345_v28, %v10265_v29  ;;  %10807 = vmatprep.mubr.msk.f32.mxu0 %vm4365_vm2, %v14774_v30  ;;  %v14826_v29 = vld [vmem:[%s11589_s29] ss:$0 sm:$0xff]  ;;  %s16514_s29 = sld [smem:[#allocation20_spill]] }
 0x509   :  { %v10347_v43 = vpop.f32.mrf.mxu1 }
 0x50a   :  { %v14781_v6 = vmax.f32 %v16500_v61, %v4310_v10  ;;  %v10348_v41 = vadd.f32 %v10347_v43, %v10346_v25  ;;  %v14831_v10 = vld [vmem:[%s11594_s3] ss:$0 sm:$0xff]  ;;  %s16515_s3 = sld [smem:[#allocation16_spill]] }
 0x50b   :  { %v10349_v35 = vpop.f32.mrf.mxu1 }
 0x50c   :  { %v4315_v53 = vadd.f32 %v10348_v41, %v10268_v58  ;;  %10808 = vmatmul.mubr.msk.f32.gmra.mxu0 %vm4365_vm2, %v14781_v6 }
 0x50d   :  { %v10350_v26 = vpop.f32.mrf.mxu1 }
 0x50e   :  { %v14788_v31 = vmax.f32 %v16501_v16, %v4315_v53  ;;  %v10351_v11 = vadd.f32 %v10350_v26, %v10349_v35 }
 0x50f   :  { %v10352_v22 = vpop.f32.mrf.mxu1 }
 0x510   :  { %v4320_v63 = vadd.f32 %v10351_v11, %v10271_v8  ;;  %10810 = vmatprep.mubr.msk.f32.mxu0 %vm4365_vm2, %v14788_v31 }
 0x511   :  { %v10353_v14 = vpop.f32.mrf.mxu1 }
 0x512   :  { %v14795_v37 = vmax.f32 %v16502_v36, %v4320_v63  ;;  %v10354_v34 = vadd.f32 %v10353_v14, %v10352_v22 }
 0x513   :  { %v10355_v1 = vpop.f32.mrf.mxu1 }
 0x514   :  { %v4325_v40 = vadd.f32 %v10354_v34, %v10274_v4  ;;  %10811 = vmatmul.mubr.msk.f32.gmra.mxu0 %vm4365_vm2, %v14795_v37 }
 0x515   :  { %v10356_v13 = vpop.f32.mrf.mxu1 }
 0x516   :  { %v14802_v9 = vmax.f32 %v16503_v51, %v4325_v40  ;;  %v10357_v3 = vadd.f32 %v10356_v13, %v10355_v1 }
 0x518   :  { %v4330_v59 = vadd.f32 %v10357_v3, %v10277_v33  ;;  %10813 = vmatprep.mubr.msk.f32.mxu0 %vm4365_vm2, %v14802_v9 }
 0x51a   :  { %v14809_v7 = vmax.f32 %v16504_v23, %v4330_v59 }
 0x51c   :  { %10814 = vmatmul.mubr.msk.f32.gmra.mxu0 %vm4365_vm2, %v14809_v7 }
 0x51d   :  { %10886 = vmatprep.mubr.f32.mxu0 %v8744_v19 }
 0x5a4   :  { %v14815_v12 = vpop.f32.mrf.mxu0 }
 0x5a6   :  { %v14817_v46 = vpop.f32.mrf.mxu0 }
 0x5ac   :  { %v14819_v52 = vpop.f32.mrf.mxu0 }
 0x5ae   :  { %v14821_v15 = vpop.f32.mrf.mxu0 }
 0x5b4   :  { %v10800_v50 = vpop.f32.mrf.mxu0 }
 0x5b5   :  { %v4570_v33 = vmul.f32 %v10800_v50, %v14826_v29  ;;  %v4568_v50 = vmul.f32 %v14819_v52, %v14826_v29  ;;  %v4566_v52 = vmul.f32 %v14815_v12, %v14826_v29 }
 0x5b6   :  { %v14823_v49 = vpop.f32.mrf.mxu0 }
 0x5b7   :  { %v4569_v23 = vmul.f32 %v14826_v29, %v14823_v49  ;;  %v4567_v49 = vmul.f32 %v14826_v29, %v14821_v15  ;;  %v4565_v15 = vmul.f32 %v14826_v29, %v14817_v46  ;;  %v4588_v12 = vadd.f32 %v14831_v10, %v4566_v52  ;;  %v8769_v52 = vld [vmem:[%s11629_s12 + $0xe8] sm:$0xff] }
 0x5b9   :  { %v4587_v46 = vadd.f32 %v14831_v10, %v4565_v15  ;;  %v8767_v15 = vld [vmem:[%s11629_s12 + $0xd8] sm:$0xff] }
 0x5bc   :  { %v10803_v55 = vpop.f32.mrf.mxu0 }
 0x5bd   :  { %v4572_v34 = vmul.f32 %v10803_v55, %v14826_v29  ;;  %v4592_v55 = vadd.f32 %v14831_v10, %v4570_v33  ;;  %v8758_v33 = vld [vmem:[%s11629_s12 + $0x90] sm:$0xff] }
 0x5be   :  { %v4510_v27 = vpop.f32.mrf.mxu0 }
 0x5bf   :  { %v4571_v40 = vmul.f32 %v14826_v29, %v4510_v27  ;;  %v4594_v3 = vadd.f32 %v14831_v10, %v4572_v34  ;;  %v8756_v34 = vld [vmem:[%s11629_s12 + $0x80] sm:$0xff] }
 0x5c1   :  { %v4593_v0 = vadd.f32 %v14831_v10, %v4571_v40  ;;  %v14901_v27 = vmax.f32 %v4594_v3, 0.0  ;;  %v8760_v40 = vld [vmem:[%s11629_s12 + $0xa0] sm:$0xff]  ;;  %v8759_v3 = vld [vmem:[%s11629_s12 + $0x98] sm:$0xff] }
 0x5c4   :  { %v10806_v17 = vpop.f32.mrf.mxu0 }
 0x5c5   :  { %v4574_v22 = vmul.f32 %v10806_v17, %v14826_v29  ;;  %v4591_v17 = vadd.f32 %v14831_v10, %v4569_v23  ;;  %v8762_v23 = vld [vmem:[%s11629_s12 + $0xb0] sm:$0xff] }
 0x5c6   :  { %v4520_v62 = vpop.f32.mrf.mxu0 }
 0x5c7   :  { %v4573_v14 = vmul.f32 %v14826_v29, %v4520_v62  ;;  %v4596_v5 = vadd.f32 %v14831_v10, %v4574_v22  ;;  %v14910_v62 = vmax.f32 %v4593_v0, 0.0  ;;  %v8750_v22 = vld [vmem:[%s11629_s12 + $0x50] sm:$0xff]  ;;  %v8763_v0 = vld [vmem:[%s11629_s12 + $0xb8] sm:$0xff] }
 0x5c9   :  { %v4595_v13 = vadd.f32 %v14831_v10, %v4573_v14  ;;  %v14883_v59 = vmax.f32 %v4596_v5, 0.0  ;;  %v8754_v14 = vld [vmem:[%s11629_s12 + $0x70] sm:$0xff]  ;;  %v8757_v5 = vld [vmem:[%s11629_s12 + $0x88] sm:$0xff] }
 0x5cb   :  { %v14892_v19 = vmax.f32 %v4595_v13, 0.0  ;;  %v8761_v13 = vld [vmem:[%s11629_s12 + $0xa8] sm:$0xff] }
 0x5cc   :  { %v10809_v42 = vpop.f32.mrf.mxu0 }
 0x5cd   :  { %v4576_v35 = vmul.f32 %v10809_v42, %v14826_v29  ;;  %v4590_v42 = vadd.f32 %v14831_v10, %v4568_v50  ;;  %v8764_v50 = vld [vmem:[%s11629_s12 + $0xc0] sm:$0xff] }
 0x5ce   :  { %v4530_v54 = vpop.f32.mrf.mxu0 }
 0x5cf   :  { %v4575_v16 = vmul.f32 %v14826_v29, %v4530_v54  ;;  %v4598_v24 = vadd.f32 %v14831_v10, %v4576_v35  ;;  %v14919_v54 = vmax.f32 %v4592_v55, 0.0  ;;  %v8747_v35 = vld [vmem:[%s11629_s12 + $0x38] sm:$0xff]  ;;  %v8765_v55 = vld [vmem:[%s11629_s12 + $0xc8] sm:$0xff] }
 0x5d1   :  { %v4597_v36 = vadd.f32 %v14831_v10, %v4575_v16  ;;  %v14867_v1 = vmax.f32 %v4598_v24, 0.0  ;;  %v8752_v16 = vld [vmem:[%s11629_s12 + $0x60] sm:$0xff]  ;;  %v8751_v24 = vld [vmem:[%s11629_s12 + $0x58] sm:$0xff] }
 0x5d3   :  { %v14875_v51 = vmax.f32 %v4597_v36, 0.0  ;;  %v8755_v36 = vld [vmem:[%s11629_s12 + $0x78] sm:$0xff] }
 0x5d4   :  { %v10812_v48 = vpop.f32.mrf.mxu0 }
 0x5d5   :  { %v4578_v25 = vmul.f32 %v10812_v48, %v14826_v29  ;;  %v4589_v48 = vadd.f32 %v14831_v10, %v4567_v49  ;;  %v8768_v49 = vld [vmem:[%s11629_s12 + $0xe0] sm:$0xff] }
 0x5d6   :  { %v4540_v47 = vpop.f32.mrf.mxu0 }
 0x5d7   :  { %v4577_v61 = vmul.f32 %v14826_v29, %v4540_v47  ;;  %v4600_v2 = vadd.f32 %v14831_v10, %v4578_v25  ;;  %v14928_v47 = vmax.f32 %v4591_v17, 0.0  ;;  %v14948_v25 = vmax.f32 %v4588_v12, 0.0  ;;  %v4358_v17 = vld [vmem:[%s11614_s24] sm:$0x3f]  ;;  %v8771_v12 = vld [vmem:[%s11629_s12 + $0xf8] sm:$0xff]  ;;  %s16522_s24 = sld [smem:[#allocation21_spill]] }
 0x5d9   :  { %v4599_v8 = vadd.f32 %v14831_v10, %v4577_v61  ;;  %v14851_v63 = vmax.f32 %v4600_v2, 0.0  ;;  %v4621_v61 = vld [vmem:[%s11629_s12 + $0x10] sm:$0xff]  ;;  %v8748_v2 = vld [vmem:[%s11629_s12 + $0x40] sm:$0xff] }
 0x5db   :  { %v14859_v4 = vmax.f32 %v4599_v8, 0.0  ;;  %v8753_v8 = vld [vmem:[%s11629_s12 + $0x68] sm:$0xff] }
 0x5dc   :  { %v10815_v28 = vpop.f32.mrf.mxu0 }
 0x5dd   :  { %v4580_v20 = vmul.f32 %v10815_v28, %v14826_v29  ;;  %v14935_v28 = vmax.f32 %v4590_v42, 0.0  ;;  %v8766_v42 = vld [vmem:[%s11629_s12 + $0xd0] sm:$0xff] }
 0x5de   :  { %v4550_v43 = vpop.f32.mrf.mxu0 }
 0x5df   :  { %v4602_v58 = vadd.f32 %v14831_v10, %v4580_v20  ;;  %v4579_v41 = vmul.f32 %v14826_v29, %v4550_v43  ;;  %v14942_v29 = vmax.f32 %v4589_v48, 0.0  ;;  %v14954_v20 = vmax.f32 %v4587_v46, 0.0  ;;  %v8745_v43 = vld [vmem:[%s11629_s12 + $0x28] sm:$0xff]  ;;  %v8770_v48 = vld [vmem:[%s11629_s12 + $0xf0] sm:$0xff]  ;;  %v8772_v46 = vld [vmem:[%s11629_s12 + $0x100] sm:$0xff] }
 0x5e1   :  { %v14838_v53 = vmax.f32 %v4602_v58, 0.0  ;;  %v4601_v26 = vadd.f32 %v14831_v10, %v4579_v41  ;;  %v4620_v10 = vld [vmem:[%s11629_s12 + $0x8] sm:$0xff]  ;;  %v4622_v58 = vld [vmem:[%s11629_s12 + $0x18] sm:$0xff]  ;;  %v8746_v41 = vld [vmem:[%s11629_s12 + $0x30] sm:$0xff] }
 0x5e3   :  { %v14843_v11 = vmax.f32 %v4601_v26, 0.0  ;;  %10816 = vmatprep.subr.mxu1 %v14838_v53  ;;  %10854 = vmatprep.subr.mxu0 %v14838_v53  ;;  %v8749_v26 = vld [vmem:[%s11629_s12 + $0x48] sm:$0xff] }
 0x5e4   :  { %10817 = vmatpush3.msra.mxu1 %v14838_v53  ;;  %10855 = vmatpush3.msra.mxu0 %v14838_v53 }
 0x5e5   :  { %10818 = vmatprep.subr.mxu1 %v14843_v11  ;;  %10856 = vmatprep.subr.mxu0 %v14843_v11 }
 0x5e6   :  { %10819 = vmatpush3.msra.mxu1 %v14843_v11  ;;  %10857 = vmatpush3.msra.mxu0 %v14843_v11 }
 0x5e7   :  { %10820 = vmatprep.subr.mxu1 %v14851_v63  ;;  %10858 = vmatprep.subr.mxu0 %v14851_v63 }
 0x5e8   :  { %10821 = vmatpush3.msra.mxu1 %v14851_v63  ;;  %10859 = vmatpush3.msra.mxu0 %v14851_v63 }
 0x5e9   :  { %10822 = vmatprep.subr.mxu1 %v14859_v4  ;;  %10860 = vmatprep.subr.mxu0 %v14859_v4 }
 0x5ea   :  { %10823 = vmatpush3.msra.mxu1 %v14859_v4  ;;  %10861 = vmatpush3.msra.mxu0 %v14859_v4 }
 0x5eb   :  { %10824 = vmatprep.subr.mxu1 %v14867_v1  ;;  %10862 = vmatprep.subr.mxu0 %v14867_v1 }
 0x5ec   :  { %10825 = vmatpush3.msra.mxu1 %v14867_v1  ;;  %10863 = vmatpush3.msra.mxu0 %v14867_v1 }
 0x5ed   :  { %10826 = vmatprep.subr.mxu1 %v14875_v51  ;;  %10864 = vmatprep.subr.mxu0 %v14875_v51 }
 0x5ee   :  { %10827 = vmatpush3.msra.mxu1 %v14875_v51  ;;  %10865 = vmatpush3.msra.mxu0 %v14875_v51 }
 0x5ef   :  { %10828 = vmatprep.subr.mxu1 %v14883_v59  ;;  %10866 = vmatprep.subr.mxu0 %v14883_v59 }
 0x5f0   :  { %10829 = vmatpush3.msra.mxu1 %v14883_v59  ;;  %10867 = vmatpush3.msra.mxu0 %v14883_v59 }
 0x5f1   :  { %10830 = vmatprep.subr.mxu1 %v14892_v19  ;;  %10868 = vmatprep.subr.mxu0 %v14892_v19 }
 0x5f2   :  { %10831 = vmatpush3.msra.mxu1 %v14892_v19  ;;  %10869 = vmatpush3.msra.mxu0 %v14892_v19 }
 0x5f3   :  { %10832 = vmatprep.subr.mxu1 %v14901_v27  ;;  %10870 = vmatprep.subr.mxu0 %v14901_v27 }
 0x5f4   :  { %10833 = vmatpush3.msra.mxu1 %v14901_v27  ;;  %10871 = vmatpush3.msra.mxu0 %v14901_v27 }
 0x5f5   :  { %10834 = vmatprep.subr.mxu1 %v14910_v62  ;;  %10872 = vmatprep.subr.mxu0 %v14910_v62 }
 0x5f6   :  { %10835 = vmatpush3.msra.mxu1 %v14910_v62  ;;  %10873 = vmatpush3.msra.mxu0 %v14910_v62 }
 0x5f7   :  { %10836 = vmatprep.subr.mxu1 %v14919_v54  ;;  %10874 = vmatprep.subr.mxu0 %v14919_v54 }
 0x5f8   :  { %10837 = vmatpush3.msra.mxu1 %v14919_v54  ;;  %10875 = vmatpush3.msra.mxu0 %v14919_v54 }
 0x5f9   :  { %10838 = vmatprep.subr.mxu1 %v14928_v47  ;;  %10876 = vmatprep.subr.mxu0 %v14928_v47 }
 0x5fa   :  { %10839 = vmatpush3.msra.mxu1 %v14928_v47  ;;  %10877 = vmatpush3.msra.mxu0 %v14928_v47 }
 0x5fb   :  { %10840 = vmatprep.subr.mxu1 %v14935_v28  ;;  %10878 = vmatprep.subr.mxu0 %v14935_v28 }
 0x5fc   :  { %10841 = vmatpush3.msra.mxu1 %v14935_v28  ;;  %10879 = vmatpush3.msra.mxu0 %v14935_v28 }
 0x5fd   :  { %10842 = vmatprep.subr.mxu1 %v14942_v29  ;;  %10880 = vmatprep.subr.mxu0 %v14942_v29 }
 0x5fe   :  { %10843 = vmatpush3.msra.mxu1 %v14942_v29  ;;  %10881 = vmatpush3.msra.mxu0 %v14942_v29 }
 0x5ff   :  { %10844 = vmatprep.subr.mxu1 %v14948_v25  ;;  %10882 = vmatprep.subr.mxu0 %v14948_v25 }
 0x600   :  { %10845 = vmatpush3.msra.mxu1 %v14948_v25  ;;  %10883 = vmatpush3.msra.mxu0 %v14948_v25 }
 0x601   :  { %10846 = vmatprep.subr.mxu1 %v14954_v20  ;;  %10884 = vmatprep.subr.mxu0 %v14954_v20 }
 0x602   :  { %10847 = vmatpush3.msra.mxu1 %v14954_v20  ;;  %10885 = vmatpush3.msra.mxu0 %v14954_v20 }
 0x603   :  { %10892 = vmatprep.subr.mxu1 %v14838_v53  ;;  %10930 = vmatprep.subr.mxu0 %v14838_v53 }
 0x604   :  { %10849 = vmatmul.mubr.f32.vlgmr.msra.gmra.mxu1 %v4620_v10  ;;  %10887 = vmatmul.mubr.f32.vlgmr.msra.gmra.mxu0 %v8745_v43 }
 0x605   :  { %10893 = vmatpush3.msra.mxu1 %v14838_v53  ;;  %10931 = vmatpush3.msra.mxu0 %v14838_v53 }
 0x606   :  { %10894 = vmatprep.subr.mxu1 %v14843_v11  ;;  %10932 = vmatprep.subr.mxu0 %v14843_v11 }
 0x607   :  { %10895 = vmatpush3.msra.mxu1 %v14843_v11  ;;  %10933 = vmatpush3.msra.mxu0 %v14843_v11 }
 0x608   :  { %10896 = vmatprep.subr.mxu1 %v14851_v63  ;;  %10934 = vmatprep.subr.mxu0 %v14851_v63 }
 0x609   :  { %10897 = vmatpush3.msra.mxu1 %v14851_v63  ;;  %10935 = vmatpush3.msra.mxu0 %v14851_v63 }
 0x60a   :  { %10898 = vmatprep.subr.mxu1 %v14859_v4  ;;  %10936 = vmatprep.subr.mxu0 %v14859_v4 }
 0x60b   :  { %10899 = vmatpush3.msra.mxu1 %v14859_v4  ;;  %10937 = vmatpush3.msra.mxu0 %v14859_v4 }
 0x60c   :  { %10900 = vmatprep.subr.mxu1 %v14867_v1  ;;  %10938 = vmatprep.subr.mxu0 %v14867_v1 }
 0x60d   :  { %10901 = vmatpush3.msra.mxu1 %v14867_v1  ;;  %10939 = vmatpush3.msra.mxu0 %v14867_v1 }
 0x60e   :  { %10902 = vmatprep.subr.mxu1 %v14875_v51  ;;  %10940 = vmatprep.subr.mxu0 %v14875_v51 }
 0x60f   :  { %10903 = vmatpush3.msra.mxu1 %v14875_v51  ;;  %10941 = vmatpush3.msra.mxu0 %v14875_v51 }
 0x610   :  { %10904 = vmatprep.subr.mxu1 %v14883_v59  ;;  %10942 = vmatprep.subr.mxu0 %v14883_v59 }
 0x611   :  { %10905 = vmatpush3.msra.mxu1 %v14883_v59  ;;  %10943 = vmatpush3.msra.mxu0 %v14883_v59 }
 0x612   :  { %10906 = vmatprep.subr.mxu1 %v14892_v19  ;;  %10944 = vmatprep.subr.mxu0 %v14892_v19 }
 0x613   :  { %10907 = vmatpush3.msra.mxu1 %v14892_v19  ;;  %10945 = vmatpush3.msra.mxu0 %v14892_v19 }
 0x614   :  { %10908 = vmatprep.subr.mxu1 %v14901_v27  ;;  %10946 = vmatprep.subr.mxu0 %v14901_v27 }
 0x615   :  { %10909 = vmatpush3.msra.mxu1 %v14901_v27  ;;  %10947 = vmatpush3.msra.mxu0 %v14901_v27 }
 0x616   :  { %10910 = vmatprep.subr.mxu1 %v14910_v62  ;;  %10948 = vmatprep.subr.mxu0 %v14910_v62 }
 0x617   :  { %10911 = vmatpush3.msra.mxu1 %v14910_v62  ;;  %10949 = vmatpush3.msra.mxu0 %v14910_v62 }
 0x618   :  { %10912 = vmatprep.subr.mxu1 %v14919_v54  ;;  %10950 = vmatprep.subr.mxu0 %v14919_v54 }
 0x619   :  { %10913 = vmatpush3.msra.mxu1 %v14919_v54  ;;  %10951 = vmatpush3.msra.mxu0 %v14919_v54 }
 0x61a   :  { %10914 = vmatprep.subr.mxu1 %v14928_v47  ;;  %10952 = vmatprep.subr.mxu0 %v14928_v47 }
 0x61b   :  { %10915 = vmatpush3.msra.mxu1 %v14928_v47  ;;  %10953 = vmatpush3.msra.mxu0 %v14928_v47 }
 0x61c   :  { %10916 = vmatprep.subr.mxu1 %v14935_v28  ;;  %10954 = vmatprep.subr.mxu0 %v14935_v28 }
 0x61d   :  { %10917 = vmatpush3.msra.mxu1 %v14935_v28  ;;  %10955 = vmatpush3.msra.mxu0 %v14935_v28 }
 0x61e   :  { %10918 = vmatprep.subr.mxu1 %v14942_v29  ;;  %10956 = vmatprep.subr.mxu0 %v14942_v29 }
 0x61f   :  { %10851 = vmatprep.mubr.f32.mxu1 %v4621_v61  ;;  %10919 = vmatpush3.msra.mxu1 %v14942_v29 }
 0x620   :  { %10957 = vmatpush3.msra.mxu0 %v14942_v29  ;;  %10852 = vmatmul.mubr.f32.gmra.mxu1 %v4622_v58 }
 0x621   :  { %10889 = vmatprep.mubr.f32.mxu0 %v8746_v41  ;;  %10920 = vmatprep.subr.mxu1 %v14948_v25 }
 0x622   :  { %10958 = vmatprep.subr.mxu0 %v14948_v25  ;;  %10890 = vmatmul.mubr.f32.gmra.mxu0 %v8747_v35 }
 0x623   :  { %10921 = vmatpush3.msra.mxu1 %v14948_v25  ;;  %10959 = vmatpush3.msra.mxu0 %v14948_v25 }
 0x624   :  { %10922 = vmatprep.subr.mxu1 %v14954_v20  ;;  %10960 = vmatprep.subr.mxu0 %v14954_v20 }
 0x625   :  { %10923 = vmatpush3.msra.mxu1 %v14954_v20  ;;  %10924 = vmatprep.mubr.f32.mxu1 %v8748_v2 }
 0x626   :  { %10961 = vmatpush3.msra.mxu0 %v14954_v20  ;;  %10925 = vmatmul.mubr.f32.vlgmr.msra.gmra.mxu1 %v8749_v26  ;;  %v15233_v26 = vld [vmem:[%s11599_s8] sm:$0xff] }
 0x627   :  { %10962 = vmatprep.mubr.f32.mxu0 %v8752_v16  ;;  %10968 = vmatprep.subr.mxu1 %v14838_v53 }
 0x628   :  { %11006 = vmatprep.subr.mxu0 %v14838_v53  ;;  %10963 = vmatmul.mubr.f32.vlgmr.msra.gmra.mxu0 %v8753_v8 }
 0x629   :  { %10969 = vmatpush3.msra.mxu1 %v14838_v53  ;;  %11007 = vmatpush3.msra.mxu0 %v14838_v53 }
 0x62a   :  { %10970 = vmatprep.subr.mxu1 %v14843_v11  ;;  %11008 = vmatprep.subr.mxu0 %v14843_v11 }
 0x62b   :  { %10971 = vmatpush3.msra.mxu1 %v14843_v11  ;;  %11009 = vmatpush3.msra.mxu0 %v14843_v11 }
 0x62c   :  { %10972 = vmatprep.subr.mxu1 %v14851_v63  ;;  %11010 = vmatprep.subr.mxu0 %v14851_v63 }
 0x62d   :  { %10973 = vmatpush3.msra.mxu1 %v14851_v63  ;;  %11011 = vmatpush3.msra.mxu0 %v14851_v63 }
 0x62e   :  { %10974 = vmatprep.subr.mxu1 %v14859_v4  ;;  %11012 = vmatprep.subr.mxu0 %v14859_v4 }
 0x62f   :  { %10975 = vmatpush3.msra.mxu1 %v14859_v4  ;;  %11013 = vmatpush3.msra.mxu0 %v14859_v4 }
 0x630   :  { %10976 = vmatprep.subr.mxu1 %v14867_v1  ;;  %11014 = vmatprep.subr.mxu0 %v14867_v1 }
 0x631   :  { %10977 = vmatpush3.msra.mxu1 %v14867_v1  ;;  %11015 = vmatpush3.msra.mxu0 %v14867_v1 }
 0x632   :  { %10978 = vmatprep.subr.mxu1 %v14875_v51  ;;  %11016 = vmatprep.subr.mxu0 %v14875_v51 }
 0x633   :  { %10979 = vmatpush3.msra.mxu1 %v14875_v51  ;;  %11017 = vmatpush3.msra.mxu0 %v14875_v51 }
 0x634   :  { %10980 = vmatprep.subr.mxu1 %v14883_v59  ;;  %11018 = vmatprep.subr.mxu0 %v14883_v59 }
 0x635   :  { %10981 = vmatpush3.msra.mxu1 %v14883_v59  ;;  %11019 = vmatpush3.msra.mxu0 %v14883_v59 }
 0x636   :  { %10982 = vmatprep.subr.mxu1 %v14892_v19  ;;  %11020 = vmatprep.subr.mxu0 %v14892_v19 }
 0x637   :  { %10983 = vmatpush3.msra.mxu1 %v14892_v19  ;;  %11021 = vmatpush3.msra.mxu0 %v14892_v19 }
 0x638   :  { %10984 = vmatprep.subr.mxu1 %v14901_v27  ;;  %11022 = vmatprep.subr.mxu0 %v14901_v27 }
 0x639   :  { %10985 = vmatpush3.msra.mxu1 %v14901_v27  ;;  %11023 = vmatpush3.msra.mxu0 %v14901_v27 }
 0x63a   :  { %10986 = vmatprep.subr.mxu1 %v14910_v62  ;;  %11024 = vmatprep.subr.mxu0 %v14910_v62 }
 0x63b   :  { %10987 = vmatpush3.msra.mxu1 %v14910_v62  ;;  %11025 = vmatpush3.msra.mxu0 %v14910_v62 }
 0x63c   :  { %10988 = vmatprep.subr.mxu1 %v14919_v54  ;;  %11026 = vmatprep.subr.mxu0 %v14919_v54 }
 0x63d   :  { %10989 = vmatpush3.msra.mxu1 %v14919_v54  ;;  %11027 = vmatpush3.msra.mxu0 %v14919_v54 }
 0x63e   :  { %10990 = vmatprep.subr.mxu1 %v14928_v47  ;;  %11028 = vmatprep.subr.mxu0 %v14928_v47 }
 0x63f   :  { %10991 = vmatpush3.msra.mxu1 %v14928_v47  ;;  %11029 = vmatpush3.msra.mxu0 %v14928_v47 }
 0x640   :  { %10992 = vmatprep.subr.mxu1 %v14935_v28  ;;  %11030 = vmatprep.subr.mxu0 %v14935_v28 }
 0x641   :  { %10927 = vmatprep.mubr.f32.mxu1 %v8750_v22  ;;  %10993 = vmatpush3.msra.mxu1 %v14935_v28 }
 0x642   :  { %11031 = vmatpush3.msra.mxu0 %v14935_v28  ;;  %10928 = vmatmul.mubr.f32.gmra.mxu1 %v8751_v24 }
 0x643   :  { %10994 = vmatprep.subr.mxu1 %v14942_v29  ;;  %11032 = vmatprep.subr.mxu0 %v14942_v29 }
 0x644   :  { %10965 = vmatprep.mubr.f32.mxu0 %v8754_v14  ;;  %10995 = vmatpush3.msra.mxu1 %v14942_v29 }
 0x645   :  { %11033 = vmatpush3.msra.mxu0 %v14942_v29  ;;  %10996 = vmatprep.subr.mxu1 %v14948_v25 }
 0x646   :  { %10966 = vmatmul.mubr.f32.gmra.mxu0 %v8755_v36  ;;  %11034 = vmatprep.subr.mxu0 %v14948_v25 }
 0x647   :  { %10997 = vmatpush3.msra.mxu1 %v14948_v25  ;;  %11035 = vmatpush3.msra.mxu0 %v14948_v25 }
 0x648   :  { %10998 = vmatprep.subr.mxu1 %v14954_v20  ;;  %11036 = vmatprep.subr.mxu0 %v14954_v20 }
 0x649   :  { %10999 = vmatpush3.msra.mxu1 %v14954_v20  ;;  %11000 = vmatprep.mubr.f32.mxu1 %v8756_v34 }
 0x64a   :  { %11037 = vmatpush3.msra.mxu0 %v14954_v20  ;;  %11001 = vmatmul.mubr.f32.vlgmr.msra.gmra.mxu1 %v8757_v5 }
 0x64b   :  { %11038 = vmatprep.mubr.f32.mxu0 %v8760_v40  ;;  %11044 = vmatprep.subr.mxu1 %v14838_v53 }
 0x64c   :  { %11082 = vmatprep.subr.mxu0 %v14838_v53  ;;  %11039 = vmatmul.mubr.f32.vlgmr.msra.gmra.mxu0 %v8761_v13 }
 0x64d   :  { %11045 = vmatpush3.msra.mxu1 %v14838_v53  ;;  %11083 = vmatpush3.msra.mxu0 %v14838_v53 }
 0x64e   :  { %11046 = vmatprep.subr.mxu1 %v14843_v11  ;;  %11084 = vmatprep.subr.mxu0 %v14843_v11 }
 0x64f   :  { %11003 = vmatprep.mubr.f32.mxu1 %v8758_v33  ;;  %11047 = vmatpush3.msra.mxu1 %v14843_v11 }
 0x650   :  { %11085 = vmatpush3.msra.mxu0 %v14843_v11  ;;  %11004 = vmatmul.mubr.f32.gmra.mxu1 %v8759_v3 }
 0x651   :  { %11048 = vmatprep.subr.mxu1 %v14851_v63  ;;  %11086 = vmatprep.subr.mxu0 %v14851_v63 }
 0x652   :  { %11041 = vmatprep.mubr.f32.mxu0 %v8762_v23  ;;  %11049 = vmatpush3.msra.mxu1 %v14851_v63 }
 0x653   :  { %11087 = vmatpush3.msra.mxu0 %v14851_v63  ;;  %11050 = vmatprep.subr.mxu1 %v14859_v4 }
 0x654   :  { %11042 = vmatmul.mubr.f32.gmra.mxu0 %v8763_v0  ;;  %11088 = vmatprep.subr.mxu0 %v14859_v4 }
 0x655   :  { %11051 = vmatpush3.msra.mxu1 %v14859_v4  ;;  %11089 = vmatpush3.msra.mxu0 %v14859_v4 }
 0x656   :  { %11052 = vmatprep.subr.mxu1 %v14867_v1  ;;  %11090 = vmatprep.subr.mxu0 %v14867_v1 }
 0x657   :  { %11053 = vmatpush3.msra.mxu1 %v14867_v1  ;;  %11091 = vmatpush3.msra.mxu0 %v14867_v1 }
 0x658   :  { %11054 = vmatprep.subr.mxu1 %v14875_v51  ;;  %11092 = vmatprep.subr.mxu0 %v14875_v51 }
 0x659   :  { %11055 = vmatpush3.msra.mxu1 %v14875_v51  ;;  %11093 = vmatpush3.msra.mxu0 %v14875_v51 }
 0x65a   :  { %11056 = vmatprep.subr.mxu1 %v14883_v59  ;;  %11094 = vmatprep.subr.mxu0 %v14883_v59 }
 0x65b   :  { %11057 = vmatpush3.msra.mxu1 %v14883_v59  ;;  %11095 = vmatpush3.msra.mxu0 %v14883_v59 }
 0x65c   :  { %11058 = vmatprep.subr.mxu1 %v14892_v19  ;;  %11096 = vmatprep.subr.mxu0 %v14892_v19 }
 0x65d   :  { %11059 = vmatpush3.msra.mxu1 %v14892_v19  ;;  %11097 = vmatpush3.msra.mxu0 %v14892_v19 }
 0x65e   :  { %11060 = vmatprep.subr.mxu1 %v14901_v27  ;;  %11098 = vmatprep.subr.mxu0 %v14901_v27 }
 0x65f   :  { %11061 = vmatpush3.msra.mxu1 %v14901_v27  ;;  %11099 = vmatpush3.msra.mxu0 %v14901_v27 }
 0x660   :  { %11062 = vmatprep.subr.mxu1 %v14910_v62  ;;  %11100 = vmatprep.subr.mxu0 %v14910_v62 }
 0x661   :  { %11063 = vmatpush3.msra.mxu1 %v14910_v62  ;;  %11101 = vmatpush3.msra.mxu0 %v14910_v62 }
 0x662   :  { %11064 = vmatprep.subr.mxu1 %v14919_v54  ;;  %11102 = vmatprep.subr.mxu0 %v14919_v54 }
 0x663   :  { %11065 = vmatpush3.msra.mxu1 %v14919_v54  ;;  %11103 = vmatpush3.msra.mxu0 %v14919_v54 }
 0x664   :  { %11066 = vmatprep.subr.mxu1 %v14928_v47  ;;  %11104 = vmatprep.subr.mxu0 %v14928_v47 }
 0x665   :  { %11067 = vmatpush3.msra.mxu1 %v14928_v47  ;;  %11105 = vmatpush3.msra.mxu0 %v14928_v47 }
 0x666   :  { %11068 = vmatprep.subr.mxu1 %v14935_v28  ;;  %11106 = vmatprep.subr.mxu0 %v14935_v28 }
 0x667   :  { %11069 = vmatpush3.msra.mxu1 %v14935_v28  ;;  %11107 = vmatpush3.msra.mxu0 %v14935_v28 }
 0x668   :  { %11070 = vmatprep.subr.mxu1 %v14942_v29  ;;  %11108 = vmatprep.subr.mxu0 %v14942_v29 }
 0x669   :  { %11071 = vmatpush3.msra.mxu1 %v14942_v29  ;;  %11109 = vmatpush3.msra.mxu0 %v14942_v29 }
 0x66a   :  { %11072 = vmatprep.subr.mxu1 %v14948_v25  ;;  %11110 = vmatprep.subr.mxu0 %v14948_v25 }
 0x66b   :  { %11073 = vmatpush3.msra.mxu1 %v14948_v25  ;;  %11111 = vmatpush3.msra.mxu0 %v14948_v25 }
 0x66c   :  { %11074 = vmatprep.subr.mxu1 %v14954_v20  ;;  %11112 = vmatprep.subr.mxu0 %v14954_v20 }
 0x66d   :  { %11075 = vmatpush3.msra.mxu1 %v14954_v20  ;;  %11076 = vmatprep.mubr.f32.mxu1 %v8764_v50 }
 0x66e   :  { %11113 = vmatpush3.msra.mxu0 %v14954_v20  ;;  %11077 = vmatmul.mubr.f32.vlgmr.msra.gmra.mxu1 %v8765_v55 }
 0x66f   :  { %11114 = vmatprep.mubr.f32.mxu0 %v8768_v49  ;;  %11120 = vmatprep.subr.mxu1 %v14838_v53 }
 0x670   :  { %11158 = vmatprep.subr.msk.mxu0 %vm5569_vm3, %v4358_v17  ;;  %11115 = vmatmul.mubr.f32.vlgmr.msra.gmra.mxu0 %v8769_v52 }
 0x671   :  { %11121 = vmatpush3.msra.mxu1 %v14838_v53  ;;  %11159 = vmatpush3.msk.msra.mxu0 %vm5569_vm3, %v4358_v17  ;;  %v8773_v53 = vld [vmem:[%s11629_s12 + $0x108] sm:$0xff]  ;;  %vm7905_vm3 = vcmask 15360  }
 0x672   :  { %11122 = vmatprep.subr.mxu1 %v14843_v11  ;;  %11166 = vmatprep.subr.mxu0 %v14809_v7 }
 0x673   :  { %11079 = vmatprep.mubr.f32.mxu1 %v8766_v42  ;;  %11123 = vmatpush3.msra.mxu1 %v14843_v11  ;;  %v8774_v11 = vld [vmem:[%s11629_s12 + $0x110] sm:$0xff] }
 0x674   :  { %11080 = vmatmul.mubr.f32.gmra.mxu1 %v8767_v15  ;;  %11124 = vmatprep.subr.mxu1 %v14851_v63 }
 0x675   :  { %11117 = vmatprep.mubr.f32.mxu0 %v8770_v48  ;;  %11125 = vmatpush3.msra.mxu1 %v14851_v63  ;;  %v8775_v63 = vld [vmem:[%s11629_s12 + $0x118] sm:$0xff]  ;;  %s11547_s12 = smov 48  }
 0x676   :  { %11118 = vmatmul.mubr.f32.gmra.mxu0 %v8771_v12  ;;  %11126 = vmatprep.subr.mxu1 %v14859_v4 }
 0x677   :  { %11127 = vmatpush3.msra.mxu1 %v14859_v4  ;;  %11152 = vmatprep.mubr.f32.mxu1 %v8772_v46 }
 0x678   :  { %11128 = vmatprep.subr.mxu1 %v14867_v1 }
 0x679   :  { %11129 = vmatpush3.msra.mxu1 %v14867_v1 }
 0x67a   :  { %11130 = vmatprep.subr.mxu1 %v14875_v51 }
 0x67b   :  { %11131 = vmatpush3.msra.mxu1 %v14875_v51 }
 0x67c   :  { %11132 = vmatprep.subr.mxu1 %v14883_v59 }
 0x67d   :  { %11133 = vmatpush3.msra.mxu1 %v14883_v59 }
 0x67e   :  { %11134 = vmatprep.subr.mxu1 %v14892_v19 }
 0x67f   :  { %11135 = vmatpush3.msra.mxu1 %v14892_v19 }
 0x680   :  { %11136 = vmatprep.subr.mxu1 %v14901_v27 }
 0x681   :  { %11137 = vmatpush3.msra.mxu1 %v14901_v27 }
 0x682   :  { %11138 = vmatprep.subr.mxu1 %v14910_v62 }
 0x683   :  { %11139 = vmatpush3.msra.mxu1 %v14910_v62 }
 0x684   :  { %11140 = vmatprep.subr.mxu1 %v14919_v54 }
 0x685   :  { %11141 = vmatpush3.msra.mxu1 %v14919_v54 }
 0x686   :  { %11142 = vmatprep.subr.mxu1 %v14928_v47 }
 0x687   :  { %11143 = vmatpush3.msra.mxu1 %v14928_v47 }
 0x688   :  { %11144 = vmatprep.subr.mxu1 %v14935_v28 }
 0x689   :  { %11145 = vmatpush3.msra.mxu1 %v14935_v28 }
 0x68a   :  { %11146 = vmatprep.subr.mxu1 %v14942_v29 }
 0x68b   :  { %11147 = vmatpush3.msra.mxu1 %v14942_v29 }
 0x68c   :  { %11148 = vmatprep.subr.mxu1 %v14948_v25 }
 0x68d   :  { %11149 = vmatpush3.msra.mxu1 %v14948_v25  ;;  %v4708_v25 = vlaneseq }
 0x68e   :  { %11150 = vmatprep.subr.mxu1 %v14954_v20 }
 0x68f   :  { %11151 = vmatpush3.msra.mxu1 %v14954_v20  ;;  %v15224_v20 = vshrl.u32 %v4708_v25, 7 }
 0x690   :  { %11153 = vmatmul.mubr.f32.vlgmr.msra.gmra.mxu1 %v8773_v53 }
 0x691   :  { %11155 = vmatprep.mubr.f32.mxu1 %v8774_v11  ;;  %v15227_v35 = vsub.s32 0, %v15224_v20  ;;  %v15230_v2 = vsub.s32 1, %v15224_v20  ;;  %v15236_v8 = vsub.s32 2, %v15224_v20  ;;  %v15245_v5 = vsub.s32 3, %v15224_v20 }
 0x692   :  { %v15248_v40 = vsub.s32 4, %v15224_v20  ;;  %v15255_v53 = vsub.s32 5, %v15224_v20 }
 0x693   :  { %16505 = vst [vmem:[#allocation123_spill] sm:$0xff] %v15236_v8  ;;  %v4711_v14 = vrot.slane %v15233_v26, %v15227_v35  ;;  %v4809_v36 = vrot.slane %v15233_v26, %v15230_v2  ;;  %v4911_v34 = vrot.slane %v15233_v26, %v15236_v8  ;;  %16506 = vst [vmem:[#allocation111_spill] sm:$0xff] %v15245_v5 }
 0x694   :  { %11156 = vmatmul.mubr.f32.gmra.mxu1 %v8775_v63  ;;  %16507 = vst [vmem:[#allocation113_spill] sm:$0xff] %v15248_v40  ;;  %v5013_v49 = vrot.slane %v15233_v26, %v15245_v5  ;;  %v5115_v52 = vrot.slane %v15233_v26, %v15248_v40 }
 0x6c4   :  { %v10850_v4 = vpop.f32.mrf.mxu1  ;;  %v10888_v51 = vpop.f32.mrf.mxu0 }
 0x6c5   :  { %v4713_v3 = vmul.f32 %v10850_v4, %v4711_v14  ;;  %v4811_v23 = vmul.f32 %v10888_v51, %v4809_v36  ;;  %v15258_v51 = vsub.s32 6, %v15224_v20 }
 0x6c6   :  { %v4689_v1 = vpop.f32.mrf.mxu1  ;;  %v4787_v19 = vpop.f32.mrf.mxu0 }
 0x6c7   :  { %v4712_v0 = vmul.f32 %v4711_v14, %v4689_v1  ;;  %v4810_v50 = vmul.f32 %v4809_v36, %v4787_v19  ;;  %v4815_v48 = vadd.f32 %v4811_v23, %v4713_v3 }
 0x6c9   :  { %v4814_v11 = vadd.f32 %v4810_v50, %v4712_v0 }
 0x6e0   :  { %v10853_v59 = vpop.f32.mrf.mxu1 }
 0x6e1   :  { %v4715_v12 = vmul.f32 %v10853_v59, %v4711_v14 }
 0x6e2   :  { %v4699_v27 = vpop.f32.mrf.mxu1  ;;  %v10891_v62 = vpop.f32.mrf.mxu0 }
 0x6e3   :  { %v4813_v46 = vmul.f32 %v10891_v62, %v4809_v36  ;;  %v4714_v63 = vmul.f32 %v4711_v14, %v4699_v27  ;;  %v5217_v62 = vrot.slane %v15233_v26, %v15255_v53  ;;  %v5319_v27 = vrot.slane %v15233_v26, %v15258_v51 }
 0x6e4   :  { %v4797_v47 = vpop.f32.mrf.mxu0 }
 0x6e5   :  { %v4812_v4 = vmul.f32 %v4809_v36, %v4797_v47  ;;  %v4817_v3 = vadd.f32 %v4813_v46, %v4715_v12 }
 0x6e6   :  { %v10926_v54 = vpop.f32.mrf.mxu1 }
 0x6e7   :  { %v4913_v55 = vmul.f32 %v10926_v54, %v4911_v34  ;;  %v4816_v23 = vadd.f32 %v4812_v4, %v4714_v63 }
 0x6e8   :  { %v4889_v28 = vpop.f32.mrf.mxu1  ;;  %v10964_v29 = vpop.f32.mrf.mxu0 }
 0x6e9   :  { %v4912_v17 = vmul.f32 %v4911_v34, %v4889_v28  ;;  %v4917_v19 = vadd.f32 %v4913_v55, %v4815_v48  ;;  %v5015_v54 = vmul.f32 %v10964_v29, %v5013_v49 }
 0x6ea   :  { %v4991_v10 = vpop.f32.mrf.mxu0 }
 0x6eb   :  { %v4916_v25 = vadd.f32 %v4912_v17, %v4814_v11  ;;  %v5014_v40 = vmul.f32 %v5013_v49, %v4991_v10  ;;  %v5019_v36 = vadd.f32 %v5015_v54, %v4917_v19 }
 0x6ed   :  { %v5018_v10 = vadd.f32 %v5014_v40, %v4916_v25 }
 0x702   :  { %v10929_v43 = vpop.f32.mrf.mxu1 }
 0x703   :  { %v4915_v28 = vmul.f32 %v10929_v43, %v4911_v34  ;;  %v15265_v43 = vsub.s32 7, %v15224_v20 }
 0x704   :  { %v4899_v61 = vpop.f32.mrf.mxu1 }
 0x705   :  { %v4914_v5 = vmul.f32 %v4911_v34, %v4899_v61  ;;  %v4919_v50 = vadd.f32 %v4915_v28, %v4817_v3  ;;  %v5421_v19 = vrot.slane %v15233_v26, %v15265_v43 }
 0x706   :  { %v10967_v58 = vpop.f32.mrf.mxu0 }
 0x707   :  { %v5017_v29 = vmul.f32 %v10967_v58, %v5013_v49  ;;  %v4918_v61 = vadd.f32 %v4914_v5, %v4816_v23 }
 0x708   :  { %v5001_v16 = vpop.f32.mrf.mxu0 }
 0x709   :  { %v5016_v34 = vmul.f32 %v5013_v49, %v5001_v16  ;;  %v5021_v63 = vadd.f32 %v5017_v29, %v4919_v50 }
 0x70a   :  { %v11002_v41 = vpop.f32.mrf.mxu1 }
 0x70b   :  { %v5117_v59 = vmul.f32 %v11002_v41, %v5115_v52  ;;  %v5020_v58 = vadd.f32 %v5016_v34, %v4918_v61 }
 0x70c   :  { %v5093_v22 = vpop.f32.mrf.mxu1  ;;  %v11040_v24 = vpop.f32.mrf.mxu0 }
 0x70d   :  { %v5116_v0 = vmul.f32 %v5115_v52, %v5093_v22  ;;  %v5121_v41 = vadd.f32 %v5117_v59, %v5019_v36  ;;  %v5219_v55 = vmul.f32 %v11040_v24, %v5217_v62  ;;  %v8776_v59 = vld [vmem:[%s11599_s8 + $0x8] ss:$0 sm:$0xff]  ;;  %s16516_s8 = sld [smem:[#allocation13_spill]] }
 0x70e   :  { %v5195_v33 = vpop.f32.mrf.mxu0 }
 0x70f   :  { %v5120_v48 = vadd.f32 %v5116_v0, %v5018_v10  ;;  %v5218_v12 = vmul.f32 %v5217_v62, %v5195_v33  ;;  %v5223_v28 = vadd.f32 %v5219_v55, %v5121_v41 }
 0x710   :  { %v11005_v13 = vpop.f32.mrf.mxu1 }
 0x711   :  { %v5119_v17 = vmul.f32 %v11005_v13, %v5115_v52  ;;  %v5222_v16 = vadd.f32 %v5218_v12, %v5120_v48  ;;  %v8778_v12 = vld [vmem:[%s11609_s19] ss:$0 sm:$0xff]  ;;  %s16521_s19 = sld [smem:[#allocation15_spill]] }
 0x712   :  { %v5103_v42 = vpop.f32.mrf.mxu1 }
 0x713   :  { %v5118_v22 = vmul.f32 %v5115_v52, %v5103_v42  ;;  %v5123_v40 = vadd.f32 %v5119_v17, %v5021_v63 }
 0x714   :  { %v11043_v15 = vpop.f32.mrf.mxu0 }
 0x715   :  { %v5221_v5 = vmul.f32 %v11043_v15, %v5217_v62  ;;  %v5122_v49 = vadd.f32 %v5118_v22, %v5020_v58 }
 0x716   :  { %v5205_v8 = vpop.f32.mrf.mxu0 }
 0x717   :  { %v5220_v24 = vmul.f32 %v5217_v62, %v5205_v8  ;;  %v5225_v23 = vadd.f32 %v5221_v5, %v5123_v40  ;;  %v8777_v62 = vld [vmem:[%s11604_s14] ss:$0 sm:$0xff]  ;;  %s16520_s14 = sld [smem:[#allocation14_spill]] }
 0x719   :  { %v5224_v0 = vadd.f32 %v5220_v24, %v5122_v49 }
 0x72e   :  { %v11078_v1 = vpop.f32.mrf.mxu1 }
 0x72f   :  { %v5321_v4 = vmul.f32 %v11078_v1, %v5319_v27 }
 0x730   :  { %v5297_v47 = vpop.f32.mrf.mxu1  ;;  %v11116_v14 = vpop.f32.mrf.mxu0 }
 0x731   :  { %v5320_v54 = vmul.f32 %v5319_v27, %v5297_v47  ;;  %v5325_v33 = vadd.f32 %v5321_v4, %v5223_v28  ;;  %v5423_v52 = vmul.f32 %v11116_v14, %v5421_v19 }
 0x732   :  { %v5399_v11 = vpop.f32.mrf.mxu0 }
 0x733   :  { %v5324_v3 = vadd.f32 %v5320_v54, %v5222_v16  ;;  %v5422_v1 = vmul.f32 %v5421_v19, %v5399_v11  ;;  %v5427_v50 = vadd.f32 %v5423_v52, %v5325_v33 }
 0x734   :  { %v11081_v46 = vpop.f32.mrf.mxu1 }
 0x735   :  { %v5323_v42 = vmul.f32 %v11081_v46, %v5319_v27  ;;  %v5426_v8 = vadd.f32 %v5422_v1, %v5324_v3 }
 0x736   :  { %v5307_v13 = vpop.f32.mrf.mxu1  ;;  %v11119_v25 = vpop.f32.mrf.mxu0 }
 0x737   :  { %v5322_v26 = vmul.f32 %v5319_v27, %v5307_v13  ;;  %v5327_v15 = vadd.f32 %v5323_v42, %v5225_v23  ;;  %v5425_v29 = vmul.f32 %v11119_v25, %v5421_v19  ;;  %v4361_v42 = vld [vmem:[%s11634_s20] sm:$0xff] }
 0x738   :  { %v5409_v47 = vpop.f32.mrf.mxu0 }
 0x739   :  { %v5326_v34 = vadd.f32 %v5322_v26, %v5224_v0  ;;  %v5424_v41 = vmul.f32 %v5421_v19, %v5409_v47  ;;  %v5429_v48 = vadd.f32 %v5425_v29, %v5327_v15  ;;  %v5805_v0 = vld [vmem:[%s16510_s9 + $0x28] sm:$0xff]  ;;  %v5804_v47 = vld [vmem:[%s16510_s9 + $0x20] sm:$0xff] }
 0x73a   :  { %11204 = vmatprep.subr.mxu1 %v5805_v0  ;;  %v5801_v29 = vld [vmem:[%s16510_s9 + $0x8] sm:$0xff] }
 0x73b   :  { %v5428_v63 = vadd.f32 %v5424_v41, %v5326_v34  ;;  %11205 = vmatpush3.msra.mxu1 %v5805_v0 }
 0x73c   :  { %11206 = vmatprep.subr.mxu1 %v5804_v47 }
 0x73d   :  { %11207 = vmatpush3.msra.mxu1 %v5804_v47 }
 0x750   :  { %v11154_v36 = vpop.f32.mrf.mxu1 }
 0x751   :  { %v5525_v10 = vmul.f32 %v11154_v36, %v8776_v59  ;;  %v5803_v36 = vld [vmem:[%s16510_s9 + $0x18] sm:$0xff] }
 0x752   :  { %v5501_v61 = vpop.f32.mrf.mxu1  ;;  %11208 = vmatprep.subr.mxu1 %v5803_v36 }
 0x753   :  { %v5529_v14 = vadd.f32 %v5525_v10, %v5427_v50  ;;  %v5524_v55 = vmul.f32 %v8776_v59, %v5501_v61  ;;  %v5802_v50 = vld [vmem:[%s16510_s9 + $0x10] sm:$0xff]  ;;  %11209 = vmatpush3.msra.mxu1 %v5803_v36  ;;  %v5800_v10 = vld [vmem:[%s16510_s9] sm:$0xff] }
 0x754   :  { %v11157_v17 = vpop.f32.mrf.mxu1  ;;  %11210 = vmatprep.subr.mxu1 %v5802_v50 }
 0x755   :  { %v5539_v22 = vmul.f32 %v8777_v62, %v5529_v14  ;;  %v5528_v27 = vadd.f32 %v5524_v55, %v5426_v8  ;;  %v5527_v46 = vmul.f32 %v11157_v17, %v8776_v59  ;;  %11211 = vmatpush3.msra.mxu1 %v5802_v50 }
 0x756   :  { %v5511_v11 = vpop.f32.mrf.mxu1  ;;  %11212 = vmatprep.subr.mxu1 %v5801_v29 }
 0x757   :  { %v5538_v4 = vmul.f32 %v8777_v62, %v5528_v27  ;;  %v5531_v58 = vadd.f32 %v5527_v46, %v5429_v48  ;;  %v5526_v54 = vmul.f32 %v8776_v59, %v5511_v11  ;;  %v5549_v28 = vadd.f32 %v8778_v12, %v5539_v22  ;;  %11213 = vmatpush3.msra.mxu1 %v5801_v29 }
 0x758   :  { %11214 = vmatprep.subr.mxu1 %v5800_v10 }
 0x759   :  { %v5548_v40 = vadd.f32 %v8778_v12, %v5538_v4  ;;  %v5541_v5 = vmul.f32 %v8777_v62, %v5531_v58  ;;  %v5530_v16 = vadd.f32 %v5526_v54, %v5428_v63  ;;  %v5553_v24 = vmax.f32 %v5549_v28, 0.0  ;;  %11215 = vmatpush3.msra.mxu1 %v5800_v10  ;;  %v8790_v54 = vld [vmem:[%s16511_s17] ss:$0 sm:$0xff]  ;;  %v16517_v10 = vld [vmem:[#allocation123_spill] sm:$0xff] }
 0x75a   :  { %v11545_v4 = vmov 0.0  }
 0x75b   :  { %v5552_v19 = vmax.f32 %v5548_v40, 0.0  ;;  %v5540_v49 = vmul.f32 %v8777_v62, %v5530_v16  ;;  %v5551_v13 = vadd.f32 %v8778_v12, %v5541_v5  ;;  %11222 = vmatprep.subr.mxu1 %v11545_v4 }
 0x75d   :  { %v5550_v25 = vadd.f32 %v8778_v12, %v5540_v49  ;;  %11160 = vmatprep.mubr.msk.f32.mxu0 %vm5556_vm4, %v5552_v19  ;;  %v5555_v52 = vmax.f32 %v5551_v13, 0.0  ;;  %v8791_v19 = vld [vmem:[%s16512_s21] ss:$0 sm:$0xff] }
 0x75e   :  { %11161 = vmatmul.mubr.msk.f32.vlgmr.msra.gmra.mxu0 %vm5556_vm4, %v5553_v24 }
 0x75f   :  { %v5554_v33 = vmax.f32 %v5550_v25, 0.0  ;;  %11167 = vmatpush3.msra.mxu0 %v14809_v7 }
 0x760   :  { %11168 = vmatprep.subr.mxu0 %v14802_v9 }
 0x761   :  { %11169 = vmatpush3.msra.mxu0 %v14802_v9  ;;  %11163 = vmatprep.mubr.msk.f32.mxu0 %vm5556_vm4, %v5554_v33 }
 0x762   :  { %11170 = vmatprep.subr.mxu0 %v14795_v37  ;;  %11164 = vmatmul.mubr.msk.f32.gmra.mxu0 %vm5556_vm4, %v5555_v52  ;;  %vm8016_vm4 = vcmask 523264  }
 0x763   :  { %11171 = vmatpush3.msra.mxu0 %v14795_v37  ;;  %11198 = vmatprep.mubr.f32.mxu0 %v4361_v42 }
 0x764   :  { %11172 = vmatprep.subr.mxu0 %v14788_v31 }
 0x765   :  { %11173 = vmatpush3.msra.mxu0 %v14788_v31 }
 0x766   :  { %11174 = vmatprep.subr.mxu0 %v14781_v6 }
 0x767   :  { %11175 = vmatpush3.msra.mxu0 %v14781_v6 }
 0x768   :  { %11176 = vmatprep.subr.mxu0 %v14774_v30 }
 0x769   :  { %11177 = vmatpush3.msra.mxu0 %v14774_v30 }
 0x76a   :  { %11178 = vmatprep.subr.mxu0 %v14767_v32 }
 0x76b   :  { %11179 = vmatpush3.msra.mxu0 %v14767_v32 }
 0x76c   :  { %11180 = vmatprep.subr.mxu0 %v14760_v38 }
 0x76d   :  { %11181 = vmatpush3.msra.mxu0 %v14760_v38 }
 0x76e   :  { %11182 = vmatprep.subr.mxu0 %v14752_v60 }
 0x76f   :  { %11183 = vmatpush3.msra.mxu0 %v14752_v60  ;;  %v8784_v60 = vld [vmem:[%s16508_s0] ss:$0 sm:$0xff]  ;;  %s11550_s0 = smov [#allocation5]  }
 0x770   :  { %11184 = vmatprep.subr.mxu0 %v14743_v18 }
 0x771   :  { %11185 = vmatpush3.msra.mxu0 %v14743_v18  ;;  %v4362_v18 = vld [vmem:[%s11634_s20 + $0x8] sm:$0xff] }
 0x772   :  { %11186 = vmatprep.subr.mxu0 %v14734_v39 }
 0x773   :  { %11187 = vmatpush3.msra.mxu0 %v14734_v39  ;;  %v4363_v39 = vld [vmem:[%s11634_s20 + $0x10] sm:$0xff] }
 0x774   :  { %11188 = vmatprep.subr.mxu0 %v14725_v44 }
 0x775   :  { %11189 = vmatpush3.msra.mxu0 %v14725_v44  ;;  %v4364_v44 = vld [vmem:[%s11634_s20 + $0x18] sm:$0xff]  ;;  %s16523_s20 = sld [smem:[#allocation17_spill]] }
 0x776   :  { %11190 = vmatprep.subr.mxu0 %v14716_v56 }
 0x777   :  { %11191 = vmatpush3.msra.mxu0 %v14716_v56  ;;  %v8785_v56 = vld [vmem:[%s16509_s5] ss:$0 sm:$0xff]  ;;  %s8098_s5 = sshll.u32 %s11550_s0, 4  ;;  %s8099_s5 = int_to_ptr.vmem [resolvable:$true] %s8098_s5 }
 0x778   :  { %11192 = vmatprep.subr.mxu0 %v14707_v45  ;;  %p11486_p1 = scmp.lt.s32.totalorder %s8099_s5, %s8099_s5 }
 0x779   :  { %11193 = vmatpush3.msra.mxu0 %v14707_v45 }
 0x77a   :  { %11194 = vmatprep.subr.mxu0 %v14698_v57 }
 0x77b   :  { %11195 = vmatpush3.msra.mxu0 %v14698_v57 }
 0x77c   :  { %11196 = vmatprep.subr.mxu0 %v14689_v21 }
 0x77d   :  { %11197 = vmatpush3.msra.mxu0 %v14689_v21 }
 0x77e   :  { %11199 = vmatmul.mubr.f32.vlgmr.msra.gmra.mxu0 %v4362_v18  ;;  %11233 = vmatprep.subr.mxu0 %v11545_v4 }
 0x77f   :  { %11201 = vmatprep.mubr.f32.mxu0 %v4363_v39 }
 0x782   :  { %11202 = vmatmul.mubr.f32.gmra.mxu0 %v4364_v44 }
 0x783   :  { %11241 = vmatprep.mubr.msk.f32.mxu0 %vm11546_vm7, %v11545_v4 }
 0x81e   :  { %v11162_v38 = vpop.f32.mrf.mxu0 }
 0x81f   :  { %v5665_v32 = vmul.f32 %v11162_v38, %v8784_v60  ;;  %v8793_v38 = vld [vmem:[%s16513_s25 + $0x8] sm:$0xff] }
 0x820   :  { %v5639_v30 = vpop.f32.mrf.mxu0 }
 0x821   :  { %v5675_v45 = vadd.f32 %v8785_v56, %v5665_v32  ;;  %v5664_v6 = vmul.f32 %v8784_v60, %v5639_v30  ;;  %v8795_v32 = vld [vmem:[%s16513_s25 + $0x10] sm:$0xff]  ;;  %v8797_v30 = vld [vmem:[%s16513_s25 + $0x18] sm:$0xff] }
 0x822   :  { %v11165_v31 = vpop.f32.mrf.mxu0 }
 0x823   :  { %v5679_v57 = vmax.f32 %v5675_v45, 0.0  ;;  %v5674_v37 = vadd.f32 %v8785_v56, %v5664_v6  ;;  %v5667_v9 = vmul.f32 %v11165_v31, %v8784_v60  ;;  %v8799_v45 = vld [vmem:[%s16513_s25 + $0x20] sm:$0xff]  ;;  %v8801_v6 = vld [vmem:[%s16513_s25 + $0x28] sm:$0xff]  ;;  %v8803_v31 = vld [vmem:[%s16513_s25 + $0x30] sm:$0xff] }
 0x824   :  { %v5649_v7 = vpop.f32.mrf.mxu0 }
 0x825   :  { %5772 = vst.msk [vmem:[#allocation2 + $0x8] sm:$0xff] %vm4365_vm2, %v5679_v57  ;;  %v5678_v21 = vmax.f32 %v5674_v37, 0.0  ;;  %v5677_v3 = vadd.f32 %v8785_v56, %v5667_v9  ;;  %v5666_v1 = vmul.f32 %v8784_v60, %v5649_v7  ;;  %v8805_v57 = vld [vmem:[%s16513_s25 + $0x38] sm:$0xff]  ;;  %v8807_v37 = vld [vmem:[%s16513_s25 + $0x40] sm:$0xff]  ;;  %v5813_v7 = vld [vmem:[%s16515_s3 + $0x8] sm:$0xf] }
 0x826   :  { %v5816_v9 = vld [vmem:[%s16514_s29] sm:$0xff] }
 0x827   :  { %5771 = vst.msk [vmem:[#allocation2] sm:$0xff] %vm4365_vm2, %v5678_v21  ;;  %v5681_v59 = vmax.f32 %v5677_v3, 0.0  ;;  %v5676_v23 = vadd.f32 %v8785_v56, %v5666_v1  ;;  %v5939_v56 = vld [vmem:[%s16513_s25] sm:$0xff] }
 0x828   :  { %v5812_v21 = vld [vmem:[%s16515_s3] sm:$0xff] }
 0x829   :  { %5774 = vst.msk [vmem:[#allocation2 + $0x18] sm:$0xff] %vm4365_vm2, %v5681_v59  ;;  %v5680_v26 = vmax.f32 %v5676_v23, 0.0 }
 0x82b   :  { %5773 = vst.msk [vmem:[#allocation2 + $0x10] sm:$0xff] %vm4365_vm2, %v5680_v26  ;;  %v5808_v26 = vld [vmem:[%s16516_s8] sm:$0xff] }
 0x82c   :  { %v6097_v29 = vrot.slane %v5808_v26, %v15230_v2 }
 0x83e   :  { %v11200_v15 = vpop.f32.mrf.mxu0 }
 0x83f   :  { %v5768_v41 = vmax.f32 %v11200_v15, 0.0  ;;  %v6017_v15 = vrot.slane %v5808_v26, %v15227_v35 }
 0x840   :  { %v5748_v8 = vpop.f32.mrf.mxu0 }
 0x841   :  { %v5767_v62 = vmax.f32 %v5748_v8, 0.0  ;;  %v6178_v8 = vrot.slane %v5808_v26, %v16517_v10 }
 0x842   :  { %v11203_v61 = vpop.f32.mrf.mxu0 }
 0x843   :  { %5779 = vrot.lane.b32.xlu0 %v5767_v62, %s11544_s13  ;;  %v5770_v55 = vmax.f32 %v11203_v61, 0.0 }
 0x844   :  { %v5758_v34 = vpop.f32.mrf.mxu0 }
 0x845   :  { %v5769_v14 = vmax.f32 %v5758_v34, 0.0 }
 0x847   :  { %5781 = vrot.lane.b32.xlu0 %v5768_v41, %s11544_s13  ;;  %5783 = vrot.lane.b32.xlu1 %v5769_v14, %s11544_s13  ;;  %v16518_v41 = vld [vmem:[#allocation111_spill] sm:$0xff] }
 0x848   :  { %v6259_v14 = vrot.slane %v5808_v26, %v16518_v41 }
 0x84b   :  { %5785 = vrot.lane.b32.xlu1 %v5770_v55, %s11544_s13 }
 0x8b5   :  { %v5780_v17 = vpop.permute.xlu0 %5779 }
 0x8b6   :  { %5792 = vst.msk [vmem:[#allocation2] sm:$0xff] %vm5791_vm5, %v5780_v17 }
 0x8b9   :  { %v5782_v48 = vpop.permute.xlu0 %5781  ;;  %v5784_v12 = vpop.permute.xlu1 %5783 }
 0x8ba   :  { %5793 = vst.msk [vmem:[#allocation2 + $0x8] sm:$0xff] %vm5791_vm5, %v5782_v48  ;;  %5794 = vst.msk [vmem:[#allocation2 + $0x10] sm:$0xff] %vm5791_vm5, %v5784_v12  ;;  %v16519_v12 = vld [vmem:[#allocation113_spill] sm:$0xff] }
 0x8bd   :  { %v5786_v22 = vpop.permute.xlu1 %5785  ;;  %v15323_v27 = vld [vmem:[#allocation2] sm:$0xff] }
 0x8be   :  { %5795 = vst.msk [vmem:[#allocation2 + $0x18] sm:$0xff] %vm5791_vm5, %v5786_v22  ;;  %11216 = vmatprep.mubr.msk.f32.mxu1 %vm5817_vm6, %v15323_v27  ;;  %v6340_v22 = vrot.slane %v5808_v26, %v16519_v12  ;;  %vm8090_vm5 = vcmask 74752  }
 0x8c1   :  { %v15327_v46 = vld [vmem:[#allocation2 + $0x8] sm:$0xff]  ;;  %v15329_v11 = vld [vmem:[#allocation2 + $0x10] sm:$0xff] }
 0x8c2   :  { %11217 = vmatmul.mubr.msk.f32.vlgmr.msra.gmra.mxu1 %vm5817_vm6, %v15327_v46 }
 0x8c3   :  { %11219 = vmatprep.mubr.msk.f32.mxu1 %vm5817_vm6, %v15329_v11 }
 0x8c5   :  { %v15335_v63 = vld [vmem:[#allocation2 + $0x18] sm:$0xff] }
 0x8c6   :  { %11220 = vmatmul.mubr.msk.f32.gmra.mxu1 %vm5817_vm6, %v15335_v63 }
 0x8c7   :  { %11230 = vmatprep.mubr.msk.f32.mxu1 %vm11546_vm7, %v11545_v4 }
 0x982   :  { %v11218_v58 = vpop.f32.mrf.mxu1 }
 0x983   :  { %v5922_v5 = vmul.f32 %v11218_v58, %v8790_v54 }
 0x984   :  { %v5896_v28 = vpop.f32.mrf.mxu1 }
 0x985   :  { %v5921_v24 = vmul.f32 %v8790_v54, %v5896_v28  ;;  %v5932_v33 = vadd.f32 %v8791_v19, %v5922_v5 }
 0x986   :  { %v11221_v40 = vpop.f32.mrf.mxu1 }
 0x987   :  { %v5924_v16 = vmul.f32 %v11221_v40, %v8790_v54  ;;  %v5931_v18 = vadd.f32 %v8791_v19, %v5921_v24  ;;  %v15355_v44 = vmax.f32 %v5932_v33, 0.0  ;;  %v6502_v40 = vrot.slane %v5808_v26, %v15258_v51 }
 0x988   :  { %v5906_v49 = vpop.f32.mrf.mxu1 }
 0x989   :  { %v5934_v13 = vadd.f32 %v8791_v19, %v5924_v16  ;;  %v5923_v25 = vmul.f32 %v8790_v54, %v5906_v49  ;;  %v15361_v60 = vmax.f32 %v5931_v18, 0.0  ;;  %v6421_v54 = vrot.slane %v5808_v26, %v15255_v53 }
 0x98b   :  { %v15347_v52 = vmax.f32 %v5934_v13, 0.0  ;;  %v5933_v42 = vadd.f32 %v8791_v19, %v5923_v25  ;;  %v6583_v13 = vrot.slane %v5808_v26, %v15265_v43  ;;  %v6863_v26 = vld [vmem:[%s16522_s24 + $0x30] sm:$0xff] }
 0x98d   :  { %v15349_v39 = vmax.f32 %v5933_v42, 0.0  ;;  %11223 = vmatpush3.msra.mxu1 %v15347_v52  ;;  %11234 = vmatpush3.msra.mxu0 %v15347_v52 }
 0x98e   :  { %11224 = vmatprep.subr.mxu1 %v11545_v4  ;;  %11235 = vmatprep.subr.mxu0 %v11545_v4 }
 0x98f   :  { %11225 = vmatpush3.msra.mxu1 %v15349_v39  ;;  %11236 = vmatpush3.msra.mxu0 %v15349_v39 }
 0x990   :  { %11226 = vmatprep.subr.mxu1 %v11545_v4  ;;  %11237 = vmatprep.subr.mxu0 %v11545_v4 }
 0x991   :  { %11227 = vmatpush3.msra.mxu1 %v15355_v44  ;;  %11238 = vmatpush3.msra.mxu0 %v15355_v44 }
 0x992   :  { %11228 = vmatprep.subr.mxu1 %v11545_v4  ;;  %11239 = vmatprep.subr.mxu0 %v11545_v4 }
 0x993   :  { %11229 = vmatpush3.msra.mxu1 %v15361_v60  ;;  %11240 = vmatpush3.msra.mxu0 %v15361_v60 }
 0x994   :  { %11244 = vmatprep.subr.mxu1 %v11545_v4  ;;  %11255 = vmatprep.subr.mxu0 %v11545_v4 }
 0x995   :  { %11231 = vmatmul.mubr.msk.f32.vlgmr.msra.gmra.mxu1 %vm5940_vm8, %v5939_v56  ;;  %11242 = vmatmul.mubr.msk.f32.vlgmr.msra.gmra.mxu0 %vm5940_vm8, %v8793_v38  ;;  %v8810_v38 = vld [vmem:[%s16520_s14] ss:$0 sm:$0xff] }
 0x996   :  { %11245 = vmatpush3.msra.mxu1 %v15347_v52  ;;  %11256 = vmatpush3.msra.mxu0 %v15347_v52 }
 0x997   :  { %11246 = vmatprep.subr.mxu1 %v11545_v4  ;;  %11257 = vmatprep.subr.mxu0 %v11545_v4 }
 0x998   :  { %11247 = vmatpush3.msra.mxu1 %v15349_v39  ;;  %11258 = vmatpush3.msra.mxu0 %v15349_v39 }
 0x999   :  { %11248 = vmatprep.subr.mxu1 %v11545_v4  ;;  %11259 = vmatprep.subr.mxu0 %v11545_v4 }
 0x99a   :  { %11249 = vmatpush3.msra.mxu1 %v15355_v44  ;;  %11260 = vmatpush3.msra.mxu0 %v15355_v44 }
 0x99b   :  { %11250 = vmatprep.subr.mxu1 %v11545_v4  ;;  %11261 = vmatprep.subr.mxu0 %v11545_v4 }
 0x99c   :  { %11251 = vmatpush3.msra.mxu1 %v15361_v60  ;;  %11262 = vmatpush3.msra.mxu0 %v15361_v60 }
 0x99d   :  { %11252 = vmatprep.mubr.msk.f32.mxu1 %vm11546_vm7, %v11545_v4  ;;  %11263 = vmatprep.mubr.msk.f32.mxu0 %vm11546_vm7, %v11545_v4 }
 0x99e   :  { %11266 = vmatprep.subr.mxu1 %v11545_v4  ;;  %11277 = vmatprep.subr.mxu0 %v11545_v4 }
 0x99f   :  { %11253 = vmatmul.mubr.msk.f32.vlgmr.msra.gmra.mxu1 %vm5940_vm8, %v8795_v32  ;;  %11264 = vmatmul.mubr.msk.f32.vlgmr.msra.gmra.mxu0 %vm5940_vm8, %v8797_v30 }
 0x9a0   :  { %11267 = vmatpush3.msra.mxu1 %v15347_v52  ;;  %11278 = vmatpush3.msra.mxu0 %v15347_v52 }
 0x9a1   :  { %11268 = vmatprep.subr.mxu1 %v11545_v4  ;;  %11279 = vmatprep.subr.mxu0 %v11545_v4 }
 0x9a2   :  { %11269 = vmatpush3.msra.mxu1 %v15349_v39  ;;  %11280 = vmatpush3.msra.mxu0 %v15349_v39 }
 0x9a3   :  { %11270 = vmatprep.subr.mxu1 %v11545_v4  ;;  %11281 = vmatprep.subr.mxu0 %v11545_v4 }
 0x9a4   :  { %11271 = vmatpush3.msra.mxu1 %v15355_v44  ;;  %11282 = vmatpush3.msra.mxu0 %v15355_v44 }
 0x9a5   :  { %11272 = vmatprep.subr.mxu1 %v11545_v4  ;;  %11283 = vmatprep.subr.mxu0 %v11545_v4 }
 0x9a6   :  { %11273 = vmatpush3.msra.mxu1 %v15361_v60  ;;  %11284 = vmatpush3.msra.mxu0 %v15361_v60 }
 0x9a7   :  { %11274 = vmatprep.mubr.msk.f32.mxu1 %vm11546_vm7, %v11545_v4  ;;  %11285 = vmatprep.mubr.msk.f32.mxu0 %vm11546_vm7, %v11545_v4 }
 0x9a8   :  { %11288 = vmatprep.subr.mxu1 %v11545_v4  ;;  %11299 = vmatprep.subr.mxu0 %v11545_v4 }
 0x9a9   :  { %11275 = vmatmul.mubr.msk.f32.vlgmr.msra.gmra.mxu1 %vm5940_vm8, %v8799_v45  ;;  %11286 = vmatmul.mubr.msk.f32.vlgmr.msra.gmra.mxu0 %vm5940_vm8, %v8801_v6 }
 0x9aa   :  { %11289 = vmatpush3.msra.mxu1 %v15347_v52  ;;  %11300 = vmatpush3.msra.mxu0 %v15347_v52 }
 0x9ab   :  { %11290 = vmatprep.subr.mxu1 %v11545_v4  ;;  %11301 = vmatprep.subr.mxu0 %v11545_v4 }
 0x9ac   :  { %11291 = vmatpush3.msra.mxu1 %v15349_v39  ;;  %11302 = vmatpush3.msra.mxu0 %v15349_v39 }
 0x9ad   :  { %11292 = vmatprep.subr.mxu1 %v11545_v4  ;;  %11303 = vmatprep.subr.mxu0 %v11545_v4 }
 0x9ae   :  { %11293 = vmatpush3.msra.mxu1 %v15355_v44  ;;  %11304 = vmatpush3.msra.mxu0 %v15355_v44 }
 0x9af   :  { %11294 = vmatprep.subr.mxu1 %v11545_v4  ;;  %11305 = vmatprep.subr.mxu0 %v11545_v4 }
 0x9b0   :  { %11295 = vmatpush3.msra.mxu1 %v15361_v60  ;;  %11306 = vmatpush3.msra.mxu0 %v15361_v60 }
 0x9b1   :  { %11296 = vmatprep.mubr.msk.f32.mxu1 %vm11546_vm7, %v11545_v4  ;;  %11307 = vmatprep.mubr.msk.f32.mxu0 %vm11546_vm7, %v11545_v4 }
 0x9b2   :  { %11310 = vmatprep.subr.mxu1 %v11545_v4  ;;  %11328 = vmatprep.subr.mxu0 %v11545_v4 }
 0x9b3   :  { %11297 = vmatmul.mubr.msk.f32.vlgmr.msra.gmra.mxu1 %vm5940_vm8, %v8803_v31  ;;  %11308 = vmatmul.mubr.msk.f32.vlgmr.msra.gmra.mxu0 %vm5940_vm8, %v8805_v57  ;;  %v8811_v31 = vld [vmem:[%s16521_s19] ss:$0 sm:$0xff] }
 0x9b4   :  { %11311 = vmatpush3.msra.mxu1 %v15347_v52  ;;  %11329 = vmatpush3.msra.mxu0 %v15335_v63 }
 0x9b5   :  { %11312 = vmatprep.subr.mxu1 %v11545_v4  ;;  %11330 = vmatprep.subr.mxu0 %v11545_v4 }
 0x9b6   :  { %11313 = vmatpush3.msra.mxu1 %v15349_v39  ;;  %11331 = vmatpush3.msra.mxu0 %v15329_v11  ;;  %v8809_v39 = vld [vmem:[%s16516_s8 + $0x8] ss:$0 sm:$0xff] }
 0x9b7   :  { %11314 = vmatprep.subr.mxu1 %v11545_v4  ;;  %11332 = vmatprep.subr.mxu0 %v11545_v4 }
 0x9b8   :  { %11315 = vmatpush3.msra.mxu1 %v15355_v44  ;;  %11333 = vmatpush3.msra.mxu0 %v15327_v46 }
 0x9b9   :  { %11316 = vmatprep.subr.mxu1 %v11545_v4  ;;  %11334 = vmatprep.subr.mxu0 %v11545_v4 }
 0x9ba   :  { %11317 = vmatpush3.msra.mxu1 %v15361_v60  ;;  %11318 = vmatprep.mubr.msk.f32.mxu1 %vm11546_vm7, %v11545_v4 }
 0x9bb   :  { %11335 = vmatpush3.msra.mxu0 %v15323_v27  ;;  %11319 = vmatmul.mubr.msk.f32.vlgmr.msra.gmra.mxu1 %vm5940_vm8, %v8807_v37 }
 0x9bc   :  { %11336 = vmatprep.mubr.msk.f32.mxu0 %vm11546_vm7, %v11545_v4  ;;  %11321 = vmatprep.subr.mxu1 %v11545_v4 }
 0x9bd   :  { %11337 = vmatmul.mubr.msk.f32.vlgmr.msra.gmra.mxu0 %vm5940_vm8, %v5816_v9  ;;  %11325 = vmatprep.mubr.msk.f32.mxu1 %vm11546_vm7, %v11545_v4 }
 0x9be   :  { %11366 = vmatprep.subr.mxu0 %v11545_v4  ;;  %11368 = vmatprep.mubr.msk.f32.mxu0 %vm11546_vm7, %v11545_v4 }
 0x9bf   :  { %11322 = vmatpush3.msk.msra.mxu1 %vm6686_vm9, %v5813_v7 }
 0x9c0   :  { %11323 = vmatprep.subr.mxu1 %v11545_v4 }
 0x9c1   :  { %11324 = vmatpush3.msra.mxu1 %v5812_v21  ;;  %v6868_v21 = vld [vmem:[%s16522_s24 + $0x58] sm:$0xff] }
 0x9c2   :  { %11339 = vmatprep.subr.mxu1 %v11545_v4 }
 0xa55   :  { %v6010_v3 = vpop.f32.mrf.mxu1  ;;  %v6090_v1 = vpop.f32.mrf.mxu0 }
 0xa56   :  { %v6018_v62 = vmul.f32 %v6017_v15, %v6010_v3  ;;  %v6098_v61 = vmul.f32 %v6097_v29, %v6090_v1  ;;  %v6867_v3 = vld [vmem:[%s16522_s24 + $0x50] sm:$0xff]  ;;  %v6866_v1 = vld [vmem:[%s16522_s24 + $0x48] sm:$0xff]  ;;  %v6857_v29 = vld [vmem:[%s16522_s24] sm:$0xff] }
 0xa57   :  { %v11232_v59 = vpop.f32.mrf.mxu1  ;;  %v11243_v23 = vpop.f32.mrf.mxu0  ;;  %v6858_v15 = vld [vmem:[%s16522_s24 + $0x8] sm:$0xff] }
 0xa58   :  { %v6099_v48 = vadd.f32 %v6098_v61, %v6018_v62  ;;  %v6865_v59 = vld [vmem:[%s16522_s24 + $0x40] sm:$0xff]  ;;  %v6864_v23 = vld [vmem:[%s16522_s24 + $0x38] sm:$0xff] }
 0xa59   :  { %v8815_v62 = vld [vmem:[%s16524_s7] ss:$0 sm:$0xff] }
 0xa5f   :  { %v6171_v0 = vpop.f32.mrf.mxu1  ;;  %v6252_v47 = vpop.f32.mrf.mxu0 }
 0xa60   :  { %v6179_v34 = vmul.f32 %v6178_v8, %v6171_v0  ;;  %v6260_v63 = vmul.f32 %v6259_v14, %v6252_v47  ;;  %v6862_v0 = vld [vmem:[%s16522_s24 + $0x28] sm:$0xff]  ;;  %v6861_v47 = vld [vmem:[%s16522_s24 + $0x20] sm:$0xff] }
 0xa61   :  { %v11254_v36 = vpop.f32.mrf.mxu1  ;;  %v11265_v50 = vpop.f32.mrf.mxu0  ;;  %v8814_v8 = vld [vmem:[%s16523_s20] ss:$0 sm:$0xff] }
 0xa62   :  { %v6180_v11 = vadd.f32 %v6179_v34, %v6099_v48  ;;  %v6860_v36 = vld [vmem:[%s16522_s24 + $0x18] sm:$0xff]  ;;  %v6859_v50 = vld [vmem:[%s16522_s24 + $0x10] sm:$0xff] }
 0xa64   :  { %v6261_v28 = vadd.f32 %v6260_v63, %v6180_v11 }
 0xa69   :  { %v6333_v55 = vpop.f32.mrf.mxu1  ;;  %v6414_v17 = vpop.f32.mrf.mxu0 }
 0xa6a   :  { %v6341_v58 = vmul.f32 %v6340_v22, %v6333_v55  ;;  %v6422_v16 = vmul.f32 %v6421_v54, %v6414_v17 }
 0xa6b   :  { %v11276_v27 = vpop.f32.mrf.mxu1  ;;  %v11287_v46 = vpop.f32.mrf.mxu0 }
 0xa6c   :  { %v6342_v5 = vadd.f32 %v6341_v58, %v6261_v28  ;;  %v8818_v27 = vld [vmem:[%s16525_s10] ss:$0 sm:$0xff] }
 0xa6d   :  { %v8819_v46 = vld [vmem:[%s16526_s11] ss:$0 sm:$0xff] }
 0xa6e   :  { %v6423_v52 = vadd.f32 %v6422_v16, %v6342_v5  ;;  %v8829_v5 = vld [vmem:[%s16527_s15 + $0xa] sm:$0x3]  ;;  %v8821_v16 = vld [vmem:[%s16527_s15 + $0x2] sm:$0x3] }
 0xa73   :  { %v6495_v19 = vpop.f32.mrf.mxu1  ;;  %v6576_v49 = vpop.f32.mrf.mxu0 }
 0xa74   :  { %v6503_v24 = vmul.f32 %v6502_v40, %v6495_v19  ;;  %v6584_v18 = vmul.f32 %v6583_v13, %v6576_v49  ;;  %v6970_v40 = vld [vmem:[%s16527_s15] sm:$0x3]  ;;  %v8833_v19 = vld [vmem:[%s16527_s15 + $0xe] sm:$0x3]  ;;  %v8823_v49 = vld [vmem:[%s16527_s15 + $0x4] sm:$0x3] }
 0xa75   :  { %v11298_v25 = vpop.f32.mrf.mxu1  ;;  %v11309_v33 = vpop.f32.mrf.mxu0  ;;  %v8827_v13 = vld [vmem:[%s16527_s15 + $0x8] sm:$0x3] }
 0xa76   :  { %v6504_v42 = vadd.f32 %v6503_v24, %v6423_v52  ;;  %v8825_v24 = vld [vmem:[%s16527_s15 + $0x6] sm:$0x3]  ;;  %v8831_v25 = vld [vmem:[%s16527_s15 + $0xc] sm:$0x3]  ;;  %v8835_v33 = vld [vmem:[%s16527_s15 + $0x10] sm:$0x3] }
 0xa77   :  { %v6880_v52 = vld [vmem:[%s16528_s16] sm:$0x3] }
 0xa78   :  { %v6585_v60 = vadd.f32 %v6584_v18, %v6504_v42  ;;  %v6877_v42 = vld [vmem:[%s16529_s18 + $0x10] sm:$0xff]  ;;  %v6876_v18 = vld [vmem:[%s16529_s18 + $0x8] sm:$0xff] }
 0xa7b   :  { %v6657_v44 = vpop.f32.mrf.mxu1 }
 0xa7c   :  { %v6665_v56 = vmul.f32 %v8809_v39, %v6657_v44  ;;  %v6875_v39 = vld [vmem:[%s16529_s18] sm:$0xff] }
 0xa7d   :  { %v11320_v32 = vpop.f32.mrf.mxu1  ;;  %v6844_v30 = vpop.f32.mrf.mxu0 }
 0xa7e   :  { %v6666_v45 = vadd.f32 %v6665_v56, %v6585_v60  ;;  %v6848_v6 = vmax.f32 %v6844_v30, 0.0 }
 0xa7f   :  { %v11338_v57 = vpop.f32.mrf.mxu0 }
 0xa80   :  { %v6673_v37 = vmul.f32 %v8810_v38, %v6666_v45  ;;  %6851 = vrot.lane.b32.xlu0 %v6848_v6, %s11547_s12  ;;  %v6871_v38 = vld [vmem:[%s16530_s22] sm:$0xff] }
 0xa81   :  { %v7128_v30 = vrot.slane %v6871_v38, %v15230_v2  ;;  %v7209_v57 = vrot.slane %v6871_v38, %v16517_v10  ;;  %v7371_v2 = vrot.slane %v6871_v38, %v16519_v12 }
 0xa82   :  { %v6680_v9 = vadd.f32 %v8811_v31, %v6673_v37  ;;  %v7048_v31 = vrot.slane %v6871_v38, %v15227_v35 }
 0xa84   :  { %v6681_v7 = vmax.f32 %v6680_v9, 0.0 }
 0xa86   :  { %11326 = vmatmul.mubr.msk.f32.vlgmr.msra.gmra.mxu1 %vm6682_vm10, %v6681_v7 }
 0xa87   :  { %11340 = vmatpush3.msra.mxu1 %v6868_v21  ;;  %11363 = vmatprep.mubr.msk.f32.mxu1 %vm11546_vm7, %v11545_v4  ;;  %v7290_v21 = vrot.slane %v6871_v38, %v16518_v41 }
 0xa88   :  { %11341 = vmatprep.subr.mxu1 %v11545_v4 }
 0xa89   :  { %11342 = vmatpush3.msra.mxu1 %v6867_v3 }
 0xa8a   :  { %11343 = vmatprep.subr.mxu1 %v11545_v4 }
 0xa8b   :  { %11344 = vmatpush3.msra.mxu1 %v6866_v1 }
 0xa8c   :  { %11345 = vmatprep.subr.mxu1 %v11545_v4 }
 0xa8d   :  { %11346 = vmatpush3.msra.mxu1 %v6865_v59 }
 0xa8e   :  { %11347 = vmatprep.subr.mxu1 %v11545_v4 }
 0xa8f   :  { %11348 = vmatpush3.msra.mxu1 %v6864_v23 }
 0xa90   :  { %11349 = vmatprep.subr.mxu1 %v11545_v4 }
 0xa91   :  { %11350 = vmatpush3.msra.mxu1 %v6863_v26 }
 0xa92   :  { %11351 = vmatprep.subr.mxu1 %v11545_v4 }
 0xa93   :  { %11352 = vmatpush3.msra.mxu1 %v6862_v0 }
 0xa94   :  { %11353 = vmatprep.subr.mxu1 %v11545_v4 }
 0xa95   :  { %11354 = vmatpush3.msra.mxu1 %v6861_v47 }
 0xa96   :  { %11355 = vmatprep.subr.mxu1 %v11545_v4 }
 0xa97   :  { %11356 = vmatpush3.msra.mxu1 %v6860_v36  ;;  %v7452_v36 = vrot.slane %v6871_v38, %v15255_v53 }
 0xa98   :  { %11357 = vmatprep.subr.mxu1 %v11545_v4 }
 0xa99   :  { %11358 = vmatpush3.msra.mxu1 %v6859_v50 }
 0xa9a   :  { %11359 = vmatprep.subr.mxu1 %v11545_v4 }
 0xa9b   :  { %11360 = vmatpush3.msra.mxu1 %v6858_v15  ;;  %v7533_v15 = vrot.slane %v6871_v38, %v15258_v51 }
 0xa9c   :  { %11361 = vmatprep.subr.mxu1 %v11545_v4 }
 0xa9d   :  { %11362 = vmatpush3.msra.mxu1 %v6857_v29 }
 0xa9e   :  { %11391 = vmatprep.subr.mxu1 %v11545_v4 }
 0xaf2   :  { %v6852_v48 = vpop.permute.xlu0 %6851 }
 0xb46   :  { %v6756_v61 = vpop.f32.mrf.mxu1 }
 0xb47   :  { %v6766_v34 = vmul.f32 %v8814_v8, %v6756_v61 }
 0xb48   :  { %v11327_v14 = vpop.f32.mrf.mxu1 }
 0xb49   :  { %v6773_v55 = vadd.f32 %v8815_v62, %v6766_v34  ;;  %v7614_v62 = vrot.slane %v6871_v38, %v15265_v43  ;;  %v11548_v14 = vmov 1983009808   ;;  %v7992_v38 = vld [vmem:[%s11754_s30 + $0x38] sm:$0xff] }
 0xb4b   :  { %v6774_v17 = vmax.f32 %v6773_v55, 0.0  ;;  %v7879_v55 = vunpack.c.l.s4 %v11548_v14 }
 0xb4d   :  { %6849 = vst.msk [vmem:[#allocation3] sm:$0xff] %vm5817_vm6, %v6774_v17 }
 0xb4e   :  { %6855 = vst.msk [vmem:[#allocation3] sm:$0xff] %vm6854_vm11, %v6852_v48 }
 0xb55   :  { %v6856_v22 = vld [vmem:[#allocation3] sm:$0xff] }
 0xb56   :  { %11364 = vmatmul.mubr.msk.f32.vlgmr.msra.gmra.mxu1 %vm6881_vm12, %v6856_v22 }
 0xb57   :  { %11393 = vmatprep.mubr.msk.f32.mxu1 %vm11546_vm7, %v11545_v4 }
 0xc16   :  { %v6951_v11 = vpop.f32.mrf.mxu1 }
 0xc17   :  { %v6961_v63 = vmul.f32 %v8818_v27, %v6951_v11  ;;  %v8837_v27 = vld [vmem:[%s16530_s22 + $0x8] ss:$0 sm:$0xff]  ;;  %v7880_v11 = vunpack.c.0.s8 %v7879_v55  ;;  %v8848_v55 = vld [vmem:[%s11759_s27] ss:$0 sm:$0xff] }
 0xc18   :  { %v11365_v58 = vpop.f32.mrf.mxu1 }
 0xc19   :  { %v6968_v54 = vadd.f32 %v8819_v46, %v6961_v63 }
 0xc1b   :  { %v6969_v28 = vmax.f32 %v6968_v54, 0.0  ;;  %v8838_v54 = vld [vmem:[%s16531_s23] ss:$0 sm:$0xff] }
 0xc1d   :  { %11367 = vmatpush3.msra.mxu0 %v6969_v28  ;;  %11392 = vmatpush3.msra.mxu1 %v6969_v28 }
 0xc1e   :  { %11369 = vmatmul.mubr.msk.f32.vlgmr.msra.gmra.mxu0 %vm6971_vm13, %v6970_v40  ;;  %11371 = vmatprep.subr.mxu0 %v11545_v4  ;;  %v7883_v40 = vsub.s32 %v7880_v11, %v15224_v20  ;;  %v7999_v20 = vld [vmem:[%s11754_s30 + $0x70] sm:$0xff] }
 0xc1f   :  { %11372 = vmatpush3.msra.mxu0 %v6969_v28  ;;  %11373 = vmatprep.mubr.msk.f32.mxu0 %vm11546_vm7, %v11545_v4 }
 0xc20   :  { %11376 = vmatprep.subr.mxu0 %v11545_v4  ;;  %11401 = vmatprep.subr.mxu1 %v11545_v4 }
 0xc21   :  { %11394 = vmatmul.mubr.msk.f32.vlgmr.msra.gmra.mxu1 %vm6971_vm13, %v8829_v5  ;;  %v8839_v5 = vld [vmem:[%s16532_s26] ss:$0 sm:$0xff] }
 0xc22   :  { %11374 = vmatmul.mubr.msk.f32.vlgmr.msra.gmra.mxu0 %vm6971_vm13, %v8821_v16  ;;  %11402 = vmatpush3.msra.mxu1 %v6969_v28 }
 0xc23   :  { %11377 = vmatpush3.msra.mxu0 %v6969_v28  ;;  %11378 = vmatprep.mubr.msk.f32.mxu0 %vm11546_vm7, %v11545_v4 }
 0xc24   :  { %11381 = vmatprep.subr.mxu0 %v11545_v4  ;;  %11403 = vmatprep.mubr.msk.f32.mxu1 %vm11546_vm7, %v11545_v4 }
 0xc25   :  { %11404 = vmatmul.mubr.msk.f32.vlgmr.msra.gmra.mxu1 %vm6971_vm13, %v8833_v19  ;;  %11411 = vmatprep.subr.mxu1 %v11545_v4 }
 0xc26   :  { %11379 = vmatmul.mubr.msk.f32.vlgmr.msra.gmra.mxu0 %vm6971_vm13, %v8823_v49  ;;  %11417 = vmatprep.mubr.msk.f32.mxu1 %vm11546_vm7, %v11545_v4 }
 0xc27   :  { %11382 = vmatpush3.msra.mxu0 %v6969_v28  ;;  %11383 = vmatprep.mubr.msk.f32.mxu0 %vm11546_vm7, %v11545_v4 }
 0xc28   :  { %11386 = vmatprep.subr.mxu0 %v11545_v4  ;;  %11412 = vmatpush3.msra.mxu1 %v6877_v42  ;;  %v7998_v42 = vld [vmem:[%s11754_s30 + $0x68] sm:$0xff] }
 0xc29   :  { %11413 = vmatprep.subr.mxu1 %v11545_v4 }
 0xc2a   :  { %11384 = vmatmul.mubr.msk.f32.vlgmr.msra.gmra.mxu0 %vm6971_vm13, %v8825_v24  ;;  %11414 = vmatpush3.msra.mxu1 %v6876_v18  ;;  %v7997_v18 = vld [vmem:[%s11754_s30 + $0x60] sm:$0xff] }
 0xc2b   :  { %11387 = vmatpush3.msra.mxu0 %v6969_v28  ;;  %11388 = vmatprep.mubr.msk.f32.mxu0 %vm11546_vm7, %v11545_v4 }
 0xc2c   :  { %11396 = vmatprep.subr.mxu0 %v11545_v4  ;;  %11415 = vmatprep.subr.mxu1 %v11545_v4 }
 0xc2d   :  { %11416 = vmatpush3.msra.mxu1 %v6875_v39  ;;  %v7996_v39 = vld [vmem:[%s11754_s30 + $0x58] sm:$0xff] }
 0xc2e   :  { %11389 = vmatmul.mubr.msk.f32.vlgmr.msra.gmra.mxu0 %vm6971_vm13, %v8827_v13 }
 0xc2f   :  { %11397 = vmatpush3.msra.mxu0 %v6969_v28  ;;  %11398 = vmatprep.mubr.msk.f32.mxu0 %vm11546_vm7, %v11545_v4 }
 0xc30   :  { %11406 = vmatprep.subr.mxu0 %v11545_v4 }
 0xc32   :  { %11399 = vmatmul.mubr.msk.f32.vlgmr.msra.gmra.mxu0 %vm6971_vm13, %v8831_v25 }
 0xc33   :  { %11407 = vmatpush3.msra.mxu0 %v6969_v28  ;;  %11408 = vmatprep.mubr.msk.f32.mxu0 %vm11546_vm7, %v11545_v4 }
 0xc34   :  { %11420 = vmatprep.subr.mxu0 %v11545_v4 }
 0xc36   :  { %11409 = vmatmul.mubr.msk.f32.vlgmr.msra.gmra.mxu0 %vm6971_vm13, %v8835_v33 }
 0xc37   :  { %11421 = vmatpush3.msra.mxu0 %v6856_v22  ;;  %11422 = vmatprep.mubr.msk.f32.mxu0 %vm11546_vm7, %v11545_v4 }
 0xc38   :  { %8020 = vmatprep.subr.mxu0 %v11545_v4 }
 0xc3a   :  { %11423 = vmatmul.mubr.msk.f32.vlgmr.msra.gmra.mxu0 %vm6971_vm13, %v6880_v52  ;;  %v8000_v52 = vld [vmem:[%s11754_s30 + $0x78] sm:$0xff] }
 0xc3b   :  { %8021 = vmatpush1.msra.mxu0 %v8000_v52 }
 0xc3c   :  { %8022 = vmatprep.subr.mxu0 %v11545_v4 }
 0xc3d   :  { %8023 = vmatpush1.msra.mxu0 %v7999_v20 }
 0xc3e   :  { %8024 = vmatprep.subr.mxu0 %v11545_v4 }
 0xc3f   :  { %8025 = vmatpush1.msra.mxu0 %v7998_v42 }
 0xc40   :  { %8026 = vmatprep.subr.mxu0 %v11545_v4 }
 0xc41   :  { %8027 = vmatpush1.msra.mxu0 %v7997_v18 }
 0xc42   :  { %8028 = vmatprep.subr.mxu0 %v11545_v4 }
 0xc43   :  { %8029 = vmatpush1.msra.mxu0 %v7996_v39 }
 0xc44   :  { %8030 = vmatprep.subr.mxu0 %v11545_v4 }
 0xcde   :  { %v7041_v44 = vpop.f32.mrf.mxu0 }
 0xcdf   :  { %v7049_v59 = vmul.f32 %v7048_v31, %v7041_v44  ;;  %v7995_v44 = vld [vmem:[%s11754_s30 + $0x50] sm:$0xff] }
 0xce0   :  { %v11370_v60 = vpop.f32.mrf.mxu0  ;;  %8031 = vmatpush1.msra.mxu0 %v7995_v44  ;;  %v7987_v31 = vld [vmem:[%s11754_s30 + $0x10] sm:$0xff] }
 0xce1   :  { %v7445_v56 = vpop.f32.mrf.mxu1  ;;  %v7994_v60 = vld [vmem:[%s11754_s30 + $0x48] sm:$0xff]  ;;  %8032 = vmatprep.subr.mxu0 %v11545_v4 }
 0xce2   :  { %v7121_v32 = vpop.f32.mrf.mxu0  ;;  %v7453_v41 = vmul.f32 %v7452_v36, %v7445_v56  ;;  %v7993_v56 = vld [vmem:[%s11754_s30 + $0x40] sm:$0xff]  ;;  %8033 = vmatpush1.msra.mxu0 %v7994_v60 }
 0xce3   :  { %v11395_v45 = vpop.f32.mrf.mxu1  ;;  %v7129_v7 = vmul.f32 %v7128_v30, %v7121_v32  ;;  %8034 = vmatprep.subr.mxu0 %v11545_v4  ;;  %v7991_v32 = vld [vmem:[%s11754_s30 + $0x30] sm:$0xff]  ;;  %v7990_v30 = vld [vmem:[%s11754_s30 + $0x28] sm:$0xff] }
 0xce4   :  { %v11375_v6 = vpop.f32.mrf.mxu0  ;;  %8035 = vmatpush1.msra.mxu0 %v7993_v56  ;;  %v7989_v45 = vld [vmem:[%s11754_s30 + $0x20] sm:$0xff] }
 0xce5   :  { %v7607_v37 = vpop.f32.mrf.mxu1  ;;  %v7130_v0 = vadd.f32 %v7129_v7, %v7049_v59  ;;  %8036 = vmatprep.subr.mxu0 %v11545_v4  ;;  %v7988_v6 = vld [vmem:[%s11754_s30 + $0x18] sm:$0xff]  ;;  %v8007_v7 = vld [vmem:[%s11754_s30 + $0xb0] sm:$0xff] }
 0xce6   :  { %v7202_v9 = vpop.f32.mrf.mxu0  ;;  %v7615_v48 = vmul.f32 %v7614_v62, %v7607_v37  ;;  %8037 = vmatpush1.msra.mxu0 %v7992_v38  ;;  %v7985_v37 = vld [vmem:[%s11754_s30] sm:$0xff]  ;;  %v8003_v59 = vld [vmem:[%s11754_s30 + $0x90] sm:$0xff]  ;;  %v8002_v62 = vld [vmem:[%s11754_s30 + $0x88] sm:$0xff] }
 0xce7   :  { %v11405_v3 = vpop.f32.mrf.mxu1  ;;  %v7210_v23 = vmul.f32 %v7209_v57, %v7202_v9  ;;  %8038 = vmatprep.subr.mxu0 %v11545_v4  ;;  %v7986_v57 = vld [vmem:[%s11754_s30 + $0x8] sm:$0xff]  ;;  %v8008_v9 = vld [vmem:[%s11754_s30 + $0xb8] sm:$0xff] }
 0xce8   :  { %v11380_v1 = vpop.f32.mrf.mxu0  ;;  %8039 = vmatpush1.msra.mxu0 %v7991_v32  ;;  %v8005_v3 = vld [vmem:[%s11754_s30 + $0xa0] sm:$0xff] }
 0xce9   :  { %v7211_v35 = vadd.f32 %v7210_v23, %v7130_v0  ;;  %8040 = vmatprep.subr.mxu0 %v11545_v4  ;;  %v8004_v1 = vld [vmem:[%s11754_s30 + $0x98] sm:$0xff]  ;;  %v8841_v23 = vld [vmem:[%s16533_s1] ss:$0 sm:$0xff] }
 0xcea   :  { %v7283_v26 = vpop.f32.mrf.mxu0  ;;  %8041 = vmatpush1.msra.mxu0 %v7990_v30 }
 0xceb   :  { %v7291_v47 = vmul.f32 %v7290_v21, %v7283_v26  ;;  %8042 = vmatprep.subr.mxu0 %v11545_v4  ;;  %v8006_v21 = vld [vmem:[%s11754_s30 + $0xa8] sm:$0xff]  ;;  %v8842_v26 = vld [vmem:[%s16534_s2] ss:$0 sm:$0xff] }
 0xcec   :  { %v11385_v50 = vpop.f32.mrf.mxu0  ;;  %8043 = vmatpush1.msra.mxu0 %v7989_v45 }
 0xced   :  { %v7292_v29 = vadd.f32 %v7291_v47, %v7211_v35  ;;  %8044 = vmatprep.subr.mxu0 %v11545_v4 }
 0xcee   :  { %v7364_v10 = vpop.f32.mrf.mxu0  ;;  %8045 = vmatpush1.msra.mxu0 %v7988_v6 }
 0xcef   :  { %v7372_v8 = vmul.f32 %v7371_v2, %v7364_v10  ;;  %8046 = vmatprep.subr.mxu0 %v11545_v4 }
 0xcf0   :  { %v11390_v61 = vpop.f32.mrf.mxu0  ;;  %8047 = vmatpush1.msra.mxu0 %v7987_v31 }
 0xcf1   :  { %v7373_v34 = vadd.f32 %v7372_v8, %v7292_v29  ;;  %8048 = vmatprep.subr.mxu0 %v11545_v4  ;;  %v8001_v61 = vld [vmem:[%s11754_s30 + $0x80] sm:$0xff] }
 0xcf2   :  { %v7526_v12 = vpop.f32.mrf.mxu0  ;;  %8049 = vmatpush1.msra.mxu0 %v7986_v57 }
 0xcf3   :  { %v7454_v17 = vadd.f32 %v7453_v41, %v7373_v34  ;;  %v7534_v53 = vmul.f32 %v7533_v15, %v7526_v12  ;;  %8050 = vmatprep.subr.mxu0 %v11545_v4  ;;  %v7895_v41 = vld [vmem:[%s11749_s6] sm:$0x3]  ;;  %s11481_s6 = scalar_lea.vmem %s8099_s5, 32 }
 0xcf4   :  { %v11400_v22 = vpop.f32.mrf.mxu0  ;;  %8051 = vmatpush1.msra.mxu0 %v7985_v37  ;;  %p11482_p0 = scmp.ne.s32.totalorder %s8099_s5, %s11481_s6  ;;  %p11487_p2 = scmp.lt.s32.totalorder %s11481_s6, %s11481_s6 }
 0xcf5   :  { %v7535_v46 = vadd.f32 %v7534_v53, %v7454_v17  ;;  %8068 = vmatprep.subr.mxu0 %v11545_v4 }
 0xcf6   :  { %v7688_v51 = vpop.f32.mrf.mxu0  ;;  %8069 = vmatpush2.msra.mxu0 %v8008_v9  ;;  %p11488_p3 = por %p11487_p2, %p11486_p1 }
 0xcf7   :  { %v7616_v63 = vadd.f32 %v7615_v48, %v7535_v46  ;;  %v7696_v58 = vmul.f32 %v8837_v27, %v7688_v51  ;;  %8070 = vmatprep.subr.mxu0 %v11545_v4 }
 0xcf8   :  { %v11410_v43 = vpop.f32.mrf.mxu0  ;;  %8071 = vmatpush2.msra.mxu0 %v8007_v7  ;;  %p11489_p4 = pnand %p11488_p3, %p11482_p0 }
 0xcf9   :  { %v7697_v28 = vadd.f32 %v7696_v58, %v7616_v63  ;;  %8072 = vmatprep.subr.mxu0 %v11545_v4 }
 0xcfa   :  { %v7870_v16 = vpop.f32.mrf.mxu0  ;;  %8073 = vmatpush2.msra.mxu0 %v8006_v21 }
 0xcfb   :  { %v7704_v19 = vmul.f32 %v8838_v54, %v7697_v28  ;;  %v7874_v49 = vmax.f32 %v7870_v16, 0.0  ;;  %8074 = vmatprep.subr.mxu0 %v11545_v4 }
 0xcfc   :  { %v11424_v24 = vpop.f32.mrf.mxu0  ;;  %8075 = vmatpush2.msra.mxu0 %v8005_v3 }
 0xcfd   :  { %v7711_v13 = vadd.f32 %v8839_v5, %v7704_v19  ;;  %v7884_v25 = vrot.slane %v7874_v49, %v7883_v40  ;;  %8076 = vmatprep.subr.mxu0 %v11545_v4 }
 0xcfe   :  { %8077 = vmatpush2.msra.mxu0 %v8004_v1 }
 0xcff   :  { %v7712_v33 = vmax.f32 %v7711_v13, 0.0  ;;  %7885 = vrot.lane.b32.xlu1 %v7884_v25, %s11549_s28  ;;  %8078 = vmatprep.subr.mxu0 %v11545_v4 }
 0xd00   :  { %8079 = vmatpush2.msra.mxu0 %v8003_v59 }
 0xd01   :  { %11418 = vmatmul.mubr.msk.f32.vlgmr.msra.gmra.mxu1 %vm4365_vm2, %v7712_v33  ;;  %8080 = vmatprep.subr.mxu0 %v11545_v4  ;;  %vm7909_vm2 = vcmask 1041408  }
 0xd02   :  { %7978 = vmatprep.mubr.f32.mxu1 %v11545_v4  ;;  %8081 = vmatpush2.msra.mxu0 %v8002_v62 }
 0xd03   :  { %8082 = vmatprep.subr.mxu0 %v11545_v4 }
 0xd04   :  { %8083 = vmatpush2.msra.mxu0 %v8001_v61 }
 0xd71   :  { %v7886_v47 = vpop.permute.xlu1 %7885 }
 0xd72   :  { %v7887_v35 = vrot.slane %v7886_v47, 6 }
 0xd74   :  { %v7888_v15 = vsel %vm6881_vm12, %v7887_v35, %v7886_v47 }
 0xdc1   :  { %v7782_v0 = vpop.f32.mrf.mxu1 }
 0xdc2   :  { %v7792_v2 = vmul.f32 %v8841_v23, %v7782_v0 }
 0xdc3   :  { %v11419_v36 = vpop.f32.mrf.mxu1 }
 0xdc4   :  { %v7799_v50 = vadd.f32 %v8842_v26, %v7792_v2 }
 0xdc6   :  { %v7800_v10 = vmax.f32 %v7799_v50, 0.0 }
 0xdc8   :  { %7876 = vst.msk [vmem:[#allocation4] sm:$0x3] %vm7875_vm0, %v7800_v10 }
 0xdc9   :  { %7893 = vst.msk [vmem:[#allocation4] sm:$0xf] %vm7892_vm1, %v7888_v15 }
 0xdd0   :  { %v8844_v29 = vld.sshfl [vmem:[#allocation4] sm:$0x33 pattern:$0x76325410] }
 0xdd1   :  { %v7904_v8 = vcombine.high %v8844_v29, %v8844_v29 }
 0xdd3   :  { %8845 = vmatprep.subr.msk.mxu1 %vm7909_vm2, %v7904_v8 }
 0xdd4   :  { %8846 = vmatpush1.msk.msra.mxu1 %vm7909_vm2, %v8844_v29 }
 0xdd5   :  { %8847 = vmatmul.mubr.msk.f32.vlgmr.msra.gmra.mxu1 %vm7905_vm3, %v7895_v41 }
 0xe95   :  { %v7980_v34 = vpop.f32.mrf.mxu1 }
 0xe97   :  { %v7982_v14 = vpop.f32.mrf.mxu1 }
 0xe98   :  { %8849 = vmatprep.mubr.msk.f32.mxu0 %vm8016_vm4, %v7982_v14 }
 0xe99   :  { %8085 = vmatmul.mubr.f32.vlgmr.msra.gmra.mxu0 %v7980_v34 }
 0xf59   :  { %v8086_v12 = vpop.f32.mrf.mxu0 }
 0xf5a   :  { %v8087_v17 = vadd.f32 %v8848_v55, %v8086_v12 }
 0xf5b   :  { %v8088_v53 = vpop.f32.mrf.mxu0 }
 0xf5c   :  { %8091 = vst.msk [vmem:[#allocation5] sm:$0x3] %vm8090_vm5, %v8087_v17 }
 0xf5d   :  { %11492 = shalt.err (!%p11489_p4)
}
 0xf5e   :  { %8101 = dma.vmem_to_hbm [thread:$0]  %s8099_s5, 32, %s11764_s4, [#allocation6]  }
 0xf5f   :  { %11501 = dma.done.wait [#allocation6], 32  }
 0xf60   :  { %11502 = vsyncadd [#allocation6], 4294967264 }
 0xf61   :  { %8105 = vsyncpa [#allocation6], 1 }

</bundles_post_ra>
